<compile_context>
chip_gen: v6e
topology: v6e:2x2x1
jax: 0.10.0
libtpu: 0.0.40
codegen_flags: <defaults>
</compile_context>

<pallas_src>
import jax
import jax.numpy as jnp
from jax import lax
from jax.experimental import pallas as pl
from jax.experimental.pallas import tpu as pltpu

C, H, W = 4, 16, 16                  # channels, spatial
HP, WP = H + 2, W + 2                # zero-padded spatial (pad=1) -> 18x18
FLAT = HP * WP                       # 324: flattened padded plane
MARGIN = WP + 1                      # 19: max |3x3 tap offset| in flat coords
SEGIN = 384                          # per-batch input segment width (3*128)
QIN = MARGIN                         # plane offset inside the input segment
MIDW = FLAT + 2 * MARGIN             # 362: mid scratch width (plane at MARGIN)
EPS = 1e-5                           # nn.InstanceNorm2d default eps
_INV_HW = 1.0 / (H * W)

# flat-coordinate offsets of the 9 taps, ordered k = kh*3 + kw
_OFFS = tuple((kh - 1) * WP + (kw - 1) for kh in range(3) for kw in range(3))


def _masked_instance_norm(a, mask):
    """InstanceNorm (no affine, biased variance) over the H*W interior
    positions selected by `mask`; all other positions come out as 0."""
    mu = jnp.sum(a * mask, axis=-1, keepdims=True) * _INV_HW
    d = (a - mu) * mask
    var = jnp.sum(d * d, axis=-1, keepdims=True) * _INV_HW
    return d * lax.rsqrt(var + EPS)


def resblock_kernel(x_ref, mask_ref, w1_ref, b1_ref, w2_ref, b2_ref,
                    o_ref, mid_ref):
    # x_ref   : (C, B, SEGIN) f32  plane at lanes [QIN, QIN+FLAT), zeros outside
    # mask_ref: (1, FLAT)     f32  1.0 at the 256 interior positions
    # w*_ref  : (C*C*9,)      f32  SMEM, flattened (c_out, c_in, kh, kw)
    # b*_ref  : (C,)          f32  SMEM conv biases
    # o_ref   : (C, B, FLAT)  f32  output in flattened padded-plane coords
    # mid_ref : (C, B, MIDW)  f32  scratch; plane at [MARGIN, MARGIN+FLAT)
    B = x_ref.shape[1]
    mask = mask_ref[...]                                     # (1, FLAT)

    # zero the 19-lane margins of the scratch so conv2's edge taps read zeros
    zmargin = jnp.zeros((C, B, MARGIN), jnp.float32)
    mid_ref[:, :, :MARGIN] = zmargin
    mid_ref[:, :, MARGIN + FLAT:] = zmargin

    # ---------- stage 1: mid = relu(norm1(conv1(x))) ----------
    for co in range(C):
        acc = None
        for ci in range(C):
            for k, off in enumerate(_OFFS):
                w = w1_ref[co * C * 9 + ci * 9 + k]
                term = x_ref[ci, :, QIN + off:QIN + off + FLAT] * w
                acc = term if acc is None else acc + term
        mid = jnp.maximum(_masked_instance_norm(acc + b1_ref[co], mask), 0.0)
        mid_ref[co, :, MARGIN:MARGIN + FLAT] = mid           # zero halo kept

    # ---------- stage 2: out = relu(norm2(conv2(mid)) + residual) ----------
    for co in range(C):
        acc = None
        for ci in range(C):
            for k, off in enumerate(_OFFS):
                w = w2_ref[co * C * 9 + ci * 9 + k]
                term = mid_ref[ci, :, MARGIN + off:MARGIN + off + FLAT] * w
                acc = term if acc is None else acc + term
        y = _masked_instance_norm(acc + b2_ref[co], mask)
        residual = x_ref[co, :, QIN:QIN + FLAT]              # plane incl. halo
        o_ref[co] = jnp.maximum(y + residual, 0.0)


def residual_block(x, w1, b1, w2, b2, *, batch_block=64):
    N = x.shape[0]
    assert x.shape[1:] == (C, H, W)

    # Batch block: full-extent for small N (keeps BlockSpec dims == array
    # dims), a multiple of 8 otherwise; keep >=2 grid steps when possible so
    # the "parallel" axis can shard across v7x's two TensorCores.
    if N <= batch_block:
        B = N // 2 if (N >= 16 and N % 16 == 0) else N
    else:
        B = max(8, (batch_block // 8) * 8)
    Np = ((N + B - 1) // B) * B

    # wrapper-side layout plumbing (plain XLA)
    xp = jnp.pad(x.astype(jnp.float32),
                 ((0, Np - N), (0, 0), (1, 1), (1, 1)))      # (Np, C, 18, 18)
    xt = jnp.transpose(xp.reshape(Np, C, FLAT), (1, 0, 2))   # (C, Np, 324)
    x_seg = jnp.pad(xt, ((0, 0), (0, 0), (QIN, SEGIN - QIN - FLAT)))

    # interior (non-halo) mask over the flattened padded plane
    p = jnp.arange(FLAT)
    row, col = p // WP, p % WP
    interior = (row >= 1) & (row <= H) & (col >= 1) & (col <= W)
    mask = interior.astype(jnp.float32).reshape(1, FLAT)

    w1f = w1.astype(jnp.float32).reshape(-1)                 # (C*C*9,)
    w2f = w2.astype(jnp.float32).reshape(-1)
    b1f = b1.astype(jnp.float32)
    b2f = b2.astype(jnp.float32)

    out3 = pl.pallas_call(
        resblock_kernel,
        out_shape=jax.ShapeDtypeStruct((C, Np, FLAT), jnp.float32),
        grid=(Np // B,),
        in_specs=[
            pl.BlockSpec((C, B, SEGIN), lambda n: (0, n, 0)),       # x
            pl.BlockSpec((1, FLAT), lambda n: (0, 0)),              # mask
            pl.BlockSpec(memory_space=pltpu.MemorySpace.SMEM),      # w1
            pl.BlockSpec(memory_space=pltpu.MemorySpace.SMEM),      # b1
            pl.BlockSpec(memory_space=pltpu.MemorySpace.SMEM),      # w2
            pl.BlockSpec(memory_space=pltpu.MemorySpace.SMEM),      # b2
        ],
        out_specs=pl.BlockSpec((C, B, FLAT), lambda n: (0, n, 0)),
        scratch_shapes=[pltpu.VMEM((C, B, MIDW), jnp.float32)],
        compiler_params=pltpu.CompilerParams(
            dimension_semantics=("parallel",),
            vmem_limit_bytes=32 * 1024 * 1024),
    )(x_seg, mask, w1f, b1f, w2f, b2f)

    out = out3[:, :N, :].reshape(C, N, HP, WP)[:, :, 1:H + 1, 1:W + 1]
    return jnp.transpose(out, (1, 0, 2, 3))                  # (N, C, 16, 16)


# ------------------ parameter setup / reference (plain JAX) ------------------

def spectral_normalize(w, key, n_iter=1, eps=1e-12):
    """torch.nn.utils.spectral_norm semantics: one power iteration on the
    (C_out, C_in*k*k) weight matrix with a normalized random u."""
    # TODO(synk): torch keeps the power-iteration vector u persistent across
    # forward calls; here it is re-drawn once (fine for a single forward).
    c_out = w.shape[0]
    w_mat = w.reshape(c_out, -1)
    u = jax.random.normal(key, (c_out,), dtype=w.dtype)
    u = u / (jnp.linalg.norm(u) + eps)
    v = jnp.zeros((w_mat.shape[1],), w.dtype)
    for _ in range(n_iter):
        v = w_mat.T @ u
        v = v / (jnp.linalg.norm(v) + eps)
        u = w_mat @ v
        u = u / (jnp.linalg.norm(u) + eps)
    sigma = u @ (w_mat @ v)
    return w / sigma


def reference_forward(x, w1, b1, w2, b2):
    """Pure-JAX f32 reference of the ResidualBlock forward."""
    def conv(y, w, b):
        out = lax.conv_general_dilated(
            y, w, window_strides=(1, 1), padding="SAME",
            dimension_numbers=("NCHW", "OIHW", "NCHW"),
            precision=lax.Precision.HIGHEST)
        return out + b[None, :, None, None]

    def inorm(y):
        mu = jnp.mean(y, axis=(2, 3), keepdims=True)
        var = jnp.mean((y - mu) ** 2, axis=(2, 3), keepdims=True)
        return (y - mu) * lax.rsqrt(var + EPS)

    out = jax.nn.relu(inorm(conv(x, w1, b1)))
    out = inorm(conv(out, w2, b2))
    return jax.nn.relu(out + x)


if __name__ == "__main__":
    key = jax.random.PRNGKey(0)
    kx, kw1, kb1, kw2, kb2, ku1, ku2 = jax.random.split(key, 7)

    N = 2
    x = jax.random.normal(kx, (N, C, H, W), dtype=jnp.float32)

    fan_in = C * 3 * 3
    bound = 1.0 / (fan_in ** 0.5)
    w1 = jax.random.uniform(kw1, (C, C, 3, 3), jnp.float32, -bound, bound)
    b1 = jax.random.uniform(kb1, (C,), jnp.float32, -bound, bound)
    w2 = jax.random.uniform(kw2, (C, C, 3, 3), jnp.float32, -bound, bound)
    b2 = jax.random.uniform(kb2, (C,), jnp.float32, -bound, bound)

    # spectral_norm(conv) normalizes the weight before the convolution runs.
    w1 = spectral_normalize(w1, ku1)
    w2 = spectral_normalize(w2, ku2)

    # TODO(synk): SelfAttention branch not implemented (use_attention=False
    # default and the class is not provided in the module).

    out = residual_block(x, w1, b1, w2, b2)
    out = jax.block_until_ready(out)

    ref = reference_forward(x, w1, b1, w2, b2)
    assert out.shape == (N, C, H, W)
    err = float(jnp.max(jnp.abs(out - ref)))
    assert err < 2e-3, err

    print("KERNEL_OK")
</pallas_src>

<mosaic_0001>
module attributes {stable_mosaic.version = 11 : i64} {
  func.func @resblock_kernel(%arg0: i32, %arg1: memref<4x2x384xf32, #tpu.memory_space<vmem>>, %arg2: memref<1x324xf32, #tpu.memory_space<vmem>>, %arg3: memref<144xf32, #tpu.memory_space<smem>>, %arg4: memref<4xf32, #tpu.memory_space<smem>>, %arg5: memref<144xf32, #tpu.memory_space<smem>>, %arg6: memref<4xf32, #tpu.memory_space<smem>>, %arg7: memref<4x2x324xf32, #tpu.memory_space<vmem>>, %arg8: memref<4x2x362xf32, #tpu.memory_space<vmem>>) attributes {dimension_semantics = [#tpu.dimension_semantics<parallel>], iteration_bounds = array<i64: 1>, scalar_prefetch = 0 : i64, scratch_operands = 1 : i64, tpu.core_type = #tpu.core_type<tc>, window_params = [{transform_indices = @transform_0, window_bounds = array<i64: 4, 2, 384>}, {pipeline_mode = #tpu.pipeline_mode<synchronous>, transform_indices = @transform_1, window_bounds = array<i64: 1, 324>}, {transform_indices = @transform_2, window_bounds = array<i64: 144>}, {transform_indices = @transform_3, window_bounds = array<i64: 4>}, {transform_indices = @transform_4, window_bounds = array<i64: 144>}, {transform_indices = @transform_5, window_bounds = array<i64: 4>}, {transform_indices = @transform_6, window_bounds = array<i64: 4, 2, 324>}]} {
    %c0 = arith.constant 0 : index
    %c0_0 = arith.constant 0 : index
    %0 = vector.load %arg2[%c0, %c0_0] : memref<1x324xf32, #tpu.memory_space<vmem>>, vector<1x324xf32>
    %cst = arith.constant 0.000000e+00 : f32
    %1 = vector.broadcast %cst : f32 to vector<4x2x19xf32>
    %c0_1 = arith.constant 0 : index
    %c0_2 = arith.constant 0 : index
    %c0_3 = arith.constant 0 : index
    %2 = vector.load %arg8[%c0_1, %c0_2, %c0_3] : memref<4x2x362xf32, #tpu.memory_space<vmem>>, vector<4x2x19xf32>
    tpu.vector_store %arg8[%c0_1, %c0_2, %c0_3], %1 {strides = array<i32>} : memref<4x2x362xf32, #tpu.memory_space<vmem>>, vector<4x2x19xf32>,
    %c0_4 = arith.constant 0 : index
    %c0_5 = arith.constant 0 : index
    %c343 = arith.constant 343 : index
    %3 = vector.load %arg8[%c0_4, %c0_5, %c343] : memref<4x2x362xf32, #tpu.memory_space<vmem>>, vector<4x2x19xf32>
    tpu.vector_store %arg8[%c0_4, %c0_5, %c343], %1 {strides = array<i32>} : memref<4x2x362xf32, #tpu.memory_space<vmem>>, vector<4x2x19xf32>,
    %c0_6 = arith.constant 0 : index
    %4 = memref.load %arg3[%c0_6] : memref<144xf32, #tpu.memory_space<smem>>
    %c0_7 = arith.constant 0 : index
    %c0_8 = arith.constant 0 : index
    %c0_9 = arith.constant 0 : index
    %5 = vector.load %arg1[%c0_7, %c0_8, %c0_9] : memref<4x2x384xf32, #tpu.memory_space<vmem>>, vector<1x2x324xf32>
    %6 = vector.shape_cast %5 : vector<1x2x324xf32> to vector<2x324xf32>
    %7 = vector.broadcast %4 : f32 to vector<2x324xf32>
    %8 = arith.mulf %6, %7 : vector<2x324xf32>
    %c1 = arith.constant 1 : index
    %9 = memref.load %arg3[%c1] : memref<144xf32, #tpu.memory_space<smem>>
    %c0_10 = arith.constant 0 : index
    %c0_11 = arith.constant 0 : index
    %c1_12 = arith.constant 1 : index
    %10 = vector.load %arg1[%c0_10, %c0_11, %c1_12] : memref<4x2x384xf32, #tpu.memory_space<vmem>>, vector<1x2x324xf32>
    %11 = vector.shape_cast %10 : vector<1x2x324xf32> to vector<2x324xf32>
    %12 = vector.broadcast %9 : f32 to vector<2x324xf32>
    %13 = arith.mulf %11, %12 : vector<2x324xf32>
    %14 = arith.addf %8, %13 : vector<2x324xf32>
    %c2 = arith.constant 2 : index
    %15 = memref.load %arg3[%c2] : memref<144xf32, #tpu.memory_space<smem>>
    %c0_13 = arith.constant 0 : index
    %c0_14 = arith.constant 0 : index
    %c2_15 = arith.constant 2 : index
    %16 = vector.load %arg1[%c0_13, %c0_14, %c2_15] : memref<4x2x384xf32, #tpu.memory_space<vmem>>, vector<1x2x324xf32>
    %17 = vector.shape_cast %16 : vector<1x2x324xf32> to vector<2x324xf32>
    %18 = vector.broadcast %15 : f32 to vector<2x324xf32>
    %19 = arith.mulf %17, %18 : vector<2x324xf32>
    %20 = arith.addf %14, %19 : vector<2x324xf32>
    %c3 = arith.constant 3 : index
    %21 = memref.load %arg3[%c3] : memref<144xf32, #tpu.memory_space<smem>>
    %c0_16 = arith.constant 0 : index
    %c0_17 = arith.constant 0 : index
    %c18 = arith.constant 18 : index
    %22 = vector.load %arg1[%c0_16, %c0_17, %c18] : memref<4x2x384xf32, #tpu.memory_space<vmem>>, vector<1x2x324xf32>
    %23 = vector.shape_cast %22 : vector<1x2x324xf32> to vector<2x324xf32>
    %24 = vector.broadcast %21 : f32 to vector<2x324xf32>
    %25 = arith.mulf %23, %24 : vector<2x324xf32>
    %26 = arith.addf %20, %25 : vector<2x324xf32>
    %c4 = arith.constant 4 : index
    %27 = memref.load %arg3[%c4] : memref<144xf32, #tpu.memory_space<smem>>
    %c0_18 = arith.constant 0 : index
    %c0_19 = arith.constant 0 : index
    %c19 = arith.constant 19 : index
    %28 = vector.load %arg1[%c0_18, %c0_19, %c19] : memref<4x2x384xf32, #tpu.memory_space<vmem>>, vector<1x2x324xf32>
    %29 = vector.shape_cast %28 : vector<1x2x324xf32> to vector<2x324xf32>
    %30 = vector.broadcast %27 : f32 to vector<2x324xf32>
    %31 = arith.mulf %29, %30 : vector<2x324xf32>
    %32 = arith.addf %26, %31 : vector<2x324xf32>
    %c5 = arith.constant 5 : index
    %33 = memref.load %arg3[%c5] : memref<144xf32, #tpu.memory_space<smem>>
    %c0_20 = arith.constant 0 : index
    %c0_21 = arith.constant 0 : index
    %c20 = arith.constant 20 : index
    %34 = vector.load %arg1[%c0_20, %c0_21, %c20] : memref<4x2x384xf32, #tpu.memory_space<vmem>>, vector<1x2x324xf32>
    %35 = vector.shape_cast %34 : vector<1x2x324xf32> to vector<2x324xf32>
    %36 = vector.broadcast %33 : f32 to vector<2x324xf32>
    %37 = arith.mulf %35, %36 : vector<2x324xf32>
    %38 = arith.addf %32, %37 : vector<2x324xf32>
    %c6 = arith.constant 6 : index
    %39 = memref.load %arg3[%c6] : memref<144xf32, #tpu.memory_space<smem>>
    %c0_22 = arith.constant 0 : index
    %c0_23 = arith.constant 0 : index
    %c36 = arith.constant 36 : index
    %40 = vector.load %arg1[%c0_22, %c0_23, %c36] : memref<4x2x384xf32, #tpu.memory_space<vmem>>, vector<1x2x324xf32>
    %41 = vector.shape_cast %40 : vector<1x2x324xf32> to vector<2x324xf32>
    %42 = vector.broadcast %39 : f32 to vector<2x324xf32>
    %43 = arith.mulf %41, %42 : vector<2x324xf32>
    %44 = arith.addf %38, %43 : vector<2x324xf32>
    %c7 = arith.constant 7 : index
    %45 = memref.load %arg3[%c7] : memref<144xf32, #tpu.memory_space<smem>>
    %c0_24 = arith.constant 0 : index
    %c0_25 = arith.constant 0 : index
    %c37 = arith.constant 37 : index
    %46 = vector.load %arg1[%c0_24, %c0_25, %c37] : memref<4x2x384xf32, #tpu.memory_space<vmem>>, vector<1x2x324xf32>
    %47 = vector.shape_cast %46 : vector<1x2x324xf32> to vector<2x324xf32>
    %48 = vector.broadcast %45 : f32 to vector<2x324xf32>
    %49 = arith.mulf %47, %48 : vector<2x324xf32>
    %50 = arith.addf %44, %49 : vector<2x324xf32>
    %c8 = arith.constant 8 : index
    %51 = memref.load %arg3[%c8] : memref<144xf32, #tpu.memory_space<smem>>
    %c0_26 = arith.constant 0 : index
    %c0_27 = arith.constant 0 : index
    %c38 = arith.constant 38 : index
    %52 = vector.load %arg1[%c0_26, %c0_27, %c38] : memref<4x2x384xf32, #tpu.memory_space<vmem>>, vector<1x2x324xf32>
    %53 = vector.shape_cast %52 : vector<1x2x324xf32> to vector<2x324xf32>
    %54 = vector.broadcast %51 : f32 to vector<2x324xf32>
    %55 = arith.mulf %53, %54 : vector<2x324xf32>
    %56 = arith.addf %50, %55 : vector<2x324xf32>
    %c9 = arith.constant 9 : index
    %57 = memref.load %arg3[%c9] : memref<144xf32, #tpu.memory_space<smem>>
    %c1_28 = arith.constant 1 : index
    %c0_29 = arith.constant 0 : index
    %c0_30 = arith.constant 0 : index
    %58 = vector.load %arg1[%c1_28, %c0_29, %c0_30] : memref<4x2x384xf32, #tpu.memory_space<vmem>>, vector<1x2x324xf32>
    %59 = vector.shape_cast %58 : vector<1x2x324xf32> to vector<2x324xf32>
    %60 = vector.broadcast %57 : f32 to vector<2x324xf32>
    %61 = arith.mulf %59, %60 : vector<2x324xf32>
    %62 = arith.addf %56, %61 : vector<2x324xf32>
    %c10 = arith.constant 10 : index
    %63 = memref.load %arg3[%c10] : memref<144xf32, #tpu.memory_space<smem>>
    %c1_31 = arith.constant 1 : index
    %c0_32 = arith.constant 0 : index
    %c1_33 = arith.constant 1 : index
    %64 = vector.load %arg1[%c1_31, %c0_32, %c1_33] : memref<4x2x384xf32, #tpu.memory_space<vmem>>, vector<1x2x324xf32>
    %65 = vector.shape_cast %64 : vector<1x2x324xf32> to vector<2x324xf32>
    %66 = vector.broadcast %63 : f32 to vector<2x324xf32>
    %67 = arith.mulf %65, %66 : vector<2x324xf32>
    %68 = arith.addf %62, %67 : vector<2x324xf32>
    %c11 = arith.constant 11 : index
    %69 = memref.load %arg3[%c11] : memref<144xf32, #tpu.memory_space<smem>>
    %c1_34 = arith.constant 1 : index
    %c0_35 = arith.constant 0 : index
    %c2_36 = arith.constant 2 : index
    %70 = vector.load %arg1[%c1_34, %c0_35, %c2_36] : memref<4x2x384xf32, #tpu.memory_space<vmem>>, vector<1x2x324xf32>
    %71 = vector.shape_cast %70 : vector<1x2x324xf32> to vector<2x324xf32>
    %72 = vector.broadcast %69 : f32 to vector<2x324xf32>
    %73 = arith.mulf %71, %72 : vector<2x324xf32>
    %74 = arith.addf %68, %73 : vector<2x324xf32>
    %c12 = arith.constant 12 : index
    %75 = memref.load %arg3[%c12] : memref<144xf32, #tpu.memory_space<smem>>
    %c1_37 = arith.constant 1 : index
    %c0_38 = arith.constant 0 : index
    %c18_39 = arith.constant 18 : index
    %76 = vector.load %arg1[%c1_37, %c0_38, %c18_39] : memref<4x2x384xf32, #tpu.memory_space<vmem>>, vector<1x2x324xf32>
    %77 = vector.shape_cast %76 : vector<1x2x324xf32> to vector<2x324xf32>
    %78 = vector.broadcast %75 : f32 to vector<2x324xf32>
    %79 = arith.mulf %77, %78 : vector<2x324xf32>
    %80 = arith.addf %74, %79 : vector<2x324xf32>
    %c13 = arith.constant 13 : index
    %81 = memref.load %arg3[%c13] : memref<144xf32, #tpu.memory_space<smem>>
    %c1_40 = arith.constant 1 : index
    %c0_41 = arith.constant 0 : index
    %c19_42 = arith.constant 19 : index
    %82 = vector.load %arg1[%c1_40, %c0_41, %c19_42] : memref<4x2x384xf32, #tpu.memory_space<vmem>>, vector<1x2x324xf32>
    %83 = vector.shape_cast %82 : vector<1x2x324xf32> to vector<2x324xf32>
    %84 = vector.broadcast %81 : f32 to vector<2x324xf32>
    %85 = arith.mulf %83, %84 : vector<2x324xf32>
    %86 = arith.addf %80, %85 : vector<2x324xf32>
    %c14 = arith.constant 14 : index
    %87 = memref.load %arg3[%c14] : memref<144xf32, #tpu.memory_space<smem>>
    %c1_43 = arith.constant 1 : index
    %c0_44 = arith.constant 0 : index
    %c20_45 = arith.constant 20 : index
    %88 = vector.load %arg1[%c1_43, %c0_44, %c20_45] : memref<4x2x384xf32, #tpu.memory_space<vmem>>, vector<1x2x324xf32>
    %89 = vector.shape_cast %88 : vector<1x2x324xf32> to vector<2x324xf32>
    %90 = vector.broadcast %87 : f32 to vector<2x324xf32>
    %91 = arith.mulf %89, %90 : vector<2x324xf32>
    %92 = arith.addf %86, %91 : vector<2x324xf32>
    %c15 = arith.constant 15 : index
    %93 = memref.load %arg3[%c15] : memref<144xf32, #tpu.memory_space<smem>>
    %c1_46 = arith.constant 1 : index
    %c0_47 = arith.constant 0 : index
    %c36_48 = arith.constant 36 : index
    %94 = vector.load %arg1[%c1_46, %c0_47, %c36_48] : memref<4x2x384xf32, #tpu.memory_space<vmem>>, vector<1x2x324xf32>
    %95 = vector.shape_cast %94 : vector<1x2x324xf32> to vector<2x324xf32>
    %96 = vector.broadcast %93 : f32 to vector<2x324xf32>
    %97 = arith.mulf %95, %96 : vector<2x324xf32>
    %98 = arith.addf %92, %97 : vector<2x324xf32>
    %c16 = arith.constant 16 : index
    %99 = memref.load %arg3[%c16] : memref<144xf32, #tpu.memory_space<smem>>
    %c1_49 = arith.constant 1 : index
    %c0_50 = arith.constant 0 : index
    %c37_51 = arith.constant 37 : index
    %100 = vector.load %arg1[%c1_49, %c0_50, %c37_51] : memref<4x2x384xf32, #tpu.memory_space<vmem>>, vector<1x2x324xf32>
    %101 = vector.shape_cast %100 : vector<1x2x324xf32> to vector<2x324xf32>
    %102 = vector.broadcast %99 : f32 to vector<2x324xf32>
    %103 = arith.mulf %101, %102 : vector<2x324xf32>
    %104 = arith.addf %98, %103 : vector<2x324xf32>
    %c17 = arith.constant 17 : index
    %105 = memref.load %arg3[%c17] : memref<144xf32, #tpu.memory_space<smem>>
    %c1_52 = arith.constant 1 : index
    %c0_53 = arith.constant 0 : index
    %c38_54 = arith.constant 38 : index
    %106 = vector.load %arg1[%c1_52, %c0_53, %c38_54] : memref<4x2x384xf32, #tpu.memory_space<vmem>>, vector<1x2x324xf32>
    %107 = vector.shape_cast %106 : vector<1x2x324xf32> to vector<2x324xf32>
    %108 = vector.broadcast %105 : f32 to vector<2x324xf32>
    %109 = arith.mulf %107, %108 : vector<2x324xf32>
    %110 = arith.addf %104, %109 : vector<2x324xf32>
    %c18_55 = arith.constant 18 : index
    %111 = memref.load %arg3[%c18_55] : memref<144xf32, #tpu.memory_space<smem>>
    %c2_56 = arith.constant 2 : index
    %c0_57 = arith.constant 0 : index
    %c0_58 = arith.constant 0 : index
    %112 = vector.load %arg1[%c2_56, %c0_57, %c0_58] : memref<4x2x384xf32, #tpu.memory_space<vmem>>, vector<1x2x324xf32>
    %113 = vector.shape_cast %112 : vector<1x2x324xf32> to vector<2x324xf32>
    %114 = vector.broadcast %111 : f32 to vector<2x324xf32>
    %115 = arith.mulf %113, %114 : vector<2x324xf32>
    %116 = arith.addf %110, %115 : vector<2x324xf32>
    %c19_59 = arith.constant 19 : index
    %117 = memref.load %arg3[%c19_59] : memref<144xf32, #tpu.memory_space<smem>>
    %c2_60 = arith.constant 2 : index
    %c0_61 = arith.constant 0 : index
    %c1_62 = arith.constant 1 : index
    %118 = vector.load %arg1[%c2_60, %c0_61, %c1_62] : memref<4x2x384xf32, #tpu.memory_space<vmem>>, vector<1x2x324xf32>
    %119 = vector.shape_cast %118 : vector<1x2x324xf32> to vector<2x324xf32>
    %120 = vector.broadcast %117 : f32 to vector<2x324xf32>
    %121 = arith.mulf %119, %120 : vector<2x324xf32>
    %122 = arith.addf %116, %121 : vector<2x324xf32>
    %c20_63 = arith.constant 20 : index
    %123 = memref.load %arg3[%c20_63] : memref<144xf32, #tpu.memory_space<smem>>
    %c2_64 = arith.constant 2 : index
    %c0_65 = arith.constant 0 : index
    %c2_66 = arith.constant 2 : index
    %124 = vector.load %arg1[%c2_64, %c0_65, %c2_66] : memref<4x2x384xf32, #tpu.memory_space<vmem>>, vector<1x2x324xf32>
    %125 = vector.shape_cast %124 : vector<1x2x324xf32> to vector<2x324xf32>
    %126 = vector.broadcast %123 : f32 to vector<2x324xf32>
    %127 = arith.mulf %125, %126 : vector<2x324xf32>
    %128 = arith.addf %122, %127 : vector<2x324xf32>
    %c21 = arith.constant 21 : index
    %129 = memref.load %arg3[%c21] : memref<144xf32, #tpu.memory_space<smem>>
    %c2_67 = arith.constant 2 : index
    %c0_68 = arith.constant 0 : index
    %c18_69 = arith.constant 18 : index
    %130 = vector.load %arg1[%c2_67, %c0_68, %c18_69] : memref<4x2x384xf32, #tpu.memory_space<vmem>>, vector<1x2x324xf32>
    %131 = vector.shape_cast %130 : vector<1x2x324xf32> to vector<2x324xf32>
    %132 = vector.broadcast %129 : f32 to vector<2x324xf32>
    %133 = arith.mulf %131, %132 : vector<2x324xf32>
    %134 = arith.addf %128, %133 : vector<2x324xf32>
    %c22 = arith.constant 22 : index
    %135 = memref.load %arg3[%c22] : memref<144xf32, #tpu.memory_space<smem>>
    %c2_70 = arith.constant 2 : index
    %c0_71 = arith.constant 0 : index
    %c19_72 = arith.constant 19 : index
    %136 = vector.load %arg1[%c2_70, %c0_71, %c19_72] : memref<4x2x384xf32, #tpu.memory_space<vmem>>, vector<1x2x324xf32>
    %137 = vector.shape_cast %136 : vector<1x2x324xf32> to vector<2x324xf32>
    %138 = vector.broadcast %135 : f32 to vector<2x324xf32>
    %139 = arith.mulf %137, %138 : vector<2x324xf32>
    %140 = arith.addf %134, %139 : vector<2x324xf32>
    %c23 = arith.constant 23 : index
    %141 = memref.load %arg3[%c23] : memref<144xf32, #tpu.memory_space<smem>>
    %c2_73 = arith.constant 2 : index
    %c0_74 = arith.constant 0 : index
    %c20_75 = arith.constant 20 : index
    %142 = vector.load %arg1[%c2_73, %c0_74, %c20_75] : memref<4x2x384xf32, #tpu.memory_space<vmem>>, vector<1x2x324xf32>
    %143 = vector.shape_cast %142 : vector<1x2x324xf32> to vector<2x324xf32>
    %144 = vector.broadcast %141 : f32 to vector<2x324xf32>
    %145 = arith.mulf %143, %144 : vector<2x324xf32>
    %146 = arith.addf %140, %145 : vector<2x324xf32>
    %c24 = arith.constant 24 : index
    %147 = memref.load %arg3[%c24] : memref<144xf32, #tpu.memory_space<smem>>
    %c2_76 = arith.constant 2 : index
    %c0_77 = arith.constant 0 : index
    %c36_78 = arith.constant 36 : index
    %148 = vector.load %arg1[%c2_76, %c0_77, %c36_78] : memref<4x2x384xf32, #tpu.memory_space<vmem>>, vector<1x2x324xf32>
    %149 = vector.shape_cast %148 : vector<1x2x324xf32> to vector<2x324xf32>
    %150 = vector.broadcast %147 : f32 to vector<2x324xf32>
    %151 = arith.mulf %149, %150 : vector<2x324xf32>
    %152 = arith.addf %146, %151 : vector<2x324xf32>
    %c25 = arith.constant 25 : index
    %153 = memref.load %arg3[%c25] : memref<144xf32, #tpu.memory_space<smem>>
    %c2_79 = arith.constant 2 : index
    %c0_80 = arith.constant 0 : index
    %c37_81 = arith.constant 37 : index
    %154 = vector.load %arg1[%c2_79, %c0_80, %c37_81] : memref<4x2x384xf32, #tpu.memory_space<vmem>>, vector<1x2x324xf32>
    %155 = vector.shape_cast %154 : vector<1x2x324xf32> to vector<2x324xf32>
    %156 = vector.broadcast %153 : f32 to vector<2x324xf32>
    %157 = arith.mulf %155, %156 : vector<2x324xf32>
    %158 = arith.addf %152, %157 : vector<2x324xf32>
    %c26 = arith.constant 26 : index
    %159 = memref.load %arg3[%c26] : memref<144xf32, #tpu.memory_space<smem>>
    %c2_82 = arith.constant 2 : index
    %c0_83 = arith.constant 0 : index
    %c38_84 = arith.constant 38 : index
    %160 = vector.load %arg1[%c2_82, %c0_83, %c38_84] : memref<4x2x384xf32, #tpu.memory_space<vmem>>, vector<1x2x324xf32>
    %161 = vector.shape_cast %160 : vector<1x2x324xf32> to vector<2x324xf32>
    %162 = vector.broadcast %159 : f32 to vector<2x324xf32>
    %163 = arith.mulf %161, %162 : vector<2x324xf32>
    %164 = arith.addf %158, %163 : vector<2x324xf32>
    %c27 = arith.constant 27 : index
    %165 = memref.load %arg3[%c27] : memref<144xf32, #tpu.memory_space<smem>>
    %c3_85 = arith.constant 3 : index
    %c0_86 = arith.constant 0 : index
    %c0_87 = arith.constant 0 : index
    %166 = vector.load %arg1[%c3_85, %c0_86, %c0_87] : memref<4x2x384xf32, #tpu.memory_space<vmem>>, vector<1x2x324xf32>
    %167 = vector.shape_cast %166 : vector<1x2x324xf32> to vector<2x324xf32>
    %168 = vector.broadcast %165 : f32 to vector<2x324xf32>
    %169 = arith.mulf %167, %168 : vector<2x324xf32>
    %170 = arith.addf %164, %169 : vector<2x324xf32>
    %c28 = arith.constant 28 : index
    %171 = memref.load %arg3[%c28] : memref<144xf32, #tpu.memory_space<smem>>
    %c3_88 = arith.constant 3 : index
    %c0_89 = arith.constant 0 : index
    %c1_90 = arith.constant 1 : index
    %172 = vector.load %arg1[%c3_88, %c0_89, %c1_90] : memref<4x2x384xf32, #tpu.memory_space<vmem>>, vector<1x2x324xf32>
    %173 = vector.shape_cast %172 : vector<1x2x324xf32> to vector<2x324xf32>
    %174 = vector.broadcast %171 : f32 to vector<2x324xf32>
    %175 = arith.mulf %173, %174 : vector<2x324xf32>
    %176 = arith.addf %170, %175 : vector<2x324xf32>
    %c29 = arith.constant 29 : index
    %177 = memref.load %arg3[%c29] : memref<144xf32, #tpu.memory_space<smem>>
    %c3_91 = arith.constant 3 : index
    %c0_92 = arith.constant 0 : index
    %c2_93 = arith.constant 2 : index
    %178 = vector.load %arg1[%c3_91, %c0_92, %c2_93] : memref<4x2x384xf32, #tpu.memory_space<vmem>>, vector<1x2x324xf32>
    %179 = vector.shape_cast %178 : vector<1x2x324xf32> to vector<2x324xf32>
    %180 = vector.broadcast %177 : f32 to vector<2x324xf32>
    %181 = arith.mulf %179, %180 : vector<2x324xf32>
    %182 = arith.addf %176, %181 : vector<2x324xf32>
    %c30 = arith.constant 30 : index
    %183 = memref.load %arg3[%c30] : memref<144xf32, #tpu.memory_space<smem>>
    %c3_94 = arith.constant 3 : index
    %c0_95 = arith.constant 0 : index
    %c18_96 = arith.constant 18 : index
    %184 = vector.load %arg1[%c3_94, %c0_95, %c18_96] : memref<4x2x384xf32, #tpu.memory_space<vmem>>, vector<1x2x324xf32>
    %185 = vector.shape_cast %184 : vector<1x2x324xf32> to vector<2x324xf32>
    %186 = vector.broadcast %183 : f32 to vector<2x324xf32>
    %187 = arith.mulf %185, %186 : vector<2x324xf32>
    %188 = arith.addf %182, %187 : vector<2x324xf32>
    %c31 = arith.constant 31 : index
    %189 = memref.load %arg3[%c31] : memref<144xf32, #tpu.memory_space<smem>>
    %c3_97 = arith.constant 3 : index
    %c0_98 = arith.constant 0 : index
    %c19_99 = arith.constant 19 : index
    %190 = vector.load %arg1[%c3_97, %c0_98, %c19_99] : memref<4x2x384xf32, #tpu.memory_space<vmem>>, vector<1x2x324xf32>
    %191 = vector.shape_cast %190 : vector<1x2x324xf32> to vector<2x324xf32>
    %192 = vector.broadcast %189 : f32 to vector<2x324xf32>
    %193 = arith.mulf %191, %192 : vector<2x324xf32>
    %194 = arith.addf %188, %193 : vector<2x324xf32>
    %c32 = arith.constant 32 : index
    %195 = memref.load %arg3[%c32] : memref<144xf32, #tpu.memory_space<smem>>
    %c3_100 = arith.constant 3 : index
    %c0_101 = arith.constant 0 : index
    %c20_102 = arith.constant 20 : index
    %196 = vector.load %arg1[%c3_100, %c0_101, %c20_102] : memref<4x2x384xf32, #tpu.memory_space<vmem>>, vector<1x2x324xf32>
    %197 = vector.shape_cast %196 : vector<1x2x324xf32> to vector<2x324xf32>
    %198 = vector.broadcast %195 : f32 to vector<2x324xf32>
    %199 = arith.mulf %197, %198 : vector<2x324xf32>
    %200 = arith.addf %194, %199 : vector<2x324xf32>
    %c33 = arith.constant 33 : index
    %201 = memref.load %arg3[%c33] : memref<144xf32, #tpu.memory_space<smem>>
    %c3_103 = arith.constant 3 : index
    %c0_104 = arith.constant 0 : index
    %c36_105 = arith.constant 36 : index
    %202 = vector.load %arg1[%c3_103, %c0_104, %c36_105] : memref<4x2x384xf32, #tpu.memory_space<vmem>>, vector<1x2x324xf32>
    %203 = vector.shape_cast %202 : vector<1x2x324xf32> to vector<2x324xf32>
    %204 = vector.broadcast %201 : f32 to vector<2x324xf32>
    %205 = arith.mulf %203, %204 : vector<2x324xf32>
    %206 = arith.addf %200, %205 : vector<2x324xf32>
    %c34 = arith.constant 34 : index
    %207 = memref.load %arg3[%c34] : memref<144xf32, #tpu.memory_space<smem>>
    %c3_106 = arith.constant 3 : index
    %c0_107 = arith.constant 0 : index
    %c37_108 = arith.constant 37 : index
    %208 = vector.load %arg1[%c3_106, %c0_107, %c37_108] : memref<4x2x384xf32, #tpu.memory_space<vmem>>, vector<1x2x324xf32>
    %209 = vector.shape_cast %208 : vector<1x2x324xf32> to vector<2x324xf32>
    %210 = vector.broadcast %207 : f32 to vector<2x324xf32>
    %211 = arith.mulf %209, %210 : vector<2x324xf32>
    %212 = arith.addf %206, %211 : vector<2x324xf32>
    %c35 = arith.constant 35 : index
    %213 = memref.load %arg3[%c35] : memref<144xf32, #tpu.memory_space<smem>>
    %c3_109 = arith.constant 3 : index
    %c0_110 = arith.constant 0 : index
    %c38_111 = arith.constant 38 : index
    %214 = vector.load %arg1[%c3_109, %c0_110, %c38_111] : memref<4x2x384xf32, #tpu.memory_space<vmem>>, vector<1x2x324xf32>
    %215 = vector.shape_cast %214 : vector<1x2x324xf32> to vector<2x324xf32>
    %216 = vector.broadcast %213 : f32 to vector<2x324xf32>
    %217 = arith.mulf %215, %216 : vector<2x324xf32>
    %218 = arith.addf %212, %217 : vector<2x324xf32>
    %c0_112 = arith.constant 0 : index
    %219 = memref.load %arg4[%c0_112] : memref<4xf32, #tpu.memory_space<smem>>
    %220 = vector.broadcast %219 : f32 to vector<2x324xf32>
    %221 = arith.addf %218, %220 : vector<2x324xf32>
    %222 = vector.broadcast %0 : vector<1x324xf32> to vector<2x324xf32>
    %223 = arith.mulf %221, %222 : vector<2x324xf32>
    %cst_113 = arith.constant dense<0.000000e+00> : vector<2xf32>
    %224 = vector.multi_reduction <add>, %223, %cst_113 [1] : vector<2x324xf32> to vector<2xf32>
    %225 = vector.shape_cast %224 : vector<2xf32> to vector<2x1xf32>
    %cst_114 = arith.constant 3.906250e-03 : f32
    %226 = vector.broadcast %cst_114 : f32 to vector<2x1xf32>
    %227 = arith.mulf %225, %226 : vector<2x1xf32>
    %228 = vector.broadcast %227 : vector<2x1xf32> to vector<2x324xf32>
    %229 = arith.subf %221, %228 : vector<2x324xf32>
    %230 = vector.broadcast %0 : vector<1x324xf32> to vector<2x324xf32>
    %231 = arith.mulf %229, %230 : vector<2x324xf32>
    %232 = arith.mulf %231, %231 : vector<2x324xf32>
    %cst_115 = arith.constant dense<0.000000e+00> : vector<2xf32>
    %233 = vector.multi_reduction <add>, %232, %cst_115 [1] : vector<2x324xf32> to vector<2xf32>
    %234 = vector.shape_cast %233 : vector<2xf32> to vector<2x1xf32>
    %cst_116 = arith.constant 3.906250e-03 : f32
    %235 = vector.broadcast %cst_116 : f32 to vector<2x1xf32>
    %236 = arith.mulf %234, %235 : vector<2x1xf32>
    %cst_117 = arith.constant 9.99999974E-6 : f32
    %237 = vector.broadcast %cst_117 : f32 to vector<2x1xf32>
    %238 = arith.addf %236, %237 : vector<2x1xf32>
    %239 = math.rsqrt %238 : vector<2x1xf32>
    %240 = vector.broadcast %239 : vector<2x1xf32> to vector<2x324xf32>
    %241 = arith.mulf %231, %240 : vector<2x324xf32>
    %cst_118 = arith.constant 0.000000e+00 : f32
    %242 = vector.broadcast %cst_118 : f32 to vector<2x324xf32>
    %243 = arith.maximumf %241, %242 : vector<2x324xf32>
    %c0_119 = arith.constant 0 : index
    %c0_120 = arith.constant 0 : index
    %c19_121 = arith.constant 19 : index
    %244 = vector.load %arg8[%c0_119, %c0_120, %c19_121] : memref<4x2x362xf32, #tpu.memory_space<vmem>>, vector<1x2x324xf32>
    %245 = vector.shape_cast %244 : vector<1x2x324xf32> to vector<2x324xf32>
    %246 = vector.shape_cast %243 : vector<2x324xf32> to vector<1x2x324xf32>
    tpu.vector_store %arg8[%c0_119, %c0_120, %c19_121], %246 {strides = array<i32>} : memref<4x2x362xf32, #tpu.memory_space<vmem>>, vector<1x2x324xf32>,
    %c36_122 = arith.constant 36 : index
    %247 = memref.load %arg3[%c36_122] : memref<144xf32, #tpu.memory_space<smem>>
    %c0_123 = arith.constant 0 : index
    %c0_124 = arith.constant 0 : index
    %c0_125 = arith.constant 0 : index
    %248 = vector.load %arg1[%c0_123, %c0_124, %c0_125] : memref<4x2x384xf32, #tpu.memory_space<vmem>>, vector<1x2x324xf32>
    %249 = vector.shape_cast %248 : vector<1x2x324xf32> to vector<2x324xf32>
    %250 = vector.broadcast %247 : f32 to vector<2x324xf32>
    %251 = arith.mulf %249, %250 : vector<2x324xf32>
    %c37_126 = arith.constant 37 : index
    %252 = memref.load %arg3[%c37_126] : memref<144xf32, #tpu.memory_space<smem>>
    %c0_127 = arith.constant 0 : index
    %c0_128 = arith.constant 0 : index
    %c1_129 = arith.constant 1 : index
    %253 = vector.load %arg1[%c0_127, %c0_128, %c1_129] : memref<4x2x384xf32, #tpu.memory_space<vmem>>, vector<1x2x324xf32>
    %254 = vector.shape_cast %253 : vector<1x2x324xf32> to vector<2x324xf32>
    %255 = vector.broadcast %252 : f32 to vector<2x324xf32>
    %256 = arith.mulf %254, %255 : vector<2x324xf32>
    %257 = arith.addf %251, %256 : vector<2x324xf32>
    %c38_130 = arith.constant 38 : index
    %258 = memref.load %arg3[%c38_130] : memref<144xf32, #tpu.memory_space<smem>>
    %c0_131 = arith.constant 0 : index
    %c0_132 = arith.constant 0 : index
    %c2_133 = arith.constant 2 : index
    %259 = vector.load %arg1[%c0_131, %c0_132, %c2_133] : memref<4x2x384xf32, #tpu.memory_space<vmem>>, vector<1x2x324xf32>
    %260 = vector.shape_cast %259 : vector<1x2x324xf32> to vector<2x324xf32>
    %261 = vector.broadcast %258 : f32 to vector<2x324xf32>
    %262 = arith.mulf %260, %261 : vector<2x324xf32>
    %263 = arith.addf %257, %262 : vector<2x324xf32>
    %c39 = arith.constant 39 : index
    %264 = memref.load %arg3[%c39] : memref<144xf32, #tpu.memory_space<smem>>
    %c0_134 = arith.constant 0 : index
    %c0_135 = arith.constant 0 : index
    %c18_136 = arith.constant 18 : index
    %265 = vector.load %arg1[%c0_134, %c0_135, %c18_136] : memref<4x2x384xf32, #tpu.memory_space<vmem>>, vector<1x2x324xf32>
    %266 = vector.shape_cast %265 : vector<1x2x324xf32> to vector<2x324xf32>
    %267 = vector.broadcast %264 : f32 to vector<2x324xf32>
    %268 = arith.mulf %266, %267 : vector<2x324xf32>
    %269 = arith.addf %263, %268 : vector<2x324xf32>
    %c40 = arith.constant 40 : index
    %270 = memref.load %arg3[%c40] : memref<144xf32, #tpu.memory_space<smem>>
    %c0_137 = arith.constant 0 : index
    %c0_138 = arith.constant 0 : index
    %c19_139 = arith.constant 19 : index
    %271 = vector.load %arg1[%c0_137, %c0_138, %c19_139] : memref<4x2x384xf32, #tpu.memory_space<vmem>>, vector<1x2x324xf32>
    %272 = vector.shape_cast %271 : vector<1x2x324xf32> to vector<2x324xf32>
    %273 = vector.broadcast %270 : f32 to vector<2x324xf32>
    %274 = arith.mulf %272, %273 : vector<2x324xf32>
    %275 = arith.addf %269, %274 : vector<2x324xf32>
    %c41 = arith.constant 41 : index
    %276 = memref.load %arg3[%c41] : memref<144xf32, #tpu.memory_space<smem>>
    %c0_140 = arith.constant 0 : index
    %c0_141 = arith.constant 0 : index
    %c20_142 = arith.constant 20 : index
    %277 = vector.load %arg1[%c0_140, %c0_141, %c20_142] : memref<4x2x384xf32, #tpu.memory_space<vmem>>, vector<1x2x324xf32>
    %278 = vector.shape_cast %277 : vector<1x2x324xf32> to vector<2x324xf32>
    %279 = vector.broadcast %276 : f32 to vector<2x324xf32>
    %280 = arith.mulf %278, %279 : vector<2x324xf32>
    %281 = arith.addf %275, %280 : vector<2x324xf32>
    %c42 = arith.constant 42 : index
    %282 = memref.load %arg3[%c42] : memref<144xf32, #tpu.memory_space<smem>>
    %c0_143 = arith.constant 0 : index
    %c0_144 = arith.constant 0 : index
    %c36_145 = arith.constant 36 : index
    %283 = vector.load %arg1[%c0_143, %c0_144, %c36_145] : memref<4x2x384xf32, #tpu.memory_space<vmem>>, vector<1x2x324xf32>
    %284 = vector.shape_cast %283 : vector<1x2x324xf32> to vector<2x324xf32>
    %285 = vector.broadcast %282 : f32 to vector<2x324xf32>
    %286 = arith.mulf %284, %285 : vector<2x324xf32>
    %287 = arith.addf %281, %286 : vector<2x324xf32>
    %c43 = arith.constant 43 : index
    %288 = memref.load %arg3[%c43] : memref<144xf32, #tpu.memory_space<smem>>
    %c0_146 = arith.constant 0 : index
    %c0_147 = arith.constant 0 : index
    %c37_148 = arith.constant 37 : index
    %289 = vector.load %arg1[%c0_146, %c0_147, %c37_148] : memref<4x2x384xf32, #tpu.memory_space<vmem>>, vector<1x2x324xf32>
    %290 = vector.shape_cast %289 : vector<1x2x324xf32> to vector<2x324xf32>
    %291 = vector.broadcast %288 : f32 to vector<2x324xf32>
    %292 = arith.mulf %290, %291 : vector<2x324xf32>
    %293 = arith.addf %287, %292 : vector<2x324xf32>
    %c44 = arith.constant 44 : index
    %294 = memref.load %arg3[%c44] : memref<144xf32, #tpu.memory_space<smem>>
    %c0_149 = arith.constant 0 : index
    %c0_150 = arith.constant 0 : index
    %c38_151 = arith.constant 38 : index
    %295 = vector.load %arg1[%c0_149, %c0_150, %c38_151] : memref<4x2x384xf32, #tpu.memory_space<vmem>>, vector<1x2x324xf32>
    %296 = vector.shape_cast %295 : vector<1x2x324xf32> to vector<2x324xf32>
    %297 = vector.broadcast %294 : f32 to vector<2x324xf32>
    %298 = arith.mulf %296, %297 : vector<2x324xf32>
    %299 = arith.addf %293, %298 : vector<2x324xf32>
    %c45 = arith.constant 45 : index
    %300 = memref.load %arg3[%c45] : memref<144xf32, #tpu.memory_space<smem>>
    %c1_152 = arith.constant 1 : index
    %c0_153 = arith.constant 0 : index
    %c0_154 = arith.constant 0 : index
    %301 = vector.load %arg1[%c1_152, %c0_153, %c0_154] : memref<4x2x384xf32, #tpu.memory_space<vmem>>, vector<1x2x324xf32>
    %302 = vector.shape_cast %301 : vector<1x2x324xf32> to vector<2x324xf32>
    %303 = vector.broadcast %300 : f32 to vector<2x324xf32>
    %304 = arith.mulf %302, %303 : vector<2x324xf32>
    %305 = arith.addf %299, %304 : vector<2x324xf32>
    %c46 = arith.constant 46 : index
    %306 = memref.load %arg3[%c46] : memref<144xf32, #tpu.memory_space<smem>>
    %c1_155 = arith.constant 1 : index
    %c0_156 = arith.constant 0 : index
    %c1_157 = arith.constant 1 : index
    %307 = vector.load %arg1[%c1_155, %c0_156, %c1_157] : memref<4x2x384xf32, #tpu.memory_space<vmem>>, vector<1x2x324xf32>
    %308 = vector.shape_cast %307 : vector<1x2x324xf32> to vector<2x324xf32>
    %309 = vector.broadcast %306 : f32 to vector<2x324xf32>
    %310 = arith.mulf %308, %309 : vector<2x324xf32>
    %311 = arith.addf %305, %310 : vector<2x324xf32>
    %c47 = arith.constant 47 : index
    %312 = memref.load %arg3[%c47] : memref<144xf32, #tpu.memory_space<smem>>
    %c1_158 = arith.constant 1 : index
    %c0_159 = arith.constant 0 : index
    %c2_160 = arith.constant 2 : index
    %313 = vector.load %arg1[%c1_158, %c0_159, %c2_160] : memref<4x2x384xf32, #tpu.memory_space<vmem>>, vector<1x2x324xf32>
    %314 = vector.shape_cast %313 : vector<1x2x324xf32> to vector<2x324xf32>
    %315 = vector.broadcast %312 : f32 to vector<2x324xf32>
    %316 = arith.mulf %314, %315 : vector<2x324xf32>
    %317 = arith.addf %311, %316 : vector<2x324xf32>
    %c48 = arith.constant 48 : index
    %318 = memref.load %arg3[%c48] : memref<144xf32, #tpu.memory_space<smem>>
    %c1_161 = arith.constant 1 : index
    %c0_162 = arith.constant 0 : index
    %c18_163 = arith.constant 18 : index
    %319 = vector.load %arg1[%c1_161, %c0_162, %c18_163] : memref<4x2x384xf32, #tpu.memory_space<vmem>>, vector<1x2x324xf32>
    %320 = vector.shape_cast %319 : vector<1x2x324xf32> to vector<2x324xf32>
    %321 = vector.broadcast %318 : f32 to vector<2x324xf32>
    %322 = arith.mulf %320, %321 : vector<2x324xf32>
    %323 = arith.addf %317, %322 : vector<2x324xf32>
    %c49 = arith.constant 49 : index
    %324 = memref.load %arg3[%c49] : memref<144xf32, #tpu.memory_space<smem>>
    %c1_164 = arith.constant 1 : index
    %c0_165 = arith.constant 0 : index
    %c19_166 = arith.constant 19 : index
    %325 = vector.load %arg1[%c1_164, %c0_165, %c19_166] : memref<4x2x384xf32, #tpu.memory_space<vmem>>, vector<1x2x324xf32>
    %326 = vector.shape_cast %325 : vector<1x2x324xf32> to vector<2x324xf32>
    %327 = vector.broadcast %324 : f32 to vector<2x324xf32>
    %328 = arith.mulf %326, %327 : vector<2x324xf32>
    %329 = arith.addf %323, %328 : vector<2x324xf32>
    %c50 = arith.constant 50 : index
    %330 = memref.load %arg3[%c50] : memref<144xf32, #tpu.memory_space<smem>>
    %c1_167 = arith.constant 1 : index
    %c0_168 = arith.constant 0 : index
    %c20_169 = arith.constant 20 : index
    %331 = vector.load %arg1[%c1_167, %c0_168, %c20_169] : memref<4x2x384xf32, #tpu.memory_space<vmem>>, vector<1x2x324xf32>
    %332 = vector.shape_cast %331 : vector<1x2x324xf32> to vector<2x324xf32>
    %333 = vector.broadcast %330 : f32 to vector<2x324xf32>
    %334 = arith.mulf %332, %333 : vector<2x324xf32>
    %335 = arith.addf %329, %334 : vector<2x324xf32>
    %c51 = arith.constant 51 : index
    %336 = memref.load %arg3[%c51] : memref<144xf32, #tpu.memory_space<smem>>
    %c1_170 = arith.constant 1 : index
    %c0_171 = arith.constant 0 : index
    %c36_172 = arith.constant 36 : index
    %337 = vector.load %arg1[%c1_170, %c0_171, %c36_172] : memref<4x2x384xf32, #tpu.memory_space<vmem>>, vector<1x2x324xf32>
    %338 = vector.shape_cast %337 : vector<1x2x324xf32> to vector<2x324xf32>
    %339 = vector.broadcast %336 : f32 to vector<2x324xf32>
    %340 = arith.mulf %338, %339 : vector<2x324xf32>
    %341 = arith.addf %335, %340 : vector<2x324xf32>
    %c52 = arith.constant 52 : index
    %342 = memref.load %arg3[%c52] : memref<144xf32, #tpu.memory_space<smem>>
    %c1_173 = arith.constant 1 : index
    %c0_174 = arith.constant 0 : index
    %c37_175 = arith.constant 37 : index
    %343 = vector.load %arg1[%c1_173, %c0_174, %c37_175] : memref<4x2x384xf32, #tpu.memory_space<vmem>>, vector<1x2x324xf32>
    %344 = vector.shape_cast %343 : vector<1x2x324xf32> to vector<2x324xf32>
    %345 = vector.broadcast %342 : f32 to vector<2x324xf32>
    %346 = arith.mulf %344, %345 : vector<2x324xf32>
    %347 = arith.addf %341, %346 : vector<2x324xf32>
    %c53 = arith.constant 53 : index
    %348 = memref.load %arg3[%c53] : memref<144xf32, #tpu.memory_space<smem>>
    %c1_176 = arith.constant 1 : index
    %c0_177 = arith.constant 0 : index
    %c38_178 = arith.constant 38 : index
    %349 = vector.load %arg1[%c1_176, %c0_177, %c38_178] : memref<4x2x384xf32, #tpu.memory_space<vmem>>, vector<1x2x324xf32>
    %350 = vector.shape_cast %349 : vector<1x2x324xf32> to vector<2x324xf32>
    %351 = vector.broadcast %348 : f32 to vector<2x324xf32>
    %352 = arith.mulf %350, %351 : vector<2x324xf32>
    %353 = arith.addf %347, %352 : vector<2x324xf32>
    %c54 = arith.constant 54 : index
    %354 = memref.load %arg3[%c54] : memref<144xf32, #tpu.memory_space<smem>>
    %c2_179 = arith.constant 2 : index
    %c0_180 = arith.constant 0 : index
    %c0_181 = arith.constant 0 : index
    %355 = vector.load %arg1[%c2_179, %c0_180, %c0_181] : memref<4x2x384xf32, #tpu.memory_space<vmem>>, vector<1x2x324xf32>
    %356 = vector.shape_cast %355 : vector<1x2x324xf32> to vector<2x324xf32>
    %357 = vector.broadcast %354 : f32 to vector<2x324xf32>
    %358 = arith.mulf %356, %357 : vector<2x324xf32>
    %359 = arith.addf %353, %358 : vector<2x324xf32>
    %c55 = arith.constant 55 : index
    %360 = memref.load %arg3[%c55] : memref<144xf32, #tpu.memory_space<smem>>
    %c2_182 = arith.constant 2 : index
    %c0_183 = arith.constant 0 : index
    %c1_184 = arith.constant 1 : index
    %361 = vector.load %arg1[%c2_182, %c0_183, %c1_184] : memref<4x2x384xf32, #tpu.memory_space<vmem>>, vector<1x2x324xf32>
    %362 = vector.shape_cast %361 : vector<1x2x324xf32> to vector<2x324xf32>
    %363 = vector.broadcast %360 : f32 to vector<2x324xf32>
    %364 = arith.mulf %362, %363 : vector<2x324xf32>
    %365 = arith.addf %359, %364 : vector<2x324xf32>
    %c56 = arith.constant 56 : index
    %366 = memref.load %arg3[%c56] : memref<144xf32, #tpu.memory_space<smem>>
    %c2_185 = arith.constant 2 : index
    %c0_186 = arith.constant 0 : index
    %c2_187 = arith.constant 2 : index
    %367 = vector.load %arg1[%c2_185, %c0_186, %c2_187] : memref<4x2x384xf32, #tpu.memory_space<vmem>>, vector<1x2x324xf32>
    %368 = vector.shape_cast %367 : vector<1x2x324xf32> to vector<2x324xf32>
    %369 = vector.broadcast %366 : f32 to vector<2x324xf32>
    %370 = arith.mulf %368, %369 : vector<2x324xf32>
    %371 = arith.addf %365, %370 : vector<2x324xf32>
    %c57 = arith.constant 57 : index
    %372 = memref.load %arg3[%c57] : memref<144xf32, #tpu.memory_space<smem>>
    %c2_188 = arith.constant 2 : index
    %c0_189 = arith.constant 0 : index
    %c18_190 = arith.constant 18 : index
    %373 = vector.load %arg1[%c2_188, %c0_189, %c18_190] : memref<4x2x384xf32, #tpu.memory_space<vmem>>, vector<1x2x324xf32>
    %374 = vector.shape_cast %373 : vector<1x2x324xf32> to vector<2x324xf32>
    %375 = vector.broadcast %372 : f32 to vector<2x324xf32>
    %376 = arith.mulf %374, %375 : vector<2x324xf32>
    %377 = arith.addf %371, %376 : vector<2x324xf32>
    %c58 = arith.constant 58 : index
    %378 = memref.load %arg3[%c58] : memref<144xf32, #tpu.memory_space<smem>>
    %c2_191 = arith.constant 2 : index
    %c0_192 = arith.constant 0 : index
    %c19_193 = arith.constant 19 : index
    %379 = vector.load %arg1[%c2_191, %c0_192, %c19_193] : memref<4x2x384xf32, #tpu.memory_space<vmem>>, vector<1x2x324xf32>
    %380 = vector.shape_cast %379 : vector<1x2x324xf32> to vector<2x324xf32>
    %381 = vector.broadcast %378 : f32 to vector<2x324xf32>
    %382 = arith.mulf %380, %381 : vector<2x324xf32>
    %383 = arith.addf %377, %382 : vector<2x324xf32>
    %c59 = arith.constant 59 : index
    %384 = memref.load %arg3[%c59] : memref<144xf32, #tpu.memory_space<smem>>
    %c2_194 = arith.constant 2 : index
    %c0_195 = arith.constant 0 : index
    %c20_196 = arith.constant 20 : index
    %385 = vector.load %arg1[%c2_194, %c0_195, %c20_196] : memref<4x2x384xf32, #tpu.memory_space<vmem>>, vector<1x2x324xf32>
    %386 = vector.shape_cast %385 : vector<1x2x324xf32> to vector<2x324xf32>
    %387 = vector.broadcast %384 : f32 to vector<2x324xf32>
    %388 = arith.mulf %386, %387 : vector<2x324xf32>
    %389 = arith.addf %383, %388 : vector<2x324xf32>
    %c60 = arith.constant 60 : index
    %390 = memref.load %arg3[%c60] : memref<144xf32, #tpu.memory_space<smem>>
    %c2_197 = arith.constant 2 : index
    %c0_198 = arith.constant 0 : index
    %c36_199 = arith.constant 36 : index
    %391 = vector.load %arg1[%c2_197, %c0_198, %c36_199] : memref<4x2x384xf32, #tpu.memory_space<vmem>>, vector<1x2x324xf32>
    %392 = vector.shape_cast %391 : vector<1x2x324xf32> to vector<2x324xf32>
    %393 = vector.broadcast %390 : f32 to vector<2x324xf32>
    %394 = arith.mulf %392, %393 : vector<2x324xf32>
    %395 = arith.addf %389, %394 : vector<2x324xf32>
    %c61 = arith.constant 61 : index
    %396 = memref.load %arg3[%c61] : memref<144xf32, #tpu.memory_space<smem>>
    %c2_200 = arith.constant 2 : index
    %c0_201 = arith.constant 0 : index
    %c37_202 = arith.constant 37 : index
    %397 = vector.load %arg1[%c2_200, %c0_201, %c37_202] : memref<4x2x384xf32, #tpu.memory_space<vmem>>, vector<1x2x324xf32>
    %398 = vector.shape_cast %397 : vector<1x2x324xf32> to vector<2x324xf32>
    %399 = vector.broadcast %396 : f32 to vector<2x324xf32>
    %400 = arith.mulf %398, %399 : vector<2x324xf32>
    %401 = arith.addf %395, %400 : vector<2x324xf32>
    %c62 = arith.constant 62 : index
    %402 = memref.load %arg3[%c62] : memref<144xf32, #tpu.memory_space<smem>>
    %c2_203 = arith.constant 2 : index
    %c0_204 = arith.constant 0 : index
    %c38_205 = arith.constant 38 : index
    %403 = vector.load %arg1[%c2_203, %c0_204, %c38_205] : memref<4x2x384xf32, #tpu.memory_space<vmem>>, vector<1x2x324xf32>
    %404 = vector.shape_cast %403 : vector<1x2x324xf32> to vector<2x324xf32>
    %405 = vector.broadcast %402 : f32 to vector<2x324xf32>
    %406 = arith.mulf %404, %405 : vector<2x324xf32>
    %407 = arith.addf %401, %406 : vector<2x324xf32>
    %c63 = arith.constant 63 : index
    %408 = memref.load %arg3[%c63] : memref<144xf32, #tpu.memory_space<smem>>
    %c3_206 = arith.constant 3 : index
    %c0_207 = arith.constant 0 : index
    %c0_208 = arith.constant 0 : index
    %409 = vector.load %arg1[%c3_206, %c0_207, %c0_208] : memref<4x2x384xf32, #tpu.memory_space<vmem>>, vector<1x2x324xf32>
    %410 = vector.shape_cast %409 : vector<1x2x324xf32> to vector<2x324xf32>
    %411 = vector.broadcast %408 : f32 to vector<2x324xf32>
    %412 = arith.mulf %410, %411 : vector<2x324xf32>
    %413 = arith.addf %407, %412 : vector<2x324xf32>
    %c64 = arith.constant 64 : index
    %414 = memref.load %arg3[%c64] : memref<144xf32, #tpu.memory_space<smem>>
    %c3_209 = arith.constant 3 : index
    %c0_210 = arith.constant 0 : index
    %c1_211 = arith.constant 1 : index
    %415 = vector.load %arg1[%c3_209, %c0_210, %c1_211] : memref<4x2x384xf32, #tpu.memory_space<vmem>>, vector<1x2x324xf32>
    %416 = vector.shape_cast %415 : vector<1x2x324xf32> to vector<2x324xf32>
    %417 = vector.broadcast %414 : f32 to vector<2x324xf32>
    %418 = arith.mulf %416, %417 : vector<2x324xf32>
    %419 = arith.addf %413, %418 : vector<2x324xf32>
    %c65 = arith.constant 65 : index
    %420 = memref.load %arg3[%c65] : memref<144xf32, #tpu.memory_space<smem>>
    %c3_212 = arith.constant 3 : index
    %c0_213 = arith.constant 0 : index
    %c2_214 = arith.constant 2 : index
    %421 = vector.load %arg1[%c3_212, %c0_213, %c2_214] : memref<4x2x384xf32, #tpu.memory_space<vmem>>, vector<1x2x324xf32>
    %422 = vector.shape_cast %421 : vector<1x2x324xf32> to vector<2x324xf32>
    %423 = vector.broadcast %420 : f32 to vector<2x324xf32>
    %424 = arith.mulf %422, %423 : vector<2x324xf32>
    %425 = arith.addf %419, %424 : vector<2x324xf32>
    %c66 = arith.constant 66 : index
    %426 = memref.load %arg3[%c66] : memref<144xf32, #tpu.memory_space<smem>>
    %c3_215 = arith.constant 3 : index
    %c0_216 = arith.constant 0 : index
    %c18_217 = arith.constant 18 : index
    %427 = vector.load %arg1[%c3_215, %c0_216, %c18_217] : memref<4x2x384xf32, #tpu.memory_space<vmem>>, vector<1x2x324xf32>
    %428 = vector.shape_cast %427 : vector<1x2x324xf32> to vector<2x324xf32>
    %429 = vector.broadcast %426 : f32 to vector<2x324xf32>
    %430 = arith.mulf %428, %429 : vector<2x324xf32>
    %431 = arith.addf %425, %430 : vector<2x324xf32>
    %c67 = arith.constant 67 : index
    %432 = memref.load %arg3[%c67] : memref<144xf32, #tpu.memory_space<smem>>
    %c3_218 = arith.constant 3 : index
    %c0_219 = arith.constant 0 : index
    %c19_220 = arith.constant 19 : index
    %433 = vector.load %arg1[%c3_218, %c0_219, %c19_220] : memref<4x2x384xf32, #tpu.memory_space<vmem>>, vector<1x2x324xf32>
    %434 = vector.shape_cast %433 : vector<1x2x324xf32> to vector<2x324xf32>
    %435 = vector.broadcast %432 : f32 to vector<2x324xf32>
    %436 = arith.mulf %434, %435 : vector<2x324xf32>
    %437 = arith.addf %431, %436 : vector<2x324xf32>
    %c68 = arith.constant 68 : index
    %438 = memref.load %arg3[%c68] : memref<144xf32, #tpu.memory_space<smem>>
    %c3_221 = arith.constant 3 : index
    %c0_222 = arith.constant 0 : index
    %c20_223 = arith.constant 20 : index
    %439 = vector.load %arg1[%c3_221, %c0_222, %c20_223] : memref<4x2x384xf32, #tpu.memory_space<vmem>>, vector<1x2x324xf32>
    %440 = vector.shape_cast %439 : vector<1x2x324xf32> to vector<2x324xf32>
    %441 = vector.broadcast %438 : f32 to vector<2x324xf32>
    %442 = arith.mulf %440, %441 : vector<2x324xf32>
    %443 = arith.addf %437, %442 : vector<2x324xf32>
    %c69 = arith.constant 69 : index
    %444 = memref.load %arg3[%c69] : memref<144xf32, #tpu.memory_space<smem>>
    %c3_224 = arith.constant 3 : index
    %c0_225 = arith.constant 0 : index
    %c36_226 = arith.constant 36 : index
    %445 = vector.load %arg1[%c3_224, %c0_225, %c36_226] : memref<4x2x384xf32, #tpu.memory_space<vmem>>, vector<1x2x324xf32>
    %446 = vector.shape_cast %445 : vector<1x2x324xf32> to vector<2x324xf32>
    %447 = vector.broadcast %444 : f32 to vector<2x324xf32>
    %448 = arith.mulf %446, %447 : vector<2x324xf32>
    %449 = arith.addf %443, %448 : vector<2x324xf32>
    %c70 = arith.constant 70 : index
    %450 = memref.load %arg3[%c70] : memref<144xf32, #tpu.memory_space<smem>>
    %c3_227 = arith.constant 3 : index
    %c0_228 = arith.constant 0 : index
    %c37_229 = arith.constant 37 : index
    %451 = vector.load %arg1[%c3_227, %c0_228, %c37_229] : memref<4x2x384xf32, #tpu.memory_space<vmem>>, vector<1x2x324xf32>
    %452 = vector.shape_cast %451 : vector<1x2x324xf32> to vector<2x324xf32>
    %453 = vector.broadcast %450 : f32 to vector<2x324xf32>
    %454 = arith.mulf %452, %453 : vector<2x324xf32>
    %455 = arith.addf %449, %454 : vector<2x324xf32>
    %c71 = arith.constant 71 : index
    %456 = memref.load %arg3[%c71] : memref<144xf32, #tpu.memory_space<smem>>
    %c3_230 = arith.constant 3 : index
    %c0_231 = arith.constant 0 : index
    %c38_232 = arith.constant 38 : index
    %457 = vector.load %arg1[%c3_230, %c0_231, %c38_232] : memref<4x2x384xf32, #tpu.memory_space<vmem>>, vector<1x2x324xf32>
    %458 = vector.shape_cast %457 : vector<1x2x324xf32> to vector<2x324xf32>
    %459 = vector.broadcast %456 : f32 to vector<2x324xf32>
    %460 = arith.mulf %458, %459 : vector<2x324xf32>
    %461 = arith.addf %455, %460 : vector<2x324xf32>
    %c1_233 = arith.constant 1 : index
    %462 = memref.load %arg4[%c1_233] : memref<4xf32, #tpu.memory_space<smem>>
    %463 = vector.broadcast %462 : f32 to vector<2x324xf32>
    %464 = arith.addf %461, %463 : vector<2x324xf32>
    %465 = vector.broadcast %0 : vector<1x324xf32> to vector<2x324xf32>
    %466 = arith.mulf %464, %465 : vector<2x324xf32>
    %cst_234 = arith.constant dense<0.000000e+00> : vector<2xf32>
    %467 = vector.multi_reduction <add>, %466, %cst_234 [1] : vector<2x324xf32> to vector<2xf32>
    %468 = vector.shape_cast %467 : vector<2xf32> to vector<2x1xf32>
    %cst_235 = arith.constant 3.906250e-03 : f32
    %469 = vector.broadcast %cst_235 : f32 to vector<2x1xf32>
    %470 = arith.mulf %468, %469 : vector<2x1xf32>
    %471 = vector.broadcast %470 : vector<2x1xf32> to vector<2x324xf32>
    %472 = arith.subf %464, %471 : vector<2x324xf32>
    %473 = vector.broadcast %0 : vector<1x324xf32> to vector<2x324xf32>
    %474 = arith.mulf %472, %473 : vector<2x324xf32>
    %475 = arith.mulf %474, %474 : vector<2x324xf32>
    %cst_236 = arith.constant dense<0.000000e+00> : vector<2xf32>
    %476 = vector.multi_reduction <add>, %475, %cst_236 [1] : vector<2x324xf32> to vector<2xf32>
    %477 = vector.shape_cast %476 : vector<2xf32> to vector<2x1xf32>
    %cst_237 = arith.constant 3.906250e-03 : f32
    %478 = vector.broadcast %cst_237 : f32 to vector<2x1xf32>
    %479 = arith.mulf %477, %478 : vector<2x1xf32>
    %cst_238 = arith.constant 9.99999974E-6 : f32
    %480 = vector.broadcast %cst_238 : f32 to vector<2x1xf32>
    %481 = arith.addf %479, %480 : vector<2x1xf32>
    %482 = math.rsqrt %481 : vector<2x1xf32>
    %483 = vector.broadcast %482 : vector<2x1xf32> to vector<2x324xf32>
    %484 = arith.mulf %474, %483 : vector<2x324xf32>
    %cst_239 = arith.constant 0.000000e+00 : f32
    %485 = vector.broadcast %cst_239 : f32 to vector<2x324xf32>
    %486 = arith.maximumf %484, %485 : vector<2x324xf32>
    %c1_240 = arith.constant 1 : index
    %c0_241 = arith.constant 0 : index
    %c19_242 = arith.constant 19 : index
    %487 = vector.load %arg8[%c1_240, %c0_241, %c19_242] : memref<4x2x362xf32, #tpu.memory_space<vmem>>, vector<1x2x324xf32>
    %488 = vector.shape_cast %487 : vector<1x2x324xf32> to vector<2x324xf32>
    %489 = vector.shape_cast %486 : vector<2x324xf32> to vector<1x2x324xf32>
    tpu.vector_store %arg8[%c1_240, %c0_241, %c19_242], %489 {strides = array<i32>} : memref<4x2x362xf32, #tpu.memory_space<vmem>>, vector<1x2x324xf32>,
    %c72 = arith.constant 72 : index
    %490 = memref.load %arg3[%c72] : memref<144xf32, #tpu.memory_space<smem>>
    %c0_243 = arith.constant 0 : index
    %c0_244 = arith.constant 0 : index
    %c0_245 = arith.constant 0 : index
    %491 = vector.load %arg1[%c0_243, %c0_244, %c0_245] : memref<4x2x384xf32, #tpu.memory_space<vmem>>, vector<1x2x324xf32>
    %492 = vector.shape_cast %491 : vector<1x2x324xf32> to vector<2x324xf32>
    %493 = vector.broadcast %490 : f32 to vector<2x324xf32>
    %494 = arith.mulf %492, %493 : vector<2x324xf32>
    %c73 = arith.constant 73 : index
    %495 = memref.load %arg3[%c73] : memref<144xf32, #tpu.memory_space<smem>>
    %c0_246 = arith.constant 0 : index
    %c0_247 = arith.constant 0 : index
    %c1_248 = arith.constant 1 : index
    %496 = vector.load %arg1[%c0_246, %c0_247, %c1_248] : memref<4x2x384xf32, #tpu.memory_space<vmem>>, vector<1x2x324xf32>
    %497 = vector.shape_cast %496 : vector<1x2x324xf32> to vector<2x324xf32>
    %498 = vector.broadcast %495 : f32 to vector<2x324xf32>
    %499 = arith.mulf %497, %498 : vector<2x324xf32>
    %500 = arith.addf %494, %499 : vector<2x324xf32>
    %c74 = arith.constant 74 : index
    %501 = memref.load %arg3[%c74] : memref<144xf32, #tpu.memory_space<smem>>
    %c0_249 = arith.constant 0 : index
    %c0_250 = arith.constant 0 : index
    %c2_251 = arith.constant 2 : index
    %502 = vector.load %arg1[%c0_249, %c0_250, %c2_251] : memref<4x2x384xf32, #tpu.memory_space<vmem>>, vector<1x2x324xf32>
    %503 = vector.shape_cast %502 : vector<1x2x324xf32> to vector<2x324xf32>
    %504 = vector.broadcast %501 : f32 to vector<2x324xf32>
    %505 = arith.mulf %503, %504 : vector<2x324xf32>
    %506 = arith.addf %500, %505 : vector<2x324xf32>
    %c75 = arith.constant 75 : index
    %507 = memref.load %arg3[%c75] : memref<144xf32, #tpu.memory_space<smem>>
    %c0_252 = arith.constant 0 : index
    %c0_253 = arith.constant 0 : index
    %c18_254 = arith.constant 18 : index
    %508 = vector.load %arg1[%c0_252, %c0_253, %c18_254] : memref<4x2x384xf32, #tpu.memory_space<vmem>>, vector<1x2x324xf32>
    %509 = vector.shape_cast %508 : vector<1x2x324xf32> to vector<2x324xf32>
    %510 = vector.broadcast %507 : f32 to vector<2x324xf32>
    %511 = arith.mulf %509, %510 : vector<2x324xf32>
    %512 = arith.addf %506, %511 : vector<2x324xf32>
    %c76 = arith.constant 76 : index
    %513 = memref.load %arg3[%c76] : memref<144xf32, #tpu.memory_space<smem>>
    %c0_255 = arith.constant 0 : index
    %c0_256 = arith.constant 0 : index
    %c19_257 = arith.constant 19 : index
    %514 = vector.load %arg1[%c0_255, %c0_256, %c19_257] : memref<4x2x384xf32, #tpu.memory_space<vmem>>, vector<1x2x324xf32>
    %515 = vector.shape_cast %514 : vector<1x2x324xf32> to vector<2x324xf32>
    %516 = vector.broadcast %513 : f32 to vector<2x324xf32>
    %517 = arith.mulf %515, %516 : vector<2x324xf32>
    %518 = arith.addf %512, %517 : vector<2x324xf32>
    %c77 = arith.constant 77 : index
    %519 = memref.load %arg3[%c77] : memref<144xf32, #tpu.memory_space<smem>>
    %c0_258 = arith.constant 0 : index
    %c0_259 = arith.constant 0 : index
    %c20_260 = arith.constant 20 : index
    %520 = vector.load %arg1[%c0_258, %c0_259, %c20_260] : memref<4x2x384xf32, #tpu.memory_space<vmem>>, vector<1x2x324xf32>
    %521 = vector.shape_cast %520 : vector<1x2x324xf32> to vector<2x324xf32>
    %522 = vector.broadcast %519 : f32 to vector<2x324xf32>
    %523 = arith.mulf %521, %522 : vector<2x324xf32>
    %524 = arith.addf %518, %523 : vector<2x324xf32>
    %c78 = arith.constant 78 : index
    %525 = memref.load %arg3[%c78] : memref<144xf32, #tpu.memory_space<smem>>
    %c0_261 = arith.constant 0 : index
    %c0_262 = arith.constant 0 : index
    %c36_263 = arith.constant 36 : index
    %526 = vector.load %arg1[%c0_261, %c0_262, %c36_263] : memref<4x2x384xf32, #tpu.memory_space<vmem>>, vector<1x2x324xf32>
    %527 = vector.shape_cast %526 : vector<1x2x324xf32> to vector<2x324xf32>
    %528 = vector.broadcast %525 : f32 to vector<2x324xf32>
    %529 = arith.mulf %527, %528 : vector<2x324xf32>
    %530 = arith.addf %524, %529 : vector<2x324xf32>
    %c79 = arith.constant 79 : index
    %531 = memref.load %arg3[%c79] : memref<144xf32, #tpu.memory_space<smem>>
    %c0_264 = arith.constant 0 : index
    %c0_265 = arith.constant 0 : index
    %c37_266 = arith.constant 37 : index
    %532 = vector.load %arg1[%c0_264, %c0_265, %c37_266] : memref<4x2x384xf32, #tpu.memory_space<vmem>>, vector<1x2x324xf32>
    %533 = vector.shape_cast %532 : vector<1x2x324xf32> to vector<2x324xf32>
    %534 = vector.broadcast %531 : f32 to vector<2x324xf32>
    %535 = arith.mulf %533, %534 : vector<2x324xf32>
    %536 = arith.addf %530, %535 : vector<2x324xf32>
    %c80 = arith.constant 80 : index
    %537 = memref.load %arg3[%c80] : memref<144xf32, #tpu.memory_space<smem>>
    %c0_267 = arith.constant 0 : index
    %c0_268 = arith.constant 0 : index
    %c38_269 = arith.constant 38 : index
    %538 = vector.load %arg1[%c0_267, %c0_268, %c38_269] : memref<4x2x384xf32, #tpu.memory_space<vmem>>, vector<1x2x324xf32>
    %539 = vector.shape_cast %538 : vector<1x2x324xf32> to vector<2x324xf32>
    %540 = vector.broadcast %537 : f32 to vector<2x324xf32>
    %541 = arith.mulf %539, %540 : vector<2x324xf32>
    %542 = arith.addf %536, %541 : vector<2x324xf32>
    %c81 = arith.constant 81 : index
    %543 = memref.load %arg3[%c81] : memref<144xf32, #tpu.memory_space<smem>>
    %c1_270 = arith.constant 1 : index
    %c0_271 = arith.constant 0 : index
    %c0_272 = arith.constant 0 : index
    %544 = vector.load %arg1[%c1_270, %c0_271, %c0_272] : memref<4x2x384xf32, #tpu.memory_space<vmem>>, vector<1x2x324xf32>
    %545 = vector.shape_cast %544 : vector<1x2x324xf32> to vector<2x324xf32>
    %546 = vector.broadcast %543 : f32 to vector<2x324xf32>
    %547 = arith.mulf %545, %546 : vector<2x324xf32>
    %548 = arith.addf %542, %547 : vector<2x324xf32>
    %c82 = arith.constant 82 : index
    %549 = memref.load %arg3[%c82] : memref<144xf32, #tpu.memory_space<smem>>
    %c1_273 = arith.constant 1 : index
    %c0_274 = arith.constant 0 : index
    %c1_275 = arith.constant 1 : index
    %550 = vector.load %arg1[%c1_273, %c0_274, %c1_275] : memref<4x2x384xf32, #tpu.memory_space<vmem>>, vector<1x2x324xf32>
    %551 = vector.shape_cast %550 : vector<1x2x324xf32> to vector<2x324xf32>
    %552 = vector.broadcast %549 : f32 to vector<2x324xf32>
    %553 = arith.mulf %551, %552 : vector<2x324xf32>
    %554 = arith.addf %548, %553 : vector<2x324xf32>
    %c83 = arith.constant 83 : index
    %555 = memref.load %arg3[%c83] : memref<144xf32, #tpu.memory_space<smem>>
    %c1_276 = arith.constant 1 : index
    %c0_277 = arith.constant 0 : index
    %c2_278 = arith.constant 2 : index
    %556 = vector.load %arg1[%c1_276, %c0_277, %c2_278] : memref<4x2x384xf32, #tpu.memory_space<vmem>>, vector<1x2x324xf32>
    %557 = vector.shape_cast %556 : vector<1x2x324xf32> to vector<2x324xf32>
    %558 = vector.broadcast %555 : f32 to vector<2x324xf32>
    %559 = arith.mulf %557, %558 : vector<2x324xf32>
    %560 = arith.addf %554, %559 : vector<2x324xf32>
    %c84 = arith.constant 84 : index
    %561 = memref.load %arg3[%c84] : memref<144xf32, #tpu.memory_space<smem>>
    %c1_279 = arith.constant 1 : index
    %c0_280 = arith.constant 0 : index
    %c18_281 = arith.constant 18 : index
    %562 = vector.load %arg1[%c1_279, %c0_280, %c18_281] : memref<4x2x384xf32, #tpu.memory_space<vmem>>, vector<1x2x324xf32>
    %563 = vector.shape_cast %562 : vector<1x2x324xf32> to vector<2x324xf32>
    %564 = vector.broadcast %561 : f32 to vector<2x324xf32>
    %565 = arith.mulf %563, %564 : vector<2x324xf32>
    %566 = arith.addf %560, %565 : vector<2x324xf32>
    %c85 = arith.constant 85 : index
    %567 = memref.load %arg3[%c85] : memref<144xf32, #tpu.memory_space<smem>>
    %c1_282 = arith.constant 1 : index
    %c0_283 = arith.constant 0 : index
    %c19_284 = arith.constant 19 : index
    %568 = vector.load %arg1[%c1_282, %c0_283, %c19_284] : memref<4x2x384xf32, #tpu.memory_space<vmem>>, vector<1x2x324xf32>
    %569 = vector.shape_cast %568 : vector<1x2x324xf32> to vector<2x324xf32>
    %570 = vector.broadcast %567 : f32 to vector<2x324xf32>
    %571 = arith.mulf %569, %570 : vector<2x324xf32>
    %572 = arith.addf %566, %571 : vector<2x324xf32>
    %c86 = arith.constant 86 : index
    %573 = memref.load %arg3[%c86] : memref<144xf32, #tpu.memory_space<smem>>
    %c1_285 = arith.constant 1 : index
    %c0_286 = arith.constant 0 : index
    %c20_287 = arith.constant 20 : index
    %574 = vector.load %arg1[%c1_285, %c0_286, %c20_287] : memref<4x2x384xf32, #tpu.memory_space<vmem>>, vector<1x2x324xf32>
    %575 = vector.shape_cast %574 : vector<1x2x324xf32> to vector<2x324xf32>
    %576 = vector.broadcast %573 : f32 to vector<2x324xf32>
    %577 = arith.mulf %575, %576 : vector<2x324xf32>
    %578 = arith.addf %572, %577 : vector<2x324xf32>
    %c87 = arith.constant 87 : index
    %579 = memref.load %arg3[%c87] : memref<144xf32, #tpu.memory_space<smem>>
    %c1_288 = arith.constant 1 : index
    %c0_289 = arith.constant 0 : index
    %c36_290 = arith.constant 36 : index
    %580 = vector.load %arg1[%c1_288, %c0_289, %c36_290] : memref<4x2x384xf32, #tpu.memory_space<vmem>>, vector<1x2x324xf32>
    %581 = vector.shape_cast %580 : vector<1x2x324xf32> to vector<2x324xf32>
    %582 = vector.broadcast %579 : f32 to vector<2x324xf32>
    %583 = arith.mulf %581, %582 : vector<2x324xf32>
    %584 = arith.addf %578, %583 : vector<2x324xf32>
    %c88 = arith.constant 88 : index
    %585 = memref.load %arg3[%c88] : memref<144xf32, #tpu.memory_space<smem>>
    %c1_291 = arith.constant 1 : index
    %c0_292 = arith.constant 0 : index
    %c37_293 = arith.constant 37 : index
    %586 = vector.load %arg1[%c1_291, %c0_292, %c37_293] : memref<4x2x384xf32, #tpu.memory_space<vmem>>, vector<1x2x324xf32>
    %587 = vector.shape_cast %586 : vector<1x2x324xf32> to vector<2x324xf32>
    %588 = vector.broadcast %585 : f32 to vector<2x324xf32>
    %589 = arith.mulf %587, %588 : vector<2x324xf32>
    %590 = arith.addf %584, %589 : vector<2x324xf32>
    %c89 = arith.constant 89 : index
    %591 = memref.load %arg3[%c89] : memref<144xf32, #tpu.memory_space<smem>>
    %c1_294 = arith.constant 1 : index
    %c0_295 = arith.constant 0 : index
    %c38_296 = arith.constant 38 : index
    %592 = vector.load %arg1[%c1_294, %c0_295, %c38_296] : memref<4x2x384xf32, #tpu.memory_space<vmem>>, vector<1x2x324xf32>
    %593 = vector.shape_cast %592 : vector<1x2x324xf32> to vector<2x324xf32>
    %594 = vector.broadcast %591 : f32 to vector<2x324xf32>
    %595 = arith.mulf %593, %594 : vector<2x324xf32>
    %596 = arith.addf %590, %595 : vector<2x324xf32>
    %c90 = arith.constant 90 : index
    %597 = memref.load %arg3[%c90] : memref<144xf32, #tpu.memory_space<smem>>
    %c2_297 = arith.constant 2 : index
    %c0_298 = arith.constant 0 : index
    %c0_299 = arith.constant 0 : index
    %598 = vector.load %arg1[%c2_297, %c0_298, %c0_299] : memref<4x2x384xf32, #tpu.memory_space<vmem>>, vector<1x2x324xf32>
    %599 = vector.shape_cast %598 : vector<1x2x324xf32> to vector<2x324xf32>
    %600 = vector.broadcast %597 : f32 to vector<2x324xf32>
    %601 = arith.mulf %599, %600 : vector<2x324xf32>
    %602 = arith.addf %596, %601 : vector<2x324xf32>
    %c91 = arith.constant 91 : index
    %603 = memref.load %arg3[%c91] : memref<144xf32, #tpu.memory_space<smem>>
    %c2_300 = arith.constant 2 : index
    %c0_301 = arith.constant 0 : index
    %c1_302 = arith.constant 1 : index
    %604 = vector.load %arg1[%c2_300, %c0_301, %c1_302] : memref<4x2x384xf32, #tpu.memory_space<vmem>>, vector<1x2x324xf32>
    %605 = vector.shape_cast %604 : vector<1x2x324xf32> to vector<2x324xf32>
    %606 = vector.broadcast %603 : f32 to vector<2x324xf32>
    %607 = arith.mulf %605, %606 : vector<2x324xf32>
    %608 = arith.addf %602, %607 : vector<2x324xf32>
    %c92 = arith.constant 92 : index
    %609 = memref.load %arg3[%c92] : memref<144xf32, #tpu.memory_space<smem>>
    %c2_303 = arith.constant 2 : index
    %c0_304 = arith.constant 0 : index
    %c2_305 = arith.constant 2 : index
    %610 = vector.load %arg1[%c2_303, %c0_304, %c2_305] : memref<4x2x384xf32, #tpu.memory_space<vmem>>, vector<1x2x324xf32>
    %611 = vector.shape_cast %610 : vector<1x2x324xf32> to vector<2x324xf32>
    %612 = vector.broadcast %609 : f32 to vector<2x324xf32>
    %613 = arith.mulf %611, %612 : vector<2x324xf32>
    %614 = arith.addf %608, %613 : vector<2x324xf32>
    %c93 = arith.constant 93 : index
    %615 = memref.load %arg3[%c93] : memref<144xf32, #tpu.memory_space<smem>>
    %c2_306 = arith.constant 2 : index
    %c0_307 = arith.constant 0 : index
    %c18_308 = arith.constant 18 : index
    %616 = vector.load %arg1[%c2_306, %c0_307, %c18_308] : memref<4x2x384xf32, #tpu.memory_space<vmem>>, vector<1x2x324xf32>
    %617 = vector.shape_cast %616 : vector<1x2x324xf32> to vector<2x324xf32>
    %618 = vector.broadcast %615 : f32 to vector<2x324xf32>
    %619 = arith.mulf %617, %618 : vector<2x324xf32>
    %620 = arith.addf %614, %619 : vector<2x324xf32>
    %c94 = arith.constant 94 : index
    %621 = memref.load %arg3[%c94] : memref<144xf32, #tpu.memory_space<smem>>
    %c2_309 = arith.constant 2 : index
    %c0_310 = arith.constant 0 : index
    %c19_311 = arith.constant 19 : index
    %622 = vector.load %arg1[%c2_309, %c0_310, %c19_311] : memref<4x2x384xf32, #tpu.memory_space<vmem>>, vector<1x2x324xf32>
    %623 = vector.shape_cast %622 : vector<1x2x324xf32> to vector<2x324xf32>
    %624 = vector.broadcast %621 : f32 to vector<2x324xf32>
    %625 = arith.mulf %623, %624 : vector<2x324xf32>
    %626 = arith.addf %620, %625 : vector<2x324xf32>
    %c95 = arith.constant 95 : index
    %627 = memref.load %arg3[%c95] : memref<144xf32, #tpu.memory_space<smem>>
    %c2_312 = arith.constant 2 : index
    %c0_313 = arith.constant 0 : index
    %c20_314 = arith.constant 20 : index
    %628 = vector.load %arg1[%c2_312, %c0_313, %c20_314] : memref<4x2x384xf32, #tpu.memory_space<vmem>>, vector<1x2x324xf32>
    %629 = vector.shape_cast %628 : vector<1x2x324xf32> to vector<2x324xf32>
    %630 = vector.broadcast %627 : f32 to vector<2x324xf32>
    %631 = arith.mulf %629, %630 : vector<2x324xf32>
    %632 = arith.addf %626, %631 : vector<2x324xf32>
    %c96 = arith.constant 96 : index
    %633 = memref.load %arg3[%c96] : memref<144xf32, #tpu.memory_space<smem>>
    %c2_315 = arith.constant 2 : index
    %c0_316 = arith.constant 0 : index
    %c36_317 = arith.constant 36 : index
    %634 = vector.load %arg1[%c2_315, %c0_316, %c36_317] : memref<4x2x384xf32, #tpu.memory_space<vmem>>, vector<1x2x324xf32>
    %635 = vector.shape_cast %634 : vector<1x2x324xf32> to vector<2x324xf32>
    %636 = vector.broadcast %633 : f32 to vector<2x324xf32>
    %637 = arith.mulf %635, %636 : vector<2x324xf32>
    %638 = arith.addf %632, %637 : vector<2x324xf32>
    %c97 = arith.constant 97 : index
    %639 = memref.load %arg3[%c97] : memref<144xf32, #tpu.memory_space<smem>>
    %c2_318 = arith.constant 2 : index
    %c0_319 = arith.constant 0 : index
    %c37_320 = arith.constant 37 : index
    %640 = vector.load %arg1[%c2_318, %c0_319, %c37_320] : memref<4x2x384xf32, #tpu.memory_space<vmem>>, vector<1x2x324xf32>
    %641 = vector.shape_cast %640 : vector<1x2x324xf32> to vector<2x324xf32>
    %642 = vector.broadcast %639 : f32 to vector<2x324xf32>
    %643 = arith.mulf %641, %642 : vector<2x324xf32>
    %644 = arith.addf %638, %643 : vector<2x324xf32>
    %c98 = arith.constant 98 : index
    %645 = memref.load %arg3[%c98] : memref<144xf32, #tpu.memory_space<smem>>
    %c2_321 = arith.constant 2 : index
    %c0_322 = arith.constant 0 : index
    %c38_323 = arith.constant 38 : index
    %646 = vector.load %arg1[%c2_321, %c0_322, %c38_323] : memref<4x2x384xf32, #tpu.memory_space<vmem>>, vector<1x2x324xf32>
    %647 = vector.shape_cast %646 : vector<1x2x324xf32> to vector<2x324xf32>
    %648 = vector.broadcast %645 : f32 to vector<2x324xf32>
    %649 = arith.mulf %647, %648 : vector<2x324xf32>
    %650 = arith.addf %644, %649 : vector<2x324xf32>
    %c99 = arith.constant 99 : index
    %651 = memref.load %arg3[%c99] : memref<144xf32, #tpu.memory_space<smem>>
    %c3_324 = arith.constant 3 : index
    %c0_325 = arith.constant 0 : index
    %c0_326 = arith.constant 0 : index
    %652 = vector.load %arg1[%c3_324, %c0_325, %c0_326] : memref<4x2x384xf32, #tpu.memory_space<vmem>>, vector<1x2x324xf32>
    %653 = vector.shape_cast %652 : vector<1x2x324xf32> to vector<2x324xf32>
    %654 = vector.broadcast %651 : f32 to vector<2x324xf32>
    %655 = arith.mulf %653, %654 : vector<2x324xf32>
    %656 = arith.addf %650, %655 : vector<2x324xf32>
    %c100 = arith.constant 100 : index
    %657 = memref.load %arg3[%c100] : memref<144xf32, #tpu.memory_space<smem>>
    %c3_327 = arith.constant 3 : index
    %c0_328 = arith.constant 0 : index
    %c1_329 = arith.constant 1 : index
    %658 = vector.load %arg1[%c3_327, %c0_328, %c1_329] : memref<4x2x384xf32, #tpu.memory_space<vmem>>, vector<1x2x324xf32>
    %659 = vector.shape_cast %658 : vector<1x2x324xf32> to vector<2x324xf32>
    %660 = vector.broadcast %657 : f32 to vector<2x324xf32>
    %661 = arith.mulf %659, %660 : vector<2x324xf32>
    %662 = arith.addf %656, %661 : vector<2x324xf32>
    %c101 = arith.constant 101 : index
    %663 = memref.load %arg3[%c101] : memref<144xf32, #tpu.memory_space<smem>>
    %c3_330 = arith.constant 3 : index
    %c0_331 = arith.constant 0 : index
    %c2_332 = arith.constant 2 : index
    %664 = vector.load %arg1[%c3_330, %c0_331, %c2_332] : memref<4x2x384xf32, #tpu.memory_space<vmem>>, vector<1x2x324xf32>
    %665 = vector.shape_cast %664 : vector<1x2x324xf32> to vector<2x324xf32>
    %666 = vector.broadcast %663 : f32 to vector<2x324xf32>
    %667 = arith.mulf %665, %666 : vector<2x324xf32>
    %668 = arith.addf %662, %667 : vector<2x324xf32>
    %c102 = arith.constant 102 : index
    %669 = memref.load %arg3[%c102] : memref<144xf32, #tpu.memory_space<smem>>
    %c3_333 = arith.constant 3 : index
    %c0_334 = arith.constant 0 : index
    %c18_335 = arith.constant 18 : index
    %670 = vector.load %arg1[%c3_333, %c0_334, %c18_335] : memref<4x2x384xf32, #tpu.memory_space<vmem>>, vector<1x2x324xf32>
    %671 = vector.shape_cast %670 : vector<1x2x324xf32> to vector<2x324xf32>
    %672 = vector.broadcast %669 : f32 to vector<2x324xf32>
    %673 = arith.mulf %671, %672 : vector<2x324xf32>
    %674 = arith.addf %668, %673 : vector<2x324xf32>
    %c103 = arith.constant 103 : index
    %675 = memref.load %arg3[%c103] : memref<144xf32, #tpu.memory_space<smem>>
    %c3_336 = arith.constant 3 : index
    %c0_337 = arith.constant 0 : index
    %c19_338 = arith.constant 19 : index
    %676 = vector.load %arg1[%c3_336, %c0_337, %c19_338] : memref<4x2x384xf32, #tpu.memory_space<vmem>>, vector<1x2x324xf32>
    %677 = vector.shape_cast %676 : vector<1x2x324xf32> to vector<2x324xf32>
    %678 = vector.broadcast %675 : f32 to vector<2x324xf32>
    %679 = arith.mulf %677, %678 : vector<2x324xf32>
    %680 = arith.addf %674, %679 : vector<2x324xf32>
    %c104 = arith.constant 104 : index
    %681 = memref.load %arg3[%c104] : memref<144xf32, #tpu.memory_space<smem>>
    %c3_339 = arith.constant 3 : index
    %c0_340 = arith.constant 0 : index
    %c20_341 = arith.constant 20 : index
    %682 = vector.load %arg1[%c3_339, %c0_340, %c20_341] : memref<4x2x384xf32, #tpu.memory_space<vmem>>, vector<1x2x324xf32>
    %683 = vector.shape_cast %682 : vector<1x2x324xf32> to vector<2x324xf32>
    %684 = vector.broadcast %681 : f32 to vector<2x324xf32>
    %685 = arith.mulf %683, %684 : vector<2x324xf32>
    %686 = arith.addf %680, %685 : vector<2x324xf32>
    %c105 = arith.constant 105 : index
    %687 = memref.load %arg3[%c105] : memref<144xf32, #tpu.memory_space<smem>>
    %c3_342 = arith.constant 3 : index
    %c0_343 = arith.constant 0 : index
    %c36_344 = arith.constant 36 : index
    %688 = vector.load %arg1[%c3_342, %c0_343, %c36_344] : memref<4x2x384xf32, #tpu.memory_space<vmem>>, vector<1x2x324xf32>
    %689 = vector.shape_cast %688 : vector<1x2x324xf32> to vector<2x324xf32>
    %690 = vector.broadcast %687 : f32 to vector<2x324xf32>
    %691 = arith.mulf %689, %690 : vector<2x324xf32>
    %692 = arith.addf %686, %691 : vector<2x324xf32>
    %c106 = arith.constant 106 : index
    %693 = memref.load %arg3[%c106] : memref<144xf32, #tpu.memory_space<smem>>
    %c3_345 = arith.constant 3 : index
    %c0_346 = arith.constant 0 : index
    %c37_347 = arith.constant 37 : index
    %694 = vector.load %arg1[%c3_345, %c0_346, %c37_347] : memref<4x2x384xf32, #tpu.memory_space<vmem>>, vector<1x2x324xf32>
    %695 = vector.shape_cast %694 : vector<1x2x324xf32> to vector<2x324xf32>
    %696 = vector.broadcast %693 : f32 to vector<2x324xf32>
    %697 = arith.mulf %695, %696 : vector<2x324xf32>
    %698 = arith.addf %692, %697 : vector<2x324xf32>
    %c107 = arith.constant 107 : index
    %699 = memref.load %arg3[%c107] : memref<144xf32, #tpu.memory_space<smem>>
    %c3_348 = arith.constant 3 : index
    %c0_349 = arith.constant 0 : index
    %c38_350 = arith.constant 38 : index
    %700 = vector.load %arg1[%c3_348, %c0_349, %c38_350] : memref<4x2x384xf32, #tpu.memory_space<vmem>>, vector<1x2x324xf32>
    %701 = vector.shape_cast %700 : vector<1x2x324xf32> to vector<2x324xf32>
    %702 = vector.broadcast %699 : f32 to vector<2x324xf32>
    %703 = arith.mulf %701, %702 : vector<2x324xf32>
    %704 = arith.addf %698, %703 : vector<2x324xf32>
    %c2_351 = arith.constant 2 : index
    %705 = memref.load %arg4[%c2_351] : memref<4xf32, #tpu.memory_space<smem>>
    %706 = vector.broadcast %705 : f32 to vector<2x324xf32>
    %707 = arith.addf %704, %706 : vector<2x324xf32>
    %708 = vector.broadcast %0 : vector<1x324xf32> to vector<2x324xf32>
    %709 = arith.mulf %707, %708 : vector<2x324xf32>
    %cst_352 = arith.constant dense<0.000000e+00> : vector<2xf32>
    %710 = vector.multi_reduction <add>, %709, %cst_352 [1] : vector<2x324xf32> to vector<2xf32>
    %711 = vector.shape_cast %710 : vector<2xf32> to vector<2x1xf32>
    %cst_353 = arith.constant 3.906250e-03 : f32
    %712 = vector.broadcast %cst_353 : f32 to vector<2x1xf32>
    %713 = arith.mulf %711, %712 : vector<2x1xf32>
    %714 = vector.broadcast %713 : vector<2x1xf32> to vector<2x324xf32>
    %715 = arith.subf %707, %714 : vector<2x324xf32>
    %716 = vector.broadcast %0 : vector<1x324xf32> to vector<2x324xf32>
    %717 = arith.mulf %715, %716 : vector<2x324xf32>
    %718 = arith.mulf %717, %717 : vector<2x324xf32>
    %cst_354 = arith.constant dense<0.000000e+00> : vector<2xf32>
    %719 = vector.multi_reduction <add>, %718, %cst_354 [1] : vector<2x324xf32> to vector<2xf32>
    %720 = vector.shape_cast %719 : vector<2xf32> to vector<2x1xf32>
    %cst_355 = arith.constant 3.906250e-03 : f32
    %721 = vector.broadcast %cst_355 : f32 to vector<2x1xf32>
    %722 = arith.mulf %720, %721 : vector<2x1xf32>
    %cst_356 = arith.constant 9.99999974E-6 : f32
    %723 = vector.broadcast %cst_356 : f32 to vector<2x1xf32>
    %724 = arith.addf %722, %723 : vector<2x1xf32>
    %725 = math.rsqrt %724 : vector<2x1xf32>
    %726 = vector.broadcast %725 : vector<2x1xf32> to vector<2x324xf32>
    %727 = arith.mulf %717, %726 : vector<2x324xf32>
    %cst_357 = arith.constant 0.000000e+00 : f32
    %728 = vector.broadcast %cst_357 : f32 to vector<2x324xf32>
    %729 = arith.maximumf %727, %728 : vector<2x324xf32>
    %c2_358 = arith.constant 2 : index
    %c0_359 = arith.constant 0 : index
    %c19_360 = arith.constant 19 : index
    %730 = vector.load %arg8[%c2_358, %c0_359, %c19_360] : memref<4x2x362xf32, #tpu.memory_space<vmem>>, vector<1x2x324xf32>
    %731 = vector.shape_cast %730 : vector<1x2x324xf32> to vector<2x324xf32>
    %732 = vector.shape_cast %729 : vector<2x324xf32> to vector<1x2x324xf32>
    tpu.vector_store %arg8[%c2_358, %c0_359, %c19_360], %732 {strides = array<i32>} : memref<4x2x362xf32, #tpu.memory_space<vmem>>, vector<1x2x324xf32>,
    %c108 = arith.constant 108 : index
    %733 = memref.load %arg3[%c108] : memref<144xf32, #tpu.memory_space<smem>>
    %c0_361 = arith.constant 0 : index
    %c0_362 = arith.constant 0 : index
    %c0_363 = arith.constant 0 : index
    %734 = vector.load %arg1[%c0_361, %c0_362, %c0_363] : memref<4x2x384xf32, #tpu.memory_space<vmem>>, vector<1x2x324xf32>
    %735 = vector.shape_cast %734 : vector<1x2x324xf32> to vector<2x324xf32>
    %736 = vector.broadcast %733 : f32 to vector<2x324xf32>
    %737 = arith.mulf %735, %736 : vector<2x324xf32>
    %c109 = arith.constant 109 : index
    %738 = memref.load %arg3[%c109] : memref<144xf32, #tpu.memory_space<smem>>
    %c0_364 = arith.constant 0 : index
    %c0_365 = arith.constant 0 : index
    %c1_366 = arith.constant 1 : index
    %739 = vector.load %arg1[%c0_364, %c0_365, %c1_366] : memref<4x2x384xf32, #tpu.memory_space<vmem>>, vector<1x2x324xf32>
    %740 = vector.shape_cast %739 : vector<1x2x324xf32> to vector<2x324xf32>
    %741 = vector.broadcast %738 : f32 to vector<2x324xf32>
    %742 = arith.mulf %740, %741 : vector<2x324xf32>
    %743 = arith.addf %737, %742 : vector<2x324xf32>
    %c110 = arith.constant 110 : index
    %744 = memref.load %arg3[%c110] : memref<144xf32, #tpu.memory_space<smem>>
    %c0_367 = arith.constant 0 : index
    %c0_368 = arith.constant 0 : index
    %c2_369 = arith.constant 2 : index
    %745 = vector.load %arg1[%c0_367, %c0_368, %c2_369] : memref<4x2x384xf32, #tpu.memory_space<vmem>>, vector<1x2x324xf32>
    %746 = vector.shape_cast %745 : vector<1x2x324xf32> to vector<2x324xf32>
    %747 = vector.broadcast %744 : f32 to vector<2x324xf32>
    %748 = arith.mulf %746, %747 : vector<2x324xf32>
    %749 = arith.addf %743, %748 : vector<2x324xf32>
    %c111 = arith.constant 111 : index
    %750 = memref.load %arg3[%c111] : memref<144xf32, #tpu.memory_space<smem>>
    %c0_370 = arith.constant 0 : index
    %c0_371 = arith.constant 0 : index
    %c18_372 = arith.constant 18 : index
    %751 = vector.load %arg1[%c0_370, %c0_371, %c18_372] : memref<4x2x384xf32, #tpu.memory_space<vmem>>, vector<1x2x324xf32>
    %752 = vector.shape_cast %751 : vector<1x2x324xf32> to vector<2x324xf32>
    %753 = vector.broadcast %750 : f32 to vector<2x324xf32>
    %754 = arith.mulf %752, %753 : vector<2x324xf32>
    %755 = arith.addf %749, %754 : vector<2x324xf32>
    %c112 = arith.constant 112 : index
    %756 = memref.load %arg3[%c112] : memref<144xf32, #tpu.memory_space<smem>>
    %c0_373 = arith.constant 0 : index
    %c0_374 = arith.constant 0 : index
    %c19_375 = arith.constant 19 : index
    %757 = vector.load %arg1[%c0_373, %c0_374, %c19_375] : memref<4x2x384xf32, #tpu.memory_space<vmem>>, vector<1x2x324xf32>
    %758 = vector.shape_cast %757 : vector<1x2x324xf32> to vector<2x324xf32>
    %759 = vector.broadcast %756 : f32 to vector<2x324xf32>
    %760 = arith.mulf %758, %759 : vector<2x324xf32>
    %761 = arith.addf %755, %760 : vector<2x324xf32>
    %c113 = arith.constant 113 : index
    %762 = memref.load %arg3[%c113] : memref<144xf32, #tpu.memory_space<smem>>
    %c0_376 = arith.constant 0 : index
    %c0_377 = arith.constant 0 : index
    %c20_378 = arith.constant 20 : index
    %763 = vector.load %arg1[%c0_376, %c0_377, %c20_378] : memref<4x2x384xf32, #tpu.memory_space<vmem>>, vector<1x2x324xf32>
    %764 = vector.shape_cast %763 : vector<1x2x324xf32> to vector<2x324xf32>
    %765 = vector.broadcast %762 : f32 to vector<2x324xf32>
    %766 = arith.mulf %764, %765 : vector<2x324xf32>
    %767 = arith.addf %761, %766 : vector<2x324xf32>
    %c114 = arith.constant 114 : index
    %768 = memref.load %arg3[%c114] : memref<144xf32, #tpu.memory_space<smem>>
    %c0_379 = arith.constant 0 : index
    %c0_380 = arith.constant 0 : index
    %c36_381 = arith.constant 36 : index
    %769 = vector.load %arg1[%c0_379, %c0_380, %c36_381] : memref<4x2x384xf32, #tpu.memory_space<vmem>>, vector<1x2x324xf32>
    %770 = vector.shape_cast %769 : vector<1x2x324xf32> to vector<2x324xf32>
    %771 = vector.broadcast %768 : f32 to vector<2x324xf32>
    %772 = arith.mulf %770, %771 : vector<2x324xf32>
    %773 = arith.addf %767, %772 : vector<2x324xf32>
    %c115 = arith.constant 115 : index
    %774 = memref.load %arg3[%c115] : memref<144xf32, #tpu.memory_space<smem>>
    %c0_382 = arith.constant 0 : index
    %c0_383 = arith.constant 0 : index
    %c37_384 = arith.constant 37 : index
    %775 = vector.load %arg1[%c0_382, %c0_383, %c37_384] : memref<4x2x384xf32, #tpu.memory_space<vmem>>, vector<1x2x324xf32>
    %776 = vector.shape_cast %775 : vector<1x2x324xf32> to vector<2x324xf32>
    %777 = vector.broadcast %774 : f32 to vector<2x324xf32>
    %778 = arith.mulf %776, %777 : vector<2x324xf32>
    %779 = arith.addf %773, %778 : vector<2x324xf32>
    %c116 = arith.constant 116 : index
    %780 = memref.load %arg3[%c116] : memref<144xf32, #tpu.memory_space<smem>>
    %c0_385 = arith.constant 0 : index
    %c0_386 = arith.constant 0 : index
    %c38_387 = arith.constant 38 : index
    %781 = vector.load %arg1[%c0_385, %c0_386, %c38_387] : memref<4x2x384xf32, #tpu.memory_space<vmem>>, vector<1x2x324xf32>
    %782 = vector.shape_cast %781 : vector<1x2x324xf32> to vector<2x324xf32>
    %783 = vector.broadcast %780 : f32 to vector<2x324xf32>
    %784 = arith.mulf %782, %783 : vector<2x324xf32>
    %785 = arith.addf %779, %784 : vector<2x324xf32>
    %c117 = arith.constant 117 : index
    %786 = memref.load %arg3[%c117] : memref<144xf32, #tpu.memory_space<smem>>
    %c1_388 = arith.constant 1 : index
    %c0_389 = arith.constant 0 : index
    %c0_390 = arith.constant 0 : index
    %787 = vector.load %arg1[%c1_388, %c0_389, %c0_390] : memref<4x2x384xf32, #tpu.memory_space<vmem>>, vector<1x2x324xf32>
    %788 = vector.shape_cast %787 : vector<1x2x324xf32> to vector<2x324xf32>
    %789 = vector.broadcast %786 : f32 to vector<2x324xf32>
    %790 = arith.mulf %788, %789 : vector<2x324xf32>
    %791 = arith.addf %785, %790 : vector<2x324xf32>
    %c118 = arith.constant 118 : index
    %792 = memref.load %arg3[%c118] : memref<144xf32, #tpu.memory_space<smem>>
    %c1_391 = arith.constant 1 : index
    %c0_392 = arith.constant 0 : index
    %c1_393 = arith.constant 1 : index
    %793 = vector.load %arg1[%c1_391, %c0_392, %c1_393] : memref<4x2x384xf32, #tpu.memory_space<vmem>>, vector<1x2x324xf32>
    %794 = vector.shape_cast %793 : vector<1x2x324xf32> to vector<2x324xf32>
    %795 = vector.broadcast %792 : f32 to vector<2x324xf32>
    %796 = arith.mulf %794, %795 : vector<2x324xf32>
    %797 = arith.addf %791, %796 : vector<2x324xf32>
    %c119 = arith.constant 119 : index
    %798 = memref.load %arg3[%c119] : memref<144xf32, #tpu.memory_space<smem>>
    %c1_394 = arith.constant 1 : index
    %c0_395 = arith.constant 0 : index
    %c2_396 = arith.constant 2 : index
    %799 = vector.load %arg1[%c1_394, %c0_395, %c2_396] : memref<4x2x384xf32, #tpu.memory_space<vmem>>, vector<1x2x324xf32>
    %800 = vector.shape_cast %799 : vector<1x2x324xf32> to vector<2x324xf32>
    %801 = vector.broadcast %798 : f32 to vector<2x324xf32>
    %802 = arith.mulf %800, %801 : vector<2x324xf32>
    %803 = arith.addf %797, %802 : vector<2x324xf32>
    %c120 = arith.constant 120 : index
    %804 = memref.load %arg3[%c120] : memref<144xf32, #tpu.memory_space<smem>>
    %c1_397 = arith.constant 1 : index
    %c0_398 = arith.constant 0 : index
    %c18_399 = arith.constant 18 : index
    %805 = vector.load %arg1[%c1_397, %c0_398, %c18_399] : memref<4x2x384xf32, #tpu.memory_space<vmem>>, vector<1x2x324xf32>
    %806 = vector.shape_cast %805 : vector<1x2x324xf32> to vector<2x324xf32>
    %807 = vector.broadcast %804 : f32 to vector<2x324xf32>
    %808 = arith.mulf %806, %807 : vector<2x324xf32>
    %809 = arith.addf %803, %808 : vector<2x324xf32>
    %c121 = arith.constant 121 : index
    %810 = memref.load %arg3[%c121] : memref<144xf32, #tpu.memory_space<smem>>
    %c1_400 = arith.constant 1 : index
    %c0_401 = arith.constant 0 : index
    %c19_402 = arith.constant 19 : index
    %811 = vector.load %arg1[%c1_400, %c0_401, %c19_402] : memref<4x2x384xf32, #tpu.memory_space<vmem>>, vector<1x2x324xf32>
    %812 = vector.shape_cast %811 : vector<1x2x324xf32> to vector<2x324xf32>
    %813 = vector.broadcast %810 : f32 to vector<2x324xf32>
    %814 = arith.mulf %812, %813 : vector<2x324xf32>
    %815 = arith.addf %809, %814 : vector<2x324xf32>
    %c122 = arith.constant 122 : index
    %816 = memref.load %arg3[%c122] : memref<144xf32, #tpu.memory_space<smem>>
    %c1_403 = arith.constant 1 : index
    %c0_404 = arith.constant 0 : index
    %c20_405 = arith.constant 20 : index
    %817 = vector.load %arg1[%c1_403, %c0_404, %c20_405] : memref<4x2x384xf32, #tpu.memory_space<vmem>>, vector<1x2x324xf32>
    %818 = vector.shape_cast %817 : vector<1x2x324xf32> to vector<2x324xf32>
    %819 = vector.broadcast %816 : f32 to vector<2x324xf32>
    %820 = arith.mulf %818, %819 : vector<2x324xf32>
    %821 = arith.addf %815, %820 : vector<2x324xf32>
    %c123 = arith.constant 123 : index
    %822 = memref.load %arg3[%c123] : memref<144xf32, #tpu.memory_space<smem>>
    %c1_406 = arith.constant 1 : index
    %c0_407 = arith.constant 0 : index
    %c36_408 = arith.constant 36 : index
    %823 = vector.load %arg1[%c1_406, %c0_407, %c36_408] : memref<4x2x384xf32, #tpu.memory_space<vmem>>, vector<1x2x324xf32>
    %824 = vector.shape_cast %823 : vector<1x2x324xf32> to vector<2x324xf32>
    %825 = vector.broadcast %822 : f32 to vector<2x324xf32>
    %826 = arith.mulf %824, %825 : vector<2x324xf32>
    %827 = arith.addf %821, %826 : vector<2x324xf32>
    %c124 = arith.constant 124 : index
    %828 = memref.load %arg3[%c124] : memref<144xf32, #tpu.memory_space<smem>>
    %c1_409 = arith.constant 1 : index
    %c0_410 = arith.constant 0 : index
    %c37_411 = arith.constant 37 : index
    %829 = vector.load %arg1[%c1_409, %c0_410, %c37_411] : memref<4x2x384xf32, #tpu.memory_space<vmem>>, vector<1x2x324xf32>
    %830 = vector.shape_cast %829 : vector<1x2x324xf32> to vector<2x324xf32>
    %831 = vector.broadcast %828 : f32 to vector<2x324xf32>
    %832 = arith.mulf %830, %831 : vector<2x324xf32>
    %833 = arith.addf %827, %832 : vector<2x324xf32>
    %c125 = arith.constant 125 : index
    %834 = memref.load %arg3[%c125] : memref<144xf32, #tpu.memory_space<smem>>
    %c1_412 = arith.constant 1 : index
    %c0_413 = arith.constant 0 : index
    %c38_414 = arith.constant 38 : index
    %835 = vector.load %arg1[%c1_412, %c0_413, %c38_414] : memref<4x2x384xf32, #tpu.memory_space<vmem>>, vector<1x2x324xf32>
    %836 = vector.shape_cast %835 : vector<1x2x324xf32> to vector<2x324xf32>
    %837 = vector.broadcast %834 : f32 to vector<2x324xf32>
    %838 = arith.mulf %836, %837 : vector<2x324xf32>
    %839 = arith.addf %833, %838 : vector<2x324xf32>
    %c126 = arith.constant 126 : index
    %840 = memref.load %arg3[%c126] : memref<144xf32, #tpu.memory_space<smem>>
    %c2_415 = arith.constant 2 : index
    %c0_416 = arith.constant 0 : index
    %c0_417 = arith.constant 0 : index
    %841 = vector.load %arg1[%c2_415, %c0_416, %c0_417] : memref<4x2x384xf32, #tpu.memory_space<vmem>>, vector<1x2x324xf32>
    %842 = vector.shape_cast %841 : vector<1x2x324xf32> to vector<2x324xf32>
    %843 = vector.broadcast %840 : f32 to vector<2x324xf32>
    %844 = arith.mulf %842, %843 : vector<2x324xf32>
    %845 = arith.addf %839, %844 : vector<2x324xf32>
    %c127 = arith.constant 127 : index
    %846 = memref.load %arg3[%c127] : memref<144xf32, #tpu.memory_space<smem>>
    %c2_418 = arith.constant 2 : index
    %c0_419 = arith.constant 0 : index
    %c1_420 = arith.constant 1 : index
    %847 = vector.load %arg1[%c2_418, %c0_419, %c1_420] : memref<4x2x384xf32, #tpu.memory_space<vmem>>, vector<1x2x324xf32>
    %848 = vector.shape_cast %847 : vector<1x2x324xf32> to vector<2x324xf32>
    %849 = vector.broadcast %846 : f32 to vector<2x324xf32>
    %850 = arith.mulf %848, %849 : vector<2x324xf32>
    %851 = arith.addf %845, %850 : vector<2x324xf32>
    %c128 = arith.constant 128 : index
    %852 = memref.load %arg3[%c128] : memref<144xf32, #tpu.memory_space<smem>>
    %c2_421 = arith.constant 2 : index
    %c0_422 = arith.constant 0 : index
    %c2_423 = arith.constant 2 : index
    %853 = vector.load %arg1[%c2_421, %c0_422, %c2_423] : memref<4x2x384xf32, #tpu.memory_space<vmem>>, vector<1x2x324xf32>
    %854 = vector.shape_cast %853 : vector<1x2x324xf32> to vector<2x324xf32>
    %855 = vector.broadcast %852 : f32 to vector<2x324xf32>
    %856 = arith.mulf %854, %855 : vector<2x324xf32>
    %857 = arith.addf %851, %856 : vector<2x324xf32>
    %c129 = arith.constant 129 : index
    %858 = memref.load %arg3[%c129] : memref<144xf32, #tpu.memory_space<smem>>
    %c2_424 = arith.constant 2 : index
    %c0_425 = arith.constant 0 : index
    %c18_426 = arith.constant 18 : index
    %859 = vector.load %arg1[%c2_424, %c0_425, %c18_426] : memref<4x2x384xf32, #tpu.memory_space<vmem>>, vector<1x2x324xf32>
    %860 = vector.shape_cast %859 : vector<1x2x324xf32> to vector<2x324xf32>
    %861 = vector.broadcast %858 : f32 to vector<2x324xf32>
    %862 = arith.mulf %860, %861 : vector<2x324xf32>
    %863 = arith.addf %857, %862 : vector<2x324xf32>
    %c130 = arith.constant 130 : index
    %864 = memref.load %arg3[%c130] : memref<144xf32, #tpu.memory_space<smem>>
    %c2_427 = arith.constant 2 : index
    %c0_428 = arith.constant 0 : index
    %c19_429 = arith.constant 19 : index
    %865 = vector.load %arg1[%c2_427, %c0_428, %c19_429] : memref<4x2x384xf32, #tpu.memory_space<vmem>>, vector<1x2x324xf32>
    %866 = vector.shape_cast %865 : vector<1x2x324xf32> to vector<2x324xf32>
    %867 = vector.broadcast %864 : f32 to vector<2x324xf32>
    %868 = arith.mulf %866, %867 : vector<2x324xf32>
    %869 = arith.addf %863, %868 : vector<2x324xf32>
    %c131 = arith.constant 131 : index
    %870 = memref.load %arg3[%c131] : memref<144xf32, #tpu.memory_space<smem>>
    %c2_430 = arith.constant 2 : index
    %c0_431 = arith.constant 0 : index
    %c20_432 = arith.constant 20 : index
    %871 = vector.load %arg1[%c2_430, %c0_431, %c20_432] : memref<4x2x384xf32, #tpu.memory_space<vmem>>, vector<1x2x324xf32>
    %872 = vector.shape_cast %871 : vector<1x2x324xf32> to vector<2x324xf32>
    %873 = vector.broadcast %870 : f32 to vector<2x324xf32>
    %874 = arith.mulf %872, %873 : vector<2x324xf32>
    %875 = arith.addf %869, %874 : vector<2x324xf32>
    %c132 = arith.constant 132 : index
    %876 = memref.load %arg3[%c132] : memref<144xf32, #tpu.memory_space<smem>>
    %c2_433 = arith.constant 2 : index
    %c0_434 = arith.constant 0 : index
    %c36_435 = arith.constant 36 : index
    %877 = vector.load %arg1[%c2_433, %c0_434, %c36_435] : memref<4x2x384xf32, #tpu.memory_space<vmem>>, vector<1x2x324xf32>
    %878 = vector.shape_cast %877 : vector<1x2x324xf32> to vector<2x324xf32>
    %879 = vector.broadcast %876 : f32 to vector<2x324xf32>
    %880 = arith.mulf %878, %879 : vector<2x324xf32>
    %881 = arith.addf %875, %880 : vector<2x324xf32>
    %c133 = arith.constant 133 : index
    %882 = memref.load %arg3[%c133] : memref<144xf32, #tpu.memory_space<smem>>
    %c2_436 = arith.constant 2 : index
    %c0_437 = arith.constant 0 : index
    %c37_438 = arith.constant 37 : index
    %883 = vector.load %arg1[%c2_436, %c0_437, %c37_438] : memref<4x2x384xf32, #tpu.memory_space<vmem>>, vector<1x2x324xf32>
    %884 = vector.shape_cast %883 : vector<1x2x324xf32> to vector<2x324xf32>
    %885 = vector.broadcast %882 : f32 to vector<2x324xf32>
    %886 = arith.mulf %884, %885 : vector<2x324xf32>
    %887 = arith.addf %881, %886 : vector<2x324xf32>
    %c134 = arith.constant 134 : index
    %888 = memref.load %arg3[%c134] : memref<144xf32, #tpu.memory_space<smem>>
    %c2_439 = arith.constant 2 : index
    %c0_440 = arith.constant 0 : index
    %c38_441 = arith.constant 38 : index
    %889 = vector.load %arg1[%c2_439, %c0_440, %c38_441] : memref<4x2x384xf32, #tpu.memory_space<vmem>>, vector<1x2x324xf32>
    %890 = vector.shape_cast %889 : vector<1x2x324xf32> to vector<2x324xf32>
    %891 = vector.broadcast %888 : f32 to vector<2x324xf32>
    %892 = arith.mulf %890, %891 : vector<2x324xf32>
    %893 = arith.addf %887, %892 : vector<2x324xf32>
    %c135 = arith.constant 135 : index
    %894 = memref.load %arg3[%c135] : memref<144xf32, #tpu.memory_space<smem>>
    %c3_442 = arith.constant 3 : index
    %c0_443 = arith.constant 0 : index
    %c0_444 = arith.constant 0 : index
    %895 = vector.load %arg1[%c3_442, %c0_443, %c0_444] : memref<4x2x384xf32, #tpu.memory_space<vmem>>, vector<1x2x324xf32>
    %896 = vector.shape_cast %895 : vector<1x2x324xf32> to vector<2x324xf32>
    %897 = vector.broadcast %894 : f32 to vector<2x324xf32>
    %898 = arith.mulf %896, %897 : vector<2x324xf32>
    %899 = arith.addf %893, %898 : vector<2x324xf32>
    %c136 = arith.constant 136 : index
    %900 = memref.load %arg3[%c136] : memref<144xf32, #tpu.memory_space<smem>>
    %c3_445 = arith.constant 3 : index
    %c0_446 = arith.constant 0 : index
    %c1_447 = arith.constant 1 : index
    %901 = vector.load %arg1[%c3_445, %c0_446, %c1_447] : memref<4x2x384xf32, #tpu.memory_space<vmem>>, vector<1x2x324xf32>
    %902 = vector.shape_cast %901 : vector<1x2x324xf32> to vector<2x324xf32>
    %903 = vector.broadcast %900 : f32 to vector<2x324xf32>
    %904 = arith.mulf %902, %903 : vector<2x324xf32>
    %905 = arith.addf %899, %904 : vector<2x324xf32>
    %c137 = arith.constant 137 : index
    %906 = memref.load %arg3[%c137] : memref<144xf32, #tpu.memory_space<smem>>
    %c3_448 = arith.constant 3 : index
    %c0_449 = arith.constant 0 : index
    %c2_450 = arith.constant 2 : index
    %907 = vector.load %arg1[%c3_448, %c0_449, %c2_450] : memref<4x2x384xf32, #tpu.memory_space<vmem>>, vector<1x2x324xf32>
    %908 = vector.shape_cast %907 : vector<1x2x324xf32> to vector<2x324xf32>
    %909 = vector.broadcast %906 : f32 to vector<2x324xf32>
    %910 = arith.mulf %908, %909 : vector<2x324xf32>
    %911 = arith.addf %905, %910 : vector<2x324xf32>
    %c138 = arith.constant 138 : index
    %912 = memref.load %arg3[%c138] : memref<144xf32, #tpu.memory_space<smem>>
    %c3_451 = arith.constant 3 : index
    %c0_452 = arith.constant 0 : index
    %c18_453 = arith.constant 18 : index
    %913 = vector.load %arg1[%c3_451, %c0_452, %c18_453] : memref<4x2x384xf32, #tpu.memory_space<vmem>>, vector<1x2x324xf32>
    %914 = vector.shape_cast %913 : vector<1x2x324xf32> to vector<2x324xf32>
    %915 = vector.broadcast %912 : f32 to vector<2x324xf32>
    %916 = arith.mulf %914, %915 : vector<2x324xf32>
    %917 = arith.addf %911, %916 : vector<2x324xf32>
    %c139 = arith.constant 139 : index
    %918 = memref.load %arg3[%c139] : memref<144xf32, #tpu.memory_space<smem>>
    %c3_454 = arith.constant 3 : index
    %c0_455 = arith.constant 0 : index
    %c19_456 = arith.constant 19 : index
    %919 = vector.load %arg1[%c3_454, %c0_455, %c19_456] : memref<4x2x384xf32, #tpu.memory_space<vmem>>, vector<1x2x324xf32>
    %920 = vector.shape_cast %919 : vector<1x2x324xf32> to vector<2x324xf32>
    %921 = vector.broadcast %918 : f32 to vector<2x324xf32>
    %922 = arith.mulf %920, %921 : vector<2x324xf32>
    %923 = arith.addf %917, %922 : vector<2x324xf32>
    %c140 = arith.constant 140 : index
    %924 = memref.load %arg3[%c140] : memref<144xf32, #tpu.memory_space<smem>>
    %c3_457 = arith.constant 3 : index
    %c0_458 = arith.constant 0 : index
    %c20_459 = arith.constant 20 : index
    %925 = vector.load %arg1[%c3_457, %c0_458, %c20_459] : memref<4x2x384xf32, #tpu.memory_space<vmem>>, vector<1x2x324xf32>
    %926 = vector.shape_cast %925 : vector<1x2x324xf32> to vector<2x324xf32>
    %927 = vector.broadcast %924 : f32 to vector<2x324xf32>
    %928 = arith.mulf %926, %927 : vector<2x324xf32>
    %929 = arith.addf %923, %928 : vector<2x324xf32>
    %c141 = arith.constant 141 : index
    %930 = memref.load %arg3[%c141] : memref<144xf32, #tpu.memory_space<smem>>
    %c3_460 = arith.constant 3 : index
    %c0_461 = arith.constant 0 : index
    %c36_462 = arith.constant 36 : index
    %931 = vector.load %arg1[%c3_460, %c0_461, %c36_462] : memref<4x2x384xf32, #tpu.memory_space<vmem>>, vector<1x2x324xf32>
    %932 = vector.shape_cast %931 : vector<1x2x324xf32> to vector<2x324xf32>
    %933 = vector.broadcast %930 : f32 to vector<2x324xf32>
    %934 = arith.mulf %932, %933 : vector<2x324xf32>
    %935 = arith.addf %929, %934 : vector<2x324xf32>
    %c142 = arith.constant 142 : index
    %936 = memref.load %arg3[%c142] : memref<144xf32, #tpu.memory_space<smem>>
    %c3_463 = arith.constant 3 : index
    %c0_464 = arith.constant 0 : index
    %c37_465 = arith.constant 37 : index
    %937 = vector.load %arg1[%c3_463, %c0_464, %c37_465] : memref<4x2x384xf32, #tpu.memory_space<vmem>>, vector<1x2x324xf32>
    %938 = vector.shape_cast %937 : vector<1x2x324xf32> to vector<2x324xf32>
    %939 = vector.broadcast %936 : f32 to vector<2x324xf32>
    %940 = arith.mulf %938, %939 : vector<2x324xf32>
    %941 = arith.addf %935, %940 : vector<2x324xf32>
    %c143 = arith.constant 143 : index
    %942 = memref.load %arg3[%c143] : memref<144xf32, #tpu.memory_space<smem>>
    %c3_466 = arith.constant 3 : index
    %c0_467 = arith.constant 0 : index
    %c38_468 = arith.constant 38 : index
    %943 = vector.load %arg1[%c3_466, %c0_467, %c38_468] : memref<4x2x384xf32, #tpu.memory_space<vmem>>, vector<1x2x324xf32>
    %944 = vector.shape_cast %943 : vector<1x2x324xf32> to vector<2x324xf32>
    %945 = vector.broadcast %942 : f32 to vector<2x324xf32>
    %946 = arith.mulf %944, %945 : vector<2x324xf32>
    %947 = arith.addf %941, %946 : vector<2x324xf32>
    %c3_469 = arith.constant 3 : index
    %948 = memref.load %arg4[%c3_469] : memref<4xf32, #tpu.memory_space<smem>>
    %949 = vector.broadcast %948 : f32 to vector<2x324xf32>
    %950 = arith.addf %947, %949 : vector<2x324xf32>
    %951 = vector.broadcast %0 : vector<1x324xf32> to vector<2x324xf32>
    %952 = arith.mulf %950, %951 : vector<2x324xf32>
    %cst_470 = arith.constant dense<0.000000e+00> : vector<2xf32>
    %953 = vector.multi_reduction <add>, %952, %cst_470 [1] : vector<2x324xf32> to vector<2xf32>
    %954 = vector.shape_cast %953 : vector<2xf32> to vector<2x1xf32>
    %cst_471 = arith.constant 3.906250e-03 : f32
    %955 = vector.broadcast %cst_471 : f32 to vector<2x1xf32>
    %956 = arith.mulf %954, %955 : vector<2x1xf32>
    %957 = vector.broadcast %956 : vector<2x1xf32> to vector<2x324xf32>
    %958 = arith.subf %950, %957 : vector<2x324xf32>
    %959 = vector.broadcast %0 : vector<1x324xf32> to vector<2x324xf32>
    %960 = arith.mulf %958, %959 : vector<2x324xf32>
    %961 = arith.mulf %960, %960 : vector<2x324xf32>
    %cst_472 = arith.constant dense<0.000000e+00> : vector<2xf32>
    %962 = vector.multi_reduction <add>, %961, %cst_472 [1] : vector<2x324xf32> to vector<2xf32>
    %963 = vector.shape_cast %962 : vector<2xf32> to vector<2x1xf32>
    %cst_473 = arith.constant 3.906250e-03 : f32
    %964 = vector.broadcast %cst_473 : f32 to vector<2x1xf32>
    %965 = arith.mulf %963, %964 : vector<2x1xf32>
    %cst_474 = arith.constant 9.99999974E-6 : f32
    %966 = vector.broadcast %cst_474 : f32 to vector<2x1xf32>
    %967 = arith.addf %965, %966 : vector<2x1xf32>
    %968 = math.rsqrt %967 : vector<2x1xf32>
    %969 = vector.broadcast %968 : vector<2x1xf32> to vector<2x324xf32>
    %970 = arith.mulf %960, %969 : vector<2x324xf32>
    %cst_475 = arith.constant 0.000000e+00 : f32
    %971 = vector.broadcast %cst_475 : f32 to vector<2x324xf32>
    %972 = arith.maximumf %970, %971 : vector<2x324xf32>
    %c3_476 = arith.constant 3 : index
    %c0_477 = arith.constant 0 : index
    %c19_478 = arith.constant 19 : index
    %973 = vector.load %arg8[%c3_476, %c0_477, %c19_478] : memref<4x2x362xf32, #tpu.memory_space<vmem>>, vector<1x2x324xf32>
    %974 = vector.shape_cast %973 : vector<1x2x324xf32> to vector<2x324xf32>
    %975 = vector.shape_cast %972 : vector<2x324xf32> to vector<1x2x324xf32>
    tpu.vector_store %arg8[%c3_476, %c0_477, %c19_478], %975 {strides = array<i32>} : memref<4x2x362xf32, #tpu.memory_space<vmem>>, vector<1x2x324xf32>,
    %c0_479 = arith.constant 0 : index
    %976 = memref.load %arg5[%c0_479] : memref<144xf32, #tpu.memory_space<smem>>
    %c0_480 = arith.constant 0 : index
    %c0_481 = arith.constant 0 : index
    %c0_482 = arith.constant 0 : index
    %977 = vector.load %arg8[%c0_480, %c0_481, %c0_482] : memref<4x2x362xf32, #tpu.memory_space<vmem>>, vector<1x2x324xf32>
    %978 = vector.shape_cast %977 : vector<1x2x324xf32> to vector<2x324xf32>
    %979 = vector.broadcast %976 : f32 to vector<2x324xf32>
    %980 = arith.mulf %978, %979 : vector<2x324xf32>
    %c1_483 = arith.constant 1 : index
    %981 = memref.load %arg5[%c1_483] : memref<144xf32, #tpu.memory_space<smem>>
    %c0_484 = arith.constant 0 : index
    %c0_485 = arith.constant 0 : index
    %c1_486 = arith.constant 1 : index
    %982 = vector.load %arg8[%c0_484, %c0_485, %c1_486] : memref<4x2x362xf32, #tpu.memory_space<vmem>>, vector<1x2x324xf32>
    %983 = vector.shape_cast %982 : vector<1x2x324xf32> to vector<2x324xf32>
    %984 = vector.broadcast %981 : f32 to vector<2x324xf32>
    %985 = arith.mulf %983, %984 : vector<2x324xf32>
    %986 = arith.addf %980, %985 : vector<2x324xf32>
    %c2_487 = arith.constant 2 : index
    %987 = memref.load %arg5[%c2_487] : memref<144xf32, #tpu.memory_space<smem>>
    %c0_488 = arith.constant 0 : index
    %c0_489 = arith.constant 0 : index
    %c2_490 = arith.constant 2 : index
    %988 = vector.load %arg8[%c0_488, %c0_489, %c2_490] : memref<4x2x362xf32, #tpu.memory_space<vmem>>, vector<1x2x324xf32>
    %989 = vector.shape_cast %988 : vector<1x2x324xf32> to vector<2x324xf32>
    %990 = vector.broadcast %987 : f32 to vector<2x324xf32>
    %991 = arith.mulf %989, %990 : vector<2x324xf32>
    %992 = arith.addf %986, %991 : vector<2x324xf32>
    %c3_491 = arith.constant 3 : index
    %993 = memref.load %arg5[%c3_491] : memref<144xf32, #tpu.memory_space<smem>>
    %c0_492 = arith.constant 0 : index
    %c0_493 = arith.constant 0 : index
    %c18_494 = arith.constant 18 : index
    %994 = vector.load %arg8[%c0_492, %c0_493, %c18_494] : memref<4x2x362xf32, #tpu.memory_space<vmem>>, vector<1x2x324xf32>
    %995 = vector.shape_cast %994 : vector<1x2x324xf32> to vector<2x324xf32>
    %996 = vector.broadcast %993 : f32 to vector<2x324xf32>
    %997 = arith.mulf %995, %996 : vector<2x324xf32>
    %998 = arith.addf %992, %997 : vector<2x324xf32>
    %c4_495 = arith.constant 4 : index
    %999 = memref.load %arg5[%c4_495] : memref<144xf32, #tpu.memory_space<smem>>
    %c0_496 = arith.constant 0 : index
    %c0_497 = arith.constant 0 : index
    %c19_498 = arith.constant 19 : index
    %1000 = vector.load %arg8[%c0_496, %c0_497, %c19_498] : memref<4x2x362xf32, #tpu.memory_space<vmem>>, vector<1x2x324xf32>
    %1001 = vector.shape_cast %1000 : vector<1x2x324xf32> to vector<2x324xf32>
    %1002 = vector.broadcast %999 : f32 to vector<2x324xf32>
    %1003 = arith.mulf %1001, %1002 : vector<2x324xf32>
    %1004 = arith.addf %998, %1003 : vector<2x324xf32>
    %c5_499 = arith.constant 5 : index
    %1005 = memref.load %arg5[%c5_499] : memref<144xf32, #tpu.memory_space<smem>>
    %c0_500 = arith.constant 0 : index
    %c0_501 = arith.constant 0 : index
    %c20_502 = arith.constant 20 : index
    %1006 = vector.load %arg8[%c0_500, %c0_501, %c20_502] : memref<4x2x362xf32, #tpu.memory_space<vmem>>, vector<1x2x324xf32>
    %1007 = vector.shape_cast %1006 : vector<1x2x324xf32> to vector<2x324xf32>
    %1008 = vector.broadcast %1005 : f32 to vector<2x324xf32>
    %1009 = arith.mulf %1007, %1008 : vector<2x324xf32>
    %1010 = arith.addf %1004, %1009 : vector<2x324xf32>
    %c6_503 = arith.constant 6 : index
    %1011 = memref.load %arg5[%c6_503] : memref<144xf32, #tpu.memory_space<smem>>
    %c0_504 = arith.constant 0 : index
    %c0_505 = arith.constant 0 : index
    %c36_506 = arith.constant 36 : index
    %1012 = vector.load %arg8[%c0_504, %c0_505, %c36_506] : memref<4x2x362xf32, #tpu.memory_space<vmem>>, vector<1x2x324xf32>
    %1013 = vector.shape_cast %1012 : vector<1x2x324xf32> to vector<2x324xf32>
    %1014 = vector.broadcast %1011 : f32 to vector<2x324xf32>
    %1015 = arith.mulf %1013, %1014 : vector<2x324xf32>
    %1016 = arith.addf %1010, %1015 : vector<2x324xf32>
    %c7_507 = arith.constant 7 : index
    %1017 = memref.load %arg5[%c7_507] : memref<144xf32, #tpu.memory_space<smem>>
    %c0_508 = arith.constant 0 : index
    %c0_509 = arith.constant 0 : index
    %c37_510 = arith.constant 37 : index
    %1018 = vector.load %arg8[%c0_508, %c0_509, %c37_510] : memref<4x2x362xf32, #tpu.memory_space<vmem>>, vector<1x2x324xf32>
    %1019 = vector.shape_cast %1018 : vector<1x2x324xf32> to vector<2x324xf32>
    %1020 = vector.broadcast %1017 : f32 to vector<2x324xf32>
    %1021 = arith.mulf %1019, %1020 : vector<2x324xf32>
    %1022 = arith.addf %1016, %1021 : vector<2x324xf32>
    %c8_511 = arith.constant 8 : index
    %1023 = memref.load %arg5[%c8_511] : memref<144xf32, #tpu.memory_space<smem>>
    %c0_512 = arith.constant 0 : index
    %c0_513 = arith.constant 0 : index
    %c38_514 = arith.constant 38 : index
    %1024 = vector.load %arg8[%c0_512, %c0_513, %c38_514] : memref<4x2x362xf32, #tpu.memory_space<vmem>>, vector<1x2x324xf32>
    %1025 = vector.shape_cast %1024 : vector<1x2x324xf32> to vector<2x324xf32>
    %1026 = vector.broadcast %1023 : f32 to vector<2x324xf32>
    %1027 = arith.mulf %1025, %1026 : vector<2x324xf32>
    %1028 = arith.addf %1022, %1027 : vector<2x324xf32>
    %c9_515 = arith.constant 9 : index
    %1029 = memref.load %arg5[%c9_515] : memref<144xf32, #tpu.memory_space<smem>>
    %c1_516 = arith.constant 1 : index
    %c0_517 = arith.constant 0 : index
    %c0_518 = arith.constant 0 : index
    %1030 = vector.load %arg8[%c1_516, %c0_517, %c0_518] : memref<4x2x362xf32, #tpu.memory_space<vmem>>, vector<1x2x324xf32>
    %1031 = vector.shape_cast %1030 : vector<1x2x324xf32> to vector<2x324xf32>
    %1032 = vector.broadcast %1029 : f32 to vector<2x324xf32>
    %1033 = arith.mulf %1031, %1032 : vector<2x324xf32>
    %1034 = arith.addf %1028, %1033 : vector<2x324xf32>
    %c10_519 = arith.constant 10 : index
    %1035 = memref.load %arg5[%c10_519] : memref<144xf32, #tpu.memory_space<smem>>
    %c1_520 = arith.constant 1 : index
    %c0_521 = arith.constant 0 : index
    %c1_522 = arith.constant 1 : index
    %1036 = vector.load %arg8[%c1_520, %c0_521, %c1_522] : memref<4x2x362xf32, #tpu.memory_space<vmem>>, vector<1x2x324xf32>
    %1037 = vector.shape_cast %1036 : vector<1x2x324xf32> to vector<2x324xf32>
    %1038 = vector.broadcast %1035 : f32 to vector<2x324xf32>
    %1039 = arith.mulf %1037, %1038 : vector<2x324xf32>
    %1040 = arith.addf %1034, %1039 : vector<2x324xf32>
    %c11_523 = arith.constant 11 : index
    %1041 = memref.load %arg5[%c11_523] : memref<144xf32, #tpu.memory_space<smem>>
    %c1_524 = arith.constant 1 : index
    %c0_525 = arith.constant 0 : index
    %c2_526 = arith.constant 2 : index
    %1042 = vector.load %arg8[%c1_524, %c0_525, %c2_526] : memref<4x2x362xf32, #tpu.memory_space<vmem>>, vector<1x2x324xf32>
    %1043 = vector.shape_cast %1042 : vector<1x2x324xf32> to vector<2x324xf32>
    %1044 = vector.broadcast %1041 : f32 to vector<2x324xf32>
    %1045 = arith.mulf %1043, %1044 : vector<2x324xf32>
    %1046 = arith.addf %1040, %1045 : vector<2x324xf32>
    %c12_527 = arith.constant 12 : index
    %1047 = memref.load %arg5[%c12_527] : memref<144xf32, #tpu.memory_space<smem>>
    %c1_528 = arith.constant 1 : index
    %c0_529 = arith.constant 0 : index
    %c18_530 = arith.constant 18 : index
    %1048 = vector.load %arg8[%c1_528, %c0_529, %c18_530] : memref<4x2x362xf32, #tpu.memory_space<vmem>>, vector<1x2x324xf32>
    %1049 = vector.shape_cast %1048 : vector<1x2x324xf32> to vector<2x324xf32>
    %1050 = vector.broadcast %1047 : f32 to vector<2x324xf32>
    %1051 = arith.mulf %1049, %1050 : vector<2x324xf32>
    %1052 = arith.addf %1046, %1051 : vector<2x324xf32>
    %c13_531 = arith.constant 13 : index
    %1053 = memref.load %arg5[%c13_531] : memref<144xf32, #tpu.memory_space<smem>>
    %c1_532 = arith.constant 1 : index
    %c0_533 = arith.constant 0 : index
    %c19_534 = arith.constant 19 : index
    %1054 = vector.load %arg8[%c1_532, %c0_533, %c19_534] : memref<4x2x362xf32, #tpu.memory_space<vmem>>, vector<1x2x324xf32>
    %1055 = vector.shape_cast %1054 : vector<1x2x324xf32> to vector<2x324xf32>
    %1056 = vector.broadcast %1053 : f32 to vector<2x324xf32>
    %1057 = arith.mulf %1055, %1056 : vector<2x324xf32>
    %1058 = arith.addf %1052, %1057 : vector<2x324xf32>
    %c14_535 = arith.constant 14 : index
    %1059 = memref.load %arg5[%c14_535] : memref<144xf32, #tpu.memory_space<smem>>
    %c1_536 = arith.constant 1 : index
    %c0_537 = arith.constant 0 : index
    %c20_538 = arith.constant 20 : index
    %1060 = vector.load %arg8[%c1_536, %c0_537, %c20_538] : memref<4x2x362xf32, #tpu.memory_space<vmem>>, vector<1x2x324xf32>
    %1061 = vector.shape_cast %1060 : vector<1x2x324xf32> to vector<2x324xf32>
    %1062 = vector.broadcast %1059 : f32 to vector<2x324xf32>
    %1063 = arith.mulf %1061, %1062 : vector<2x324xf32>
    %1064 = arith.addf %1058, %1063 : vector<2x324xf32>
    %c15_539 = arith.constant 15 : index
    %1065 = memref.load %arg5[%c15_539] : memref<144xf32, #tpu.memory_space<smem>>
    %c1_540 = arith.constant 1 : index
    %c0_541 = arith.constant 0 : index
    %c36_542 = arith.constant 36 : index
    %1066 = vector.load %arg8[%c1_540, %c0_541, %c36_542] : memref<4x2x362xf32, #tpu.memory_space<vmem>>, vector<1x2x324xf32>
    %1067 = vector.shape_cast %1066 : vector<1x2x324xf32> to vector<2x324xf32>
    %1068 = vector.broadcast %1065 : f32 to vector<2x324xf32>
    %1069 = arith.mulf %1067, %1068 : vector<2x324xf32>
    %1070 = arith.addf %1064, %1069 : vector<2x324xf32>
    %c16_543 = arith.constant 16 : index
    %1071 = memref.load %arg5[%c16_543] : memref<144xf32, #tpu.memory_space<smem>>
    %c1_544 = arith.constant 1 : index
    %c0_545 = arith.constant 0 : index
    %c37_546 = arith.constant 37 : index
    %1072 = vector.load %arg8[%c1_544, %c0_545, %c37_546] : memref<4x2x362xf32, #tpu.memory_space<vmem>>, vector<1x2x324xf32>
    %1073 = vector.shape_cast %1072 : vector<1x2x324xf32> to vector<2x324xf32>
    %1074 = vector.broadcast %1071 : f32 to vector<2x324xf32>
    %1075 = arith.mulf %1073, %1074 : vector<2x324xf32>
    %1076 = arith.addf %1070, %1075 : vector<2x324xf32>
    %c17_547 = arith.constant 17 : index
    %1077 = memref.load %arg5[%c17_547] : memref<144xf32, #tpu.memory_space<smem>>
    %c1_548 = arith.constant 1 : index
    %c0_549 = arith.constant 0 : index
    %c38_550 = arith.constant 38 : index
    %1078 = vector.load %arg8[%c1_548, %c0_549, %c38_550] : memref<4x2x362xf32, #tpu.memory_space<vmem>>, vector<1x2x324xf32>
    %1079 = vector.shape_cast %1078 : vector<1x2x324xf32> to vector<2x324xf32>
    %1080 = vector.broadcast %1077 : f32 to vector<2x324xf32>
    %1081 = arith.mulf %1079, %1080 : vector<2x324xf32>
    %1082 = arith.addf %1076, %1081 : vector<2x324xf32>
    %c18_551 = arith.constant 18 : index
    %1083 = memref.load %arg5[%c18_551] : memref<144xf32, #tpu.memory_space<smem>>
    %c2_552 = arith.constant 2 : index
    %c0_553 = arith.constant 0 : index
    %c0_554 = arith.constant 0 : index
    %1084 = vector.load %arg8[%c2_552, %c0_553, %c0_554] : memref<4x2x362xf32, #tpu.memory_space<vmem>>, vector<1x2x324xf32>
    %1085 = vector.shape_cast %1084 : vector<1x2x324xf32> to vector<2x324xf32>
    %1086 = vector.broadcast %1083 : f32 to vector<2x324xf32>
    %1087 = arith.mulf %1085, %1086 : vector<2x324xf32>
    %1088 = arith.addf %1082, %1087 : vector<2x324xf32>
    %c19_555 = arith.constant 19 : index
    %1089 = memref.load %arg5[%c19_555] : memref<144xf32, #tpu.memory_space<smem>>
    %c2_556 = arith.constant 2 : index
    %c0_557 = arith.constant 0 : index
    %c1_558 = arith.constant 1 : index
    %1090 = vector.load %arg8[%c2_556, %c0_557, %c1_558] : memref<4x2x362xf32, #tpu.memory_space<vmem>>, vector<1x2x324xf32>
    %1091 = vector.shape_cast %1090 : vector<1x2x324xf32> to vector<2x324xf32>
    %1092 = vector.broadcast %1089 : f32 to vector<2x324xf32>
    %1093 = arith.mulf %1091, %1092 : vector<2x324xf32>
    %1094 = arith.addf %1088, %1093 : vector<2x324xf32>
    %c20_559 = arith.constant 20 : index
    %1095 = memref.load %arg5[%c20_559] : memref<144xf32, #tpu.memory_space<smem>>
    %c2_560 = arith.constant 2 : index
    %c0_561 = arith.constant 0 : index
    %c2_562 = arith.constant 2 : index
    %1096 = vector.load %arg8[%c2_560, %c0_561, %c2_562] : memref<4x2x362xf32, #tpu.memory_space<vmem>>, vector<1x2x324xf32>
    %1097 = vector.shape_cast %1096 : vector<1x2x324xf32> to vector<2x324xf32>
    %1098 = vector.broadcast %1095 : f32 to vector<2x324xf32>
    %1099 = arith.mulf %1097, %1098 : vector<2x324xf32>
    %1100 = arith.addf %1094, %1099 : vector<2x324xf32>
    %c21_563 = arith.constant 21 : index
    %1101 = memref.load %arg5[%c21_563] : memref<144xf32, #tpu.memory_space<smem>>
    %c2_564 = arith.constant 2 : index
    %c0_565 = arith.constant 0 : index
    %c18_566 = arith.constant 18 : index
    %1102 = vector.load %arg8[%c2_564, %c0_565, %c18_566] : memref<4x2x362xf32, #tpu.memory_space<vmem>>, vector<1x2x324xf32>
    %1103 = vector.shape_cast %1102 : vector<1x2x324xf32> to vector<2x324xf32>
    %1104 = vector.broadcast %1101 : f32 to vector<2x324xf32>
    %1105 = arith.mulf %1103, %1104 : vector<2x324xf32>
    %1106 = arith.addf %1100, %1105 : vector<2x324xf32>
    %c22_567 = arith.constant 22 : index
    %1107 = memref.load %arg5[%c22_567] : memref<144xf32, #tpu.memory_space<smem>>
    %c2_568 = arith.constant 2 : index
    %c0_569 = arith.constant 0 : index
    %c19_570 = arith.constant 19 : index
    %1108 = vector.load %arg8[%c2_568, %c0_569, %c19_570] : memref<4x2x362xf32, #tpu.memory_space<vmem>>, vector<1x2x324xf32>
    %1109 = vector.shape_cast %1108 : vector<1x2x324xf32> to vector<2x324xf32>
    %1110 = vector.broadcast %1107 : f32 to vector<2x324xf32>
    %1111 = arith.mulf %1109, %1110 : vector<2x324xf32>
    %1112 = arith.addf %1106, %1111 : vector<2x324xf32>
    %c23_571 = arith.constant 23 : index
    %1113 = memref.load %arg5[%c23_571] : memref<144xf32, #tpu.memory_space<smem>>
    %c2_572 = arith.constant 2 : index
    %c0_573 = arith.constant 0 : index
    %c20_574 = arith.constant 20 : index
    %1114 = vector.load %arg8[%c2_572, %c0_573, %c20_574] : memref<4x2x362xf32, #tpu.memory_space<vmem>>, vector<1x2x324xf32>
    %1115 = vector.shape_cast %1114 : vector<1x2x324xf32> to vector<2x324xf32>
    %1116 = vector.broadcast %1113 : f32 to vector<2x324xf32>
    %1117 = arith.mulf %1115, %1116 : vector<2x324xf32>
    %1118 = arith.addf %1112, %1117 : vector<2x324xf32>
    %c24_575 = arith.constant 24 : index
    %1119 = memref.load %arg5[%c24_575] : memref<144xf32, #tpu.memory_space<smem>>
    %c2_576 = arith.constant 2 : index
    %c0_577 = arith.constant 0 : index
    %c36_578 = arith.constant 36 : index
    %1120 = vector.load %arg8[%c2_576, %c0_577, %c36_578] : memref<4x2x362xf32, #tpu.memory_space<vmem>>, vector<1x2x324xf32>
    %1121 = vector.shape_cast %1120 : vector<1x2x324xf32> to vector<2x324xf32>
    %1122 = vector.broadcast %1119 : f32 to vector<2x324xf32>
    %1123 = arith.mulf %1121, %1122 : vector<2x324xf32>
    %1124 = arith.addf %1118, %1123 : vector<2x324xf32>
    %c25_579 = arith.constant 25 : index
    %1125 = memref.load %arg5[%c25_579] : memref<144xf32, #tpu.memory_space<smem>>
    %c2_580 = arith.constant 2 : index
    %c0_581 = arith.constant 0 : index
    %c37_582 = arith.constant 37 : index
    %1126 = vector.load %arg8[%c2_580, %c0_581, %c37_582] : memref<4x2x362xf32, #tpu.memory_space<vmem>>, vector<1x2x324xf32>
    %1127 = vector.shape_cast %1126 : vector<1x2x324xf32> to vector<2x324xf32>
    %1128 = vector.broadcast %1125 : f32 to vector<2x324xf32>
    %1129 = arith.mulf %1127, %1128 : vector<2x324xf32>
    %1130 = arith.addf %1124, %1129 : vector<2x324xf32>
    %c26_583 = arith.constant 26 : index
    %1131 = memref.load %arg5[%c26_583] : memref<144xf32, #tpu.memory_space<smem>>
    %c2_584 = arith.constant 2 : index
    %c0_585 = arith.constant 0 : index
    %c38_586 = arith.constant 38 : index
    %1132 = vector.load %arg8[%c2_584, %c0_585, %c38_586] : memref<4x2x362xf32, #tpu.memory_space<vmem>>, vector<1x2x324xf32>
    %1133 = vector.shape_cast %1132 : vector<1x2x324xf32> to vector<2x324xf32>
    %1134 = vector.broadcast %1131 : f32 to vector<2x324xf32>
    %1135 = arith.mulf %1133, %1134 : vector<2x324xf32>
    %1136 = arith.addf %1130, %1135 : vector<2x324xf32>
    %c27_587 = arith.constant 27 : index
    %1137 = memref.load %arg5[%c27_587] : memref<144xf32, #tpu.memory_space<smem>>
    %c3_588 = arith.constant 3 : index
    %c0_589 = arith.constant 0 : index
    %c0_590 = arith.constant 0 : index
    %1138 = vector.load %arg8[%c3_588, %c0_589, %c0_590] : memref<4x2x362xf32, #tpu.memory_space<vmem>>, vector<1x2x324xf32>
    %1139 = vector.shape_cast %1138 : vector<1x2x324xf32> to vector<2x324xf32>
    %1140 = vector.broadcast %1137 : f32 to vector<2x324xf32>
    %1141 = arith.mulf %1139, %1140 : vector<2x324xf32>
    %1142 = arith.addf %1136, %1141 : vector<2x324xf32>
    %c28_591 = arith.constant 28 : index
    %1143 = memref.load %arg5[%c28_591] : memref<144xf32, #tpu.memory_space<smem>>
    %c3_592 = arith.constant 3 : index
    %c0_593 = arith.constant 0 : index
    %c1_594 = arith.constant 1 : index
    %1144 = vector.load %arg8[%c3_592, %c0_593, %c1_594] : memref<4x2x362xf32, #tpu.memory_space<vmem>>, vector<1x2x324xf32>
    %1145 = vector.shape_cast %1144 : vector<1x2x324xf32> to vector<2x324xf32>
    %1146 = vector.broadcast %1143 : f32 to vector<2x324xf32>
    %1147 = arith.mulf %1145, %1146 : vector<2x324xf32>
    %1148 = arith.addf %1142, %1147 : vector<2x324xf32>
    %c29_595 = arith.constant 29 : index
    %1149 = memref.load %arg5[%c29_595] : memref<144xf32, #tpu.memory_space<smem>>
    %c3_596 = arith.constant 3 : index
    %c0_597 = arith.constant 0 : index
    %c2_598 = arith.constant 2 : index
    %1150 = vector.load %arg8[%c3_596, %c0_597, %c2_598] : memref<4x2x362xf32, #tpu.memory_space<vmem>>, vector<1x2x324xf32>
    %1151 = vector.shape_cast %1150 : vector<1x2x324xf32> to vector<2x324xf32>
    %1152 = vector.broadcast %1149 : f32 to vector<2x324xf32>
    %1153 = arith.mulf %1151, %1152 : vector<2x324xf32>
    %1154 = arith.addf %1148, %1153 : vector<2x324xf32>
    %c30_599 = arith.constant 30 : index
    %1155 = memref.load %arg5[%c30_599] : memref<144xf32, #tpu.memory_space<smem>>
    %c3_600 = arith.constant 3 : index
    %c0_601 = arith.constant 0 : index
    %c18_602 = arith.constant 18 : index
    %1156 = vector.load %arg8[%c3_600, %c0_601, %c18_602] : memref<4x2x362xf32, #tpu.memory_space<vmem>>, vector<1x2x324xf32>
    %1157 = vector.shape_cast %1156 : vector<1x2x324xf32> to vector<2x324xf32>
    %1158 = vector.broadcast %1155 : f32 to vector<2x324xf32>
    %1159 = arith.mulf %1157, %1158 : vector<2x324xf32>
    %1160 = arith.addf %1154, %1159 : vector<2x324xf32>
    %c31_603 = arith.constant 31 : index
    %1161 = memref.load %arg5[%c31_603] : memref<144xf32, #tpu.memory_space<smem>>
    %c3_604 = arith.constant 3 : index
    %c0_605 = arith.constant 0 : index
    %c19_606 = arith.constant 19 : index
    %1162 = vector.load %arg8[%c3_604, %c0_605, %c19_606] : memref<4x2x362xf32, #tpu.memory_space<vmem>>, vector<1x2x324xf32>
    %1163 = vector.shape_cast %1162 : vector<1x2x324xf32> to vector<2x324xf32>
    %1164 = vector.broadcast %1161 : f32 to vector<2x324xf32>
    %1165 = arith.mulf %1163, %1164 : vector<2x324xf32>
    %1166 = arith.addf %1160, %1165 : vector<2x324xf32>
    %c32_607 = arith.constant 32 : index
    %1167 = memref.load %arg5[%c32_607] : memref<144xf32, #tpu.memory_space<smem>>
    %c3_608 = arith.constant 3 : index
    %c0_609 = arith.constant 0 : index
    %c20_610 = arith.constant 20 : index
    %1168 = vector.load %arg8[%c3_608, %c0_609, %c20_610] : memref<4x2x362xf32, #tpu.memory_space<vmem>>, vector<1x2x324xf32>
    %1169 = vector.shape_cast %1168 : vector<1x2x324xf32> to vector<2x324xf32>
    %1170 = vector.broadcast %1167 : f32 to vector<2x324xf32>
    %1171 = arith.mulf %1169, %1170 : vector<2x324xf32>
    %1172 = arith.addf %1166, %1171 : vector<2x324xf32>
    %c33_611 = arith.constant 33 : index
    %1173 = memref.load %arg5[%c33_611] : memref<144xf32, #tpu.memory_space<smem>>
    %c3_612 = arith.constant 3 : index
    %c0_613 = arith.constant 0 : index
    %c36_614 = arith.constant 36 : index
    %1174 = vector.load %arg8[%c3_612, %c0_613, %c36_614] : memref<4x2x362xf32, #tpu.memory_space<vmem>>, vector<1x2x324xf32>
    %1175 = vector.shape_cast %1174 : vector<1x2x324xf32> to vector<2x324xf32>
    %1176 = vector.broadcast %1173 : f32 to vector<2x324xf32>
    %1177 = arith.mulf %1175, %1176 : vector<2x324xf32>
    %1178 = arith.addf %1172, %1177 : vector<2x324xf32>
    %c34_615 = arith.constant 34 : index
    %1179 = memref.load %arg5[%c34_615] : memref<144xf32, #tpu.memory_space<smem>>
    %c3_616 = arith.constant 3 : index
    %c0_617 = arith.constant 0 : index
    %c37_618 = arith.constant 37 : index
    %1180 = vector.load %arg8[%c3_616, %c0_617, %c37_618] : memref<4x2x362xf32, #tpu.memory_space<vmem>>, vector<1x2x324xf32>
    %1181 = vector.shape_cast %1180 : vector<1x2x324xf32> to vector<2x324xf32>
    %1182 = vector.broadcast %1179 : f32 to vector<2x324xf32>
    %1183 = arith.mulf %1181, %1182 : vector<2x324xf32>
    %1184 = arith.addf %1178, %1183 : vector<2x324xf32>
    %c35_619 = arith.constant 35 : index
    %1185 = memref.load %arg5[%c35_619] : memref<144xf32, #tpu.memory_space<smem>>
    %c3_620 = arith.constant 3 : index
    %c0_621 = arith.constant 0 : index
    %c38_622 = arith.constant 38 : index
    %1186 = vector.load %arg8[%c3_620, %c0_621, %c38_622] : memref<4x2x362xf32, #tpu.memory_space<vmem>>, vector<1x2x324xf32>
    %1187 = vector.shape_cast %1186 : vector<1x2x324xf32> to vector<2x324xf32>
    %1188 = vector.broadcast %1185 : f32 to vector<2x324xf32>
    %1189 = arith.mulf %1187, %1188 : vector<2x324xf32>
    %1190 = arith.addf %1184, %1189 : vector<2x324xf32>
    %c0_623 = arith.constant 0 : index
    %1191 = memref.load %arg6[%c0_623] : memref<4xf32, #tpu.memory_space<smem>>
    %1192 = vector.broadcast %1191 : f32 to vector<2x324xf32>
    %1193 = arith.addf %1190, %1192 : vector<2x324xf32>
    %1194 = vector.broadcast %0 : vector<1x324xf32> to vector<2x324xf32>
    %1195 = arith.mulf %1193, %1194 : vector<2x324xf32>
    %cst_624 = arith.constant dense<0.000000e+00> : vector<2xf32>
    %1196 = vector.multi_reduction <add>, %1195, %cst_624 [1] : vector<2x324xf32> to vector<2xf32>
    %1197 = vector.shape_cast %1196 : vector<2xf32> to vector<2x1xf32>
    %cst_625 = arith.constant 3.906250e-03 : f32
    %1198 = vector.broadcast %cst_625 : f32 to vector<2x1xf32>
    %1199 = arith.mulf %1197, %1198 : vector<2x1xf32>
    %1200 = vector.broadcast %1199 : vector<2x1xf32> to vector<2x324xf32>
    %1201 = arith.subf %1193, %1200 : vector<2x324xf32>
    %1202 = vector.broadcast %0 : vector<1x324xf32> to vector<2x324xf32>
    %1203 = arith.mulf %1201, %1202 : vector<2x324xf32>
    %1204 = arith.mulf %1203, %1203 : vector<2x324xf32>
    %cst_626 = arith.constant dense<0.000000e+00> : vector<2xf32>
    %1205 = vector.multi_reduction <add>, %1204, %cst_626 [1] : vector<2x324xf32> to vector<2xf32>
    %1206 = vector.shape_cast %1205 : vector<2xf32> to vector<2x1xf32>
    %cst_627 = arith.constant 3.906250e-03 : f32
    %1207 = vector.broadcast %cst_627 : f32 to vector<2x1xf32>
    %1208 = arith.mulf %1206, %1207 : vector<2x1xf32>
    %cst_628 = arith.constant 9.99999974E-6 : f32
    %1209 = vector.broadcast %cst_628 : f32 to vector<2x1xf32>
    %1210 = arith.addf %1208, %1209 : vector<2x1xf32>
    %1211 = math.rsqrt %1210 : vector<2x1xf32>
    %1212 = vector.broadcast %1211 : vector<2x1xf32> to vector<2x324xf32>
    %1213 = arith.mulf %1203, %1212 : vector<2x324xf32>
    %c0_629 = arith.constant 0 : index
    %c0_630 = arith.constant 0 : index
    %c19_631 = arith.constant 19 : index
    %1214 = vector.load %arg1[%c0_629, %c0_630, %c19_631] : memref<4x2x384xf32, #tpu.memory_space<vmem>>, vector<1x2x324xf32>
    %1215 = vector.shape_cast %1214 : vector<1x2x324xf32> to vector<2x324xf32>
    %1216 = arith.addf %1213, %1215 : vector<2x324xf32>
    %cst_632 = arith.constant 0.000000e+00 : f32
    %1217 = vector.broadcast %cst_632 : f32 to vector<2x324xf32>
    %1218 = arith.maximumf %1216, %1217 : vector<2x324xf32>
    %c0_633 = arith.constant 0 : index
    %c0_634 = arith.constant 0 : index
    %c0_635 = arith.constant 0 : index
    %1219 = vector.load %arg7[%c0_633, %c0_634, %c0_635] : memref<4x2x324xf32, #tpu.memory_space<vmem>>, vector<1x2x324xf32>
    %1220 = vector.shape_cast %1219 : vector<1x2x324xf32> to vector<2x324xf32>
    %1221 = vector.shape_cast %1218 : vector<2x324xf32> to vector<1x2x324xf32>
    tpu.vector_store %arg7[%c0_633, %c0_634, %c0_635], %1221 {strides = array<i32>} : memref<4x2x324xf32, #tpu.memory_space<vmem>>, vector<1x2x324xf32>,
    %c36_636 = arith.constant 36 : index
    %1222 = memref.load %arg5[%c36_636] : memref<144xf32, #tpu.memory_space<smem>>
    %c0_637 = arith.constant 0 : index
    %c0_638 = arith.constant 0 : index
    %c0_639 = arith.constant 0 : index
    %1223 = vector.load %arg8[%c0_637, %c0_638, %c0_639] : memref<4x2x362xf32, #tpu.memory_space<vmem>>, vector<1x2x324xf32>
    %1224 = vector.shape_cast %1223 : vector<1x2x324xf32> to vector<2x324xf32>
    %1225 = vector.broadcast %1222 : f32 to vector<2x324xf32>
    %1226 = arith.mulf %1224, %1225 : vector<2x324xf32>
    %c37_640 = arith.constant 37 : index
    %1227 = memref.load %arg5[%c37_640] : memref<144xf32, #tpu.memory_space<smem>>
    %c0_641 = arith.constant 0 : index
    %c0_642 = arith.constant 0 : index
    %c1_643 = arith.constant 1 : index
    %1228 = vector.load %arg8[%c0_641, %c0_642, %c1_643] : memref<4x2x362xf32, #tpu.memory_space<vmem>>, vector<1x2x324xf32>
    %1229 = vector.shape_cast %1228 : vector<1x2x324xf32> to vector<2x324xf32>
    %1230 = vector.broadcast %1227 : f32 to vector<2x324xf32>
    %1231 = arith.mulf %1229, %1230 : vector<2x324xf32>
    %1232 = arith.addf %1226, %1231 : vector<2x324xf32>
    %c38_644 = arith.constant 38 : index
    %1233 = memref.load %arg5[%c38_644] : memref<144xf32, #tpu.memory_space<smem>>
    %c0_645 = arith.constant 0 : index
    %c0_646 = arith.constant 0 : index
    %c2_647 = arith.constant 2 : index
    %1234 = vector.load %arg8[%c0_645, %c0_646, %c2_647] : memref<4x2x362xf32, #tpu.memory_space<vmem>>, vector<1x2x324xf32>
    %1235 = vector.shape_cast %1234 : vector<1x2x324xf32> to vector<2x324xf32>
    %1236 = vector.broadcast %1233 : f32 to vector<2x324xf32>
    %1237 = arith.mulf %1235, %1236 : vector<2x324xf32>
    %1238 = arith.addf %1232, %1237 : vector<2x324xf32>
    %c39_648 = arith.constant 39 : index
    %1239 = memref.load %arg5[%c39_648] : memref<144xf32, #tpu.memory_space<smem>>
    %c0_649 = arith.constant 0 : index
    %c0_650 = arith.constant 0 : index
    %c18_651 = arith.constant 18 : index
    %1240 = vector.load %arg8[%c0_649, %c0_650, %c18_651] : memref<4x2x362xf32, #tpu.memory_space<vmem>>, vector<1x2x324xf32>
    %1241 = vector.shape_cast %1240 : vector<1x2x324xf32> to vector<2x324xf32>
    %1242 = vector.broadcast %1239 : f32 to vector<2x324xf32>
    %1243 = arith.mulf %1241, %1242 : vector<2x324xf32>
    %1244 = arith.addf %1238, %1243 : vector<2x324xf32>
    %c40_652 = arith.constant 40 : index
    %1245 = memref.load %arg5[%c40_652] : memref<144xf32, #tpu.memory_space<smem>>
    %c0_653 = arith.constant 0 : index
    %c0_654 = arith.constant 0 : index
    %c19_655 = arith.constant 19 : index
    %1246 = vector.load %arg8[%c0_653, %c0_654, %c19_655] : memref<4x2x362xf32, #tpu.memory_space<vmem>>, vector<1x2x324xf32>
    %1247 = vector.shape_cast %1246 : vector<1x2x324xf32> to vector<2x324xf32>
    %1248 = vector.broadcast %1245 : f32 to vector<2x324xf32>
    %1249 = arith.mulf %1247, %1248 : vector<2x324xf32>
    %1250 = arith.addf %1244, %1249 : vector<2x324xf32>
    %c41_656 = arith.constant 41 : index
    %1251 = memref.load %arg5[%c41_656] : memref<144xf32, #tpu.memory_space<smem>>
    %c0_657 = arith.constant 0 : index
    %c0_658 = arith.constant 0 : index
    %c20_659 = arith.constant 20 : index
    %1252 = vector.load %arg8[%c0_657, %c0_658, %c20_659] : memref<4x2x362xf32, #tpu.memory_space<vmem>>, vector<1x2x324xf32>
    %1253 = vector.shape_cast %1252 : vector<1x2x324xf32> to vector<2x324xf32>
    %1254 = vector.broadcast %1251 : f32 to vector<2x324xf32>
    %1255 = arith.mulf %1253, %1254 : vector<2x324xf32>
    %1256 = arith.addf %1250, %1255 : vector<2x324xf32>
    %c42_660 = arith.constant 42 : index
    %1257 = memref.load %arg5[%c42_660] : memref<144xf32, #tpu.memory_space<smem>>
    %c0_661 = arith.constant 0 : index
    %c0_662 = arith.constant 0 : index
    %c36_663 = arith.constant 36 : index
    %1258 = vector.load %arg8[%c0_661, %c0_662, %c36_663] : memref<4x2x362xf32, #tpu.memory_space<vmem>>, vector<1x2x324xf32>
    %1259 = vector.shape_cast %1258 : vector<1x2x324xf32> to vector<2x324xf32>
    %1260 = vector.broadcast %1257 : f32 to vector<2x324xf32>
    %1261 = arith.mulf %1259, %1260 : vector<2x324xf32>
    %1262 = arith.addf %1256, %1261 : vector<2x324xf32>
    %c43_664 = arith.constant 43 : index
    %1263 = memref.load %arg5[%c43_664] : memref<144xf32, #tpu.memory_space<smem>>
    %c0_665 = arith.constant 0 : index
    %c0_666 = arith.constant 0 : index
    %c37_667 = arith.constant 37 : index
    %1264 = vector.load %arg8[%c0_665, %c0_666, %c37_667] : memref<4x2x362xf32, #tpu.memory_space<vmem>>, vector<1x2x324xf32>
    %1265 = vector.shape_cast %1264 : vector<1x2x324xf32> to vector<2x324xf32>
    %1266 = vector.broadcast %1263 : f32 to vector<2x324xf32>
    %1267 = arith.mulf %1265, %1266 : vector<2x324xf32>
    %1268 = arith.addf %1262, %1267 : vector<2x324xf32>
    %c44_668 = arith.constant 44 : index
    %1269 = memref.load %arg5[%c44_668] : memref<144xf32, #tpu.memory_space<smem>>
    %c0_669 = arith.constant 0 : index
    %c0_670 = arith.constant 0 : index
    %c38_671 = arith.constant 38 : index
    %1270 = vector.load %arg8[%c0_669, %c0_670, %c38_671] : memref<4x2x362xf32, #tpu.memory_space<vmem>>, vector<1x2x324xf32>
    %1271 = vector.shape_cast %1270 : vector<1x2x324xf32> to vector<2x324xf32>
    %1272 = vector.broadcast %1269 : f32 to vector<2x324xf32>
    %1273 = arith.mulf %1271, %1272 : vector<2x324xf32>
    %1274 = arith.addf %1268, %1273 : vector<2x324xf32>
    %c45_672 = arith.constant 45 : index
    %1275 = memref.load %arg5[%c45_672] : memref<144xf32, #tpu.memory_space<smem>>
    %c1_673 = arith.constant 1 : index
    %c0_674 = arith.constant 0 : index
    %c0_675 = arith.constant 0 : index
    %1276 = vector.load %arg8[%c1_673, %c0_674, %c0_675] : memref<4x2x362xf32, #tpu.memory_space<vmem>>, vector<1x2x324xf32>
    %1277 = vector.shape_cast %1276 : vector<1x2x324xf32> to vector<2x324xf32>
    %1278 = vector.broadcast %1275 : f32 to vector<2x324xf32>
    %1279 = arith.mulf %1277, %1278 : vector<2x324xf32>
    %1280 = arith.addf %1274, %1279 : vector<2x324xf32>
    %c46_676 = arith.constant 46 : index
    %1281 = memref.load %arg5[%c46_676] : memref<144xf32, #tpu.memory_space<smem>>
    %c1_677 = arith.constant 1 : index
    %c0_678 = arith.constant 0 : index
    %c1_679 = arith.constant 1 : index
    %1282 = vector.load %arg8[%c1_677, %c0_678, %c1_679] : memref<4x2x362xf32, #tpu.memory_space<vmem>>, vector<1x2x324xf32>
    %1283 = vector.shape_cast %1282 : vector<1x2x324xf32> to vector<2x324xf32>
    %1284 = vector.broadcast %1281 : f32 to vector<2x324xf32>
    %1285 = arith.mulf %1283, %1284 : vector<2x324xf32>
    %1286 = arith.addf %1280, %1285 : vector<2x324xf32>
    %c47_680 = arith.constant 47 : index
    %1287 = memref.load %arg5[%c47_680] : memref<144xf32, #tpu.memory_space<smem>>
    %c1_681 = arith.constant 1 : index
    %c0_682 = arith.constant 0 : index
    %c2_683 = arith.constant 2 : index
    %1288 = vector.load %arg8[%c1_681, %c0_682, %c2_683] : memref<4x2x362xf32, #tpu.memory_space<vmem>>, vector<1x2x324xf32>
    %1289 = vector.shape_cast %1288 : vector<1x2x324xf32> to vector<2x324xf32>
    %1290 = vector.broadcast %1287 : f32 to vector<2x324xf32>
    %1291 = arith.mulf %1289, %1290 : vector<2x324xf32>
    %1292 = arith.addf %1286, %1291 : vector<2x324xf32>
    %c48_684 = arith.constant 48 : index
    %1293 = memref.load %arg5[%c48_684] : memref<144xf32, #tpu.memory_space<smem>>
    %c1_685 = arith.constant 1 : index
    %c0_686 = arith.constant 0 : index
    %c18_687 = arith.constant 18 : index
    %1294 = vector.load %arg8[%c1_685, %c0_686, %c18_687] : memref<4x2x362xf32, #tpu.memory_space<vmem>>, vector<1x2x324xf32>
    %1295 = vector.shape_cast %1294 : vector<1x2x324xf32> to vector<2x324xf32>
    %1296 = vector.broadcast %1293 : f32 to vector<2x324xf32>
    %1297 = arith.mulf %1295, %1296 : vector<2x324xf32>
    %1298 = arith.addf %1292, %1297 : vector<2x324xf32>
    %c49_688 = arith.constant 49 : index
    %1299 = memref.load %arg5[%c49_688] : memref<144xf32, #tpu.memory_space<smem>>
    %c1_689 = arith.constant 1 : index
    %c0_690 = arith.constant 0 : index
    %c19_691 = arith.constant 19 : index
    %1300 = vector.load %arg8[%c1_689, %c0_690, %c19_691] : memref<4x2x362xf32, #tpu.memory_space<vmem>>, vector<1x2x324xf32>
    %1301 = vector.shape_cast %1300 : vector<1x2x324xf32> to vector<2x324xf32>
    %1302 = vector.broadcast %1299 : f32 to vector<2x324xf32>
    %1303 = arith.mulf %1301, %1302 : vector<2x324xf32>
    %1304 = arith.addf %1298, %1303 : vector<2x324xf32>
    %c50_692 = arith.constant 50 : index
    %1305 = memref.load %arg5[%c50_692] : memref<144xf32, #tpu.memory_space<smem>>
    %c1_693 = arith.constant 1 : index
    %c0_694 = arith.constant 0 : index
    %c20_695 = arith.constant 20 : index
    %1306 = vector.load %arg8[%c1_693, %c0_694, %c20_695] : memref<4x2x362xf32, #tpu.memory_space<vmem>>, vector<1x2x324xf32>
    %1307 = vector.shape_cast %1306 : vector<1x2x324xf32> to vector<2x324xf32>
    %1308 = vector.broadcast %1305 : f32 to vector<2x324xf32>
    %1309 = arith.mulf %1307, %1308 : vector<2x324xf32>
    %1310 = arith.addf %1304, %1309 : vector<2x324xf32>
    %c51_696 = arith.constant 51 : index
    %1311 = memref.load %arg5[%c51_696] : memref<144xf32, #tpu.memory_space<smem>>
    %c1_697 = arith.constant 1 : index
    %c0_698 = arith.constant 0 : index
    %c36_699 = arith.constant 36 : index
    %1312 = vector.load %arg8[%c1_697, %c0_698, %c36_699] : memref<4x2x362xf32, #tpu.memory_space<vmem>>, vector<1x2x324xf32>
    %1313 = vector.shape_cast %1312 : vector<1x2x324xf32> to vector<2x324xf32>
    %1314 = vector.broadcast %1311 : f32 to vector<2x324xf32>
    %1315 = arith.mulf %1313, %1314 : vector<2x324xf32>
    %1316 = arith.addf %1310, %1315 : vector<2x324xf32>
    %c52_700 = arith.constant 52 : index
    %1317 = memref.load %arg5[%c52_700] : memref<144xf32, #tpu.memory_space<smem>>
    %c1_701 = arith.constant 1 : index
    %c0_702 = arith.constant 0 : index
    %c37_703 = arith.constant 37 : index
    %1318 = vector.load %arg8[%c1_701, %c0_702, %c37_703] : memref<4x2x362xf32, #tpu.memory_space<vmem>>, vector<1x2x324xf32>
    %1319 = vector.shape_cast %1318 : vector<1x2x324xf32> to vector<2x324xf32>
    %1320 = vector.broadcast %1317 : f32 to vector<2x324xf32>
    %1321 = arith.mulf %1319, %1320 : vector<2x324xf32>
    %1322 = arith.addf %1316, %1321 : vector<2x324xf32>
    %c53_704 = arith.constant 53 : index
    %1323 = memref.load %arg5[%c53_704] : memref<144xf32, #tpu.memory_space<smem>>
    %c1_705 = arith.constant 1 : index
    %c0_706 = arith.constant 0 : index
    %c38_707 = arith.constant 38 : index
    %1324 = vector.load %arg8[%c1_705, %c0_706, %c38_707] : memref<4x2x362xf32, #tpu.memory_space<vmem>>, vector<1x2x324xf32>
    %1325 = vector.shape_cast %1324 : vector<1x2x324xf32> to vector<2x324xf32>
    %1326 = vector.broadcast %1323 : f32 to vector<2x324xf32>
    %1327 = arith.mulf %1325, %1326 : vector<2x324xf32>
    %1328 = arith.addf %1322, %1327 : vector<2x324xf32>
    %c54_708 = arith.constant 54 : index
    %1329 = memref.load %arg5[%c54_708] : memref<144xf32, #tpu.memory_space<smem>>
    %c2_709 = arith.constant 2 : index
    %c0_710 = arith.constant 0 : index
    %c0_711 = arith.constant 0 : index
    %1330 = vector.load %arg8[%c2_709, %c0_710, %c0_711] : memref<4x2x362xf32, #tpu.memory_space<vmem>>, vector<1x2x324xf32>
    %1331 = vector.shape_cast %1330 : vector<1x2x324xf32> to vector<2x324xf32>
    %1332 = vector.broadcast %1329 : f32 to vector<2x324xf32>
    %1333 = arith.mulf %1331, %1332 : vector<2x324xf32>
    %1334 = arith.addf %1328, %1333 : vector<2x324xf32>
    %c55_712 = arith.constant 55 : index
    %1335 = memref.load %arg5[%c55_712] : memref<144xf32, #tpu.memory_space<smem>>
    %c2_713 = arith.constant 2 : index
    %c0_714 = arith.constant 0 : index
    %c1_715 = arith.constant 1 : index
    %1336 = vector.load %arg8[%c2_713, %c0_714, %c1_715] : memref<4x2x362xf32, #tpu.memory_space<vmem>>, vector<1x2x324xf32>
    %1337 = vector.shape_cast %1336 : vector<1x2x324xf32> to vector<2x324xf32>
    %1338 = vector.broadcast %1335 : f32 to vector<2x324xf32>
    %1339 = arith.mulf %1337, %1338 : vector<2x324xf32>
    %1340 = arith.addf %1334, %1339 : vector<2x324xf32>
    %c56_716 = arith.constant 56 : index
    %1341 = memref.load %arg5[%c56_716] : memref<144xf32, #tpu.memory_space<smem>>
    %c2_717 = arith.constant 2 : index
    %c0_718 = arith.constant 0 : index
    %c2_719 = arith.constant 2 : index
    %1342 = vector.load %arg8[%c2_717, %c0_718, %c2_719] : memref<4x2x362xf32, #tpu.memory_space<vmem>>, vector<1x2x324xf32>
    %1343 = vector.shape_cast %1342 : vector<1x2x324xf32> to vector<2x324xf32>
    %1344 = vector.broadcast %1341 : f32 to vector<2x324xf32>
    %1345 = arith.mulf %1343, %1344 : vector<2x324xf32>
    %1346 = arith.addf %1340, %1345 : vector<2x324xf32>
    %c57_720 = arith.constant 57 : index
    %1347 = memref.load %arg5[%c57_720] : memref<144xf32, #tpu.memory_space<smem>>
    %c2_721 = arith.constant 2 : index
    %c0_722 = arith.constant 0 : index
    %c18_723 = arith.constant 18 : index
    %1348 = vector.load %arg8[%c2_721, %c0_722, %c18_723] : memref<4x2x362xf32, #tpu.memory_space<vmem>>, vector<1x2x324xf32>
    %1349 = vector.shape_cast %1348 : vector<1x2x324xf32> to vector<2x324xf32>
    %1350 = vector.broadcast %1347 : f32 to vector<2x324xf32>
    %1351 = arith.mulf %1349, %1350 : vector<2x324xf32>
    %1352 = arith.addf %1346, %1351 : vector<2x324xf32>
    %c58_724 = arith.constant 58 : index
    %1353 = memref.load %arg5[%c58_724] : memref<144xf32, #tpu.memory_space<smem>>
    %c2_725 = arith.constant 2 : index
    %c0_726 = arith.constant 0 : index
    %c19_727 = arith.constant 19 : index
    %1354 = vector.load %arg8[%c2_725, %c0_726, %c19_727] : memref<4x2x362xf32, #tpu.memory_space<vmem>>, vector<1x2x324xf32>
    %1355 = vector.shape_cast %1354 : vector<1x2x324xf32> to vector<2x324xf32>
    %1356 = vector.broadcast %1353 : f32 to vector<2x324xf32>
    %1357 = arith.mulf %1355, %1356 : vector<2x324xf32>
    %1358 = arith.addf %1352, %1357 : vector<2x324xf32>
    %c59_728 = arith.constant 59 : index
    %1359 = memref.load %arg5[%c59_728] : memref<144xf32, #tpu.memory_space<smem>>
    %c2_729 = arith.constant 2 : index
    %c0_730 = arith.constant 0 : index
    %c20_731 = arith.constant 20 : index
    %1360 = vector.load %arg8[%c2_729, %c0_730, %c20_731] : memref<4x2x362xf32, #tpu.memory_space<vmem>>, vector<1x2x324xf32>
    %1361 = vector.shape_cast %1360 : vector<1x2x324xf32> to vector<2x324xf32>
    %1362 = vector.broadcast %1359 : f32 to vector<2x324xf32>
    %1363 = arith.mulf %1361, %1362 : vector<2x324xf32>
    %1364 = arith.addf %1358, %1363 : vector<2x324xf32>
    %c60_732 = arith.constant 60 : index
    %1365 = memref.load %arg5[%c60_732] : memref<144xf32, #tpu.memory_space<smem>>
    %c2_733 = arith.constant 2 : index
    %c0_734 = arith.constant 0 : index
    %c36_735 = arith.constant 36 : index
    %1366 = vector.load %arg8[%c2_733, %c0_734, %c36_735] : memref<4x2x362xf32, #tpu.memory_space<vmem>>, vector<1x2x324xf32>
    %1367 = vector.shape_cast %1366 : vector<1x2x324xf32> to vector<2x324xf32>
    %1368 = vector.broadcast %1365 : f32 to vector<2x324xf32>
    %1369 = arith.mulf %1367, %1368 : vector<2x324xf32>
    %1370 = arith.addf %1364, %1369 : vector<2x324xf32>
    %c61_736 = arith.constant 61 : index
    %1371 = memref.load %arg5[%c61_736] : memref<144xf32, #tpu.memory_space<smem>>
    %c2_737 = arith.constant 2 : index
    %c0_738 = arith.constant 0 : index
    %c37_739 = arith.constant 37 : index
    %1372 = vector.load %arg8[%c2_737, %c0_738, %c37_739] : memref<4x2x362xf32, #tpu.memory_space<vmem>>, vector<1x2x324xf32>
    %1373 = vector.shape_cast %1372 : vector<1x2x324xf32> to vector<2x324xf32>
    %1374 = vector.broadcast %1371 : f32 to vector<2x324xf32>
    %1375 = arith.mulf %1373, %1374 : vector<2x324xf32>
    %1376 = arith.addf %1370, %1375 : vector<2x324xf32>
    %c62_740 = arith.constant 62 : index
    %1377 = memref.load %arg5[%c62_740] : memref<144xf32, #tpu.memory_space<smem>>
    %c2_741 = arith.constant 2 : index
    %c0_742 = arith.constant 0 : index
    %c38_743 = arith.constant 38 : index
    %1378 = vector.load %arg8[%c2_741, %c0_742, %c38_743] : memref<4x2x362xf32, #tpu.memory_space<vmem>>, vector<1x2x324xf32>
    %1379 = vector.shape_cast %1378 : vector<1x2x324xf32> to vector<2x324xf32>
    %1380 = vector.broadcast %1377 : f32 to vector<2x324xf32>
    %1381 = arith.mulf %1379, %1380 : vector<2x324xf32>
    %1382 = arith.addf %1376, %1381 : vector<2x324xf32>
    %c63_744 = arith.constant 63 : index
    %1383 = memref.load %arg5[%c63_744] : memref<144xf32, #tpu.memory_space<smem>>
    %c3_745 = arith.constant 3 : index
    %c0_746 = arith.constant 0 : index
    %c0_747 = arith.constant 0 : index
    %1384 = vector.load %arg8[%c3_745, %c0_746, %c0_747] : memref<4x2x362xf32, #tpu.memory_space<vmem>>, vector<1x2x324xf32>
    %1385 = vector.shape_cast %1384 : vector<1x2x324xf32> to vector<2x324xf32>
    %1386 = vector.broadcast %1383 : f32 to vector<2x324xf32>
    %1387 = arith.mulf %1385, %1386 : vector<2x324xf32>
    %1388 = arith.addf %1382, %1387 : vector<2x324xf32>
    %c64_748 = arith.constant 64 : index
    %1389 = memref.load %arg5[%c64_748] : memref<144xf32, #tpu.memory_space<smem>>
    %c3_749 = arith.constant 3 : index
    %c0_750 = arith.constant 0 : index
    %c1_751 = arith.constant 1 : index
    %1390 = vector.load %arg8[%c3_749, %c0_750, %c1_751] : memref<4x2x362xf32, #tpu.memory_space<vmem>>, vector<1x2x324xf32>
    %1391 = vector.shape_cast %1390 : vector<1x2x324xf32> to vector<2x324xf32>
    %1392 = vector.broadcast %1389 : f32 to vector<2x324xf32>
    %1393 = arith.mulf %1391, %1392 : vector<2x324xf32>
    %1394 = arith.addf %1388, %1393 : vector<2x324xf32>
    %c65_752 = arith.constant 65 : index
    %1395 = memref.load %arg5[%c65_752] : memref<144xf32, #tpu.memory_space<smem>>
    %c3_753 = arith.constant 3 : index
    %c0_754 = arith.constant 0 : index
    %c2_755 = arith.constant 2 : index
    %1396 = vector.load %arg8[%c3_753, %c0_754, %c2_755] : memref<4x2x362xf32, #tpu.memory_space<vmem>>, vector<1x2x324xf32>
    %1397 = vector.shape_cast %1396 : vector<1x2x324xf32> to vector<2x324xf32>
    %1398 = vector.broadcast %1395 : f32 to vector<2x324xf32>
    %1399 = arith.mulf %1397, %1398 : vector<2x324xf32>
    %1400 = arith.addf %1394, %1399 : vector<2x324xf32>
    %c66_756 = arith.constant 66 : index
    %1401 = memref.load %arg5[%c66_756] : memref<144xf32, #tpu.memory_space<smem>>
    %c3_757 = arith.constant 3 : index
    %c0_758 = arith.constant 0 : index
    %c18_759 = arith.constant 18 : index
    %1402 = vector.load %arg8[%c3_757, %c0_758, %c18_759] : memref<4x2x362xf32, #tpu.memory_space<vmem>>, vector<1x2x324xf32>
    %1403 = vector.shape_cast %1402 : vector<1x2x324xf32> to vector<2x324xf32>
    %1404 = vector.broadcast %1401 : f32 to vector<2x324xf32>
    %1405 = arith.mulf %1403, %1404 : vector<2x324xf32>
    %1406 = arith.addf %1400, %1405 : vector<2x324xf32>
    %c67_760 = arith.constant 67 : index
    %1407 = memref.load %arg5[%c67_760] : memref<144xf32, #tpu.memory_space<smem>>
    %c3_761 = arith.constant 3 : index
    %c0_762 = arith.constant 0 : index
    %c19_763 = arith.constant 19 : index
    %1408 = vector.load %arg8[%c3_761, %c0_762, %c19_763] : memref<4x2x362xf32, #tpu.memory_space<vmem>>, vector<1x2x324xf32>
    %1409 = vector.shape_cast %1408 : vector<1x2x324xf32> to vector<2x324xf32>
    %1410 = vector.broadcast %1407 : f32 to vector<2x324xf32>
    %1411 = arith.mulf %1409, %1410 : vector<2x324xf32>
    %1412 = arith.addf %1406, %1411 : vector<2x324xf32>
    %c68_764 = arith.constant 68 : index
    %1413 = memref.load %arg5[%c68_764] : memref<144xf32, #tpu.memory_space<smem>>
    %c3_765 = arith.constant 3 : index
    %c0_766 = arith.constant 0 : index
    %c20_767 = arith.constant 20 : index
    %1414 = vector.load %arg8[%c3_765, %c0_766, %c20_767] : memref<4x2x362xf32, #tpu.memory_space<vmem>>, vector<1x2x324xf32>
    %1415 = vector.shape_cast %1414 : vector<1x2x324xf32> to vector<2x324xf32>
    %1416 = vector.broadcast %1413 : f32 to vector<2x324xf32>
    %1417 = arith.mulf %1415, %1416 : vector<2x324xf32>
    %1418 = arith.addf %1412, %1417 : vector<2x324xf32>
    %c69_768 = arith.constant 69 : index
    %1419 = memref.load %arg5[%c69_768] : memref<144xf32, #tpu.memory_space<smem>>
    %c3_769 = arith.constant 3 : index
    %c0_770 = arith.constant 0 : index
    %c36_771 = arith.constant 36 : index
    %1420 = vector.load %arg8[%c3_769, %c0_770, %c36_771] : memref<4x2x362xf32, #tpu.memory_space<vmem>>, vector<1x2x324xf32>
    %1421 = vector.shape_cast %1420 : vector<1x2x324xf32> to vector<2x324xf32>
    %1422 = vector.broadcast %1419 : f32 to vector<2x324xf32>
    %1423 = arith.mulf %1421, %1422 : vector<2x324xf32>
    %1424 = arith.addf %1418, %1423 : vector<2x324xf32>
    %c70_772 = arith.constant 70 : index
    %1425 = memref.load %arg5[%c70_772] : memref<144xf32, #tpu.memory_space<smem>>
    %c3_773 = arith.constant 3 : index
    %c0_774 = arith.constant 0 : index
    %c37_775 = arith.constant 37 : index
    %1426 = vector.load %arg8[%c3_773, %c0_774, %c37_775] : memref<4x2x362xf32, #tpu.memory_space<vmem>>, vector<1x2x324xf32>
    %1427 = vector.shape_cast %1426 : vector<1x2x324xf32> to vector<2x324xf32>
    %1428 = vector.broadcast %1425 : f32 to vector<2x324xf32>
    %1429 = arith.mulf %1427, %1428 : vector<2x324xf32>
    %1430 = arith.addf %1424, %1429 : vector<2x324xf32>
    %c71_776 = arith.constant 71 : index
    %1431 = memref.load %arg5[%c71_776] : memref<144xf32, #tpu.memory_space<smem>>
    %c3_777 = arith.constant 3 : index
    %c0_778 = arith.constant 0 : index
    %c38_779 = arith.constant 38 : index
    %1432 = vector.load %arg8[%c3_777, %c0_778, %c38_779] : memref<4x2x362xf32, #tpu.memory_space<vmem>>, vector<1x2x324xf32>
    %1433 = vector.shape_cast %1432 : vector<1x2x324xf32> to vector<2x324xf32>
    %1434 = vector.broadcast %1431 : f32 to vector<2x324xf32>
    %1435 = arith.mulf %1433, %1434 : vector<2x324xf32>
    %1436 = arith.addf %1430, %1435 : vector<2x324xf32>
    %c1_780 = arith.constant 1 : index
    %1437 = memref.load %arg6[%c1_780] : memref<4xf32, #tpu.memory_space<smem>>
    %1438 = vector.broadcast %1437 : f32 to vector<2x324xf32>
    %1439 = arith.addf %1436, %1438 : vector<2x324xf32>
    %1440 = vector.broadcast %0 : vector<1x324xf32> to vector<2x324xf32>
    %1441 = arith.mulf %1439, %1440 : vector<2x324xf32>
    %cst_781 = arith.constant dense<0.000000e+00> : vector<2xf32>
    %1442 = vector.multi_reduction <add>, %1441, %cst_781 [1] : vector<2x324xf32> to vector<2xf32>
    %1443 = vector.shape_cast %1442 : vector<2xf32> to vector<2x1xf32>
    %cst_782 = arith.constant 3.906250e-03 : f32
    %1444 = vector.broadcast %cst_782 : f32 to vector<2x1xf32>
    %1445 = arith.mulf %1443, %1444 : vector<2x1xf32>
    %1446 = vector.broadcast %1445 : vector<2x1xf32> to vector<2x324xf32>
    %1447 = arith.subf %1439, %1446 : vector<2x324xf32>
    %1448 = vector.broadcast %0 : vector<1x324xf32> to vector<2x324xf32>
    %1449 = arith.mulf %1447, %1448 : vector<2x324xf32>
    %1450 = arith.mulf %1449, %1449 : vector<2x324xf32>
    %cst_783 = arith.constant dense<0.000000e+00> : vector<2xf32>
    %1451 = vector.multi_reduction <add>, %1450, %cst_783 [1] : vector<2x324xf32> to vector<2xf32>
    %1452 = vector.shape_cast %1451 : vector<2xf32> to vector<2x1xf32>
    %cst_784 = arith.constant 3.906250e-03 : f32
    %1453 = vector.broadcast %cst_784 : f32 to vector<2x1xf32>
    %1454 = arith.mulf %1452, %1453 : vector<2x1xf32>
    %cst_785 = arith.constant 9.99999974E-6 : f32
    %1455 = vector.broadcast %cst_785 : f32 to vector<2x1xf32>
    %1456 = arith.addf %1454, %1455 : vector<2x1xf32>
    %1457 = math.rsqrt %1456 : vector<2x1xf32>
    %1458 = vector.broadcast %1457 : vector<2x1xf32> to vector<2x324xf32>
    %1459 = arith.mulf %1449, %1458 : vector<2x324xf32>
    %c1_786 = arith.constant 1 : index
    %c0_787 = arith.constant 0 : index
    %c19_788 = arith.constant 19 : index
    %1460 = vector.load %arg1[%c1_786, %c0_787, %c19_788] : memref<4x2x384xf32, #tpu.memory_space<vmem>>, vector<1x2x324xf32>
    %1461 = vector.shape_cast %1460 : vector<1x2x324xf32> to vector<2x324xf32>
    %1462 = arith.addf %1459, %1461 : vector<2x324xf32>
    %cst_789 = arith.constant 0.000000e+00 : f32
    %1463 = vector.broadcast %cst_789 : f32 to vector<2x324xf32>
    %1464 = arith.maximumf %1462, %1463 : vector<2x324xf32>
    %c1_790 = arith.constant 1 : index
    %c0_791 = arith.constant 0 : index
    %c0_792 = arith.constant 0 : index
    %1465 = vector.load %arg7[%c1_790, %c0_791, %c0_792] : memref<4x2x324xf32, #tpu.memory_space<vmem>>, vector<1x2x324xf32>
    %1466 = vector.shape_cast %1465 : vector<1x2x324xf32> to vector<2x324xf32>
    %1467 = vector.shape_cast %1464 : vector<2x324xf32> to vector<1x2x324xf32>
    tpu.vector_store %arg7[%c1_790, %c0_791, %c0_792], %1467 {strides = array<i32>} : memref<4x2x324xf32, #tpu.memory_space<vmem>>, vector<1x2x324xf32>,
    %c72_793 = arith.constant 72 : index
    %1468 = memref.load %arg5[%c72_793] : memref<144xf32, #tpu.memory_space<smem>>
    %c0_794 = arith.constant 0 : index
    %c0_795 = arith.constant 0 : index
    %c0_796 = arith.constant 0 : index
    %1469 = vector.load %arg8[%c0_794, %c0_795, %c0_796] : memref<4x2x362xf32, #tpu.memory_space<vmem>>, vector<1x2x324xf32>
    %1470 = vector.shape_cast %1469 : vector<1x2x324xf32> to vector<2x324xf32>
    %1471 = vector.broadcast %1468 : f32 to vector<2x324xf32>
    %1472 = arith.mulf %1470, %1471 : vector<2x324xf32>
    %c73_797 = arith.constant 73 : index
    %1473 = memref.load %arg5[%c73_797] : memref<144xf32, #tpu.memory_space<smem>>
    %c0_798 = arith.constant 0 : index
    %c0_799 = arith.constant 0 : index
    %c1_800 = arith.constant 1 : index
    %1474 = vector.load %arg8[%c0_798, %c0_799, %c1_800] : memref<4x2x362xf32, #tpu.memory_space<vmem>>, vector<1x2x324xf32>
    %1475 = vector.shape_cast %1474 : vector<1x2x324xf32> to vector<2x324xf32>
    %1476 = vector.broadcast %1473 : f32 to vector<2x324xf32>
    %1477 = arith.mulf %1475, %1476 : vector<2x324xf32>
    %1478 = arith.addf %1472, %1477 : vector<2x324xf32>
    %c74_801 = arith.constant 74 : index
    %1479 = memref.load %arg5[%c74_801] : memref<144xf32, #tpu.memory_space<smem>>
    %c0_802 = arith.constant 0 : index
    %c0_803 = arith.constant 0 : index
    %c2_804 = arith.constant 2 : index
    %1480 = vector.load %arg8[%c0_802, %c0_803, %c2_804] : memref<4x2x362xf32, #tpu.memory_space<vmem>>, vector<1x2x324xf32>
    %1481 = vector.shape_cast %1480 : vector<1x2x324xf32> to vector<2x324xf32>
    %1482 = vector.broadcast %1479 : f32 to vector<2x324xf32>
    %1483 = arith.mulf %1481, %1482 : vector<2x324xf32>
    %1484 = arith.addf %1478, %1483 : vector<2x324xf32>
    %c75_805 = arith.constant 75 : index
    %1485 = memref.load %arg5[%c75_805] : memref<144xf32, #tpu.memory_space<smem>>
    %c0_806 = arith.constant 0 : index
    %c0_807 = arith.constant 0 : index
    %c18_808 = arith.constant 18 : index
    %1486 = vector.load %arg8[%c0_806, %c0_807, %c18_808] : memref<4x2x362xf32, #tpu.memory_space<vmem>>, vector<1x2x324xf32>
    %1487 = vector.shape_cast %1486 : vector<1x2x324xf32> to vector<2x324xf32>
    %1488 = vector.broadcast %1485 : f32 to vector<2x324xf32>
    %1489 = arith.mulf %1487, %1488 : vector<2x324xf32>
    %1490 = arith.addf %1484, %1489 : vector<2x324xf32>
    %c76_809 = arith.constant 76 : index
    %1491 = memref.load %arg5[%c76_809] : memref<144xf32, #tpu.memory_space<smem>>
    %c0_810 = arith.constant 0 : index
    %c0_811 = arith.constant 0 : index
    %c19_812 = arith.constant 19 : index
    %1492 = vector.load %arg8[%c0_810, %c0_811, %c19_812] : memref<4x2x362xf32, #tpu.memory_space<vmem>>, vector<1x2x324xf32>
    %1493 = vector.shape_cast %1492 : vector<1x2x324xf32> to vector<2x324xf32>
    %1494 = vector.broadcast %1491 : f32 to vector<2x324xf32>
    %1495 = arith.mulf %1493, %1494 : vector<2x324xf32>
    %1496 = arith.addf %1490, %1495 : vector<2x324xf32>
    %c77_813 = arith.constant 77 : index
    %1497 = memref.load %arg5[%c77_813] : memref<144xf32, #tpu.memory_space<smem>>
    %c0_814 = arith.constant 0 : index
    %c0_815 = arith.constant 0 : index
    %c20_816 = arith.constant 20 : index
    %1498 = vector.load %arg8[%c0_814, %c0_815, %c20_816] : memref<4x2x362xf32, #tpu.memory_space<vmem>>, vector<1x2x324xf32>
    %1499 = vector.shape_cast %1498 : vector<1x2x324xf32> to vector<2x324xf32>
    %1500 = vector.broadcast %1497 : f32 to vector<2x324xf32>
    %1501 = arith.mulf %1499, %1500 : vector<2x324xf32>
    %1502 = arith.addf %1496, %1501 : vector<2x324xf32>
    %c78_817 = arith.constant 78 : index
    %1503 = memref.load %arg5[%c78_817] : memref<144xf32, #tpu.memory_space<smem>>
    %c0_818 = arith.constant 0 : index
    %c0_819 = arith.constant 0 : index
    %c36_820 = arith.constant 36 : index
    %1504 = vector.load %arg8[%c0_818, %c0_819, %c36_820] : memref<4x2x362xf32, #tpu.memory_space<vmem>>, vector<1x2x324xf32>
    %1505 = vector.shape_cast %1504 : vector<1x2x324xf32> to vector<2x324xf32>
    %1506 = vector.broadcast %1503 : f32 to vector<2x324xf32>
    %1507 = arith.mulf %1505, %1506 : vector<2x324xf32>
    %1508 = arith.addf %1502, %1507 : vector<2x324xf32>
    %c79_821 = arith.constant 79 : index
    %1509 = memref.load %arg5[%c79_821] : memref<144xf32, #tpu.memory_space<smem>>
    %c0_822 = arith.constant 0 : index
    %c0_823 = arith.constant 0 : index
    %c37_824 = arith.constant 37 : index
    %1510 = vector.load %arg8[%c0_822, %c0_823, %c37_824] : memref<4x2x362xf32, #tpu.memory_space<vmem>>, vector<1x2x324xf32>
    %1511 = vector.shape_cast %1510 : vector<1x2x324xf32> to vector<2x324xf32>
    %1512 = vector.broadcast %1509 : f32 to vector<2x324xf32>
    %1513 = arith.mulf %1511, %1512 : vector<2x324xf32>
    %1514 = arith.addf %1508, %1513 : vector<2x324xf32>
    %c80_825 = arith.constant 80 : index
    %1515 = memref.load %arg5[%c80_825] : memref<144xf32, #tpu.memory_space<smem>>
    %c0_826 = arith.constant 0 : index
    %c0_827 = arith.constant 0 : index
    %c38_828 = arith.constant 38 : index
    %1516 = vector.load %arg8[%c0_826, %c0_827, %c38_828] : memref<4x2x362xf32, #tpu.memory_space<vmem>>, vector<1x2x324xf32>
    %1517 = vector.shape_cast %1516 : vector<1x2x324xf32> to vector<2x324xf32>
    %1518 = vector.broadcast %1515 : f32 to vector<2x324xf32>
    %1519 = arith.mulf %1517, %1518 : vector<2x324xf32>
    %1520 = arith.addf %1514, %1519 : vector<2x324xf32>
    %c81_829 = arith.constant 81 : index
    %1521 = memref.load %arg5[%c81_829] : memref<144xf32, #tpu.memory_space<smem>>
    %c1_830 = arith.constant 1 : index
    %c0_831 = arith.constant 0 : index
    %c0_832 = arith.constant 0 : index
    %1522 = vector.load %arg8[%c1_830, %c0_831, %c0_832] : memref<4x2x362xf32, #tpu.memory_space<vmem>>, vector<1x2x324xf32>
    %1523 = vector.shape_cast %1522 : vector<1x2x324xf32> to vector<2x324xf32>
    %1524 = vector.broadcast %1521 : f32 to vector<2x324xf32>
    %1525 = arith.mulf %1523, %1524 : vector<2x324xf32>
    %1526 = arith.addf %1520, %1525 : vector<2x324xf32>
    %c82_833 = arith.constant 82 : index
    %1527 = memref.load %arg5[%c82_833] : memref<144xf32, #tpu.memory_space<smem>>
    %c1_834 = arith.constant 1 : index
    %c0_835 = arith.constant 0 : index
    %c1_836 = arith.constant 1 : index
    %1528 = vector.load %arg8[%c1_834, %c0_835, %c1_836] : memref<4x2x362xf32, #tpu.memory_space<vmem>>, vector<1x2x324xf32>
    %1529 = vector.shape_cast %1528 : vector<1x2x324xf32> to vector<2x324xf32>
    %1530 = vector.broadcast %1527 : f32 to vector<2x324xf32>
    %1531 = arith.mulf %1529, %1530 : vector<2x324xf32>
    %1532 = arith.addf %1526, %1531 : vector<2x324xf32>
    %c83_837 = arith.constant 83 : index
    %1533 = memref.load %arg5[%c83_837] : memref<144xf32, #tpu.memory_space<smem>>
    %c1_838 = arith.constant 1 : index
    %c0_839 = arith.constant 0 : index
    %c2_840 = arith.constant 2 : index
    %1534 = vector.load %arg8[%c1_838, %c0_839, %c2_840] : memref<4x2x362xf32, #tpu.memory_space<vmem>>, vector<1x2x324xf32>
    %1535 = vector.shape_cast %1534 : vector<1x2x324xf32> to vector<2x324xf32>
    %1536 = vector.broadcast %1533 : f32 to vector<2x324xf32>
    %1537 = arith.mulf %1535, %1536 : vector<2x324xf32>
    %1538 = arith.addf %1532, %1537 : vector<2x324xf32>
    %c84_841 = arith.constant 84 : index
    %1539 = memref.load %arg5[%c84_841] : memref<144xf32, #tpu.memory_space<smem>>
    %c1_842 = arith.constant 1 : index
    %c0_843 = arith.constant 0 : index
    %c18_844 = arith.constant 18 : index
    %1540 = vector.load %arg8[%c1_842, %c0_843, %c18_844] : memref<4x2x362xf32, #tpu.memory_space<vmem>>, vector<1x2x324xf32>
    %1541 = vector.shape_cast %1540 : vector<1x2x324xf32> to vector<2x324xf32>
    %1542 = vector.broadcast %1539 : f32 to vector<2x324xf32>
    %1543 = arith.mulf %1541, %1542 : vector<2x324xf32>
    %1544 = arith.addf %1538, %1543 : vector<2x324xf32>
    %c85_845 = arith.constant 85 : index
    %1545 = memref.load %arg5[%c85_845] : memref<144xf32, #tpu.memory_space<smem>>
    %c1_846 = arith.constant 1 : index
    %c0_847 = arith.constant 0 : index
    %c19_848 = arith.constant 19 : index
    %1546 = vector.load %arg8[%c1_846, %c0_847, %c19_848] : memref<4x2x362xf32, #tpu.memory_space<vmem>>, vector<1x2x324xf32>
    %1547 = vector.shape_cast %1546 : vector<1x2x324xf32> to vector<2x324xf32>
    %1548 = vector.broadcast %1545 : f32 to vector<2x324xf32>
    %1549 = arith.mulf %1547, %1548 : vector<2x324xf32>
    %1550 = arith.addf %1544, %1549 : vector<2x324xf32>
    %c86_849 = arith.constant 86 : index
    %1551 = memref.load %arg5[%c86_849] : memref<144xf32, #tpu.memory_space<smem>>
    %c1_850 = arith.constant 1 : index
    %c0_851 = arith.constant 0 : index
    %c20_852 = arith.constant 20 : index
    %1552 = vector.load %arg8[%c1_850, %c0_851, %c20_852] : memref<4x2x362xf32, #tpu.memory_space<vmem>>, vector<1x2x324xf32>
    %1553 = vector.shape_cast %1552 : vector<1x2x324xf32> to vector<2x324xf32>
    %1554 = vector.broadcast %1551 : f32 to vector<2x324xf32>
    %1555 = arith.mulf %1553, %1554 : vector<2x324xf32>
    %1556 = arith.addf %1550, %1555 : vector<2x324xf32>
    %c87_853 = arith.constant 87 : index
    %1557 = memref.load %arg5[%c87_853] : memref<144xf32, #tpu.memory_space<smem>>
    %c1_854 = arith.constant 1 : index
    %c0_855 = arith.constant 0 : index
    %c36_856 = arith.constant 36 : index
    %1558 = vector.load %arg8[%c1_854, %c0_855, %c36_856] : memref<4x2x362xf32, #tpu.memory_space<vmem>>, vector<1x2x324xf32>
    %1559 = vector.shape_cast %1558 : vector<1x2x324xf32> to vector<2x324xf32>
    %1560 = vector.broadcast %1557 : f32 to vector<2x324xf32>
    %1561 = arith.mulf %1559, %1560 : vector<2x324xf32>
    %1562 = arith.addf %1556, %1561 : vector<2x324xf32>
    %c88_857 = arith.constant 88 : index
    %1563 = memref.load %arg5[%c88_857] : memref<144xf32, #tpu.memory_space<smem>>
    %c1_858 = arith.constant 1 : index
    %c0_859 = arith.constant 0 : index
    %c37_860 = arith.constant 37 : index
    %1564 = vector.load %arg8[%c1_858, %c0_859, %c37_860] : memref<4x2x362xf32, #tpu.memory_space<vmem>>, vector<1x2x324xf32>
    %1565 = vector.shape_cast %1564 : vector<1x2x324xf32> to vector<2x324xf32>
    %1566 = vector.broadcast %1563 : f32 to vector<2x324xf32>
    %1567 = arith.mulf %1565, %1566 : vector<2x324xf32>
    %1568 = arith.addf %1562, %1567 : vector<2x324xf32>
    %c89_861 = arith.constant 89 : index
    %1569 = memref.load %arg5[%c89_861] : memref<144xf32, #tpu.memory_space<smem>>
    %c1_862 = arith.constant 1 : index
    %c0_863 = arith.constant 0 : index
    %c38_864 = arith.constant 38 : index
    %1570 = vector.load %arg8[%c1_862, %c0_863, %c38_864] : memref<4x2x362xf32, #tpu.memory_space<vmem>>, vector<1x2x324xf32>
    %1571 = vector.shape_cast %1570 : vector<1x2x324xf32> to vector<2x324xf32>
    %1572 = vector.broadcast %1569 : f32 to vector<2x324xf32>
    %1573 = arith.mulf %1571, %1572 : vector<2x324xf32>
    %1574 = arith.addf %1568, %1573 : vector<2x324xf32>
    %c90_865 = arith.constant 90 : index
    %1575 = memref.load %arg5[%c90_865] : memref<144xf32, #tpu.memory_space<smem>>
    %c2_866 = arith.constant 2 : index
    %c0_867 = arith.constant 0 : index
    %c0_868 = arith.constant 0 : index
    %1576 = vector.load %arg8[%c2_866, %c0_867, %c0_868] : memref<4x2x362xf32, #tpu.memory_space<vmem>>, vector<1x2x324xf32>
    %1577 = vector.shape_cast %1576 : vector<1x2x324xf32> to vector<2x324xf32>
    %1578 = vector.broadcast %1575 : f32 to vector<2x324xf32>
    %1579 = arith.mulf %1577, %1578 : vector<2x324xf32>
    %1580 = arith.addf %1574, %1579 : vector<2x324xf32>
    %c91_869 = arith.constant 91 : index
    %1581 = memref.load %arg5[%c91_869] : memref<144xf32, #tpu.memory_space<smem>>
    %c2_870 = arith.constant 2 : index
    %c0_871 = arith.constant 0 : index
    %c1_872 = arith.constant 1 : index
    %1582 = vector.load %arg8[%c2_870, %c0_871, %c1_872] : memref<4x2x362xf32, #tpu.memory_space<vmem>>, vector<1x2x324xf32>
    %1583 = vector.shape_cast %1582 : vector<1x2x324xf32> to vector<2x324xf32>
    %1584 = vector.broadcast %1581 : f32 to vector<2x324xf32>
    %1585 = arith.mulf %1583, %1584 : vector<2x324xf32>
    %1586 = arith.addf %1580, %1585 : vector<2x324xf32>
    %c92_873 = arith.constant 92 : index
    %1587 = memref.load %arg5[%c92_873] : memref<144xf32, #tpu.memory_space<smem>>
    %c2_874 = arith.constant 2 : index
    %c0_875 = arith.constant 0 : index
    %c2_876 = arith.constant 2 : index
    %1588 = vector.load %arg8[%c2_874, %c0_875, %c2_876] : memref<4x2x362xf32, #tpu.memory_space<vmem>>, vector<1x2x324xf32>
    %1589 = vector.shape_cast %1588 : vector<1x2x324xf32> to vector<2x324xf32>
    %1590 = vector.broadcast %1587 : f32 to vector<2x324xf32>
    %1591 = arith.mulf %1589, %1590 : vector<2x324xf32>
    %1592 = arith.addf %1586, %1591 : vector<2x324xf32>
    %c93_877 = arith.constant 93 : index
    %1593 = memref.load %arg5[%c93_877] : memref<144xf32, #tpu.memory_space<smem>>
    %c2_878 = arith.constant 2 : index
    %c0_879 = arith.constant 0 : index
    %c18_880 = arith.constant 18 : index
    %1594 = vector.load %arg8[%c2_878, %c0_879, %c18_880] : memref<4x2x362xf32, #tpu.memory_space<vmem>>, vector<1x2x324xf32>
    %1595 = vector.shape_cast %1594 : vector<1x2x324xf32> to vector<2x324xf32>
    %1596 = vector.broadcast %1593 : f32 to vector<2x324xf32>
    %1597 = arith.mulf %1595, %1596 : vector<2x324xf32>
    %1598 = arith.addf %1592, %1597 : vector<2x324xf32>
    %c94_881 = arith.constant 94 : index
    %1599 = memref.load %arg5[%c94_881] : memref<144xf32, #tpu.memory_space<smem>>
    %c2_882 = arith.constant 2 : index
    %c0_883 = arith.constant 0 : index
    %c19_884 = arith.constant 19 : index
    %1600 = vector.load %arg8[%c2_882, %c0_883, %c19_884] : memref<4x2x362xf32, #tpu.memory_space<vmem>>, vector<1x2x324xf32>
    %1601 = vector.shape_cast %1600 : vector<1x2x324xf32> to vector<2x324xf32>
    %1602 = vector.broadcast %1599 : f32 to vector<2x324xf32>
    %1603 = arith.mulf %1601, %1602 : vector<2x324xf32>
    %1604 = arith.addf %1598, %1603 : vector<2x324xf32>
    %c95_885 = arith.constant 95 : index
    %1605 = memref.load %arg5[%c95_885] : memref<144xf32, #tpu.memory_space<smem>>
    %c2_886 = arith.constant 2 : index
    %c0_887 = arith.constant 0 : index
    %c20_888 = arith.constant 20 : index
    %1606 = vector.load %arg8[%c2_886, %c0_887, %c20_888] : memref<4x2x362xf32, #tpu.memory_space<vmem>>, vector<1x2x324xf32>
    %1607 = vector.shape_cast %1606 : vector<1x2x324xf32> to vector<2x324xf32>
    %1608 = vector.broadcast %1605 : f32 to vector<2x324xf32>
    %1609 = arith.mulf %1607, %1608 : vector<2x324xf32>
    %1610 = arith.addf %1604, %1609 : vector<2x324xf32>
    %c96_889 = arith.constant 96 : index
    %1611 = memref.load %arg5[%c96_889] : memref<144xf32, #tpu.memory_space<smem>>
    %c2_890 = arith.constant 2 : index
    %c0_891 = arith.constant 0 : index
    %c36_892 = arith.constant 36 : index
    %1612 = vector.load %arg8[%c2_890, %c0_891, %c36_892] : memref<4x2x362xf32, #tpu.memory_space<vmem>>, vector<1x2x324xf32>
    %1613 = vector.shape_cast %1612 : vector<1x2x324xf32> to vector<2x324xf32>
    %1614 = vector.broadcast %1611 : f32 to vector<2x324xf32>
    %1615 = arith.mulf %1613, %1614 : vector<2x324xf32>
    %1616 = arith.addf %1610, %1615 : vector<2x324xf32>
    %c97_893 = arith.constant 97 : index
    %1617 = memref.load %arg5[%c97_893] : memref<144xf32, #tpu.memory_space<smem>>
    %c2_894 = arith.constant 2 : index
    %c0_895 = arith.constant 0 : index
    %c37_896 = arith.constant 37 : index
    %1618 = vector.load %arg8[%c2_894, %c0_895, %c37_896] : memref<4x2x362xf32, #tpu.memory_space<vmem>>, vector<1x2x324xf32>
    %1619 = vector.shape_cast %1618 : vector<1x2x324xf32> to vector<2x324xf32>
    %1620 = vector.broadcast %1617 : f32 to vector<2x324xf32>
    %1621 = arith.mulf %1619, %1620 : vector<2x324xf32>
    %1622 = arith.addf %1616, %1621 : vector<2x324xf32>
    %c98_897 = arith.constant 98 : index
    %1623 = memref.load %arg5[%c98_897] : memref<144xf32, #tpu.memory_space<smem>>
    %c2_898 = arith.constant 2 : index
    %c0_899 = arith.constant 0 : index
    %c38_900 = arith.constant 38 : index
    %1624 = vector.load %arg8[%c2_898, %c0_899, %c38_900] : memref<4x2x362xf32, #tpu.memory_space<vmem>>, vector<1x2x324xf32>
    %1625 = vector.shape_cast %1624 : vector<1x2x324xf32> to vector<2x324xf32>
    %1626 = vector.broadcast %1623 : f32 to vector<2x324xf32>
    %1627 = arith.mulf %1625, %1626 : vector<2x324xf32>
    %1628 = arith.addf %1622, %1627 : vector<2x324xf32>
    %c99_901 = arith.constant 99 : index
    %1629 = memref.load %arg5[%c99_901] : memref<144xf32, #tpu.memory_space<smem>>
    %c3_902 = arith.constant 3 : index
    %c0_903 = arith.constant 0 : index
    %c0_904 = arith.constant 0 : index
    %1630 = vector.load %arg8[%c3_902, %c0_903, %c0_904] : memref<4x2x362xf32, #tpu.memory_space<vmem>>, vector<1x2x324xf32>
    %1631 = vector.shape_cast %1630 : vector<1x2x324xf32> to vector<2x324xf32>
    %1632 = vector.broadcast %1629 : f32 to vector<2x324xf32>
    %1633 = arith.mulf %1631, %1632 : vector<2x324xf32>
    %1634 = arith.addf %1628, %1633 : vector<2x324xf32>
    %c100_905 = arith.constant 100 : index
    %1635 = memref.load %arg5[%c100_905] : memref<144xf32, #tpu.memory_space<smem>>
    %c3_906 = arith.constant 3 : index
    %c0_907 = arith.constant 0 : index
    %c1_908 = arith.constant 1 : index
    %1636 = vector.load %arg8[%c3_906, %c0_907, %c1_908] : memref<4x2x362xf32, #tpu.memory_space<vmem>>, vector<1x2x324xf32>
    %1637 = vector.shape_cast %1636 : vector<1x2x324xf32> to vector<2x324xf32>
    %1638 = vector.broadcast %1635 : f32 to vector<2x324xf32>
    %1639 = arith.mulf %1637, %1638 : vector<2x324xf32>
    %1640 = arith.addf %1634, %1639 : vector<2x324xf32>
    %c101_909 = arith.constant 101 : index
    %1641 = memref.load %arg5[%c101_909] : memref<144xf32, #tpu.memory_space<smem>>
    %c3_910 = arith.constant 3 : index
    %c0_911 = arith.constant 0 : index
    %c2_912 = arith.constant 2 : index
    %1642 = vector.load %arg8[%c3_910, %c0_911, %c2_912] : memref<4x2x362xf32, #tpu.memory_space<vmem>>, vector<1x2x324xf32>
    %1643 = vector.shape_cast %1642 : vector<1x2x324xf32> to vector<2x324xf32>
    %1644 = vector.broadcast %1641 : f32 to vector<2x324xf32>
    %1645 = arith.mulf %1643, %1644 : vector<2x324xf32>
    %1646 = arith.addf %1640, %1645 : vector<2x324xf32>
    %c102_913 = arith.constant 102 : index
    %1647 = memref.load %arg5[%c102_913] : memref<144xf32, #tpu.memory_space<smem>>
    %c3_914 = arith.constant 3 : index
    %c0_915 = arith.constant 0 : index
    %c18_916 = arith.constant 18 : index
    %1648 = vector.load %arg8[%c3_914, %c0_915, %c18_916] : memref<4x2x362xf32, #tpu.memory_space<vmem>>, vector<1x2x324xf32>
    %1649 = vector.shape_cast %1648 : vector<1x2x324xf32> to vector<2x324xf32>
    %1650 = vector.broadcast %1647 : f32 to vector<2x324xf32>
    %1651 = arith.mulf %1649, %1650 : vector<2x324xf32>
    %1652 = arith.addf %1646, %1651 : vector<2x324xf32>
    %c103_917 = arith.constant 103 : index
    %1653 = memref.load %arg5[%c103_917] : memref<144xf32, #tpu.memory_space<smem>>
    %c3_918 = arith.constant 3 : index
    %c0_919 = arith.constant 0 : index
    %c19_920 = arith.constant 19 : index
    %1654 = vector.load %arg8[%c3_918, %c0_919, %c19_920] : memref<4x2x362xf32, #tpu.memory_space<vmem>>, vector<1x2x324xf32>
    %1655 = vector.shape_cast %1654 : vector<1x2x324xf32> to vector<2x324xf32>
    %1656 = vector.broadcast %1653 : f32 to vector<2x324xf32>
    %1657 = arith.mulf %1655, %1656 : vector<2x324xf32>
    %1658 = arith.addf %1652, %1657 : vector<2x324xf32>
    %c104_921 = arith.constant 104 : index
    %1659 = memref.load %arg5[%c104_921] : memref<144xf32, #tpu.memory_space<smem>>
    %c3_922 = arith.constant 3 : index
    %c0_923 = arith.constant 0 : index
    %c20_924 = arith.constant 20 : index
    %1660 = vector.load %arg8[%c3_922, %c0_923, %c20_924] : memref<4x2x362xf32, #tpu.memory_space<vmem>>, vector<1x2x324xf32>
    %1661 = vector.shape_cast %1660 : vector<1x2x324xf32> to vector<2x324xf32>
    %1662 = vector.broadcast %1659 : f32 to vector<2x324xf32>
    %1663 = arith.mulf %1661, %1662 : vector<2x324xf32>
    %1664 = arith.addf %1658, %1663 : vector<2x324xf32>
    %c105_925 = arith.constant 105 : index
    %1665 = memref.load %arg5[%c105_925] : memref<144xf32, #tpu.memory_space<smem>>
    %c3_926 = arith.constant 3 : index
    %c0_927 = arith.constant 0 : index
    %c36_928 = arith.constant 36 : index
    %1666 = vector.load %arg8[%c3_926, %c0_927, %c36_928] : memref<4x2x362xf32, #tpu.memory_space<vmem>>, vector<1x2x324xf32>
    %1667 = vector.shape_cast %1666 : vector<1x2x324xf32> to vector<2x324xf32>
    %1668 = vector.broadcast %1665 : f32 to vector<2x324xf32>
    %1669 = arith.mulf %1667, %1668 : vector<2x324xf32>
    %1670 = arith.addf %1664, %1669 : vector<2x324xf32>
    %c106_929 = arith.constant 106 : index
    %1671 = memref.load %arg5[%c106_929] : memref<144xf32, #tpu.memory_space<smem>>
    %c3_930 = arith.constant 3 : index
    %c0_931 = arith.constant 0 : index
    %c37_932 = arith.constant 37 : index
    %1672 = vector.load %arg8[%c3_930, %c0_931, %c37_932] : memref<4x2x362xf32, #tpu.memory_space<vmem>>, vector<1x2x324xf32>
    %1673 = vector.shape_cast %1672 : vector<1x2x324xf32> to vector<2x324xf32>
    %1674 = vector.broadcast %1671 : f32 to vector<2x324xf32>
    %1675 = arith.mulf %1673, %1674 : vector<2x324xf32>
    %1676 = arith.addf %1670, %1675 : vector<2x324xf32>
    %c107_933 = arith.constant 107 : index
    %1677 = memref.load %arg5[%c107_933] : memref<144xf32, #tpu.memory_space<smem>>
    %c3_934 = arith.constant 3 : index
    %c0_935 = arith.constant 0 : index
    %c38_936 = arith.constant 38 : index
    %1678 = vector.load %arg8[%c3_934, %c0_935, %c38_936] : memref<4x2x362xf32, #tpu.memory_space<vmem>>, vector<1x2x324xf32>
    %1679 = vector.shape_cast %1678 : vector<1x2x324xf32> to vector<2x324xf32>
    %1680 = vector.broadcast %1677 : f32 to vector<2x324xf32>
    %1681 = arith.mulf %1679, %1680 : vector<2x324xf32>
    %1682 = arith.addf %1676, %1681 : vector<2x324xf32>
    %c2_937 = arith.constant 2 : index
    %1683 = memref.load %arg6[%c2_937] : memref<4xf32, #tpu.memory_space<smem>>
    %1684 = vector.broadcast %1683 : f32 to vector<2x324xf32>
    %1685 = arith.addf %1682, %1684 : vector<2x324xf32>
    %1686 = vector.broadcast %0 : vector<1x324xf32> to vector<2x324xf32>
    %1687 = arith.mulf %1685, %1686 : vector<2x324xf32>
    %cst_938 = arith.constant dense<0.000000e+00> : vector<2xf32>
    %1688 = vector.multi_reduction <add>, %1687, %cst_938 [1] : vector<2x324xf32> to vector<2xf32>
    %1689 = vector.shape_cast %1688 : vector<2xf32> to vector<2x1xf32>
    %cst_939 = arith.constant 3.906250e-03 : f32
    %1690 = vector.broadcast %cst_939 : f32 to vector<2x1xf32>
    %1691 = arith.mulf %1689, %1690 : vector<2x1xf32>
    %1692 = vector.broadcast %1691 : vector<2x1xf32> to vector<2x324xf32>
    %1693 = arith.subf %1685, %1692 : vector<2x324xf32>
    %1694 = vector.broadcast %0 : vector<1x324xf32> to vector<2x324xf32>
    %1695 = arith.mulf %1693, %1694 : vector<2x324xf32>
    %1696 = arith.mulf %1695, %1695 : vector<2x324xf32>
    %cst_940 = arith.constant dense<0.000000e+00> : vector<2xf32>
    %1697 = vector.multi_reduction <add>, %1696, %cst_940 [1] : vector<2x324xf32> to vector<2xf32>
    %1698 = vector.shape_cast %1697 : vector<2xf32> to vector<2x1xf32>
    %cst_941 = arith.constant 3.906250e-03 : f32
    %1699 = vector.broadcast %cst_941 : f32 to vector<2x1xf32>
    %1700 = arith.mulf %1698, %1699 : vector<2x1xf32>
    %cst_942 = arith.constant 9.99999974E-6 : f32
    %1701 = vector.broadcast %cst_942 : f32 to vector<2x1xf32>
    %1702 = arith.addf %1700, %1701 : vector<2x1xf32>
    %1703 = math.rsqrt %1702 : vector<2x1xf32>
    %1704 = vector.broadcast %1703 : vector<2x1xf32> to vector<2x324xf32>
    %1705 = arith.mulf %1695, %1704 : vector<2x324xf32>
    %c2_943 = arith.constant 2 : index
    %c0_944 = arith.constant 0 : index
    %c19_945 = arith.constant 19 : index
    %1706 = vector.load %arg1[%c2_943, %c0_944, %c19_945] : memref<4x2x384xf32, #tpu.memory_space<vmem>>, vector<1x2x324xf32>
    %1707 = vector.shape_cast %1706 : vector<1x2x324xf32> to vector<2x324xf32>
    %1708 = arith.addf %1705, %1707 : vector<2x324xf32>
    %cst_946 = arith.constant 0.000000e+00 : f32
    %1709 = vector.broadcast %cst_946 : f32 to vector<2x324xf32>
    %1710 = arith.maximumf %1708, %1709 : vector<2x324xf32>
    %c2_947 = arith.constant 2 : index
    %c0_948 = arith.constant 0 : index
    %c0_949 = arith.constant 0 : index
    %1711 = vector.load %arg7[%c2_947, %c0_948, %c0_949] : memref<4x2x324xf32, #tpu.memory_space<vmem>>, vector<1x2x324xf32>
    %1712 = vector.shape_cast %1711 : vector<1x2x324xf32> to vector<2x324xf32>
    %1713 = vector.shape_cast %1710 : vector<2x324xf32> to vector<1x2x324xf32>
    tpu.vector_store %arg7[%c2_947, %c0_948, %c0_949], %1713 {strides = array<i32>} : memref<4x2x324xf32, #tpu.memory_space<vmem>>, vector<1x2x324xf32>,
    %c108_950 = arith.constant 108 : index
    %1714 = memref.load %arg5[%c108_950] : memref<144xf32, #tpu.memory_space<smem>>
    %c0_951 = arith.constant 0 : index
    %c0_952 = arith.constant 0 : index
    %c0_953 = arith.constant 0 : index
    %1715 = vector.load %arg8[%c0_951, %c0_952, %c0_953] : memref<4x2x362xf32, #tpu.memory_space<vmem>>, vector<1x2x324xf32>
    %1716 = vector.shape_cast %1715 : vector<1x2x324xf32> to vector<2x324xf32>
    %1717 = vector.broadcast %1714 : f32 to vector<2x324xf32>
    %1718 = arith.mulf %1716, %1717 : vector<2x324xf32>
    %c109_954 = arith.constant 109 : index
    %1719 = memref.load %arg5[%c109_954] : memref<144xf32, #tpu.memory_space<smem>>
    %c0_955 = arith.constant 0 : index
    %c0_956 = arith.constant 0 : index
    %c1_957 = arith.constant 1 : index
    %1720 = vector.load %arg8[%c0_955, %c0_956, %c1_957] : memref<4x2x362xf32, #tpu.memory_space<vmem>>, vector<1x2x324xf32>
    %1721 = vector.shape_cast %1720 : vector<1x2x324xf32> to vector<2x324xf32>
    %1722 = vector.broadcast %1719 : f32 to vector<2x324xf32>
    %1723 = arith.mulf %1721, %1722 : vector<2x324xf32>
    %1724 = arith.addf %1718, %1723 : vector<2x324xf32>
    %c110_958 = arith.constant 110 : index
    %1725 = memref.load %arg5[%c110_958] : memref<144xf32, #tpu.memory_space<smem>>
    %c0_959 = arith.constant 0 : index
    %c0_960 = arith.constant 0 : index
    %c2_961 = arith.constant 2 : index
    %1726 = vector.load %arg8[%c0_959, %c0_960, %c2_961] : memref<4x2x362xf32, #tpu.memory_space<vmem>>, vector<1x2x324xf32>
    %1727 = vector.shape_cast %1726 : vector<1x2x324xf32> to vector<2x324xf32>
    %1728 = vector.broadcast %1725 : f32 to vector<2x324xf32>
    %1729 = arith.mulf %1727, %1728 : vector<2x324xf32>
    %1730 = arith.addf %1724, %1729 : vector<2x324xf32>
    %c111_962 = arith.constant 111 : index
    %1731 = memref.load %arg5[%c111_962] : memref<144xf32, #tpu.memory_space<smem>>
    %c0_963 = arith.constant 0 : index
    %c0_964 = arith.constant 0 : index
    %c18_965 = arith.constant 18 : index
    %1732 = vector.load %arg8[%c0_963, %c0_964, %c18_965] : memref<4x2x362xf32, #tpu.memory_space<vmem>>, vector<1x2x324xf32>
    %1733 = vector.shape_cast %1732 : vector<1x2x324xf32> to vector<2x324xf32>
    %1734 = vector.broadcast %1731 : f32 to vector<2x324xf32>
    %1735 = arith.mulf %1733, %1734 : vector<2x324xf32>
    %1736 = arith.addf %1730, %1735 : vector<2x324xf32>
    %c112_966 = arith.constant 112 : index
    %1737 = memref.load %arg5[%c112_966] : memref<144xf32, #tpu.memory_space<smem>>
    %c0_967 = arith.constant 0 : index
    %c0_968 = arith.constant 0 : index
    %c19_969 = arith.constant 19 : index
    %1738 = vector.load %arg8[%c0_967, %c0_968, %c19_969] : memref<4x2x362xf32, #tpu.memory_space<vmem>>, vector<1x2x324xf32>
    %1739 = vector.shape_cast %1738 : vector<1x2x324xf32> to vector<2x324xf32>
    %1740 = vector.broadcast %1737 : f32 to vector<2x324xf32>
    %1741 = arith.mulf %1739, %1740 : vector<2x324xf32>
    %1742 = arith.addf %1736, %1741 : vector<2x324xf32>
    %c113_970 = arith.constant 113 : index
    %1743 = memref.load %arg5[%c113_970] : memref<144xf32, #tpu.memory_space<smem>>
    %c0_971 = arith.constant 0 : index
    %c0_972 = arith.constant 0 : index
    %c20_973 = arith.constant 20 : index
    %1744 = vector.load %arg8[%c0_971, %c0_972, %c20_973] : memref<4x2x362xf32, #tpu.memory_space<vmem>>, vector<1x2x324xf32>
    %1745 = vector.shape_cast %1744 : vector<1x2x324xf32> to vector<2x324xf32>
    %1746 = vector.broadcast %1743 : f32 to vector<2x324xf32>
    %1747 = arith.mulf %1745, %1746 : vector<2x324xf32>
    %1748 = arith.addf %1742, %1747 : vector<2x324xf32>
    %c114_974 = arith.constant 114 : index
    %1749 = memref.load %arg5[%c114_974] : memref<144xf32, #tpu.memory_space<smem>>
    %c0_975 = arith.constant 0 : index
    %c0_976 = arith.constant 0 : index
    %c36_977 = arith.constant 36 : index
    %1750 = vector.load %arg8[%c0_975, %c0_976, %c36_977] : memref<4x2x362xf32, #tpu.memory_space<vmem>>, vector<1x2x324xf32>
    %1751 = vector.shape_cast %1750 : vector<1x2x324xf32> to vector<2x324xf32>
    %1752 = vector.broadcast %1749 : f32 to vector<2x324xf32>
    %1753 = arith.mulf %1751, %1752 : vector<2x324xf32>
    %1754 = arith.addf %1748, %1753 : vector<2x324xf32>
    %c115_978 = arith.constant 115 : index
    %1755 = memref.load %arg5[%c115_978] : memref<144xf32, #tpu.memory_space<smem>>
    %c0_979 = arith.constant 0 : index
    %c0_980 = arith.constant 0 : index
    %c37_981 = arith.constant 37 : index
    %1756 = vector.load %arg8[%c0_979, %c0_980, %c37_981] : memref<4x2x362xf32, #tpu.memory_space<vmem>>, vector<1x2x324xf32>
    %1757 = vector.shape_cast %1756 : vector<1x2x324xf32> to vector<2x324xf32>
    %1758 = vector.broadcast %1755 : f32 to vector<2x324xf32>
    %1759 = arith.mulf %1757, %1758 : vector<2x324xf32>
    %1760 = arith.addf %1754, %1759 : vector<2x324xf32>
    %c116_982 = arith.constant 116 : index
    %1761 = memref.load %arg5[%c116_982] : memref<144xf32, #tpu.memory_space<smem>>
    %c0_983 = arith.constant 0 : index
    %c0_984 = arith.constant 0 : index
    %c38_985 = arith.constant 38 : index
    %1762 = vector.load %arg8[%c0_983, %c0_984, %c38_985] : memref<4x2x362xf32, #tpu.memory_space<vmem>>, vector<1x2x324xf32>
    %1763 = vector.shape_cast %1762 : vector<1x2x324xf32> to vector<2x324xf32>
    %1764 = vector.broadcast %1761 : f32 to vector<2x324xf32>
    %1765 = arith.mulf %1763, %1764 : vector<2x324xf32>
    %1766 = arith.addf %1760, %1765 : vector<2x324xf32>
    %c117_986 = arith.constant 117 : index
    %1767 = memref.load %arg5[%c117_986] : memref<144xf32, #tpu.memory_space<smem>>
    %c1_987 = arith.constant 1 : index
    %c0_988 = arith.constant 0 : index
    %c0_989 = arith.constant 0 : index
    %1768 = vector.load %arg8[%c1_987, %c0_988, %c0_989] : memref<4x2x362xf32, #tpu.memory_space<vmem>>, vector<1x2x324xf32>
    %1769 = vector.shape_cast %1768 : vector<1x2x324xf32> to vector<2x324xf32>
    %1770 = vector.broadcast %1767 : f32 to vector<2x324xf32>
    %1771 = arith.mulf %1769, %1770 : vector<2x324xf32>
    %1772 = arith.addf %1766, %1771 : vector<2x324xf32>
    %c118_990 = arith.constant 118 : index
    %1773 = memref.load %arg5[%c118_990] : memref<144xf32, #tpu.memory_space<smem>>
    %c1_991 = arith.constant 1 : index
    %c0_992 = arith.constant 0 : index
    %c1_993 = arith.constant 1 : index
    %1774 = vector.load %arg8[%c1_991, %c0_992, %c1_993] : memref<4x2x362xf32, #tpu.memory_space<vmem>>, vector<1x2x324xf32>
    %1775 = vector.shape_cast %1774 : vector<1x2x324xf32> to vector<2x324xf32>
    %1776 = vector.broadcast %1773 : f32 to vector<2x324xf32>
    %1777 = arith.mulf %1775, %1776 : vector<2x324xf32>
    %1778 = arith.addf %1772, %1777 : vector<2x324xf32>
    %c119_994 = arith.constant 119 : index
    %1779 = memref.load %arg5[%c119_994] : memref<144xf32, #tpu.memory_space<smem>>
    %c1_995 = arith.constant 1 : index
    %c0_996 = arith.constant 0 : index
    %c2_997 = arith.constant 2 : index
    %1780 = vector.load %arg8[%c1_995, %c0_996, %c2_997] : memref<4x2x362xf32, #tpu.memory_space<vmem>>, vector<1x2x324xf32>
    %1781 = vector.shape_cast %1780 : vector<1x2x324xf32> to vector<2x324xf32>
    %1782 = vector.broadcast %1779 : f32 to vector<2x324xf32>
    %1783 = arith.mulf %1781, %1782 : vector<2x324xf32>
    %1784 = arith.addf %1778, %1783 : vector<2x324xf32>
    %c120_998 = arith.constant 120 : index
    %1785 = memref.load %arg5[%c120_998] : memref<144xf32, #tpu.memory_space<smem>>
    %c1_999 = arith.constant 1 : index
    %c0_1000 = arith.constant 0 : index
    %c18_1001 = arith.constant 18 : index
    %1786 = vector.load %arg8[%c1_999, %c0_1000, %c18_1001] : memref<4x2x362xf32, #tpu.memory_space<vmem>>, vector<1x2x324xf32>
    %1787 = vector.shape_cast %1786 : vector<1x2x324xf32> to vector<2x324xf32>
    %1788 = vector.broadcast %1785 : f32 to vector<2x324xf32>
    %1789 = arith.mulf %1787, %1788 : vector<2x324xf32>
    %1790 = arith.addf %1784, %1789 : vector<2x324xf32>
    %c121_1002 = arith.constant 121 : index
    %1791 = memref.load %arg5[%c121_1002] : memref<144xf32, #tpu.memory_space<smem>>
    %c1_1003 = arith.constant 1 : index
    %c0_1004 = arith.constant 0 : index
    %c19_1005 = arith.constant 19 : index
    %1792 = vector.load %arg8[%c1_1003, %c0_1004, %c19_1005] : memref<4x2x362xf32, #tpu.memory_space<vmem>>, vector<1x2x324xf32>
    %1793 = vector.shape_cast %1792 : vector<1x2x324xf32> to vector<2x324xf32>
    %1794 = vector.broadcast %1791 : f32 to vector<2x324xf32>
    %1795 = arith.mulf %1793, %1794 : vector<2x324xf32>
    %1796 = arith.addf %1790, %1795 : vector<2x324xf32>
    %c122_1006 = arith.constant 122 : index
    %1797 = memref.load %arg5[%c122_1006] : memref<144xf32, #tpu.memory_space<smem>>
    %c1_1007 = arith.constant 1 : index
    %c0_1008 = arith.constant 0 : index
    %c20_1009 = arith.constant 20 : index
    %1798 = vector.load %arg8[%c1_1007, %c0_1008, %c20_1009] : memref<4x2x362xf32, #tpu.memory_space<vmem>>, vector<1x2x324xf32>
    %1799 = vector.shape_cast %1798 : vector<1x2x324xf32> to vector<2x324xf32>
    %1800 = vector.broadcast %1797 : f32 to vector<2x324xf32>
    %1801 = arith.mulf %1799, %1800 : vector<2x324xf32>
    %1802 = arith.addf %1796, %1801 : vector<2x324xf32>
    %c123_1010 = arith.constant 123 : index
    %1803 = memref.load %arg5[%c123_1010] : memref<144xf32, #tpu.memory_space<smem>>
    %c1_1011 = arith.constant 1 : index
    %c0_1012 = arith.constant 0 : index
    %c36_1013 = arith.constant 36 : index
    %1804 = vector.load %arg8[%c1_1011, %c0_1012, %c36_1013] : memref<4x2x362xf32, #tpu.memory_space<vmem>>, vector<1x2x324xf32>
    %1805 = vector.shape_cast %1804 : vector<1x2x324xf32> to vector<2x324xf32>
    %1806 = vector.broadcast %1803 : f32 to vector<2x324xf32>
    %1807 = arith.mulf %1805, %1806 : vector<2x324xf32>
    %1808 = arith.addf %1802, %1807 : vector<2x324xf32>
    %c124_1014 = arith.constant 124 : index
    %1809 = memref.load %arg5[%c124_1014] : memref<144xf32, #tpu.memory_space<smem>>
    %c1_1015 = arith.constant 1 : index
    %c0_1016 = arith.constant 0 : index
    %c37_1017 = arith.constant 37 : index
    %1810 = vector.load %arg8[%c1_1015, %c0_1016, %c37_1017] : memref<4x2x362xf32, #tpu.memory_space<vmem>>, vector<1x2x324xf32>
    %1811 = vector.shape_cast %1810 : vector<1x2x324xf32> to vector<2x324xf32>
    %1812 = vector.broadcast %1809 : f32 to vector<2x324xf32>
    %1813 = arith.mulf %1811, %1812 : vector<2x324xf32>
    %1814 = arith.addf %1808, %1813 : vector<2x324xf32>
    %c125_1018 = arith.constant 125 : index
    %1815 = memref.load %arg5[%c125_1018] : memref<144xf32, #tpu.memory_space<smem>>
    %c1_1019 = arith.constant 1 : index
    %c0_1020 = arith.constant 0 : index
    %c38_1021 = arith.constant 38 : index
    %1816 = vector.load %arg8[%c1_1019, %c0_1020, %c38_1021] : memref<4x2x362xf32, #tpu.memory_space<vmem>>, vector<1x2x324xf32>
    %1817 = vector.shape_cast %1816 : vector<1x2x324xf32> to vector<2x324xf32>
    %1818 = vector.broadcast %1815 : f32 to vector<2x324xf32>
    %1819 = arith.mulf %1817, %1818 : vector<2x324xf32>
    %1820 = arith.addf %1814, %1819 : vector<2x324xf32>
    %c126_1022 = arith.constant 126 : index
    %1821 = memref.load %arg5[%c126_1022] : memref<144xf32, #tpu.memory_space<smem>>
    %c2_1023 = arith.constant 2 : index
    %c0_1024 = arith.constant 0 : index
    %c0_1025 = arith.constant 0 : index
    %1822 = vector.load %arg8[%c2_1023, %c0_1024, %c0_1025] : memref<4x2x362xf32, #tpu.memory_space<vmem>>, vector<1x2x324xf32>
    %1823 = vector.shape_cast %1822 : vector<1x2x324xf32> to vector<2x324xf32>
    %1824 = vector.broadcast %1821 : f32 to vector<2x324xf32>
    %1825 = arith.mulf %1823, %1824 : vector<2x324xf32>
    %1826 = arith.addf %1820, %1825 : vector<2x324xf32>
    %c127_1026 = arith.constant 127 : index
    %1827 = memref.load %arg5[%c127_1026] : memref<144xf32, #tpu.memory_space<smem>>
    %c2_1027 = arith.constant 2 : index
    %c0_1028 = arith.constant 0 : index
    %c1_1029 = arith.constant 1 : index
    %1828 = vector.load %arg8[%c2_1027, %c0_1028, %c1_1029] : memref<4x2x362xf32, #tpu.memory_space<vmem>>, vector<1x2x324xf32>
    %1829 = vector.shape_cast %1828 : vector<1x2x324xf32> to vector<2x324xf32>
    %1830 = vector.broadcast %1827 : f32 to vector<2x324xf32>
    %1831 = arith.mulf %1829, %1830 : vector<2x324xf32>
    %1832 = arith.addf %1826, %1831 : vector<2x324xf32>
    %c128_1030 = arith.constant 128 : index
    %1833 = memref.load %arg5[%c128_1030] : memref<144xf32, #tpu.memory_space<smem>>
    %c2_1031 = arith.constant 2 : index
    %c0_1032 = arith.constant 0 : index
    %c2_1033 = arith.constant 2 : index
    %1834 = vector.load %arg8[%c2_1031, %c0_1032, %c2_1033] : memref<4x2x362xf32, #tpu.memory_space<vmem>>, vector<1x2x324xf32>
    %1835 = vector.shape_cast %1834 : vector<1x2x324xf32> to vector<2x324xf32>
    %1836 = vector.broadcast %1833 : f32 to vector<2x324xf32>
    %1837 = arith.mulf %1835, %1836 : vector<2x324xf32>
    %1838 = arith.addf %1832, %1837 : vector<2x324xf32>
    %c129_1034 = arith.constant 129 : index
    %1839 = memref.load %arg5[%c129_1034] : memref<144xf32, #tpu.memory_space<smem>>
    %c2_1035 = arith.constant 2 : index
    %c0_1036 = arith.constant 0 : index
    %c18_1037 = arith.constant 18 : index
    %1840 = vector.load %arg8[%c2_1035, %c0_1036, %c18_1037] : memref<4x2x362xf32, #tpu.memory_space<vmem>>, vector<1x2x324xf32>
    %1841 = vector.shape_cast %1840 : vector<1x2x324xf32> to vector<2x324xf32>
    %1842 = vector.broadcast %1839 : f32 to vector<2x324xf32>
    %1843 = arith.mulf %1841, %1842 : vector<2x324xf32>
    %1844 = arith.addf %1838, %1843 : vector<2x324xf32>
    %c130_1038 = arith.constant 130 : index
    %1845 = memref.load %arg5[%c130_1038] : memref<144xf32, #tpu.memory_space<smem>>
    %c2_1039 = arith.constant 2 : index
    %c0_1040 = arith.constant 0 : index
    %c19_1041 = arith.constant 19 : index
    %1846 = vector.load %arg8[%c2_1039, %c0_1040, %c19_1041] : memref<4x2x362xf32, #tpu.memory_space<vmem>>, vector<1x2x324xf32>
    %1847 = vector.shape_cast %1846 : vector<1x2x324xf32> to vector<2x324xf32>
    %1848 = vector.broadcast %1845 : f32 to vector<2x324xf32>
    %1849 = arith.mulf %1847, %1848 : vector<2x324xf32>
    %1850 = arith.addf %1844, %1849 : vector<2x324xf32>
    %c131_1042 = arith.constant 131 : index
    %1851 = memref.load %arg5[%c131_1042] : memref<144xf32, #tpu.memory_space<smem>>
    %c2_1043 = arith.constant 2 : index
    %c0_1044 = arith.constant 0 : index
    %c20_1045 = arith.constant 20 : index
    %1852 = vector.load %arg8[%c2_1043, %c0_1044, %c20_1045] : memref<4x2x362xf32, #tpu.memory_space<vmem>>, vector<1x2x324xf32>
    %1853 = vector.shape_cast %1852 : vector<1x2x324xf32> to vector<2x324xf32>
    %1854 = vector.broadcast %1851 : f32 to vector<2x324xf32>
    %1855 = arith.mulf %1853, %1854 : vector<2x324xf32>
    %1856 = arith.addf %1850, %1855 : vector<2x324xf32>
    %c132_1046 = arith.constant 132 : index
    %1857 = memref.load %arg5[%c132_1046] : memref<144xf32, #tpu.memory_space<smem>>
    %c2_1047 = arith.constant 2 : index
    %c0_1048 = arith.constant 0 : index
    %c36_1049 = arith.constant 36 : index
    %1858 = vector.load %arg8[%c2_1047, %c0_1048, %c36_1049] : memref<4x2x362xf32, #tpu.memory_space<vmem>>, vector<1x2x324xf32>
    %1859 = vector.shape_cast %1858 : vector<1x2x324xf32> to vector<2x324xf32>
    %1860 = vector.broadcast %1857 : f32 to vector<2x324xf32>
    %1861 = arith.mulf %1859, %1860 : vector<2x324xf32>
    %1862 = arith.addf %1856, %1861 : vector<2x324xf32>
    %c133_1050 = arith.constant 133 : index
    %1863 = memref.load %arg5[%c133_1050] : memref<144xf32, #tpu.memory_space<smem>>
    %c2_1051 = arith.constant 2 : index
    %c0_1052 = arith.constant 0 : index
    %c37_1053 = arith.constant 37 : index
    %1864 = vector.load %arg8[%c2_1051, %c0_1052, %c37_1053] : memref<4x2x362xf32, #tpu.memory_space<vmem>>, vector<1x2x324xf32>
    %1865 = vector.shape_cast %1864 : vector<1x2x324xf32> to vector<2x324xf32>
    %1866 = vector.broadcast %1863 : f32 to vector<2x324xf32>
    %1867 = arith.mulf %1865, %1866 : vector<2x324xf32>
    %1868 = arith.addf %1862, %1867 : vector<2x324xf32>
    %c134_1054 = arith.constant 134 : index
    %1869 = memref.load %arg5[%c134_1054] : memref<144xf32, #tpu.memory_space<smem>>
    %c2_1055 = arith.constant 2 : index
    %c0_1056 = arith.constant 0 : index
    %c38_1057 = arith.constant 38 : index
    %1870 = vector.load %arg8[%c2_1055, %c0_1056, %c38_1057] : memref<4x2x362xf32, #tpu.memory_space<vmem>>, vector<1x2x324xf32>
    %1871 = vector.shape_cast %1870 : vector<1x2x324xf32> to vector<2x324xf32>
    %1872 = vector.broadcast %1869 : f32 to vector<2x324xf32>
    %1873 = arith.mulf %1871, %1872 : vector<2x324xf32>
    %1874 = arith.addf %1868, %1873 : vector<2x324xf32>
    %c135_1058 = arith.constant 135 : index
    %1875 = memref.load %arg5[%c135_1058] : memref<144xf32, #tpu.memory_space<smem>>
    %c3_1059 = arith.constant 3 : index
    %c0_1060 = arith.constant 0 : index
    %c0_1061 = arith.constant 0 : index
    %1876 = vector.load %arg8[%c3_1059, %c0_1060, %c0_1061] : memref<4x2x362xf32, #tpu.memory_space<vmem>>, vector<1x2x324xf32>
    %1877 = vector.shape_cast %1876 : vector<1x2x324xf32> to vector<2x324xf32>
    %1878 = vector.broadcast %1875 : f32 to vector<2x324xf32>
    %1879 = arith.mulf %1877, %1878 : vector<2x324xf32>
    %1880 = arith.addf %1874, %1879 : vector<2x324xf32>
    %c136_1062 = arith.constant 136 : index
    %1881 = memref.load %arg5[%c136_1062] : memref<144xf32, #tpu.memory_space<smem>>
    %c3_1063 = arith.constant 3 : index
    %c0_1064 = arith.constant 0 : index
    %c1_1065 = arith.constant 1 : index
    %1882 = vector.load %arg8[%c3_1063, %c0_1064, %c1_1065] : memref<4x2x362xf32, #tpu.memory_space<vmem>>, vector<1x2x324xf32>
    %1883 = vector.shape_cast %1882 : vector<1x2x324xf32> to vector<2x324xf32>
    %1884 = vector.broadcast %1881 : f32 to vector<2x324xf32>
    %1885 = arith.mulf %1883, %1884 : vector<2x324xf32>
    %1886 = arith.addf %1880, %1885 : vector<2x324xf32>
    %c137_1066 = arith.constant 137 : index
    %1887 = memref.load %arg5[%c137_1066] : memref<144xf32, #tpu.memory_space<smem>>
    %c3_1067 = arith.constant 3 : index
    %c0_1068 = arith.constant 0 : index
    %c2_1069 = arith.constant 2 : index
    %1888 = vector.load %arg8[%c3_1067, %c0_1068, %c2_1069] : memref<4x2x362xf32, #tpu.memory_space<vmem>>, vector<1x2x324xf32>
    %1889 = vector.shape_cast %1888 : vector<1x2x324xf32> to vector<2x324xf32>
    %1890 = vector.broadcast %1887 : f32 to vector<2x324xf32>
    %1891 = arith.mulf %1889, %1890 : vector<2x324xf32>
    %1892 = arith.addf %1886, %1891 : vector<2x324xf32>
    %c138_1070 = arith.constant 138 : index
    %1893 = memref.load %arg5[%c138_1070] : memref<144xf32, #tpu.memory_space<smem>>
    %c3_1071 = arith.constant 3 : index
    %c0_1072 = arith.constant 0 : index
    %c18_1073 = arith.constant 18 : index
    %1894 = vector.load %arg8[%c3_1071, %c0_1072, %c18_1073] : memref<4x2x362xf32, #tpu.memory_space<vmem>>, vector<1x2x324xf32>
    %1895 = vector.shape_cast %1894 : vector<1x2x324xf32> to vector<2x324xf32>
    %1896 = vector.broadcast %1893 : f32 to vector<2x324xf32>
    %1897 = arith.mulf %1895, %1896 : vector<2x324xf32>
    %1898 = arith.addf %1892, %1897 : vector<2x324xf32>
    %c139_1074 = arith.constant 139 : index
    %1899 = memref.load %arg5[%c139_1074] : memref<144xf32, #tpu.memory_space<smem>>
    %c3_1075 = arith.constant 3 : index
    %c0_1076 = arith.constant 0 : index
    %c19_1077 = arith.constant 19 : index
    %1900 = vector.load %arg8[%c3_1075, %c0_1076, %c19_1077] : memref<4x2x362xf32, #tpu.memory_space<vmem>>, vector<1x2x324xf32>
    %1901 = vector.shape_cast %1900 : vector<1x2x324xf32> to vector<2x324xf32>
    %1902 = vector.broadcast %1899 : f32 to vector<2x324xf32>
    %1903 = arith.mulf %1901, %1902 : vector<2x324xf32>
    %1904 = arith.addf %1898, %1903 : vector<2x324xf32>
    %c140_1078 = arith.constant 140 : index
    %1905 = memref.load %arg5[%c140_1078] : memref<144xf32, #tpu.memory_space<smem>>
    %c3_1079 = arith.constant 3 : index
    %c0_1080 = arith.constant 0 : index
    %c20_1081 = arith.constant 20 : index
    %1906 = vector.load %arg8[%c3_1079, %c0_1080, %c20_1081] : memref<4x2x362xf32, #tpu.memory_space<vmem>>, vector<1x2x324xf32>
    %1907 = vector.shape_cast %1906 : vector<1x2x324xf32> to vector<2x324xf32>
    %1908 = vector.broadcast %1905 : f32 to vector<2x324xf32>
    %1909 = arith.mulf %1907, %1908 : vector<2x324xf32>
    %1910 = arith.addf %1904, %1909 : vector<2x324xf32>
    %c141_1082 = arith.constant 141 : index
    %1911 = memref.load %arg5[%c141_1082] : memref<144xf32, #tpu.memory_space<smem>>
    %c3_1083 = arith.constant 3 : index
    %c0_1084 = arith.constant 0 : index
    %c36_1085 = arith.constant 36 : index
    %1912 = vector.load %arg8[%c3_1083, %c0_1084, %c36_1085] : memref<4x2x362xf32, #tpu.memory_space<vmem>>, vector<1x2x324xf32>
    %1913 = vector.shape_cast %1912 : vector<1x2x324xf32> to vector<2x324xf32>
    %1914 = vector.broadcast %1911 : f32 to vector<2x324xf32>
    %1915 = arith.mulf %1913, %1914 : vector<2x324xf32>
    %1916 = arith.addf %1910, %1915 : vector<2x324xf32>
    %c142_1086 = arith.constant 142 : index
    %1917 = memref.load %arg5[%c142_1086] : memref<144xf32, #tpu.memory_space<smem>>
    %c3_1087 = arith.constant 3 : index
    %c0_1088 = arith.constant 0 : index
    %c37_1089 = arith.constant 37 : index
    %1918 = vector.load %arg8[%c3_1087, %c0_1088, %c37_1089] : memref<4x2x362xf32, #tpu.memory_space<vmem>>, vector<1x2x324xf32>
    %1919 = vector.shape_cast %1918 : vector<1x2x324xf32> to vector<2x324xf32>
    %1920 = vector.broadcast %1917 : f32 to vector<2x324xf32>
    %1921 = arith.mulf %1919, %1920 : vector<2x324xf32>
    %1922 = arith.addf %1916, %1921 : vector<2x324xf32>
    %c143_1090 = arith.constant 143 : index
    %1923 = memref.load %arg5[%c143_1090] : memref<144xf32, #tpu.memory_space<smem>>
    %c3_1091 = arith.constant 3 : index
    %c0_1092 = arith.constant 0 : index
    %c38_1093 = arith.constant 38 : index
    %1924 = vector.load %arg8[%c3_1091, %c0_1092, %c38_1093] : memref<4x2x362xf32, #tpu.memory_space<vmem>>, vector<1x2x324xf32>
    %1925 = vector.shape_cast %1924 : vector<1x2x324xf32> to vector<2x324xf32>
    %1926 = vector.broadcast %1923 : f32 to vector<2x324xf32>
    %1927 = arith.mulf %1925, %1926 : vector<2x324xf32>
    %1928 = arith.addf %1922, %1927 : vector<2x324xf32>
    %c3_1094 = arith.constant 3 : index
    %1929 = memref.load %arg6[%c3_1094] : memref<4xf32, #tpu.memory_space<smem>>
    %1930 = vector.broadcast %1929 : f32 to vector<2x324xf32>
    %1931 = arith.addf %1928, %1930 : vector<2x324xf32>
    %1932 = vector.broadcast %0 : vector<1x324xf32> to vector<2x324xf32>
    %1933 = arith.mulf %1931, %1932 : vector<2x324xf32>
    %cst_1095 = arith.constant dense<0.000000e+00> : vector<2xf32>
    %1934 = vector.multi_reduction <add>, %1933, %cst_1095 [1] : vector<2x324xf32> to vector<2xf32>
    %1935 = vector.shape_cast %1934 : vector<2xf32> to vector<2x1xf32>
    %cst_1096 = arith.constant 3.906250e-03 : f32
    %1936 = vector.broadcast %cst_1096 : f32 to vector<2x1xf32>
    %1937 = arith.mulf %1935, %1936 : vector<2x1xf32>
    %1938 = vector.broadcast %1937 : vector<2x1xf32> to vector<2x324xf32>
    %1939 = arith.subf %1931, %1938 : vector<2x324xf32>
    %1940 = vector.broadcast %0 : vector<1x324xf32> to vector<2x324xf32>
    %1941 = arith.mulf %1939, %1940 : vector<2x324xf32>
    %1942 = arith.mulf %1941, %1941 : vector<2x324xf32>
    %cst_1097 = arith.constant dense<0.000000e+00> : vector<2xf32>
    %1943 = vector.multi_reduction <add>, %1942, %cst_1097 [1] : vector<2x324xf32> to vector<2xf32>
    %1944 = vector.shape_cast %1943 : vector<2xf32> to vector<2x1xf32>
    %cst_1098 = arith.constant 3.906250e-03 : f32
    %1945 = vector.broadcast %cst_1098 : f32 to vector<2x1xf32>
    %1946 = arith.mulf %1944, %1945 : vector<2x1xf32>
    %cst_1099 = arith.constant 9.99999974E-6 : f32
    %1947 = vector.broadcast %cst_1099 : f32 to vector<2x1xf32>
    %1948 = arith.addf %1946, %1947 : vector<2x1xf32>
    %1949 = math.rsqrt %1948 : vector<2x1xf32>
    %1950 = vector.broadcast %1949 : vector<2x1xf32> to vector<2x324xf32>
    %1951 = arith.mulf %1941, %1950 : vector<2x324xf32>
    %c3_1100 = arith.constant 3 : index
    %c0_1101 = arith.constant 0 : index
    %c19_1102 = arith.constant 19 : index
    %1952 = vector.load %arg1[%c3_1100, %c0_1101, %c19_1102] : memref<4x2x384xf32, #tpu.memory_space<vmem>>, vector<1x2x324xf32>
    %1953 = vector.shape_cast %1952 : vector<1x2x324xf32> to vector<2x324xf32>
    %1954 = arith.addf %1951, %1953 : vector<2x324xf32>
    %cst_1103 = arith.constant 0.000000e+00 : f32
    %1955 = vector.broadcast %cst_1103 : f32 to vector<2x324xf32>
    %1956 = arith.maximumf %1954, %1955 : vector<2x324xf32>
    %c3_1104 = arith.constant 3 : index
    %c0_1105 = arith.constant 0 : index
    %c0_1106 = arith.constant 0 : index
    %1957 = vector.load %arg7[%c3_1104, %c0_1105, %c0_1106] : memref<4x2x324xf32, #tpu.memory_space<vmem>>, vector<1x2x324xf32>
    %1958 = vector.shape_cast %1957 : vector<1x2x324xf32> to vector<2x324xf32>
    %1959 = vector.shape_cast %1956 : vector<2x324xf32> to vector<1x2x324xf32>
    tpu.vector_store %arg7[%c3_1104, %c0_1105, %c0_1106], %1959 {strides = array<i32>} : memref<4x2x324xf32, #tpu.memory_space<vmem>>, vector<1x2x324xf32>,
    return
  }
  func.func @transform_0(%arg0: i32) -> (i32, i32, i32) {
    %c0_i32 = arith.constant 0 : i32
    %c0_i32_0 = arith.constant 0 : i32
    %c0_i32_1 = arith.constant 0 : i32
    return %c0_i32, %arg0, %c0_i32_0 : i32, i32, i32
  }
  func.func @transform_1(%arg0: i32) -> (i32, i32) {
    %c0_i32 = arith.constant 0 : i32
    %c0_i32_0 = arith.constant 0 : i32
    %c0_i32_1 = arith.constant 0 : i32
    return %c0_i32, %c0_i32_0 : i32, i32
  }
  func.func @transform_2(%arg0: i32) -> i32 {
    %c0_i32 = arith.constant 0 : i32
    %c0_i32_0 = arith.constant 0 : i32
    return %c0_i32 : i32
  }
  func.func @transform_3(%arg0: i32) -> i32 {
    %c0_i32 = arith.constant 0 : i32
    %c0_i32_0 = arith.constant 0 : i32
    return %c0_i32 : i32
  }
  func.func @transform_4(%arg0: i32) -> i32 {
    %c0_i32 = arith.constant 0 : i32
    %c0_i32_0 = arith.constant 0 : i32
    return %c0_i32 : i32
  }
  func.func @transform_5(%arg0: i32) -> i32 {
    %c0_i32 = arith.constant 0 : i32
    %c0_i32_0 = arith.constant 0 : i32
    return %c0_i32 : i32
  }
  func.func @transform_6(%arg0: i32) -> (i32, i32, i32) {
    %c0_i32 = arith.constant 0 : i32
    %c0_i32_0 = arith.constant 0 : i32
    %c0_i32_1 = arith.constant 0 : i32
    return %c0_i32, %arg0, %c0_i32_0 : i32, i32, i32
  }
}

</mosaic_0001>

<bundles_post_ra>
// kernel: tpu_custom_call.1
= control target key start
LH: loop header
LB: loop body
LE: loop exit
PB: predicated region body
PF: predicated region fallthrough
CT: control target
= control target key end

     0   :  { %11 = vsyncpa [#allocation4], 0  ;;  %s6002_s0 = inlined_call_operand.hbm [shape: f32[4,2,384], index: 0, kind: input, shape index: {}]   ;;  %s6003_s1 = inlined_call_operand.hbm [shape: f32[1,324], index: 1, kind: input, shape index: {}]   ;;  %s6004_s2 = inlined_call_operand.vmem [shape: f32[144], index: 2, kind: input, shape index: {}]   ;;  %s6005_s3 = inlined_call_operand.vmem [shape: f32[4], index: 3, kind: input, shape index: {}]   ;;  %s6006_s4 = inlined_call_operand.vmem [shape: f32[144], index: 4, kind: input, shape index: {}]   ;;  %s6007_s5 = inlined_call_operand.vmem [shape: f32[4], index: 5, kind: input, shape index: {}]   ;;  %s6008_s6 = inlined_call_operand.hbm [shape: f32[4,2,324], index: 6, kind: output, shape index: {}]  }
   0x1   :  { %12 = vsyncpa [#allocation8], 0 }
   0x2   :  { %13 = vsyncpa [#allocation6], 0 }
   0x3   :  { %14 = vsyncpa [#allocation11], 0 }
   0x4   :  { %15 = vsyncpa [#allocation14], 0  ;;  %s55_s23 = sshll.u32 %s6005_s3, 4  ;;  %s56_s23 = int_to_ptr.vmem [resolvable:$true] %s55_s23 }
   0x5   :  { %16 = vsyncpa [#allocation5], 0  ;;  %s3978_s24 = scalar_lea.vmem %s56_s23, 16  ;;  %p3983_p1 = scmp.lt.s32.totalorder %s56_s23, %s56_s23 }
   0x6   :  { %p3979_p0 = scmp.ne.s32.totalorder %s56_s23, %s3978_s24  ;;  %p3984_p2 = scmp.lt.s32.totalorder %s3978_s24, %s3978_s24 }
   0x8   :  { %p3985_p3 = por %p3984_p2, %p3983_p1 }
   0xa   :  { %p3986_p4 = pnand %p3985_p3, %p3979_p0 }
   0xc   :  { %3989 = shalt.err (!%p3986_p4)
}
   0xd   :  { %s4098_s25 = smov [#allocation10]   ;;  %s4099_s26 = smov [#allocation3]  }
   0xe   :  { %58 = dma.vmem_to_smem %s56_s23, 16, %s4098_s25, [#allocation11]  }
   0xf   :  { %s22_s27 = sshll.u32 %s4099_s26, 4  ;;  %s23_s27 = int_to_ptr.vmem [resolvable:$true] %s22_s27 }
  0x10   :  { %s3998_s28 = scalar_lea.vmem %s23_s27, 384  ;;  %p4003_p6 = scmp.lt.s32.totalorder %s23_s27, %s23_s27 }
  0x11   :  { %p3999_p5 = scmp.ne.s32.totalorder %s23_s27, %s3998_s28  ;;  %p4004_p7 = scmp.lt.s32.totalorder %s3998_s28, %s3998_s28 }
  0x13   :  { %p4005_p8 = por %p4004_p7, %p4003_p6 }
  0x15   :  { %p4006_p9 = pnand %p4005_p8, %p3999_p5 }
  0x17   :  { %4009 = shalt.err (!%p4006_p9)
}
  0x18   :  { %s4100_s3 = smov 96   ;;  %s4101_s29 = smov 6  }
  0x19   :  { %28 = dma.hbm_to_vmem [thread:$0]  %s6002_s0, 384, %s23_s27, [#allocation4], %s4100_s3, %s4100_s3, %s4101_s29  }
  0x1a   :  { %s45_s10 = sshll.u32 %s6004_s2, 4  ;;  %s4102_s11 = smov [#allocation7]   ;;  %s46_s10 = int_to_ptr.vmem [resolvable:$true] %s45_s10 }
  0x1b   :  { %s35_s12 = sshll.u32 %s4102_s11, 4  ;;  %s36_s12 = int_to_ptr.vmem [resolvable:$true] %s35_s12 }
  0x1c   :  { %s4018_s13 = scalar_lea.vmem %s36_s12, 48  ;;  %s4022_s14 = scalar_lea.vmem %s36_s12, 64 }
  0x1d   :  { %p4019_p10 = scmp.ne.s32.totalorder %s36_s12, %s4018_s13  ;;  %p4023_p11 = scmp.lt.s32.totalorder %s36_s12, %s36_s12 }
  0x1e   :  { %p4024_p12 = scmp.lt.s32.totalorder %s4022_s14, %s4018_s13 }
  0x20   :  { %p4025_p13 = por %p4024_p12, %p4023_p11 }
  0x22   :  { %p4026_p0 = pnand %p4025_p13, %p4019_p10 }
  0x24   :  { %4029 = shalt.err (!%p4026_p0)
}
  0x25   :  { %38 = dma.hbm_to_vmem [thread:$0]  %s6003_s1, 48, %s36_s12, [#allocation8]  }
  0x26   :  { %s4030_s0 = scalar_lea.vmem %s46_s10, 32  ;;  %p4035_p2 = scmp.lt.s32.totalorder %s46_s10, %s46_s10 }
  0x27   :  { %p4031_p1 = scmp.ne.s32.totalorder %s46_s10, %s4030_s0  ;;  %p4036_p3 = scmp.lt.s32.totalorder %s4030_s0, %s4030_s0 }
  0x29   :  { %p4037_p4 = por %p4036_p3, %p4035_p2 }
  0x2b   :  { %p4038_p5 = pnand %p4037_p4, %p4031_p1 }
  0x2d   :  { %4041 = shalt.err (!%p4038_p5)
}
  0x2e   :  { %s4103_s2 = smov [#allocation9]   ;;  %s65_s19 = sshll.u32 %s6006_s4, 4  ;;  %s66_s19 = int_to_ptr.vmem [resolvable:$true] %s65_s19 }
  0x2f   :  { %48 = dma.vmem_to_smem %s46_s10, 32, %s4103_s2, [#allocation6]  }
  0x30   :  { %s75_s22 = sshll.u32 %s6007_s5, 4  ;;  %s4042_s23 = scalar_lea.vmem %s66_s19, 32  ;;  %s76_s22 = int_to_ptr.vmem [resolvable:$true] %s75_s22 }
  0x31   :  { %p4043_p6 = scmp.ne.s32.totalorder %s66_s19, %s4042_s23  ;;  %p4047_p7 = scmp.lt.s32.totalorder %s66_s19, %s66_s19 }
  0x32   :  { %p4048_p8 = scmp.lt.s32.totalorder %s4042_s23, %s4042_s23 }
  0x34   :  { %p4049_p9 = por %p4048_p8, %p4047_p7 }
  0x36   :  { %p4050_p10 = pnand %p4049_p9, %p4043_p6 }
  0x38   :  { %4053 = shalt.err (!%p4050_p10)
}
  0x39   :  { %s4104_s1 = smov [#allocation12]   ;;  %s4054_s24 = scalar_lea.vmem %s76_s22, 16 }
  0x3a   :  { %68 = dma.vmem_to_smem %s66_s19, 32, %s4104_s1, [#allocation11]  }
  0x3b   :  { %p4055_p11 = scmp.ne.s32.totalorder %s76_s22, %s4054_s24  ;;  %p4059_p12 = scmp.lt.s32.totalorder %s76_s22, %s76_s22 }
  0x3c   :  { %p4060_p13 = scmp.lt.s32.totalorder %s4054_s24, %s4054_s24 }
  0x3e   :  { %p4061_p0 = por %p4060_p13, %p4059_p12 }
  0x40   :  { %p4062_p1 = pnand %p4061_p0, %p4055_p11 }
  0x42   :  { %4065 = shalt.err (!%p4062_p1)
}
  0x43   :  { %s4105_s4 = smov [#allocation13]  }
  0x44   :  { %78 = dma.vmem_to_smem %s76_s22, 16, %s4105_s4, [#allocation14]  }
  0x45   :  { %4086 = dma.done.wait [#allocation4], 384  }
  0x46   :  { %4087 = vsyncadd [#allocation4], 4294966912 }
  0x47   :  { %4088 = dma.done.wait [#allocation8], 48  }
  0x48   :  { %4089 = vsyncadd [#allocation8], 4294967248 }
  0x49   :  { %4090 = dma.done.wait [#allocation6], 32  }
  0x4a   :  { %4091 = vsyncadd [#allocation6], 4294967264 }
  0x4b   :  { %4092 = dma.done.wait [#allocation11], 48  }
  0x4c   :  { %4093 = vsyncadd [#allocation11], 4294967248 }
  0x4d   :  { %4094 = dma.done.wait [#allocation14], 16  }
  0x4e   :  { %4095 = vsyncadd [#allocation14], 4294967280 }
  0x4f   :  { %97 = sfence }
  0x50   :  { %s3646_s5 = sld [smem:[#allocation9 + $0x3]]  ;;  %v4175_v0 = vld [vmem:[#allocation3] sm:$0x3f]  ;;  %s4106_s9 = smov 110   ;;  %v4191_v17 = vld [vmem:[#allocation3 + $0x6] sm:$0x3f] }
  0x51   :  { %s3644_s25 = sld [smem:[#allocation9 + $0x1]]  ;;  %s4107_s10 = smov 127   ;;  %v4209_v34 = vld [vmem:[#allocation3] sm:$0x3f]  ;;  %v4211_v36 = vld [vmem:[#allocation3 + $0xc] sm:$0x3f] }
  0x52   :  { %s3647_s26 = sld [smem:[#allocation9 + $0x4]]  ;;  %s4108_s13 = smov 109   ;;  %v4233_v56 = vld [vmem:[#allocation3] sm:$0x3f]  ;;  %v4235_v58 = vld [vmem:[#allocation3 + $0x6] sm:$0x3f] }
  0x53   :  { %s3645_s27 = sld [smem:[#allocation9 + $0x2]]  ;;  %s4109_s14 = smov 126   ;;  %vm120_vm0 = vcmask 1039360   ;;  %vm131_vm1 = vcmask 1031168   ;;  %vm142_vm2 = vcmask 900096   ;;  %vm153_vm3 = vcmask 891904  }
  0x54   :  { %s3649_s28 = sld [smem:[#allocation9 + $0x6]]  ;;  %s4110_s0 = smov 92   ;;  %vm164_vm4 = vcmask 883712   ;;  %vm175_vm5 = vcmask 752640   ;;  %vm186_vm6 = vcmask 744448   ;;  %vm197_vm7 = vcmask 736256  }
  0x55   :  { %s3648_s30 = sld [smem:[#allocation9 + $0x5]]  ;;  %s4111_s2 = smov 108   ;;  %vm513_vm8 = vcmask 1041408   ;;  %vm517_vm9 = vcmask 549888   ;;  %vm99_vm10 = vcmask 148480   ;;  %vm104_vm11 = vcmask 861880  }
  0x56   :  { %v136_v1 = vstv %s3646_s5  ;;  %s3651_s7 = sld [smem:[#allocation9 + $0x8]]  ;;  %s4112_s19 = smov 90   ;;  %vm583_vm12 = vcmask 1041560   ;;  %vm584_vm13 = vcmask 1043458   ;;  %vm586_vm15 = vcmask 709636  }
  0x57   :  { %v137_v2 = vmul.f32 %v136_v1, %v4175_v0  ;;  %v114_v3 = vstv %s3644_s25  ;;  %s3650_s8 = sld [smem:[#allocation9 + $0x7]]  ;;  %s4113_s20 = smov 91   ;;  %vm585_vm14 = vmor %vm584_vm13, %vm583_vm12 }
  0x58   :  { %v115_v4 = vmul.f32 %v114_v3, %v4175_v0  ;;  %v147_v5 = vstv %s3647_s26  ;;  %s3654_s11 = sld [smem:[#allocation9 + $0xb]] }
  0x59   :  { %139 = vrot.lane.b32.xlu1 %v137_v2, %s4106_s9  ;;  %v148_v6 = vmul.f32 %v147_v5, %v4175_v0  ;;  %v125_v7 = vstv %s3645_s27  ;;  %s3653_s12 = sld [smem:[#allocation9 + $0xa]] }
  0x5a   :  { %117 = vrot.lane.b32.xlu0 %v115_v4, %s4107_s10  ;;  %v126_v8 = vmul.f32 %v125_v7, %v4175_v0  ;;  %v169_v9 = vstv %s3649_s28  ;;  %s3656_s15 = sld [smem:[#allocation9 + $0xd]] }
  0x5b   :  { %v158_v10 = vstv %s3648_s30  ;;  %v170_v11 = vmul.f32 %v169_v9, %v4175_v0  ;;  %s3655_s16 = sld [smem:[#allocation9 + $0xc]] }
  0x5c   :  { %v159_v12 = vmul.f32 %v158_v10, %v4175_v0  ;;  %v191_v13 = vstv %s3651_s7  ;;  %s3658_s17 = sld [smem:[#allocation9 + $0xf]] }
  0x5d   :  { %150 = vrot.lane.b32.xlu1 %v148_v6, %s4108_s13  ;;  %v180_v14 = vstv %s3650_s8  ;;  %v192_v15 = vmul.f32 %v191_v13, %v4175_v0  ;;  %s3657_s18 = sld [smem:[#allocation9 + $0xe]] }
  0x5e   :  { %128 = vrot.lane.b32.xlu0 %v126_v8, %s4109_s14  ;;  %v181_v16 = vmul.f32 %v180_v14, %v4175_v0  ;;  %v218_v18 = vstv %s3654_s11  ;;  %s3660_s21 = sld [smem:[#allocation9 + $0x11]] }
  0x5f   :  { %v208_v19 = vstv %s3653_s12  ;;  %v219_v20 = vmul.f32 %v218_v18, %v4191_v17  ;;  %s3659_s22 = sld [smem:[#allocation9 + $0x10]] }
  0x60   :  { %v209_v21 = vmul.f32 %v208_v19, %v4191_v17  ;;  %v238_v22 = vstv %s3656_s15  ;;  %s3680_s23 = sld [smem:[#allocation9 + $0x25]] }
  0x61   :  { %172 = vrot.lane.b32.xlu1 %v170_v11, %s4110_s0  ;;  %v228_v23 = vstv %s3655_s16  ;;  %v239_v24 = vmul.f32 %v238_v22, %v4191_v17  ;;  %s3662_s1 = sld [smem:[#allocation9 + $0x13]] }
  0x62   :  { %161 = vrot.lane.b32.xlu0 %v159_v12, %s4111_s2  ;;  %v229_v25 = vmul.f32 %v228_v23, %v4191_v17  ;;  %v258_v26 = vstv %s3658_s17  ;;  %s3682_s24 = sld [smem:[#allocation9 + $0x27]] }
  0x63   :  { %v248_v27 = vstv %s3657_s18  ;;  %v259_v28 = vmul.f32 %v258_v26, %v4191_v17  ;;  %s3681_s4 = sld [smem:[#allocation9 + $0x26]] }
  0x64   :  { %v249_v29 = vmul.f32 %v248_v27, %v4191_v17  ;;  %v278_v30 = vstv %s3660_s21  ;;  %s3684_s5 = sld [smem:[#allocation9 + $0x29]] }
  0x65   :  { %194 = vrot.lane.b32.xlu1 %v192_v15, %s4112_s19  ;;  %v268_v31 = vstv %s3659_s22  ;;  %v279_v32 = vmul.f32 %v278_v30, %v4191_v17  ;;  %s3683_s25 = sld [smem:[#allocation9 + $0x28]] }
  0x66   :  { %183 = vrot.lane.b32.xlu0 %v181_v16, %s4113_s20  ;;  %v269_v33 = vmul.f32 %v268_v31, %v4191_v17  ;;  %v594_v35 = vstv %s3680_s23  ;;  %s3686_s26 = sld [smem:[#allocation9 + $0x2b]] }
  0x67   :  { %v294_v37 = vstv %s3662_s1  ;;  %v595_v38 = vmul.f32 %v594_v35, %v4209_v34  ;;  %s3685_s27 = sld [smem:[#allocation9 + $0x2a]] }
  0x68   :  { %v295_v39 = vmul.f32 %v294_v37, %v4211_v36  ;;  %v614_v40 = vstv %s3682_s24  ;;  %s3663_s28 = sld [smem:[#allocation9 + $0x14]] }
  0x69   :  { %221 = vrot.lane.b32.xlu1 %v219_v20, %s4109_s14  ;;  %v604_v41 = vstv %s3681_s4  ;;  %v615_v42 = vmul.f32 %v614_v40, %v4209_v34  ;;  %s3687_s30 = sld [smem:[#allocation9 + $0x2c]] }
  0x6a   :  { %211 = vrot.lane.b32.xlu0 %v209_v21, %s4107_s10  ;;  %v605_v43 = vmul.f32 %v604_v41, %v4209_v34  ;;  %v634_v44 = vstv %s3684_s5  ;;  %s3717_s7 = sld [smem:[#allocation9 + $0x49]] }
  0x6b   :  { %v624_v45 = vstv %s3683_s25  ;;  %v635_v46 = vmul.f32 %v634_v44, %v4209_v34  ;;  %s3689_s8 = sld [smem:[#allocation9 + $0x2e]]  ;;  %v4283_v44 = vld [vmem:[#allocation3 + $0x12] sm:$0x3f] }
  0x6c   :  { %v625_v47 = vmul.f32 %v624_v45, %v4209_v34  ;;  %v654_v48 = vstv %s3686_s26  ;;  %s3718_s11 = sld [smem:[#allocation9 + $0x4a]] }
  0x6d   :  { %241 = vrot.lane.b32.xlu1 %v239_v24, %s4108_s13  ;;  %v644_v49 = vstv %s3685_s27  ;;  %v655_v50 = vmul.f32 %v654_v48, %v4209_v34  ;;  %s3690_s12 = sld [smem:[#allocation9 + $0x2f]]  ;;  %v4289_v48 = vld [vmem:[#allocation3] sm:$0x3f] }
  0x6e   :  { %231 = vrot.lane.b32.xlu0 %v229_v25, %s4106_s9  ;;  %v645_v51 = vmul.f32 %v644_v49, %v4209_v34  ;;  %v304_v52 = vstv %s3663_s28  ;;  %s3691_s15 = sld [smem:[#allocation9 + $0x30]] }
  0x6f   :  { %v664_v53 = vstv %s3687_s30  ;;  %v305_v54 = vmul.f32 %v304_v52, %v4211_v36  ;;  %s3664_s16 = sld [smem:[#allocation9 + $0x15]] }
  0x70   :  { %v665_v55 = vmul.f32 %v664_v53, %v4209_v34  ;;  %v1026_v57 = vstv %s3717_s7  ;;  %s3665_s17 = sld [smem:[#allocation9 + $0x16]] }
  0x71   :  { %261 = vrot.lane.b32.xlu1 %v259_v28, %s4110_s0  ;;  %v679_v59 = vstv %s3689_s8  ;;  %v1027_v60 = vmul.f32 %v1026_v57, %v4233_v56  ;;  %s3719_s18 = sld [smem:[#allocation9 + $0x4b]] }
  0x72   :  { %251 = vrot.lane.b32.xlu0 %v249_v29, %s4111_s2  ;;  %v680_v61 = vmul.f32 %v679_v59, %v4235_v58  ;;  %v1036_v62 = vstv %s3718_s11  ;;  %s3720_s21 = sld [smem:[#allocation9 + $0x4c]] }
  0x73   :  { %v689_v63 = vstv %s3690_s12  ;;  %v1037_v1 = vmul.f32 %v1036_v62, %v4233_v56  ;;  %s3692_s22 = sld [smem:[#allocation9 + $0x31]] }
  0x74   :  { %v690_v2 = vmul.f32 %v689_v63, %v4235_v58  ;;  %v699_v3 = vstv %s3691_s15  ;;  %s3693_s23 = sld [smem:[#allocation9 + $0x32]] }
  0x75   :  { %281 = vrot.lane.b32.xlu1 %v279_v32, %s4112_s19  ;;  %v314_v4 = vstv %s3664_s16  ;;  %v700_v5 = vmul.f32 %v699_v3, %v4235_v58  ;;  %s3666_s1 = sld [smem:[#allocation9 + $0x17]] }
  0x76   :  { %271 = vrot.lane.b32.xlu0 %v269_v33, %s4113_s20  ;;  %v315_v6 = vmul.f32 %v314_v4, %v4211_v36  ;;  %v324_v7 = vstv %s3665_s17  ;;  %s3667_s24 = sld [smem:[#allocation9 + $0x18]] }
  0x77   :  { %v1046_v8 = vstv %s3719_s18  ;;  %v325_v9 = vmul.f32 %v324_v7, %v4211_v36  ;;  %s3721_s4 = sld [smem:[#allocation9 + $0x4d]] }
  0x78   :  { %v1047_v10 = vmul.f32 %v1046_v8, %v4233_v56  ;;  %v1056_v11 = vstv %s3720_s21  ;;  %s3722_s5 = sld [smem:[#allocation9 + $0x4e]] }
  0x79   :  { %597 = vrot.lane.b32.xlu1 %v595_v38, %s4107_s10  ;;  %v709_v12 = vstv %s3692_s22  ;;  %v1057_v13 = vmul.f32 %v1056_v11, %v4233_v56  ;;  %s3694_s25 = sld [smem:[#allocation9 + $0x33]] }
  0x7a   :  { %297 = vrot.lane.b32.xlu0 %v295_v39, %s4107_s10  ;;  %v710_v14 = vmul.f32 %v709_v12, %v4235_v58  ;;  %v719_v15 = vstv %s3693_s23  ;;  %s3695_s26 = sld [smem:[#allocation9 + $0x34]] }
  0x7b   :  { %v334_v16 = vstv %s3666_s1  ;;  %v720_v18 = vmul.f32 %v719_v15, %v4235_v58  ;;  %s3668_s27 = sld [smem:[#allocation9 + $0x19]] }
  0x7c   :  { %v335_v19 = vmul.f32 %v334_v16, %v4211_v36  ;;  %v344_v20 = vstv %s3667_s24  ;;  %s3669_s28 = sld [smem:[#allocation9 + $0x1a]] }
  0x7d   :  { %617 = vrot.lane.b32.xlu1 %v615_v42, %s4106_s9  ;;  %v1066_v21 = vstv %s3721_s4  ;;  %v345_v22 = vmul.f32 %v344_v20, %v4211_v36  ;;  %s3723_s30 = sld [smem:[#allocation9 + $0x4f]]  ;;  %v4281_v42 = vld [vmem:[#allocation3 + $0xc] sm:$0x3f] }
  0x7e   :  { %607 = vrot.lane.b32.xlu0 %v605_v43, %s4109_s14  ;;  %v1067_v23 = vmul.f32 %v1066_v21, %v4233_v56  ;;  %v1076_v24 = vstv %s3722_s5  ;;  %s3724_s7 = sld [smem:[#allocation9 + $0x50]] }
  0x7f   :  { %v729_v25 = vstv %s3694_s25  ;;  %v1077_v26 = vmul.f32 %v1076_v24, %v4233_v56  ;;  %s3696_s8 = sld [smem:[#allocation9 + $0x35]] }
  0x80   :  { %v730_v27 = vmul.f32 %v729_v25, %v4235_v58  ;;  %v739_v28 = vstv %s3695_s26  ;;  %s3698_s11 = sld [smem:[#allocation9 + $0x37]] }
  0x81   :  { %637 = vrot.lane.b32.xlu1 %v635_v46, %s4111_s2  ;;  %v354_v29 = vstv %s3668_s27  ;;  %v740_v30 = vmul.f32 %v739_v28, %v4235_v58  ;;  %s3671_s12 = sld [smem:[#allocation9 + $0x1c]] }
  0x82   :  { %627 = vrot.lane.b32.xlu0 %v625_v47, %s4108_s13  ;;  %v355_v31 = vmul.f32 %v354_v29, %v4211_v36  ;;  %v364_v32 = vstv %s3669_s28  ;;  %s3754_s15 = sld [smem:[#allocation9 + $0x6d]] }
  0x83   :  { %v1086_v33 = vstv %s3723_s30  ;;  %v365_v35 = vmul.f32 %v364_v32, %v4211_v36  ;;  %s3726_s16 = sld [smem:[#allocation9 + $0x52]] }
  0x84   :  { %v1087_v37 = vmul.f32 %v1086_v33, %v4233_v56  ;;  %v1096_v38 = vstv %s3724_s7  ;;  %s3699_s17 = sld [smem:[#allocation9 + $0x38]] }
  0x85   :  { %657 = vrot.lane.b32.xlu1 %v655_v50, %s4113_s20  ;;  %v749_v39 = vstv %s3696_s8  ;;  %v1097_v40 = vmul.f32 %v1096_v38, %v4233_v56  ;;  %s3672_s18 = sld [smem:[#allocation9 + $0x1d]]  ;;  %v4291_v50 = vld [vmem:[#allocation3 + $0x6] sm:$0x3f] }
  0x86   :  { %647 = vrot.lane.b32.xlu0 %v645_v51, %s4110_s0  ;;  %v750_v41 = vmul.f32 %v749_v39, %v4235_v58  ;;  %v764_v43 = vstv %s3698_s11  ;;  %s3755_s21 = sld [smem:[#allocation9 + $0x6e]] }
  0x87   :  { %v380_v45 = vstv %s3671_s12  ;;  %v765_v46 = vmul.f32 %v764_v43, %v4281_v42  ;;  %s3727_s22 = sld [smem:[#allocation9 + $0x53]] }
  0x88   :  { %v381_v47 = vmul.f32 %v380_v45, %v4283_v44  ;;  %v1458_v49 = vstv %s3754_s15  ;;  %s3700_s23 = sld [smem:[#allocation9 + $0x39]] }
  0x89   :  { %307 = vrot.lane.b32.xlu1 %v305_v54, %s4109_s14  ;;  %v1111_v51 = vstv %s3726_s16  ;;  %v1459_v52 = vmul.f32 %v1458_v49, %v4289_v48  ;;  %s3673_s1 = sld [smem:[#allocation9 + $0x1e]] }
  0x8a   :  { %667 = vrot.lane.b32.xlu0 %v665_v55, %s4112_s19  ;;  %v1112_v53 = vmul.f32 %v1111_v51, %v4291_v50  ;;  %v774_v54 = vstv %s3699_s17  ;;  %s3756_s24 = sld [smem:[#allocation9 + $0x6f]] }
  0x8b   :  { %v390_v55 = vstv %s3672_s18  ;;  %v775_v56 = vmul.f32 %v774_v54, %v4281_v42  ;;  %s3728_s4 = sld [smem:[#allocation9 + $0x54]] }
  0x8c   :  { %v391_v57 = vmul.f32 %v390_v55, %v4283_v44  ;;  %v1468_v59 = vstv %s3755_s21  ;;  %s109_s5 = sld [smem:[#allocation9]] }
  0x8d   :  { %1029 = vrot.lane.b32.xlu1 %v1027_v60, %s4107_s10  ;;  %v1121_v60 = vstv %s3727_s22  ;;  %s3701_s25 = sld [smem:[#allocation9 + $0x3a]] }
  0x8e   :  { %682 = vrot.lane.b32.xlu0 %v680_v61, %s4107_s10  ;;  %v1469_v61 = vmul.f32 %v1468_v59, %v4289_v48  ;;  %v1122_v62 = vmul.f32 %v1121_v60, %v4291_v50  ;;  %v784_v63 = vstv %s3700_s23  ;;  %s3674_s26 = sld [smem:[#allocation9 + $0x1f]] }
  0x8f   :  { %s4309_s27 = sld [smem:[#allocation9 + $0x70]] }
  0x90   :  { %v1478_v4 = vstv %s3756_s24  ;;  %s4311_s28 = sld [smem:[#allocation9 + $0x55]] }
  0x91   :  { %1039 = vrot.lane.b32.xlu1 %v1037_v1, %s4109_s14  ;;  %v400_v1 = vstv %s3673_s1  ;;  %s4317_s30 = sld [smem:[#allocation9 + $0x3b]] }
  0x92   :  { %692 = vrot.lane.b32.xlu0 %v690_v2, %s4109_s14  ;;  %v785_v2 = vmul.f32 %v784_v63, %v4281_v42  ;;  %v401_v3 = vmul.f32 %v400_v1, %v4283_v44  ;;  %s4319_s7 = sld [smem:[#allocation9 + $0x20]] }
  0x93   :  { %v794_v8 = vstv %s3701_s25  ;;  %s4327_s8 = sld [smem:[#allocation9 + $0x71]] }
  0x94   :  { %v410_v11 = vstv %s3674_s26  ;;  %s4331_s11 = sld [smem:[#allocation9 + $0x56]] }
  0x95   :  { %702 = vrot.lane.b32.xlu1 %v700_v5, %s4106_s9  ;;  %v1131_v5 = vstv %s3728_s4  ;;  %v411_v16 = vmul.f32 %v410_v11, %v4283_v44  ;;  %s4335_s12 = sld [smem:[#allocation9 + $0x9]] }
  0x96   :  { %317 = vrot.lane.b32.xlu0 %v315_v6, %s4106_s9  ;;  %v1479_v6 = vmul.f32 %v1478_v4, %v4289_v48  ;;  %v1132_v7 = vmul.f32 %v1131_v5, %v4291_v50  ;;  %v1141_v21 = vstv %s4311_s28  ;;  %s4340_s15 = sld [smem:[#allocation9 + $0x3c]] }
  0x97   :  { %s4344_s16 = sld [smem:[#allocation9 + $0x21]] }
  0x98   :  { %s4352_s17 = sld [smem:[#allocation9 + $0x72]] }
  0x99   :  { %327 = vrot.lane.b32.xlu1 %v325_v9, %s4108_s13  ;;  %s4356_s18 = sld [smem:[#allocation9 + $0x57]] }
  0x9a   :  { %1049 = vrot.lane.b32.xlu0 %v1047_v10, %s4106_s9  ;;  %v111_v10 = vstv %s109_s5  ;;  %s4364_s21 = sld [smem:[#allocation9 + $0x3d]] }
  0x9b   :  { %v112_v15 = vmul.f32 %v111_v10, %v4175_v0  ;;  %s4369_s22 = sld [smem:[#allocation9 + $0x22]] }
  0x9c   :  { %s4378_s23 = sld [smem:[#allocation9 + $0x73]] }
  0x9d   :  { %1059 = vrot.lane.b32.xlu1 %v1057_v13, %s4108_s13  ;;  %v430_v63 = vstv %s4344_s16  ;;  %s4382_s1 = sld [smem:[#allocation9 + $0x58]] }
  0x9e   :  { %712 = vrot.lane.b32.xlu0 %v710_v14, %s4108_s13  ;;  %v795_v14 = vmul.f32 %v794_v8, %v4281_v42  ;;  %v1508_v8 = vstv %s4352_s17  ;;  %s4386_s24 = sld [smem:[#allocation9 + $0x24]] }
  0x9f   :  { %s4391_s4 = sld [smem:[#allocation9 + $0x3e]] }
  0xa0   :  { %s4395_s5 = sld [smem:[#allocation9 + $0x23]] }
  0xa1   :  { %722 = vrot.lane.b32.xlu1 %v720_v18, %s4111_s2  ;;  %v1488_v18 = vstv %s4309_s27  ;;  %s4400_s25 = sld [smem:[#allocation9 + $0x12]] }
  0xa2   :  { %337 = vrot.lane.b32.xlu0 %v335_v19, %s4111_s2  ;;  %v1489_v0 = vmul.f32 %v1488_v18, %v4289_v48  ;;  %s4405_s26 = sld [smem:[#allocation9 + $0x74]] }
  0xa3   :  { %s4409_s27 = sld [smem:[#allocation9 + $0x59]] }
  0xa4   :  { %s4417_s28 = sld [smem:[#allocation9 + $0x5b]] }
  0xa5   :  { %347 = vrot.lane.b32.xlu1 %v345_v22, %s4110_s0  ;;  %s4468_s16 = sld [smem:[#allocation9 + $0x5d]] }
  0xa6   :  { %1069 = vrot.lane.b32.xlu0 %v1067_v23, %s4111_s2  ;;  %s4474_s17 = sld [smem:[#allocation9 + $0x42]] }
  0xa9   :  { %1079 = vrot.lane.b32.xlu1 %v1077_v26, %s4110_s0  ;;  %v1142_v26 = vmul.f32 %v1141_v21, %v4291_v50 }
  0xaa   :  { %732 = vrot.lane.b32.xlu0 %v730_v27, %s4110_s0  ;;  %v804_v27 = vstv %s4317_s30  ;;  %s4422_s30 = sld [smem:[#allocation9 + $0x40]] }
  0xab   :  { %v805_v38 = vmul.f32 %v804_v27, %v4281_v42 }
  0xad   :  { %742 = vrot.lane.b32.xlu1 %v740_v30, %s4113_s20 }
  0xae   :  { %357 = vrot.lane.b32.xlu0 %v355_v31, %s4113_s20  ;;  %v420_v31 = vstv %s4319_s7  ;;  %s4434_s7 = sld [smem:[#allocation9 + $0x41]] }
  0xb1   :  { %367 = vrot.lane.b32.xlu1 %v365_v35, %s4112_s19 }
  0xb2   :  { %1089 = vrot.lane.b32.xlu0 %v1087_v37, %s4113_s20 }
  0xb5   :  { %1099 = vrot.lane.b32.xlu1 %v1097_v40, %s4112_s19  ;;  %v421_v40 = vmul.f32 %v420_v31, %v4283_v44 }
  0xb6   :  { %752 = vrot.lane.b32.xlu0 %v750_v41, %s4112_s19  ;;  %v1498_v41 = vstv %s4327_s8  ;;  %s4439_s8 = sld [smem:[#allocation9 + $0x76]] }
  0xb7   :  { %v1499_v54 = vmul.f32 %v1498_v41, %v4289_v48 }
  0xb9   :  { %767 = vrot.lane.b32.xlu1 %v765_v46, %s4107_s10 }
  0xba   :  { %383 = vrot.lane.b32.xlu0 %v381_v47, %s4107_s10  ;;  %v1151_v47 = vstv %s4331_s11  ;;  %s4445_s11 = sld [smem:[#allocation9 + $0x2d]] }
  0xbd   :  { %1461 = vrot.lane.b32.xlu1 %v1459_v52, %s4107_s10 }
  0xbe   :  { %1114 = vrot.lane.b32.xlu0 %v1112_v53, %s4107_s10 }
  0xc1   :  { %777 = vrot.lane.b32.xlu1 %v775_v56, %s4109_s14  ;;  %v1152_v56 = vmul.f32 %v1151_v47, %v4291_v50 }
  0xc2   :  { %393 = vrot.lane.b32.xlu0 %v391_v57, %s4109_s14  ;;  %v814_v57 = vstv %s4340_s15  ;;  %s4458_s15 = sld [smem:[#allocation9 + $0x5c]] }
  0xc3   :  { %v815_v4 = vmul.f32 %v814_v57, %v4281_v42 }
  0xc5   :  { %1471 = vrot.lane.b32.xlu1 %v1469_v61, %s4109_s14 }
  0xc6   :  { %1124 = vrot.lane.b32.xlu0 %v1122_v62, %s4109_s14  ;;  %v204_v62 = vstv %s4335_s12  ;;  %s4452_s12 = sld [smem:[#allocation9 + $0x77]] }
  0xc9   :  { %787 = vrot.lane.b32.xlu1 %v785_v2, %s4106_s9 }
  0xca   :  { %403 = vrot.lane.b32.xlu0 %v401_v3, %s4106_s9 }
  0xcb   :  { %v140_v9 = vpop.permute.xlu1 %139 }
  0xcc   :  { %v118_v12 = vpop.permute.xlu0 %117  ;;  %v141_v23 = vrot.slane %v140_v9, 2 }
  0xcd   :  { %v119_v13 = vrot.slane %v118_v12, 2  ;;  %1481 = vrot.lane.b32.xlu1 %v1479_v6, %s4106_s9  ;;  %v205_v6 = vmul.f32 %v204_v62, %v4191_v17  ;;  %v1509_v17 = vmul.f32 %v1508_v8, %v4289_v48 }
  0xce   :  { %1134 = vrot.lane.b32.xlu0 %v1132_v7, %s4106_s9  ;;  %v143_v35 = vsel %vm142_vm2, %v140_v9, %v141_v23  ;;  %v431_v7 = vmul.f32 %v430_v63, %v4283_v44  ;;  %v440_v23 = vstv %s4369_s22  ;;  %s3766_s22 = sld [smem:[#allocation9 + $0x79]] }
  0xcf   :  { %v121_v19 = vsel %vm120_vm0, %v118_v12, %v119_v13  ;;  %v151_v20 = vpop.permute.xlu1 %150  ;;  %v1161_v12 = vstv %s4356_s18  ;;  %s4482_s18 = sld [smem:[#allocation9 + $0x43]] }
  0xd0   :  { %v129_v22 = vpop.permute.xlu0 %128  ;;  %v123_v25 = vadd.f32 %v121_v19, %v112_v15  ;;  %v152_v28 = vrot.slane %v151_v20, 2  ;;  %v1162_v18 = vmul.f32 %v1161_v12, %v4291_v50  ;;  %v824_v19 = vstv %s4364_s21  ;;  %s4489_s21 = sld [smem:[#allocation9 + $0x78]] }
  0xd1   :  { %v130_v24 = vrot.slane %v129_v22, 2  ;;  %797 = vrot.lane.b32.xlu1 %v795_v14, %s4108_s13  ;;  %v825_v27 = vmul.f32 %v824_v19, %v4281_v42  ;;  %v4455_v19 = vld [vmem:[#allocation3 + $0x12] sm:$0x3f] }
  0xd2   :  { %413 = vrot.lane.b32.xlu0 %v411_v16, %s4108_s13  ;;  %v154_v43 = vsel %vm153_vm3, %v151_v20, %v152_v28 }
  0xd3   :  { %v132_v29 = vsel %vm131_vm1, %v129_v22, %v130_v24  ;;  %v173_v30 = vpop.permute.xlu1 %172 }
  0xd4   :  { %v134_v32 = vadd.f32 %v132_v29, %v123_v25  ;;  %v162_v33 = vpop.permute.xlu0 %161  ;;  %v174_v45 = vrot.slane %v173_v30, 2  ;;  %v441_v29 = vmul.f32 %v440_v23, %v4283_v44 }
  0xd5   :  { %v163_v37 = vrot.slane %v162_v33, 2  ;;  %1491 = vrot.lane.b32.xlu1 %v1489_v0, %s4108_s13 }
  0xd6   :  { %v145_v39 = vadd.f32 %v143_v35, %v134_v32  ;;  %1144 = vrot.lane.b32.xlu0 %v1142_v26, %s4108_s13  ;;  %v176_v59 = vsel %vm175_vm5, %v173_v30, %v174_v45  ;;  %v1518_v30 = vstv %s4378_s23  ;;  %v1171_v35 = vstv %s4382_s1  ;;  %s3738_s23 = sld [smem:[#allocation9 + $0x5e]] }
  0xd7   :  { %v195_v46 = vpop.permute.xlu1 %194  ;;  %v165_v52 = vsel %vm164_vm4, %v162_v33, %v163_v37  ;;  %v1519_v41 = vmul.f32 %v1518_v30, %v4289_v48  ;;  %v1172_v45 = vmul.f32 %v1171_v35, %v4291_v50  ;;  %v4471_v30 = vld [vmem:[#allocation3 + $0x6] sm:$0x3f]  ;;  %s3739_s1 = sld [smem:[#allocation9 + $0x5f]] }
  0xd8   :  { %v156_v49 = vadd.f32 %v154_v43, %v145_v39  ;;  %v184_v51 = vpop.permute.xlu0 %183  ;;  %v196_v60 = vrot.slane %v195_v46, 2 }
  0xd9   :  { %v185_v53 = vrot.slane %v184_v51, 2  ;;  %807 = vrot.lane.b32.xlu1 %v805_v38, %s4111_s2 }
  0xda   :  { %v167_v55 = vadd.f32 %v165_v52, %v156_v49  ;;  %423 = vrot.lane.b32.xlu0 %v421_v40, %s4111_s2  ;;  %v198_v9 = vsel %vm197_vm7, %v195_v46, %v196_v60  ;;  %v834_v46 = vstv %s4391_s4  ;;  %v290_v60 = vstv %s4400_s25  ;;  %s3712_s4 = sld [smem:[#allocation9 + $0x45]] }
  0xdb   :  { %v222_v61 = vpop.permute.xlu1 %221  ;;  %v187_v3 = vsel %vm186_vm6, %v184_v51, %v185_v53  ;;  %v591_v51 = vstv %s4386_s24  ;;  %v450_v53 = vstv %s4395_s5  ;;  %v291_v8 = vmul.f32 %v290_v60, %v4211_v36  ;;  %s3711_s24 = sld [smem:[#allocation9 + $0x44]] }
  0xdc   :  { %v178_v1 = vadd.f32 %v176_v59, %v167_v55  ;;  %v212_v2 = vpop.permute.xlu0 %211  ;;  %v223_v15 = vrot.slane %v222_v61, 2  ;;  %v592_v63 = vmul.f32 %v591_v51, %v4209_v34  ;;  %v1196_v36 = vstv %s4417_s28  ;;  %s3767_s5 = sld [smem:[#allocation9 + $0x7a]] }
  0xdd   :  { %1501 = vrot.lane.b32.xlu1 %v1499_v54, %s4111_s2  ;;  %v213_v10 = vrot.slane %v212_v2, 2  ;;  %s3768_s25 = sld [smem:[#allocation9 + $0x7b]] }
  0xde   :  { %v189_v5 = vadd.f32 %v187_v3, %v178_v1  ;;  %1154 = vrot.lane.b32.xlu0 %v1152_v56, %s4111_s2  ;;  %v224_v25 = vsel %vm131_vm1, %v222_v61, %v223_v15  ;;  %v835_v61 = vmul.f32 %v834_v46, %v4281_v42  ;;  %v451_v1 = vmul.f32 %v450_v53, %v4283_v44  ;;  %s4538_s28 = sld [smem:[#allocation9 + $0x46]] }
  0xdf   :  { %v242_v11 = vpop.permute.xlu1 %241  ;;  %v214_v20 = vsel %vm120_vm0, %v212_v2, %v213_v10  ;;  %v1528_v2 = vstv %s4405_s26  ;;  %s4526_s26 = sld [smem:[#allocation9 + $0x60]] }
  0xe0   :  { %v200_v13 = vadd.f32 %v198_v9, %v189_v5  ;;  %v232_v14 = vpop.permute.xlu0 %231  ;;  %v243_v26 = vrot.slane %v242_v11, 2  ;;  %v1529_v12 = vmul.f32 %v1528_v2, %v4289_v48  ;;  %v849_v48 = vstv %s4422_s30  ;;  %s4544_s30 = sld [smem:[#allocation9 + $0x47]] }
  0xe1   :  { %817 = vrot.lane.b32.xlu1 %v815_v4, %s4110_s0  ;;  %v233_v21 = vrot.slane %v232_v14, 2 }
  0xe2   :  { %v206_v16 = vadd.f32 %v205_v6, %v200_v13  ;;  %433 = vrot.lane.b32.xlu0 %v431_v7, %s4110_s0  ;;  %v244_v39 = vsel %vm153_vm3, %v242_v11, %v243_v26  ;;  %v1181_v6 = vstv %s4409_s27  ;;  %v850_v26 = vmul.f32 %v849_v48, %v4455_v19  ;;  %s4534_s27 = sld [smem:[#allocation9 + $0x61]] }
  0xe3   :  { %v262_v22 = vpop.permute.xlu1 %261  ;;  %v234_v31 = vsel %vm142_vm2, %v232_v14, %v233_v21  ;;  %v1182_v15 = vmul.f32 %v1181_v6, %v4291_v50  ;;  %v879_v6 = vstv %s4482_s18  ;;  %v889_v48 = vstv %s3711_s24  ;;  %s4606_s18 = sld [smem:[#allocation9 + $0x80]] }
  0xe4   :  { %v216_v24 = vadd.f32 %v214_v20, %v206_v16  ;;  %v252_v0 = vpop.permute.xlu0 %251  ;;  %v263_v40 = vrot.slane %v262_v22, 2  ;;  %s4651_s24 = sld [smem:[#allocation9 + $0x67]] }
  0xe5   :  { %1511 = vrot.lane.b32.xlu1 %v1509_v17, %s4110_s0  ;;  %v253_v32 = vrot.slane %v252_v0, 2  ;;  %v4449_v17 = vld [vmem:[#allocation3 + $0xc] sm:$0x3f] }
  0xe6   :  { %v226_v28 = vadd.f32 %v224_v25, %v216_v24  ;;  %1164 = vrot.lane.b32.xlu0 %v1162_v18, %s4110_s0  ;;  %v264_v57 = vsel %vm175_vm5, %v262_v22, %v263_v40 }
  0xe7   :  { %v282_v33 = vpop.permute.xlu1 %281  ;;  %v254_v47 = vsel %vm164_vm4, %v252_v0, %v253_v32  ;;  %v1197_v0 = vmul.f32 %v1196_v36, %v4449_v17 }
  0xe8   :  { %v236_v37 = vadd.f32 %v234_v31, %v226_v28  ;;  %v272_v38 = vpop.permute.xlu0 %271  ;;  %v283_v59 = vrot.slane %v282_v33, 2  ;;  %v1543_v31 = vstv %s4439_s8  ;;  %s4555_s8 = sld [smem:[#allocation9 + $0x7d]] }
  0xe9   :  { %827 = vrot.lane.b32.xlu1 %v825_v27, %s4113_s20  ;;  %v273_v49 = vrot.slane %v272_v38, 2  ;;  %v859_v27 = vstv %s4434_s7  ;;  %s4551_s7 = sld [smem:[#allocation9 + $0x7c]] }
  0xea   :  { %v246_v43 = vadd.f32 %v244_v39, %v236_v37  ;;  %443 = vrot.lane.b32.xlu0 %v441_v29, %s4113_s20  ;;  %v284_v9 = vsel %vm197_vm7, %v282_v33, %v283_v59  ;;  %v860_v39 = vmul.f32 %v859_v27, %v4455_v19 }
  0xeb   :  { %v598_v52 = vpop.permute.xlu1 %597  ;;  %v274_v3 = vsel %vm186_vm6, %v272_v38, %v273_v49  ;;  %v1206_v49 = vstv %s4458_s15  ;;  %s4579_s15 = sld [smem:[#allocation9 + $0x64]] }
  0xec   :  { %v256_v54 = vadd.f32 %v254_v47, %v246_v43  ;;  %v599_v55 = vrot.slane %v598_v52, 2  ;;  %v4424_v56 = vpop.permute.xlu0 %297  ;;  %v1553_v43 = vstv %s4452_s12  ;;  %v675_v47 = vstv %s4445_s11  ;;  %s4559_s11 = sld [smem:[#allocation9 + $0x62]] }
  0xed   :  { %1521 = vrot.lane.b32.xlu1 %v1519_v41, %s4113_s20  ;;  %v1544_v41 = vmul.f32 %v1543_v31, %v4471_v30  ;;  %v676_v59 = vmul.f32 %v675_v47, %v4235_v58  ;;  %v1207_v60 = vmul.f32 %v1206_v49, %v4449_v17  ;;  %v1246_v31 = vstv %s4526_s26  ;;  %s4572_s12 = sld [smem:[#allocation9 + $0x7f]] }
  0xee   :  { %v266_v62 = vadd.f32 %v264_v57, %v256_v54  ;;  %1174 = vrot.lane.b32.xlu0 %v1172_v45, %s4113_s20  ;;  %v600_v4 = vsel %vm120_vm0, %v598_v52, %v599_v55  ;;  %v1554_v55 = vmul.f32 %v1553_v43, %v4471_v30  ;;  %s3749_s26 = sld [smem:[#allocation9 + $0x69]] }
  0xef   :  { %v618_v5 = vpop.permute.xlu1 %617  ;;  %v602_v14 = vadd.f32 %v600_v4, %v592_v63 }
  0xf0   :  { %v276_v7 = vadd.f32 %v274_v3, %v266_v62  ;;  %v608_v34 = vpop.permute.xlu0 %607  ;;  %v619_v10 = vrot.slane %v618_v5, 2 }
  0xf1   :  { %v609_v11 = vrot.slane %v608_v34, 2  ;;  %837 = vrot.lane.b32.xlu1 %v835_v61, %s4112_s19  ;;  %v1216_v61 = vstv %s4468_s16  ;;  %s4584_s16 = sld [smem:[#allocation9 + $0x1b]] }
  0xf2   :  { %v286_v13 = vadd.f32 %v284_v9, %v276_v7  ;;  %453 = vrot.lane.b32.xlu0 %v451_v1, %s4112_s19  ;;  %v620_v50 = vsel %vm142_vm2, %v618_v5, %v619_v10  ;;  %v869_v1 = vstv %s4474_s17  ;;  %v1217_v4 = vmul.f32 %v1216_v61, %v4449_v17  ;;  %s4600_s17 = sld [smem:[#allocation9 + $0x36]] }
  0xf3   :  { %v610_v16 = vsel %vm131_vm1, %v608_v34, %v609_v11  ;;  %v638_v18 = vpop.permute.xlu1 %637  ;;  %v870_v58 = vmul.f32 %v869_v1, %v4455_v19  ;;  %v880_v9 = vmul.f32 %v879_v6, %v4455_v19  ;;  %v1573_v11 = vstv %s3766_s22  ;;  %s4625_s22 = sld [smem:[#allocation9 + $0x81]] }
  0xf4   :  { %v4460_v20 = vadd.f32 %v291_v8, %v286_v13  ;;  %v612_v21 = vadd.f32 %v610_v16, %v602_v14  ;;  %v628_v22 = vpop.permute.xlu0 %627  ;;  %v639_v23 = vrot.slane %v638_v18, 2  ;;  %v1563_v8 = vstv %s4489_s21  ;;  %s4611_s21 = sld [smem:[#allocation9 + $0x65]] }
  0xf5   :  { %v629_v24 = vrot.slane %v628_v22, 2  ;;  %1531 = vrot.lane.b32.xlu1 %v1529_v12, %s4112_s19  ;;  %v1564_v10 = vmul.f32 %v1563_v8, %v4471_v30  ;;  %v1226_v13 = vstv %s3738_s23  ;;  %v1236_v16 = vstv %s3739_s1  ;;  %s4632_s23 = sld [smem:[#allocation9 + $0x66]] }
  0xf6   :  { %v622_v25 = vadd.f32 %v620_v50, %v612_v21  ;;  %1184 = vrot.lane.b32.xlu0 %v1182_v15, %s4112_s19  ;;  %v640_v35 = vsel %vm164_vm4, %v638_v18, %v639_v23  ;;  %v1574_v15 = vmul.f32 %v1573_v11, %v4471_v30  ;;  %v1227_v36 = vmul.f32 %v1226_v13, %v4449_v17  ;;  %s4644_s1 = sld [smem:[#allocation9 + $0x82]] }
  0xf7   :  { %v630_v28 = vsel %vm153_vm3, %v628_v22, %v629_v24  ;;  %v658_v29 = vpop.permute.xlu1 %657  ;;  %v1237_v22 = vmul.f32 %v1236_v16, %v4449_v17  ;;  %v890_v50 = vmul.f32 %v889_v48, %v4455_v19  ;;  %v899_v23 = vstv %s3712_s4  ;;  %s3776_s4 = sld [smem:[#allocation9 + $0x83]] }
  0xf8   :  { %v632_v32 = vadd.f32 %v630_v28, %v622_v25  ;;  %v648_v33 = vpop.permute.xlu0 %647  ;;  %v659_v37 = vrot.slane %v658_v29, 2  ;;  %v1593_v28 = vstv %s3768_s25  ;;  %v1603_v1 = vstv %s4551_s7  ;;  %s3777_s25 = sld [smem:[#allocation9 + $0x84]] }
  0xf9   :  { %v649_v38 = vrot.slane %v648_v33, 2  ;;  %1199 = vrot.lane.b32.xlu1 %v1197_v0, %s4107_s10  ;;  %v1583_v0 = vstv %s3767_s5  ;;  %v1613_v8 = vstv %s4555_s8  ;;  %s3748_s5 = sld [smem:[#allocation9 + $0x68]] }
  0xfa   :  { %v642_v40 = vadd.f32 %v640_v35, %v632_v32  ;;  %852 = vrot.lane.b32.xlu0 %v850_v26, %s4107_s10  ;;  %v660_v53 = vsel %vm186_vm6, %v658_v29, %v659_v37  ;;  %v900_v26 = vmul.f32 %v899_v23, %v4455_v19  ;;  %v1584_v27 = vmul.f32 %v1583_v0, %v4471_v30  ;;  %s3751_s7 = sld [smem:[#allocation9 + $0x6b]] }
  0xfb   :  { %v650_v45 = vsel %vm175_vm5, %v648_v33, %v649_v38  ;;  %v4485_v46 = vpop.permute.xlu1 %307  ;;  %v299_v32 = vrot.slane %v4424_v56, 2  ;;  %v1594_v37 = vmul.f32 %v1593_v28, %v4471_v30  ;;  %s3782_s8 = sld [smem:[#allocation9 + $0x89]] }
  0xfc   :  { %v652_v51 = vadd.f32 %v650_v45, %v642_v40  ;;  %v668_v52 = vpop.permute.xlu0 %667  ;;  %v309_v33 = vrot.slane %v4485_v46, 2  ;;  %v1256_v40 = vstv %s4534_s27  ;;  %v909_v45 = vstv %s4538_s28  ;;  %s3778_s27 = sld [smem:[#allocation9 + $0x85]] }
  0xfd   :  { %v669_v54 = vrot.slane %v668_v52, 2  ;;  %862 = vrot.lane.b32.xlu1 %v860_v39, %s4109_s14  ;;  %v1247_v39 = vmul.f32 %v1246_v31, %v4449_v17  ;;  %v300_v47 = vsel %vm120_vm0, %v4424_v56, %v299_v32  ;;  %v4620_v31 = vld [vmem:[#allocation3 + $0xc] sm:$0x3f]  ;;  %v1628_v32 = vstv %s4572_s12  ;;  %s3750_s28 = sld [smem:[#allocation9 + $0x6a]] }
  0xfe   :  { %v662_v57 = vadd.f32 %v660_v53, %v652_v51  ;;  %1546 = vrot.lane.b32.xlu0 %v1544_v41, %s4107_s10  ;;  %v310_v49 = vsel %vm131_vm1, %v4485_v46, %v309_v33  ;;  %v302_v53 = vadd.f32 %v300_v47, %v4460_v20  ;;  %v1281_v33 = vstv %s4579_s15  ;;  %s3784_s12 = sld [smem:[#allocation9 + $0x8b]] }
  0xff   :  { %v670_v62 = vsel %vm197_vm7, %v668_v52, %v669_v54  ;;  %v4499_v63 = vpop.permute.xlu1 %1029  ;;  %s3783_s15 = sld [smem:[#allocation9 + $0x8a]] }
 0x100   :  { %v672_v2 = vadd.f32 %v670_v62, %v662_v57  ;;  %v4502_v3 = vpop.permute.xlu0 %682  ;;  %v919_v57 = vstv %s4544_s30  ;;  %v312_v20 = vadd.f32 %v310_v49, %v302_v53  ;;  %s3779_s30 = sld [smem:[#allocation9 + $0x86]] }
 0x101   :  { %1556 = vrot.lane.b32.xlu1 %v1554_v55, %s4109_s14  ;;  %v684_v41 = vrot.slane %v4502_v3, 2  ;;  %v1257_v55 = vmul.f32 %v1256_v40, %v4449_v17  ;;  %v920_v6 = vmul.f32 %v919_v57, %v4455_v19 }
 0x102   :  { %v4506_v5 = vadd.f32 %v676_v59, %v672_v2  ;;  %1209 = vrot.lane.b32.xlu0 %v1207_v60, %s4109_s14  ;;  %v910_v59 = vmul.f32 %v909_v45, %v4455_v19 }
 0x103   :  { %v4511_v7 = vpop.permute.xlu1 %1039  ;;  %v685_v60 = vsel %vm120_vm0, %v4502_v3, %v684_v41  ;;  %v1266_v3 = vstv %s4559_s11  ;;  %s3781_s11 = sld [smem:[#allocation9 + $0x88]] }
 0x104   :  { %v4514_v34 = vpop.permute.xlu0 %692  ;;  %v687_v13 = vadd.f32 %v685_v60, %v4506_v5  ;;  %v1267_v23 = vmul.f32 %v1266_v3, %v4449_v17 }
 0x105   :  { %1219 = vrot.lane.b32.xlu1 %v1217_v4, %s4106_s9  ;;  %v694_v54 = vrot.slane %v4514_v34, 2 }
 0x106   :  { %872 = vrot.lane.b32.xlu0 %v870_v58, %s4106_s9 }
 0x107   :  { %v4520_v12 = vpop.permute.xlu1 %702 }
 0x108   :  { %v318_v14 = vpop.permute.xlu0 %317  ;;  %v704_v61 = vrot.slane %v4520_v12, 2 }
 0x109   :  { %882 = vrot.lane.b32.xlu1 %v880_v9, %s4108_s13  ;;  %v319_v38 = vrot.slane %v318_v14, 2  ;;  %v695_v9 = vsel %vm131_vm1, %v4514_v34, %v694_v54 }
 0x10a   :  { %1566 = vrot.lane.b32.xlu0 %v1564_v10, %s4106_s9  ;;  %v705_v34 = vsel %vm142_vm2, %v4520_v12, %v704_v61  ;;  %v697_v5 = vadd.f32 %v695_v9, %v687_v13 }
 0x10b   :  { %v328_v18 = vpop.permute.xlu1 %327  ;;  %v320_v56 = vsel %vm142_vm2, %v318_v14, %v319_v38 }
 0x10c   :  { %v4528_v21 = vpop.permute.xlu0 %1049  ;;  %v329_v51 = vrot.slane %v328_v18, 2  ;;  %v322_v10 = vadd.f32 %v320_v56, %v312_v20  ;;  %v707_v28 = vadd.f32 %v705_v34, %v697_v5  ;;  %v1291_v20 = vstv %s4611_s21  ;;  %s3787_s21 = sld [smem:[#allocation9 + $0x8e]] }
 0x10d   :  { %1576 = vrot.lane.b32.xlu1 %v1574_v15, %s4108_s13  ;;  %v1604_v15 = vmul.f32 %v1603_v1, %v4471_v30  ;;  %v1658_v34 = vstv %s4644_s1  ;;  %s4798_s1 = sld [smem:[#allocation10]] }
 0x10e   :  { %1229 = vrot.lane.b32.xlu0 %v1227_v36, %s4108_s13  ;;  %v330_v2 = vsel %vm153_vm3, %v328_v18, %v329_v51  ;;  %v1659_v5 = vmul.f32 %v1658_v34, %v4620_v31 }
 0x10f   :  { %v4536_v24 = vpop.permute.xlu1 %1059  ;;  %v332_v36 = vadd.f32 %v330_v2, %v322_v10 }
 0x110   :  { %v4540_v25 = vpop.permute.xlu0 %712 }
 0x111   :  { %1239 = vrot.lane.b32.xlu1 %v1237_v22, %s4111_s2  ;;  %v714_v11 = vrot.slane %v4540_v25, 2 }
 0x112   :  { %892 = vrot.lane.b32.xlu0 %v890_v50, %s4111_s2  ;;  %v1614_v50 = vmul.f32 %v1613_v8, %v4471_v30  ;;  %v1648_v8 = vstv %s4625_s22  ;;  %s4781_s22 = sld [smem:[#allocation9 + $0x3f]] }
 0x113   :  { %v4548_v29 = vpop.permute.xlu1 %722  ;;  %v715_v12 = vsel %vm153_vm3, %v4540_v25, %v714_v11  ;;  %v1301_v11 = vstv %s4632_s23  ;;  %s4790_s23 = sld [smem:[#allocation9 + $0x48]] }
 0x114   :  { %v338_v35 = vpop.permute.xlu0 %337  ;;  %v724_v16 = vrot.slane %v4548_v29, 2  ;;  %v717_v40 = vadd.f32 %v715_v12, %v707_v28 }
 0x115   :  { %902 = vrot.lane.b32.xlu1 %v900_v26, %s4110_s0  ;;  %v339_v46 = vrot.slane %v338_v35, 2 }
 0x116   :  { %1586 = vrot.lane.b32.xlu0 %v1584_v27, %s4111_s2  ;;  %v725_v17 = vsel %vm164_vm4, %v4548_v29, %v724_v16  ;;  %v1629_v29 = vmul.f32 %v1628_v32, %v4620_v31  ;;  %v1311_v16 = vstv %s4651_s24  ;;  %v1331_v32 = vstv %s3749_s26  ;;  %s4847_s24 = sld [smem:[#allocation9 + $0x6c]] }
 0x117   :  { %v348_v43 = vpop.permute.xlu1 %347  ;;  %v340_v14 = vsel %vm164_vm4, %v338_v35, %v339_v46  ;;  %v376_v35 = vstv %s4584_s16  ;;  %v727_v51 = vadd.f32 %v725_v17, %v717_v40  ;;  %s3786_s16 = sld [smem:[#allocation9 + $0x8d]] }
 0x118   :  { %v4570_v52 = vpop.permute.xlu0 %1069  ;;  %v349_v4 = vrot.slane %v348_v43, 2  ;;  %v342_v0 = vadd.f32 %v340_v14, %v332_v36  ;;  %v377_v49 = vmul.f32 %v376_v35, %v4283_v44  ;;  %v1649_v14 = vmul.f32 %v1648_v8, %v4620_v31  ;;  %s4964_s26 = sld [smem:[#allocation10 + $0x1]] }
 0x119   :  { %1596 = vrot.lane.b32.xlu1 %v1594_v37, %s4110_s0 }
 0x11a   :  { %1249 = vrot.lane.b32.xlu0 %v1247_v39, %s4110_s0  ;;  %v350_v48 = vsel %vm175_vm5, %v348_v43, %v349_v4  ;;  %v4630_v39 = vld [vmem:[#allocation3 + $0x12] sm:$0x3f] }
 0x11b   :  { %v4589_v62 = vpop.permute.xlu1 %1079  ;;  %v352_v30 = vadd.f32 %v350_v48, %v342_v0  ;;  %v1282_v54 = vmul.f32 %v1281_v33, %v4630_v39  ;;  %v1312_v48 = vmul.f32 %v1311_v16, %v4630_v39  ;;  %v1332_v17 = vmul.f32 %v1331_v32, %v4630_v39 }
 0x11c   :  { %v733_v58 = vpop.permute.xlu0 %732 }
 0x11d   :  { %1259 = vrot.lane.b32.xlu1 %v1257_v55, %s4113_s20  ;;  %v734_v26 = vrot.slane %v733_v58, 2  ;;  %v1638_v55 = vstv %s4606_s18  ;;  %s3788_s18 = sld [smem:[#allocation9 + $0x8f]]  ;;  %v1763_v8 = vstv %s3786_s16 }
 0x11e   :  { %912 = vrot.lane.b32.xlu0 %v910_v59, %s4113_s20  ;;  %v760_v59 = vstv %s4600_s17  ;;  %v1639_v2 = vmul.f32 %v1638_v55, %v4620_v31  ;;  %v1723_v55 = vstv %s3782_s8  ;;  %s3785_s17 = sld [smem:[#allocation9 + $0x8c]] }
 0x11f   :  { %v743_v18 = vpop.permute.xlu1 %742  ;;  %v735_v45 = vsel %vm175_vm5, %v733_v58, %v734_v26  ;;  %v761_v58 = vmul.f32 %v760_v59, %v4281_v42  ;;  %v1302_v42 = vmul.f32 %v1301_v11, %v4630_v39  ;;  %s3789_s8 = sld [smem:[#allocation10 + $0x3]] }
 0x120   :  { %v358_v22 = vpop.permute.xlu0 %357  ;;  %v744_v25 = vrot.slane %v743_v18, 2  ;;  %v737_v44 = vadd.f32 %v735_v45, %v727_v51  ;;  %v1698_v45 = vstv %s3779_s30  ;;  %s5036_s30 = sld [smem:[#allocation9 + $0x87]] }
 0x121   :  { %v359_v27 = vrot.slane %v358_v22, 2  ;;  %922 = vrot.lane.b32.xlu1 %v920_v6, %s4112_s19  ;;  %v1292_v6 = vmul.f32 %v1291_v20, %v4630_v39  ;;  %v1699_v51 = vmul.f32 %v1698_v45, %v4620_v31  ;;  %v4114_v45 = vmov 1983009808   ;;  %s3794_s16 = sld [smem:[#allocation12 + $0x5]] }
 0x122   :  { %1606 = vrot.lane.b32.xlu0 %v1604_v15, %s4113_s20  ;;  %v745_v57 = vsel %vm186_vm6, %v743_v18, %v744_v25 }
 0x123   :  { %v360_v37 = vsel %vm186_vm6, %v358_v22, %v359_v27  ;;  %v368_v38 = vpop.permute.xlu1 %367  ;;  %v747_v4 = vadd.f32 %v745_v57, %v737_v44  ;;  %v1668_v22 = vstv %s3776_s4  ;;  %v1678_v27 = vstv %s3777_s25  ;;  %s4854_s4 = sld [smem:[#allocation9 + $0x51]] }
 0x124   :  { %v369_v41 = vrot.slane %v368_v38, 2  ;;  %v4634_v43 = vpop.permute.xlu0 %1089  ;;  %v362_v47 = vadd.f32 %v360_v37, %v352_v30  ;;  %v1669_v0 = vmul.f32 %v1668_v22, %v4620_v31  ;;  %v1679_v35 = vmul.f32 %v1678_v27, %v4620_v31  ;;  %s4915_s25 = sld [smem:[#allocation9 + $0x75]] }
 0x125   :  { %1616 = vrot.lane.b32.xlu1 %v1614_v50, %s4112_s19  ;;  %v1688_v30 = vstv %s3778_s27  ;;  %v1341_v37 = vstv %s3750_s28  ;;  %v1753_v11 = vstv %s3785_s17  ;;  %s4999_s27 = sld [smem:[#allocation9 + $0x7e]] }
 0x126   :  { %v370_v53 = vsel %vm197_vm7, %v368_v38, %v369_v41  ;;  %1269 = vrot.lane.b32.xlu0 %v1267_v23, %s4112_s19  ;;  %v1321_v23 = vstv %s3748_s5  ;;  %v1689_v40 = vmul.f32 %v1688_v30, %v4620_v31  ;;  %v1342_v41 = vmul.f32 %v1341_v37, %v4630_v39  ;;  %s4891_s5 = sld [smem:[#allocation9 + $0x5a]] }
 0x127   :  { %v372_v56 = vadd.f32 %v370_v53, %v362_v47  ;;  %v4647_v46 = vpop.permute.xlu1 %1099  ;;  %v1322_v26 = vmul.f32 %v1321_v23, %v4630_v39  ;;  %v1783_v34 = vstv %s3788_s18  ;;  %s5008_s28 = sld [smem:[#allocation9 + $0x63]] }
 0x128   :  { %v753_v60 = vpop.permute.xlu0 %752  ;;  %s3791_s17 = sld [smem:[#allocation12 + $0x2]] }
 0x129   :  { %v754_v61 = vrot.slane %v753_v60, 2  ;;  %1631 = vrot.lane.b32.xlu1 %v1629_v29, %s4107_s10  ;;  %v4654_v1 = vadd.f32 %v377_v49, %v372_v56  ;;  %v1351_v29 = vstv %s3751_s7  ;;  %v1713_v56 = vstv %s3781_s11  ;;  %s5043_s7 = sld [smem:[#allocation10 + $0x2]]  ;;  %s4117_s11 = smov 19  }
 0x12a   :  { %1284 = vrot.lane.b32.xlu0 %v1282_v54, %s4107_s10  ;;  %v1352_v53 = vmul.f32 %v1351_v29, %v4630_v39  ;;  %v4715_v54 = vld [vmem:[#allocation3 + $0x12] sm:$0x3f]  ;;  %v477_v29 = vunpack.c.l.s4 %v4114_v45  ;;  %s3796_s18 = sld [smem:[#allocation12 + $0x7]] }
 0x12b   :  { %v755_v9 = vsel %vm197_vm7, %v753_v60, %v754_v61  ;;  %v4662_v10 = vpop.permute.xlu1 %767  ;;  %v1724_v20 = vmul.f32 %v1723_v55, %v4715_v54  ;;  %v1714_v44 = vmul.f32 %v1713_v56, %v4715_v54  ;;  %v1743_v60 = vstv %s3784_s12  ;;  %s3792_s12 = sld [smem:[#allocation12 + $0x3]] }
 0x12c   :  { %v757_v3 = vadd.f32 %v755_v9, %v747_v4  ;;  %v4665_v13 = vpop.permute.xlu0 %383  ;;  %v1784_v23 = vmul.f32 %v1783_v34, %v4715_v54 }
 0x12d   :  { %1641 = vrot.lane.b32.xlu1 %v1639_v2, %s4109_s14  ;;  %v1733_v2 = vstv %s3783_s15  ;;  %v385_v27 = vrot.slane %v4665_v13, 2  ;;  %s3790_s15 = sld [smem:[#allocation12 + $0x1]] }
 0x12e   :  { %v4669_v15 = vadd.f32 %v761_v58, %v757_v3  ;;  %1294 = vrot.lane.b32.xlu0 %v1292_v6, %s4109_s14  ;;  %v1744_v58 = vmul.f32 %v1743_v60, %v4715_v54  ;;  %v1734_v6 = vmul.f32 %v1733_v2, %v4715_v54  ;;  %v98_v2 = vld [vmem:[#allocation7] sm:$0x7] }
 0x12f   :  { %v4674_v36 = vpop.permute.xlu1 %1461 }
 0x130   :  { %v4677_v18 = vpop.permute.xlu0 %1114 }
 0x131   :  { %1651 = vrot.lane.b32.xlu1 %v1649_v14, %s4106_s9  ;;  %v1764_v14 = vmul.f32 %v1763_v8, %v4715_v54 }
 0x132   :  { %1304 = vrot.lane.b32.xlu0 %v1302_v42, %s4106_s9  ;;  %v1754_v42 = vmul.f32 %v1753_v11, %v4715_v54 }
 0x133   :  { %v4683_v50 = vpop.permute.xlu1 %777 }
 0x134   :  { %v4685_v12 = vpop.permute.xlu0 %393 }
 0x135   :  { %1661 = vrot.lane.b32.xlu1 %v1659_v5, %s4108_s13  ;;  %v1773_v5 = vstv %s3787_s21  ;;  %v395_v37 = vrot.slane %v4685_v12, 2  ;;  %s3793_s21 = sld [smem:[#allocation12 + $0x4]] }
 0x136   :  { %1314 = vrot.lane.b32.xlu0 %v1312_v48, %s4108_s13  ;;  %v463_v48 = vlaneseq }
 0x137   :  { %v4691_v28 = vpop.permute.xlu1 %1471 }
 0x138   :  { %v4693_v33 = vpop.permute.xlu0 %1124 }
 0x139   :  { %1671 = vrot.lane.b32.xlu1 %v1669_v0, %s4111_s2  ;;  %v769_v0 = vrot.slane %v4662_v10, 2 }
 0x13a   :  { %1324 = vrot.lane.b32.xlu0 %v1322_v26, %s4111_s2  ;;  %v1774_v26 = vmul.f32 %v1773_v5, %v4715_v54 }
 0x13b   :  { %v4699_v25 = vpop.permute.xlu1 %787 }
 0x13c   :  { %v4701_v38 = vpop.permute.xlu0 %403 }
 0x13d   :  { %1681 = vrot.lane.b32.xlu1 %v1679_v35, %s4110_s0  ;;  %v4751_v35 = vshrl.u32 %v463_v48, 7 }
 0x13e   :  { %1334 = vrot.lane.b32.xlu0 %v1332_v17, %s4110_s0  ;;  %v779_v17 = vrot.slane %v4683_v50, 2 }
 0x13f   :  { %v4707_v47 = vpop.permute.xlu1 %1481  ;;  %v465_v56 = vsub.s32 0, %v4751_v35  ;;  %v469_v60 = vsub.s32 1, %v4751_v35  ;;  %v473_v8 = vsub.s32 2, %v4751_v35 }
 0x140   :  { %v4709_v49 = vpop.permute.xlu0 %1134 }
 0x141   :  { %1691 = vrot.lane.b32.xlu1 %v1689_v40, %s4113_s20  ;;  %v770_v40 = vsel %vm120_vm0, %v4662_v10, %v769_v0  ;;  %v466_v48 = vrot.slane %v98_v2, %v465_v56 }
 0x142   :  { %1344 = vrot.lane.b32.xlu0 %v1342_v41, %s4113_s20  ;;  %v789_v41 = vrot.slane %v4699_v25, 2 }
 0x143   :  { %v4717_v57 = vpop.permute.xlu1 %797 }
 0x144   :  { %v4719_v59 = vpop.permute.xlu0 %413  ;;  %v799_v10 = vrot.slane %v4717_v57, 2 }
 0x145   :  { %1701 = vrot.lane.b32.xlu1 %v1699_v51, %s4112_s19  ;;  %v386_v51 = vsel %vm120_vm0, %v4665_v13, %v385_v27  ;;  %v396_v13 = vsel %vm131_vm1, %v4685_v12, %v395_v37 }
 0x146   :  { %1354 = vrot.lane.b32.xlu0 %v1352_v53, %s4112_s19  ;;  %v405_v53 = vrot.slane %v4701_v38, 2  ;;  %v388_v11 = vadd.f32 %v386_v51, %v4654_v1  ;;  %v800_v1 = vsel %vm153_vm3, %v4717_v57, %v799_v10 }
 0x147   :  { %v4725_v61 = vpop.permute.xlu1 %1491 }
 0x148   :  { %v4727_v4 = vpop.permute.xlu0 %1144 }
 0x149   :  { %1726 = vrot.lane.b32.xlu1 %v1724_v20, %s4109_s14  ;;  %v780_v20 = vsel %vm131_vm1, %v4683_v50, %v779_v17  ;;  %v790_v50 = vsel %vm142_vm2, %v4699_v25, %v789_v41  ;;  %v470_v25 = vrot.slane %v98_v2, %v469_v60 }
 0x14a   :  { %1716 = vrot.lane.b32.xlu0 %v1714_v44, %s4107_s10 }
 0x14b   :  { %v4733_v9 = vpop.permute.xlu1 %807  ;;  %v475_v10 = vcombine.low %v466_v48, %v470_v25  ;;  %v1023_v48 = vstv %s4790_s23  ;;  %s3797_s23 = sld [smem:[#allocation12 + $0x8]] }
 0x14c   :  { %v4735_v3 = vpop.permute.xlu0 %423 }
 0x14d   :  { %1746 = vrot.lane.b32.xlu1 %v1744_v58, %s4108_s13  ;;  %v772_v58 = vadd.f32 %v770_v40, %v4669_v15  ;;  %v406_v15 = vsel %vm142_vm2, %v4701_v38, %v405_v53  ;;  %v425_v12 = vrot.slane %v4735_v3, 2 }
 0x14e   :  { %1736 = vrot.lane.b32.xlu0 %v1734_v6, %s4106_s9  ;;  %v415_v6 = vrot.slane %v4719_v59, 2 }
 0x14f   :  { %v4741_v16 = vpop.permute.xlu1 %1501  ;;  %v782_v34 = vadd.f32 %v780_v20, %v772_v58  ;;  %v426_v57 = vsel %vm164_vm4, %v4735_v3, %v425_v12 }
 0x150   :  { %v4743_v22 = vpop.permute.xlu0 %1154  ;;  %v416_v17 = vsel %vm153_vm3, %v4719_v59, %v415_v6  ;;  %v845_v6 = vstv %s4781_s22  ;;  %s3795_s22 = sld [smem:[#allocation12 + $0x6]] }
 0x151   :  { %1766 = vrot.lane.b32.xlu1 %v1764_v14, %s4110_s0  ;;  %v809_v14 = vrot.slane %v4733_v9, 2  ;;  %v792_v27 = vadd.f32 %v790_v50, %v782_v34 }
 0x152   :  { %1756 = vrot.lane.b32.xlu0 %v1754_v42, %s4111_s2  ;;  %v478_v42 = vunpack.c.0.s8 %v477_v29 }
 0x153   :  { %v818_v32 = vpop.permute.xlu1 %817  ;;  %v810_v38 = vsel %vm164_vm4, %v4733_v9, %v809_v14  ;;  %v802_v45 = vadd.f32 %v800_v1, %v792_v27  ;;  %v474_v9 = vrot.slane %v98_v2, %v473_v8  ;;  %v1031_v1 = vrot.slane %v4499_v63, 2 }
 0x154   :  { %v434_v30 = vpop.permute.xlu0 %433  ;;  %v819_v0 = vrot.slane %v818_v32, 2  ;;  %v4801_v59 = vsub.s32 %v478_v42, %v4751_v35 }
 0x155   :  { %1786 = vrot.lane.b32.xlu1 %v1784_v23, %s4112_s19  ;;  %v398_v23 = vadd.f32 %v396_v13, %v388_v11  ;;  %v435_v37 = vrot.slane %v434_v30, 2  ;;  %v812_v60 = vadd.f32 %v810_v38, %v802_v45  ;;  %v1041_v38 = vrot.slane %v4511_v7, 2 }
 0x156   :  { %1776 = vrot.lane.b32.xlu0 %v1774_v26, %s4113_s20  ;;  %v820_v56 = vsel %vm175_vm5, %v818_v32, %v819_v0  ;;  %v489_v2 = vrot.slane %v474_v9, %v4801_v59 }
 0x157   :  { %v4763_v55 = vpop.permute.xlu1 %1511  ;;  %v408_v40 = vadd.f32 %v406_v15, %v398_v23  ;;  %v436_v58 = vsel %vm175_vm5, %v434_v30, %v435_v37  ;;  %v822_v11 = vadd.f32 %v820_v56, %v812_v60  ;;  %v482_v15 = vrot.slane %v475_v10, %v4801_v59 }
 0x158   :  { %v4769_v44 = vpop.permute.xlu0 %1164  ;;  %v846_v30 = vmul.f32 %v845_v6, %v4455_v19  ;;  %v1042_v60 = vsel %vm131_vm1, %v4511_v7, %v1041_v38 }
 0x159   :  { %v418_v53 = vadd.f32 %v416_v17, %v408_v40  ;;  %v4820_v37 = vcombine.low %v482_v15, %v489_v2 }
 0x15b   :  { %v828_v5 = vpop.permute.xlu1 %827  ;;  %v428_v3 = vadd.f32 %v426_v57, %v418_v53  ;;  %v1051_v53 = vrot.slane %v4528_v21, 2 }
 0x15c   :  { %v444_v26 = vpop.permute.xlu0 %443  ;;  %v829_v41 = vrot.slane %v828_v5, 2 }
 0x15d   :  { %v445_v29 = vrot.slane %v444_v26, 2  ;;  %v438_v42 = vadd.f32 %v436_v58, %v428_v3  ;;  %v1061_v58 = vrot.slane %v4536_v24, 2 }
 0x15e   :  { %v830_v13 = vsel %vm186_vm6, %v828_v5, %v829_v41  ;;  %v3973_v41 = vld [vmem:[#allocation3] sm:$0x3f] }
 0x15f   :  { %v4796_v51 = vpop.permute.xlu1 %1521  ;;  %v446_v50 = vsel %vm186_vm6, %v444_v26, %v445_v29  ;;  %v832_v8 = vadd.f32 %v830_v13, %v822_v11  ;;  %v460_v26 = vstv %s4798_s1  ;;  %v1024_v45 = vmul.f32 %v3973_v41, %v1023_v48  ;;  %s3800_s1 = sld [smem:[#allocation12 + $0xb]] }
 0x160   :  { %v4804_v20 = vpop.permute.xlu0 %1174  ;;  %v448_v23 = vadd.f32 %v446_v50, %v438_v42  ;;  %v1032_v29 = vsel %vm120_vm0, %v4499_v63, %v1031_v1  ;;  %v1052_v63 = vsel %vm142_vm2, %v4528_v21, %v1051_v53  ;;  %v1071_v11 = vrot.slane %v4570_v52, 2 }
 0x161   :  { %v1034_v3 = vadd.f32 %v1032_v29, %v1024_v45  ;;  %v1062_v7 = vsel %vm153_vm3, %v4536_v24, %v1061_v58  ;;  %v1455_v53 = vstv %s4847_s24  ;;  %v1116_v58 = vrot.slane %v4677_v18, 2  ;;  %s3799_s24 = sld [smem:[#allocation12 + $0xa]] }
 0x162   :  { %v1072_v2 = vsel %vm164_vm4, %v4570_v52, %v1071_v11  ;;  %v3975_v11 = vld [vmem:[#allocation3 + $0x6] sm:$0x3f] }
 0x163   :  { %v838_v14 = vpop.permute.xlu1 %837 }
 0x164   :  { %v839_v34 = vrot.slane %v838_v14, 2  ;;  %v454_v32 = vpop.permute.xlu0 %453 }
 0x165   :  { %v455_v12 = vrot.slane %v454_v32, 2 }
 0x166   :  { %v840_v5 = vsel %vm197_vm7, %v838_v14, %v839_v34  ;;  %v1044_v14 = vadd.f32 %v1042_v60, %v1034_v3  ;;  %v1081_v34 = vrot.slane %v4589_v62, 2  ;;  %v1473_v3 = vrot.slane %v4691_v28, 2 }
 0x167   :  { %v842_v0 = vadd.f32 %v840_v5, %v832_v8  ;;  %v456_v25 = vsel %vm197_vm7, %v454_v32, %v455_v12  ;;  %v4818_v27 = vpop.permute.xlu1 %1531  ;;  %v1091_v8 = vrot.slane %v4634_v43, 2 }
 0x168   :  { %v458_v17 = vadd.f32 %v456_v25, %v448_v23  ;;  %v4822_v40 = vpop.permute.xlu0 %1184  ;;  %v1054_v15 = vadd.f32 %v1052_v63, %v1044_v14  ;;  %v1082_v1 = vsel %vm175_vm5, %v4589_v62, %v1081_v34  ;;  %v1463_v62 = vrot.slane %v4674_v36, 2 }
 0x169   :  { %v4825_v19 = vadd.f32 %v846_v30, %v842_v0  ;;  %v1101_v0 = vrot.slane %v4647_v46, 2  ;;  %v1126_v34 = vrot.slane %v4693_v33, 2 }
 0x16a   :  { %v4827_v57 = vadd.f32 %v460_v26, %v458_v17  ;;  %v1064_v48 = vadd.f32 %v1062_v7, %v1054_v15  ;;  %v1092_v17 = vsel %vm186_vm6, %v4634_v43, %v1091_v8  ;;  %v1474_v15 = vsel %vm131_vm1, %v4691_v28, %v1473_v3 }
 0x16b   :  { %v4832_v56 = vpop.permute.xlu1 %1199  ;;  %v1102_v29 = vsel %vm197_vm7, %v4647_v46, %v1101_v0  ;;  %v1464_v46 = vsel %vm120_vm0, %v4674_v36, %v1463_v62  ;;  %v1493_v8 = vrot.slane %v4725_v61, 2 }
 0x16c   :  { %v492_v9 = vmul.f32 %v4820_v37, %v4827_v57  ;;  %v4836_v10 = vpop.permute.xlu0 %852  ;;  %v1074_v26 = vadd.f32 %v1072_v2, %v1064_v48  ;;  %v1136_v2 = vrot.slane %v4709_v49, 2 }
 0x16e   :  { %v494_v13 = vcombine.high %v492_v9, %v492_v9  ;;  %v501_v6 = vrot.slane %v492_v9, %v4801_v59  ;;  %v1084_v41 = vadd.f32 %v1082_v1, %v1074_v26  ;;  %v1107_v9 = vstv %s4854_s4  ;;  %s3802_s4 = sld [smem:[#allocation12 + $0xd]] }
 0x16f   :  { %v4845_v50 = vpop.permute.xlu1 %862  ;;  %v1108_v14 = vmul.f32 %v3975_v11, %v1107_v9  ;;  %v1137_v26 = vsel %vm142_vm2, %v4709_v49, %v1136_v2  ;;  %v1186_v2 = vrot.slane %v4822_v40, 2 }
 0x170   :  { %v4849_v42 = vpop.permute.xlu0 %1546  ;;  %v508_v32 = vrot.slane %v494_v13, %v4801_v59  ;;  %v509_v21 = vcombine.high %v501_v6, %v501_v6  ;;  %v514_v30 = vsel %vm513_vm8, %v501_v6, 0.0  ;;  %v1094_v60 = vadd.f32 %v1092_v17, %v1084_v41  ;;  %v3974_v6 = vld [vmem:[#allocation3] sm:$0x3f] }
 0x171   :  { %v1456_v63 = vmul.f32 %v3974_v6, %v1455_v53  ;;  %v1503_v17 = vrot.slane %v4741_v16, 2  ;;  %v1513_v53 = vrot.slane %v4763_v55, 2  ;;  %v864_v62 = vrot.slane %v4845_v50, 2 }
 0x172   :  { %v515_v24 = vsel %vm513_vm8, %v509_v21, 0.0  ;;  %v518_v52 = vsel %vm517_vm9, %v508_v32, 0.0  ;;  %v1104_v43 = vadd.f32 %v1102_v29, %v1094_v60  ;;  %v1483_v32 = vrot.slane %v4707_v47, 2 }
 0x173   :  { %v4860_v12 = vpop.permute.xlu1 %1556  ;;  %v516_v5 = vadd.f32 %v515_v24, %v514_v30  ;;  %v1117_v21 = vsel %vm120_vm0, %v4677_v18, %v1116_v58  ;;  %v1466_v24 = vadd.f32 %v1464_v46, %v1456_v63  ;;  %v1146_v18 = vrot.slane %v4727_v4, 2 }
 0x174   :  { %v4864_v23 = vpop.permute.xlu0 %1209  ;;  %v1109_v36 = vadd.f32 %v1108_v14, %v1104_v43  ;;  %v1484_v1 = vsel %vm142_vm2, %v4707_v47, %v1483_v32  ;;  %v1192_v60 = vstv %s4891_s5  ;;  %v1504_v63 = vsel %vm164_vm4, %v4741_v16, %v1503_v17  ;;  %s3801_s5 = sld [smem:[#allocation12 + $0xc]] }
 0x175   :  { %v519_v25 = vadd.f32 %v518_v52, %v516_v5  ;;  %v1127_v5 = vsel %vm131_vm1, %v4693_v33, %v1126_v34  ;;  %v1476_v28 = vadd.f32 %v1474_v15, %v1466_v24  ;;  %v854_v52 = vrot.slane %v4836_v10, 2 }
 0x176   :  { %v1119_v0 = vadd.f32 %v1117_v21, %v1109_v36  ;;  %v1156_v33 = vrot.slane %v4743_v22, 2  ;;  %v1147_v49 = vsel %vm153_vm3, %v4727_v4, %v1146_v18  ;;  %v1523_v14 = vrot.slane %v4796_v51, 2 }
 0x177   :  { %v4872_v38 = vpop.permute.xlu1 %1219  ;;  %520 = vadd.xlane.f32.xlu0 %v519_v25  ;;  %v1494_v25 = vsel %vm153_vm3, %v4725_v61, %v1493_v8  ;;  %v1486_v29 = vadd.f32 %v1484_v1, %v1476_v28  ;;  %v1166_v61 = vrot.slane %v4769_v44, 2  ;;  %v855_v43 = vsel %vm120_vm0, %v4836_v10, %v854_v52 }
 0x178   :  { %v4874_v45 = vpop.permute.xlu0 %872  ;;  %v1129_v41 = vadd.f32 %v1127_v5, %v1119_v0  ;;  %v1157_v11 = vsel %vm164_vm4, %v4743_v22, %v1156_v33  ;;  %v1176_v4 = vrot.slane %v4804_v20, 2  ;;  %v1514_v32 = vsel %vm175_vm5, %v4763_v55, %v1513_v53 }
 0x179   :  { %v1496_v3 = vadd.f32 %v1494_v25, %v1486_v29  ;;  %v874_v6 = vrot.slane %v4874_v45, 2  ;;  %v865_v10 = vsel %vm131_vm1, %v4845_v50, %v864_v62  ;;  %v1167_v16 = vsel %vm175_vm5, %v4769_v44, %v1166_v61  ;;  %v3976_v29 = vld [vmem:[#allocation3 + $0xc] sm:$0x3f]  ;;  %v3977_v62 = vld [vmem:[#allocation3 + $0x6] sm:$0x3f] }
 0x17a   :  { %v1139_v58 = vadd.f32 %v1137_v26, %v1129_v41  ;;  %v1533_v22 = vrot.slane %v4818_v27, 2  ;;  %v857_v8 = vadd.f32 %v855_v43, %v4825_v19  ;;  %v1524_v50 = vsel %vm186_vm6, %v4796_v51, %v1523_v14 }
 0x17b   :  { %v4883_v13 = vpop.permute.xlu1 %882  ;;  %v1506_v24 = vadd.f32 %v1504_v63, %v1496_v3  ;;  %v875_v55 = vsel %vm142_vm2, %v4874_v45, %v874_v6  ;;  %v1177_v1 = vsel %vm186_vm6, %v4804_v20, %v1176_v4  ;;  %v1539_v44 = vstv %s4915_s25  ;;  %s3804_s25 = sld [smem:[#allocation12 + $0xf]] }
 0x17c   :  { %v4885_v7 = vpop.permute.xlu0 %1566  ;;  %v1149_v34 = vadd.f32 %v1147_v49, %v1139_v58  ;;  %v884_v21 = vrot.slane %v4883_v13, 2  ;;  %v867_v18 = vadd.f32 %v865_v10, %v857_v8  ;;  %v1534_v45 = vsel %vm197_vm7, %v4818_v27, %v1533_v22 }
 0x17d   :  { %v1516_v28 = vadd.f32 %v1514_v32, %v1506_v24  ;;  %v1187_v51 = vsel %vm197_vm7, %v4822_v40, %v1186_v2  ;;  %v1193_v53 = vmul.f32 %v3976_v29, %v1192_v60  ;;  %v1548_v49 = vrot.slane %v4849_v42, 2 }
 0x17e   :  { %v1159_v36 = vadd.f32 %v1157_v11, %v1149_v34  ;;  %v885_v19 = vsel %vm153_vm3, %v4883_v13, %v884_v21  ;;  %v877_v17 = vadd.f32 %v875_v55, %v867_v18  ;;  %v1540_v13 = vmul.f32 %v3977_v62, %v1539_v44 }
 0x17f   :  { %v4899_v30 = vpop.permute.xlu1 %1576  ;;  %v1526_v20 = vadd.f32 %v1524_v50, %v1516_v28  ;;  %v1201_v40 = vrot.slane %v4832_v56, 2  ;;  %v1211_v60 = vrot.slane %v4864_v23, 2  ;;  %v1549_v14 = vsel %vm120_vm0, %v4849_v42, %v1548_v49 }
 0x180   :  { %v4901_v48 = vpop.permute.xlu0 %1229  ;;  %v1169_v52 = vadd.f32 %v1167_v16, %v1159_v36  ;;  %v887_v61 = vadd.f32 %v885_v19, %v877_v17  ;;  %v1568_v4 = vrot.slane %v4885_v7, 2  ;;  %v1221_v24 = vrot.slane %v4872_v38, 2 }
 0x181   :  { %v1536_v27 = vadd.f32 %v1534_v45, %v1526_v20  ;;  %v1578_v42 = vrot.slane %v4899_v30, 2  ;;  %v929_v50 = vstv %s4964_s26  ;;  %v1231_v18 = vrot.slane %v4901_v48, 2  ;;  %s3803_s26 = sld [smem:[#allocation12 + $0xe]] }
 0x182   :  { %v1179_v33 = vadd.f32 %v1177_v1, %v1169_v52  ;;  %v1222_v45 = vsel %vm142_vm2, %v4872_v38, %v1221_v24 }
 0x183   :  { %v4917_v47 = vpop.permute.xlu1 %1239  ;;  %v1541_v16 = vadd.f32 %v1540_v13, %v1536_v27 }
 0x184   :  { %v893_v9 = vpop.permute.xlu0 %892  ;;  %v1189_v3 = vadd.f32 %v1187_v51, %v1179_v33  ;;  %v1241_v51 = vrot.slane %v4917_v47, 2 }
 0x185   :  { %v894_v5 = vrot.slane %v893_v9, 2  ;;  %v1551_v55 = vadd.f32 %v1549_v14, %v1541_v16 }
 0x186   :  { %v1194_v21 = vadd.f32 %v1193_v53, %v1189_v3  ;;  %v1242_v27 = vsel %vm164_vm4, %v4917_v47, %v1241_v51 }
 0x187   :  { %v903_v46 = vpop.permute.xlu1 %902  ;;  %v895_v41 = vsel %vm164_vm4, %v893_v9, %v894_v5  ;;  %v1558_v9 = vrot.slane %v4860_v12, 2  ;;  %v1212_v5 = vsel %vm131_vm1, %v4864_v23, %v1211_v60  ;;  %v1579_v23 = vsel %vm153_vm3, %v4899_v30, %v1578_v42 }
 0x188   :  { %v4939_v15 = vpop.permute.xlu0 %1586  ;;  %v904_v26 = vrot.slane %v903_v46, 2  ;;  %v897_v63 = vadd.f32 %v895_v41, %v887_v61  ;;  %v1232_v41 = vsel %vm153_vm3, %v4901_v48, %v1231_v18 }
 0x189   :  { %v1559_v8 = vsel %vm131_vm1, %v4860_v12, %v1558_v9  ;;  %v1588_v44 = vrot.slane %v4939_v15, 2 }
 0x18a   :  { %v905_v43 = vsel %vm175_vm5, %v903_v46, %v904_v26  ;;  %v1202_v46 = vsel %vm120_vm0, %v4832_v56, %v1201_v40  ;;  %v1569_v56 = vsel %vm142_vm2, %v4885_v7, %v1568_v4  ;;  %v1561_v19 = vadd.f32 %v1559_v8, %v1551_v55 }
 0x18b   :  { %v4953_v0 = vpop.permute.xlu1 %1596  ;;  %v907_v34 = vadd.f32 %v905_v43, %v897_v63  ;;  %v1204_v52 = vadd.f32 %v1202_v46, %v1194_v21  ;;  %v1589_v29 = vsel %vm164_vm4, %v4939_v15, %v1588_v44 }
 0x18c   :  { %v4957_v25 = vpop.permute.xlu0 %1249  ;;  %v1571_v20 = vadd.f32 %v1569_v56, %v1561_v19  ;;  %v1598_v33 = vrot.slane %v4953_v0, 2 }
 0x18d   :  { %v1214_v7 = vadd.f32 %v1212_v5, %v1204_v52  ;;  %v1251_v38 = vrot.slane %v4957_v25, 2 }
 0x18e   :  { %v1581_v13 = vadd.f32 %v1579_v23, %v1571_v20 }
 0x18f   :  { %v4967_v58 = vpop.permute.xlu1 %1259  ;;  %v1224_v62 = vadd.f32 %v1222_v45, %v1214_v7  ;;  %v1252_v63 = vsel %vm175_vm5, %v4957_v25, %v1251_v38 }
 0x190   :  { %v913_v6 = vpop.permute.xlu0 %912  ;;  %v1261_v48 = vrot.slane %v4967_v58, 2  ;;  %v1591_v43 = vadd.f32 %v1589_v29, %v1581_v13 }
 0x191   :  { %v914_v11 = vrot.slane %v913_v6, 2  ;;  %v1234_v40 = vadd.f32 %v1232_v41, %v1224_v62 }
 0x192   :  { %v1262_v21 = vsel %vm186_vm6, %v4967_v58, %v1261_v48 }
 0x193   :  { %v915_v32 = vsel %vm186_vm6, %v913_v6, %v914_v11  ;;  %v923_v10 = vpop.permute.xlu1 %922  ;;  %v1599_v6 = vsel %vm175_vm5, %v4953_v0, %v1598_v33  ;;  %v1244_v4 = vadd.f32 %v1242_v27, %v1234_v40 }
 0x194   :  { %v924_v22 = vrot.slane %v923_v10, 2  ;;  %v1607_v2 = vpop.permute.xlu0 %1606  ;;  %v917_v36 = vadd.f32 %v915_v32, %v907_v34 }
 0x195   :  { %v1608_v49 = vrot.slane %v1607_v2, 2  ;;  %v1254_v16 = vadd.f32 %v1252_v63, %v1244_v4 }
 0x196   :  { %v925_v1 = vsel %vm197_vm7, %v923_v10, %v924_v22  ;;  %v1601_v10 = vadd.f32 %v1599_v6, %v1591_v43  ;;  %v1624_v22 = vstv %s4999_s27  ;;  %s3806_s27 = sld [smem:[#allocation12 + $0x11]] }
 0x197   :  { %v927_v12 = vadd.f32 %v925_v1, %v917_v36  ;;  %v1617_v28 = vpop.permute.xlu1 %1616  ;;  %v1609_v34 = vsel %vm186_vm6, %v1607_v2, %v1608_v49  ;;  %v1277_v36 = vstv %s5008_s28  ;;  %v1264_v5 = vadd.f32 %v1262_v21, %v1254_v16  ;;  %s3805_s28 = sld [smem:[#allocation12 + $0x10]] }
 0x198   :  { %v1270_v26 = vpop.permute.xlu0 %1269  ;;  %v1618_v9 = vrot.slane %v1617_v28, 2  ;;  %v1611_v24 = vadd.f32 %v1609_v34, %v1601_v10  ;;  %v1625_v56 = vmul.f32 %v1624_v22, %v4620_v31 }
 0x199   :  { %v4996_v17 = vadd.f32 %v929_v50, %v927_v12  ;;  %v1271_v11 = vrot.slane %v1270_v26, 2  ;;  %v1278_v12 = vmul.f32 %v1277_v36, %v4630_v39 }
 0x19a   :  { %v1619_v25 = vsel %vm197_vm7, %v1617_v28, %v1618_v9 }
 0x19b   :  { %v931_v30 = vmul.f32 %v4996_v17, %v4820_v37  ;;  %v1632_v53 = vpop.permute.xlu1 %1631  ;;  %v1272_v42 = vsel %vm197_vm7, %v1270_v26, %v1271_v11  ;;  %v1621_v58 = vadd.f32 %v1619_v25, %v1611_v24 }
 0x19c   :  { %v1285_v61 = vpop.permute.xlu0 %1284  ;;  %v1274_v18 = vadd.f32 %v1272_v42, %v1264_v5  ;;  %v1633_v44 = vrot.slane %v1632_v53, 2  ;;  %v1709_v42 = vstv %s5036_s30  ;;  %s3809_s30 = sld [smem:[#allocation12 + $0x14]] }
 0x19d   :  { %v933_v3 = vcombine.high %v931_v30, %v931_v30  ;;  %v940_v15 = vrot.slane %v931_v30, %v4801_v59  ;;  %v1286_v28 = vrot.slane %v1285_v61, 2  ;;  %v1626_v26 = vadd.f32 %v1625_v56, %v1621_v58 }
 0x19e   :  { %v1634_v51 = vsel %vm120_vm0, %v1632_v53, %v1633_v44  ;;  %v1279_v7 = vadd.f32 %v1278_v12, %v1274_v18  ;;  %v1710_v18 = vmul.f32 %v1709_v42, %v4715_v54  ;;  %v1793_v42 = vstv %s3789_s8  ;;  %s3811_s8 = sld [smem:[#allocation12 + $0x16]] }
 0x19f   :  { %v1642_v60 = vpop.permute.xlu1 %1641  ;;  %v947_v47 = vrot.slane %v933_v3, %v4801_v59  ;;  %v948_v14 = vcombine.high %v940_v15, %v940_v15  ;;  %v952_v0 = vsel %vm513_vm8, %v940_v15, 0.0  ;;  %v1287_v33 = vsel %vm120_vm0, %v1285_v61, %v1286_v28 }
 0x1a0   :  { %v1295_v32 = vpop.permute.xlu0 %1294  ;;  %v1643_v19 = vrot.slane %v1642_v60, 2  ;;  %v1636_v39 = vadd.f32 %v1634_v51, %v1626_v26  ;;  %v1289_v49 = vadd.f32 %v1287_v33, %v1279_v7 }
 0x1a1   :  { %v953_v46 = vsel %vm513_vm8, %v948_v14, 0.0  ;;  %v955_v2 = vsel %vm517_vm9, %v947_v47, 0.0  ;;  %v1296_v23 = vrot.slane %v1295_v32, 2 }
 0x1a2   :  { %v954_v8 = vadd.f32 %v953_v46, %v952_v0  ;;  %v1644_v31 = vsel %vm131_vm1, %v1642_v60, %v1643_v19 }
 0x1a3   :  { %v1652_v55 = vpop.permute.xlu1 %1651  ;;  %v1297_v62 = vsel %vm131_vm1, %v1295_v32, %v1296_v23  ;;  %v1646_v53 = vadd.f32 %v1644_v31, %v1636_v39 }
 0x1a4   :  { %v1305_v50 = vpop.permute.xlu0 %1304  ;;  %v956_v1 = vadd.f32 %v955_v2, %v954_v8  ;;  %v1653_v20 = vrot.slane %v1652_v55, 2  ;;  %v1299_v40 = vadd.f32 %v1297_v62, %v1289_v49 }
 0x1a5   :  { %v1306_v41 = vrot.slane %v1305_v50, 2 }
 0x1a6   :  { %957 = vadd.xlane.f32.xlu1 %v956_v1  ;;  %v1654_v27 = vsel %vm142_vm2, %v1652_v55, %v1653_v20 }
 0x1a7   :  { %v1662_v52 = vpop.permute.xlu1 %1661  ;;  %v1307_v3 = vsel %vm142_vm2, %v1305_v50, %v1306_v41  ;;  %v1656_v63 = vadd.f32 %v1654_v27, %v1646_v53 }
 0x1a8   :  { %v1315_v45 = vpop.permute.xlu0 %1314  ;;  %v1663_v38 = vrot.slane %v1662_v52, 2  ;;  %v1309_v47 = vadd.f32 %v1307_v3, %v1299_v40 }
 0x1a9   :  { %v1316_v13 = vrot.slane %v1315_v45, 2 }
 0x1aa   :  { %v1664_v43 = vsel %vm153_vm3, %v1662_v52, %v1663_v38  ;;  %v1361_v52 = vstv %s5043_s7  ;;  %s3808_s7 = sld [smem:[#allocation12 + $0x13]] }
 0x1ab   :  { %v1672_v29 = vpop.permute.xlu1 %1671  ;;  %v1317_v11 = vsel %vm153_vm3, %v1315_v45, %v1316_v13  ;;  %v1666_v4 = vadd.f32 %v1664_v43, %v1656_v63 }
 0x1ac   :  { %v1325_v30 = vpop.permute.xlu0 %1324  ;;  %v1673_v48 = vrot.slane %v1672_v29, 2  ;;  %v1319_v10 = vadd.f32 %v1317_v11, %v1309_v47 }
 0x1ad   :  { %v1326_v61 = vrot.slane %v1325_v30, 2 }
 0x1ae   :  { %v1674_v14 = vsel %vm164_vm4, %v1672_v29, %v1673_v48 }
 0x1af   :  { %v1682_v15 = vpop.permute.xlu1 %1681  ;;  %v1327_v34 = vsel %vm164_vm4, %v1325_v30, %v1326_v61  ;;  %v1676_v16 = vadd.f32 %v1674_v14, %v1666_v4 }
 0x1b0   :  { %v1683_v6 = vrot.slane %v1682_v15, 2  ;;  %v1335_v9 = vpop.permute.xlu0 %1334  ;;  %v1329_v8 = vadd.f32 %v1327_v34, %v1319_v10 }
 0x1b1   :  { %v1336_v60 = vrot.slane %v1335_v9, 2 }
 0x1b2   :  { %v1684_v21 = vsel %vm175_vm5, %v1682_v15, %v1683_v6 }
 0x1b3   :  { %v1692_v32 = vpop.permute.xlu1 %1691  ;;  %v1337_v25 = vsel %vm175_vm5, %v1335_v9, %v1336_v60  ;;  %v1686_v36 = vadd.f32 %v1684_v21, %v1676_v16 }
 0x1b4   :  { %v1693_v0 = vrot.slane %v1692_v32, 2  ;;  %v1345_v46 = vpop.permute.xlu0 %1344  ;;  %v1339_v5 = vadd.f32 %v1337_v25, %v1329_v8 }
 0x1b5   :  { %v1346_v22 = vrot.slane %v1345_v46, 2 }
 0x1b6   :  { %v1694_v24 = vsel %vm186_vm6, %v1692_v32, %v1693_v0 }
 0x1b7   :  { %v1347_v55 = vsel %vm186_vm6, %v1345_v46, %v1346_v22  ;;  %v1702_v2 = vpop.permute.xlu1 %1701  ;;  %v1696_v58 = vadd.f32 %v1694_v24, %v1686_v36 }
 0x1b8   :  { %v1703_v50 = vrot.slane %v1702_v2, 2  ;;  %v1355_v1 = vpop.permute.xlu0 %1354  ;;  %v1349_v44 = vadd.f32 %v1347_v55, %v1339_v5 }
 0x1b9   :  { %v1356_v56 = vrot.slane %v1355_v1, 2 }
 0x1ba   :  { %v1704_v12 = vsel %vm197_vm7, %v1702_v2, %v1703_v50 }
 0x1bb   :  { %v1706_v28 = vadd.f32 %v1704_v12, %v1696_v58  ;;  %v1357_v19 = vsel %vm197_vm7, %v1355_v1, %v1356_v56  ;;  %v1727_v45 = vpop.permute.xlu1 %1726 }
 0x1bc   :  { %v1359_v26 = vadd.f32 %v1357_v19, %v1349_v44  ;;  %v1717_v23 = vpop.permute.xlu0 %1716  ;;  %v1728_v51 = vrot.slane %v1727_v45, 2  ;;  %v4115_v19 = vmov 269488144  }
 0x1bd   :  { %v1711_v7 = vadd.f32 %v1710_v18, %v1706_v28  ;;  %v1718_v20 = vrot.slane %v1717_v23, 2 }
 0x1be   :  { %v5054_v33 = vadd.f32 %v1361_v52, %v1359_v26  ;;  %v1729_v30 = vsel %vm131_vm1, %v1727_v45, %v1728_v51  ;;  %v2308_v52 = vld [vmem:[#allocation3] sm:$0x3f]  ;;  %v525_v45 = vunpack.c.l.s4 %v4115_v19 }
 0x1bf   :  { %v1719_v41 = vsel %vm120_vm0, %v1717_v23, %v1718_v20  ;;  %v1747_v29 = vpop.permute.xlu1 %1746 }
 0x1c0   :  { %v1363_v54 = vmul.f32 %v5054_v33, %v4820_v37  ;;  %v1721_v31 = vadd.f32 %v1719_v41, %v1711_v7  ;;  %v1737_v38 = vpop.permute.xlu0 %1736  ;;  %v1748_v39 = vrot.slane %v1747_v29, 2  ;;  %v526_v26 = vunpack.c.0.s8 %v525_v45 }
 0x1c1   :  { %v1738_v62 = vrot.slane %v1737_v38, 2 }
 0x1c2   :  { %v1731_v13 = vadd.f32 %v1729_v30, %v1721_v31  ;;  %v1365_v49 = vcombine.high %v1363_v54, %v1363_v54  ;;  %v1372_v27 = vrot.slane %v1363_v54, %v4801_v59  ;;  %v1749_v43 = vsel %vm153_vm3, %v1747_v29, %v1748_v39 }
 0x1c3   :  { %v1739_v48 = vsel %vm142_vm2, %v1737_v38, %v1738_v62  ;;  %v1767_v53 = vpop.permute.xlu1 %1766  ;;  %v5082_v23 = vsub.s32 %v526_v26, %v4751_v35 }
 0x1c4   :  { %v1741_v3 = vadd.f32 %v1739_v48, %v1731_v13  ;;  %v1757_v61 = vpop.permute.xlu0 %1756  ;;  %v1379_v15 = vrot.slane %v1365_v49, %v4801_v59  ;;  %v1380_v40 = vcombine.high %v1372_v27, %v1372_v27  ;;  %v1768_v6 = vrot.slane %v1767_v53, 2 }
 0x1c5   :  { %v1758_v9 = vrot.slane %v1757_v61, 2  ;;  %v1384_v11 = vsel %vm513_vm8, %v1372_v27, 0.0 }
 0x1c6   :  { %v1751_v63 = vadd.f32 %v1749_v43, %v1741_v3  ;;  %v1385_v60 = vsel %vm513_vm8, %v1380_v40, 0.0  ;;  %v1387_v10 = vsel %vm517_vm9, %v1379_v15, 0.0  ;;  %v1769_v21 = vsel %vm175_vm5, %v1767_v53, %v1768_v6 }
 0x1c7   :  { %v1759_v47 = vsel %vm164_vm4, %v1757_v61, %v1758_v9  ;;  %v1787_v14 = vpop.permute.xlu1 %1786  ;;  %v1386_v4 = vadd.f32 %v1385_v60, %v1384_v11 }
 0x1c8   :  { %v1761_v34 = vadd.f32 %v1759_v47, %v1751_v63  ;;  %v1777_v32 = vpop.permute.xlu0 %1776  ;;  %v1788_v0 = vrot.slane %v1787_v14, 2 }
 0x1c9   :  { %v1778_v46 = vrot.slane %v1777_v32, 2  ;;  %v1388_v16 = vadd.f32 %v1387_v10, %v1386_v4 }
 0x1ca   :  { %v1771_v25 = vadd.f32 %v1769_v21, %v1761_v34  ;;  %v1789_v24 = vsel %vm197_vm7, %v1787_v14, %v1788_v0 }
 0x1cb   :  { %v1779_v22 = vsel %vm186_vm6, %v1777_v32, %v1778_v46  ;;  %1389 = vadd.xlane.f32.xlu0 %v1388_v16 }
 0x1cc   :  { %v1781_v8 = vadd.f32 %v1779_v22, %v1771_v25 }
 0x1ce   :  { %v1791_v36 = vadd.f32 %v1789_v24, %v1781_v8 }
 0x1d0   :  { %v5071_v55 = vadd.f32 %v1793_v42, %v1791_v36 }
 0x1d2   :  { %v1795_v2 = vmul.f32 %v5071_v55, %v4820_v37 }
 0x1d4   :  { %v1797_v5 = vcombine.high %v1795_v2, %v1795_v2  ;;  %v1804_v50 = vrot.slane %v1795_v2, %v4801_v59 }
 0x1d6   :  { %v1811_v1 = vrot.slane %v1797_v5, %v4801_v59  ;;  %v1812_v58 = vcombine.high %v1804_v50, %v1804_v50  ;;  %v1816_v56 = vsel %vm513_vm8, %v1804_v50, 0.0 }
 0x1d8   :  { %v1817_v18 = vsel %vm513_vm8, %v1812_v58, 0.0  ;;  %v1819_v12 = vsel %vm517_vm9, %v1811_v1, 0.0 }
 0x1d9   :  { %v1818_v44 = vadd.f32 %v1817_v18, %v1816_v56 }
 0x1db   :  { %v1820_v28 = vadd.f32 %v1819_v12, %v1818_v44 }
 0x1dd   :  { %1821 = vadd.xlane.f32.xlu0 %v1820_v28 }
 0x1f3   :  { %2310 = vrot.lane.b32.xlu0 %v2308_v52, %s4108_s13 }
 0x200   :  { %v521_v51 = vpop.xlane.xlu0 %520 }
 0x201   :  { %v522_v7 = vmul.f32 0.00390625, %v521_v51 }
 0x203   :  { %v530_v20 = vrot.slane %v522_v7, %v5082_v23 }
 0x205   :  { %v532_v41 = vsub.f32 %v4827_v57, %v530_v20 }
 0x207   :  { %v5087_v29 = vmul.f32 %v532_v41, %v4820_v37 }
 0x209   :  { %v534_v54 = vmul.f32 %v5087_v29, %v5087_v29 }
 0x20b   :  { %v536_v31 = vcombine.high %v534_v54, %v534_v54  ;;  %v543_v38 = vrot.slane %v534_v54, %v4801_v59 }
 0x20d   :  { %v550_v30 = vrot.slane %v536_v31, %v4801_v59  ;;  %v551_v39 = vcombine.high %v543_v38, %v543_v38  ;;  %v555_v35 = vsel %vm513_vm8, %v543_v38, 0.0 }
 0x20f   :  { %v556_v62 = vsel %vm513_vm8, %v551_v39, 0.0  ;;  %v558_v49 = vsel %vm517_vm9, %v550_v30, 0.0 }
 0x210   :  { %v557_v13 = vadd.f32 %v556_v62, %v555_v35 }
 0x212   :  { %v559_v57 = vadd.f32 %v558_v49, %v557_v13 }
 0x214   :  { %560 = vadd.xlane.f32.xlu1 %v559_v57 }
 0x22f   :  { %v958_v27 = vpop.xlane.xlu1 %957 }
 0x230   :  { %v959_v48 = vmul.f32 0.00390625, %v958_v27 }
 0x232   :  { %v967_v53 = vrot.slane %v959_v48, %v5082_v23 }
 0x234   :  { %v969_v3 = vsub.f32 %v4996_v17, %v967_v53 }
 0x236   :  { %v5099_v61 = vmul.f32 %v969_v3, %v4820_v37 }
 0x238   :  { %v971_v15 = vmul.f32 %v5099_v61, %v5099_v61 }
 0x23a   :  { %v973_v40 = vcombine.high %v971_v15, %v971_v15  ;;  %v980_v43 = vrot.slane %v971_v15, %v4801_v59 }
 0x23c   :  { %v987_v6 = vrot.slane %v973_v40, %v4801_v59  ;;  %v988_v9 = vcombine.high %v980_v43, %v980_v43  ;;  %v992_v63 = vsel %vm513_vm8, %v980_v43, 0.0 }
 0x23e   :  { %v993_v11 = vsel %vm513_vm8, %v988_v9, 0.0  ;;  %v995_v47 = vsel %vm517_vm9, %v987_v6, 0.0 }
 0x23f   :  { %v994_v60 = vadd.f32 %v993_v11, %v992_v63 }
 0x241   :  { %v996_v17 = vadd.f32 %v995_v47, %v994_v60 }
 0x243   :  { %997 = vadd.xlane.f32.xlu0 %v996_v17 }
 0x254   :  { %v1390_v14 = vpop.xlane.xlu0 %1389 }
 0x255   :  { %v1391_v4 = vmul.f32 0.00390625, %v1390_v14 }
 0x257   :  { %v1399_v34 = vrot.slane %v1391_v4, %v5082_v23 }
 0x259   :  { %v1401_v32 = vsub.f32 %v5054_v33, %v1399_v34 }
 0x25b   :  { %v5111_v10 = vmul.f32 %v1401_v32, %v4820_v37  ;;  %v1910_v32 = vstv %s3792_s12  ;;  %s3813_s12 = sld [smem:[#allocation12 + $0x18]] }
 0x25d   :  { %v1403_v21 = vmul.f32 %v5111_v10, %v5111_v10 }
 0x25f   :  { %v1405_v0 = vcombine.high %v1403_v21, %v1403_v21  ;;  %v1412_v46 = vrot.slane %v1403_v21, %v4801_v59 }
 0x261   :  { %v1419_v16 = vrot.slane %v1405_v0, %v4801_v59  ;;  %v1420_v25 = vcombine.high %v1412_v46, %v1412_v46  ;;  %v1424_v22 = vsel %vm513_vm8, %v1412_v46, 0.0 }
 0x263   :  { %v1425_v8 = vsel %vm513_vm8, %v1420_v25, 0.0  ;;  %v1427_v42 = vsel %vm517_vm9, %v1419_v16, 0.0  ;;  %v1930_v16 = vstv %s3794_s16  ;;  %v1900_v25 = vstv %s3791_s17  ;;  %s3815_s16 = sld [smem:[#allocation12 + $0x1a]] }
 0x264   :  { %v1426_v24 = vadd.f32 %v1425_v8, %v1424_v22  ;;  %s3814_s17 = sld [smem:[#allocation12 + $0x19]] }
 0x266   :  { %v1822_v33 = vpop.xlane.xlu0 %1821  ;;  %v1428_v36 = vadd.f32 %v1427_v42, %v1426_v24  ;;  %v1950_v24 = vstv %s3796_s18  ;;  %v1920_v42 = vstv %s3793_s21  ;;  %s3818_s18 = sld [smem:[#allocation12 + $0x1d]] }
 0x267   :  { %v1823_v2 = vmul.f32 0.00390625, %v1822_v33  ;;  %s3817_s21 = sld [smem:[#allocation12 + $0x1c]] }
 0x268   :  { %1429 = vadd.xlane.f32.xlu0 %v1428_v36 }
 0x269   :  { %v1831_v5 = vrot.slane %v1823_v2, %v5082_v23  ;;  %v1940_v2 = vstv %s3795_s22  ;;  %s3820_s22 = sld [smem:[#allocation12 + $0x1f]] }
 0x26a   :  { %v5130_v30 = vpop.permute.xlu0 %2310 }
 0x26b   :  { %v1833_v50 = vsub.f32 %v5071_v55, %v1831_v5  ;;  %v4116_v55 = vmov 0.0  }
 0x26c   :  { %100 = vst.msk [vmem:[#allocation2] sm:$0x3] %vm99_vm10, %v4116_v55  ;;  %101 = vst.msk [vmem:[#allocation2 + $0x6] sm:$0x3] %vm99_vm10, %v4116_v55 }
 0x26d   :  { %v1834_v1 = vmul.f32 %v1833_v50, %v4820_v37  ;;  %105 = vst.msk [vmem:[#allocation2 + $0x4] sm:$0x3] %vm104_vm11, %v4116_v55  ;;  %106 = vst.msk [vmem:[#allocation2 + $0xa] sm:$0x3] %vm104_vm11, %v4116_v55  ;;  %v1960_v50 = vstv %s3797_s23  ;;  %s3819_s23 = sld [smem:[#allocation12 + $0x1e]] }
 0x26e   :  { %102 = vst.msk [vmem:[#allocation2 + $0xc] sm:$0x3] %vm99_vm10, %v4116_v55  ;;  %103 = vst.msk [vmem:[#allocation2 + $0x12] sm:$0x3] %vm99_vm10, %v4116_v55  ;;  %vm580_vm10 = vcmask 154624  }
 0x26f   :  { %v1835_v58 = vmul.f32 %v1834_v1, %v1834_v1  ;;  %107 = vst.msk [vmem:[#allocation2 + $0x10] sm:$0x3] %vm104_vm11, %v4116_v55  ;;  %108 = vst.msk [vmem:[#allocation2 + $0x16] sm:$0x3] %vm104_vm11, %v4116_v55 }
 0x270   :  { %vm5138_vm11 = vmor %vm586_vm15, %vm585_vm14 }
 0x271   :  { %v1837_v56 = vcombine.high %v1835_v58, %v1835_v58  ;;  %v1844_v18 = vrot.slane %v1835_v58, %v4801_v59 }
 0x273   :  { %v1851_v44 = vrot.slane %v1837_v56, %v4801_v59  ;;  %v1852_v12 = vcombine.high %v1844_v18, %v1844_v18  ;;  %v1856_v28 = vsel %vm513_vm8, %v1844_v18, 0.0 }
 0x275   :  { %v1857_v52 = vsel %vm513_vm8, %v1852_v12, 0.0  ;;  %v1859_v45 = vsel %vm517_vm9, %v1851_v44, 0.0  ;;  %v1985_v44 = vstv %s3800_s1  ;;  %v1975_v12 = vstv %s3799_s24  ;;  %s3822_s1 = sld [smem:[#allocation12 + $0x21]] }
 0x276   :  { %v1858_v19 = vadd.f32 %v1857_v52, %v1856_v28  ;;  %s3821_s24 = sld [smem:[#allocation12 + $0x20]] }
 0x278   :  { %v1860_v26 = vadd.f32 %v1859_v45, %v1858_v19  ;;  %v2005_v45 = vstv %s3802_s4  ;;  %s3824_s4 = sld [smem:[#allocation12 + $0x23]] }
 0x27a   :  { %1861 = vadd.xlane.f32.xlu0 %v1860_v26  ;;  %v1995_v26 = vstv %s3801_s5  ;;  %s3823_s5 = sld [smem:[#allocation12 + $0x22]] }
 0x29d   :  { %v561_v51 = vpop.xlane.xlu1 %560 }
 0x29e   :  { %v562_v7 = vmul.f32 0.00390625, %v561_v51 }
 0x2a0   :  { %v563_v20 = vadd.f32 1e-05, %v562_v7  ;;  %v2025_v7 = vstv %s3804_s25  ;;  %s3826_s25 = sld [smem:[#allocation12 + $0x25]] }
 0x2a2   :  { %3957 = vrsqrt.f32 %v563_v20  ;;  %v2015_v20 = vstv %s3803_s26  ;;  %s3863_s26 = sld [smem:[#allocation12 + $0x49]] }
 0x2af   :  { %v3958_v41 = vpop.eup %3957 }
 0x2b0   :  { %v572_v54 = vrot.slane %v3958_v41, %v5082_v23 }
 0x2b2   :  { %v574_v31 = vmul.f32 %v572_v54, %v5087_v29 }
 0x2b4   :  { %v575_v38 = vmax.f32 %v574_v31, 0.0  ;;  %v2045_v31 = vstv %s3806_s27  ;;  %s5218_s27 = sld [smem:[#allocation12]] }
 0x2b6   :  { %577 = vrot.lane.b32.xlu1 %v575_v38, %s4117_s11  ;;  %v2035_v38 = vstv %s3805_s28  ;;  %s5222_s28 = sld [smem:[#allocation12 + $0x6d]] }
 0x2cc   :  { %v998_v39 = vpop.xlane.xlu0 %997 }
 0x2cd   :  { %v999_v35 = vmul.f32 0.00390625, %v998_v39 }
 0x2cf   :  { %v1000_v62 = vadd.f32 1e-05, %v999_v35 }
 0x2d1   :  { %3959 = vrsqrt.f32 %v1000_v62 }
 0x2de   :  { %v3960_v13 = vpop.eup %3959 }
 0x2df   :  { %v1009_v49 = vrot.slane %v3960_v13, %v5082_v23 }
 0x2e1   :  { %v1011_v57 = vmul.f32 %v1009_v49, %v5099_v61 }
 0x2e3   :  { %v1012_v27 = vmax.f32 %v1011_v57, 0.0  ;;  %v2070_v57 = vstv %s3809_s30  ;;  %s5224_s30 = sld [smem:[#allocation12 + $0x26]] }
 0x2e5   :  { %1014 = vrot.lane.b32.xlu0 %v1012_v27, %s4117_s11  ;;  %v2060_v27 = vstv %s3808_s7  ;;  %s5228_s7 = sld [smem:[#allocation12 + $0x4a]] }
 0x2f1   :  { %v1430_v48 = vpop.xlane.xlu0 %1429 }
 0x2f2   :  { %v1431_v53 = vmul.f32 0.00390625, %v1430_v48 }
 0x2f4   :  { %v1432_v3 = vadd.f32 1e-05, %v1431_v53 }
 0x2f6   :  { %3961 = vrsqrt.f32 %v1432_v3 }
 0x303   :  { %v3962_v29 = vpop.eup %3961  ;;  %v1862_v15 = vpop.xlane.xlu0 %1861 }
 0x304   :  { %v1863_v40 = vmul.f32 0.00390625, %v1862_v15  ;;  %v1441_v43 = vrot.slane %v3962_v29, %v5082_v23  ;;  %v2090_v29 = vstv %s3811_s8  ;;  %s5236_s8 = sld [smem:[#allocation12 + $0x6e]] }
 0x306   :  { %v1864_v6 = vadd.f32 1e-05, %v1863_v40  ;;  %v1443_v9 = vmul.f32 %v1441_v43, %v5111_v10  ;;  %v1890_v10 = vstv %s3790_s15  ;;  %s3812_s15 = sld [smem:[#allocation12 + $0x17]] }
 0x308   :  { %3963 = vrsqrt.f32 %v1864_v6  ;;  %v1444_v63 = vmax.f32 %v1443_v9, 0.0  ;;  %v2110_v6 = vstv %s3813_s12  ;;  %s5249_s12 = sld [smem:[#allocation12 + $0x4b]] }
 0x30a   :  { %1446 = vrot.lane.b32.xlu1 %v1444_v63, %s4117_s11 }
 0x30c   :  { %v2100_v9 = vstv %s3812_s15  ;;  %s5258_s15 = sld [smem:[#allocation12 + $0x6f]] }
 0x315   :  { %v3964_v11 = vpop.eup %3963 }
 0x316   :  { %v1873_v61 = vrot.slane %v3964_v11, %v5082_v23 }
 0x318   :  { %v1875_v60 = vmul.f32 %v1873_v61, %v1834_v1 }
 0x31a   :  { %v1876_v47 = vmax.f32 %v1875_v60, 0.0 }
 0x31c   :  { %1878 = vrot.lane.b32.xlu1 %v1876_v47, %s4117_s11  ;;  %s3810_s11 = sld [smem:[#allocation12 + $0x15]] }
 0x322   :  { %v2080_v15 = vstv %s3810_s11  ;;  %s5240_s11 = sld [smem:[#allocation12 + $0x27]] }
 0x328   :  { %v578_v17 = vpop.permute.xlu1 %577 }
 0x329   :  { %v579_v4 = vrot.slane %v578_v17, 6 }
 0x32b   :  { %v581_v34 = vsel %vm580_vm10, %v579_v4, %v578_v17  ;;  %v2130_v17 = vstv %s3815_s16  ;;  %v2120_v4 = vstv %s3814_s17  ;;  %s5261_s16 = sld [smem:[#allocation12 + $0x28]] }
 0x32c   :  { %588 = vst.msk [vmem:[#allocation2] sm:$0x3f] %vm5138_vm11, %v581_v34  ;;  %s5268_s17 = sld [smem:[#allocation12 + $0x9]] }
 0x333   :  { %v5145_v21 = vld [vmem:[#allocation2] sm:$0x3f] }
 0x334   :  { %v1911_v0 = vmul.f32 %v1910_v32, %v5145_v21  ;;  %v1891_v46 = vmul.f32 %v1890_v10, %v5145_v21  ;;  %v1931_v22 = vmul.f32 %v1930_v16, %v5145_v21  ;;  %v1901_v8 = vmul.f32 %v1900_v25, %v5145_v21 }
 0x335   :  { %v1951_v33 = vmul.f32 %v1950_v24, %v5145_v21  ;;  %v1921_v36 = vmul.f32 %v1920_v42, %v5145_v21  ;;  %v1941_v5 = vmul.f32 %v1940_v2, %v5145_v21  ;;  %v1961_v1 = vmul.f32 %v1960_v50, %v5145_v21 }
 0x336   :  { %1913 = vrot.lane.b32.xlu0 %v1911_v0, %s4106_s9  ;;  %1893 = vrot.lane.b32.xlu1 %v1891_v46, %s4107_s10  ;;  %v2155_v10 = vstv %s3818_s18  ;;  %v2145_v0 = vstv %s3817_s21  ;;  %s5272_s18 = sld [smem:[#allocation12 + $0x4c]] }
 0x337   :  { %v2175_v25 = vstv %s3820_s22  ;;  %v2195_v42 = vstv %s3822_s1  ;;  %v2205_v50 = vstv %s3823_s5  ;;  %s5275_s21 = sld [smem:[#allocation12 + $0x70]] }
 0x338   :  { %s5283_s22 = sld [smem:[#allocation12 + $0x29]] }
 0x339   :  { %s3904_s1 = sld [smem:[#allocation12 + $0x71]] }
 0x33a   :  { %1933 = vrot.lane.b32.xlu0 %v1931_v22, %s4111_s2  ;;  %1903 = vrot.lane.b32.xlu1 %v1901_v8, %s4109_s14  ;;  %v2165_v22 = vstv %s3819_s23  ;;  %s5287_s23 = sld [smem:[#allocation12 + $0x4d]] }
 0x33b   :  { %s3905_s5 = sld [smem:[#allocation12 + $0x72]] }
 0x33e   :  { %1953 = vrot.lane.b32.xlu0 %v1951_v33, %s4113_s20  ;;  %1923 = vrot.lane.b32.xlu1 %v1921_v36, %s4108_s13  ;;  %v2185_v33 = vstv %s3821_s24  ;;  %s3831_s24 = sld [smem:[#allocation12 + $0x2a]] }
 0x342   :  { %1943 = vrot.lane.b32.xlu1 %v1941_v5, %s4110_s0  ;;  %v2215_v5 = vstv %s3824_s4  ;;  %s3868_s4 = sld [smem:[#allocation12 + $0x4e]] }
 0x346   :  { %1963 = vrot.lane.b32.xlu1 %v1961_v1, %s4112_s19 }
 0x357   :  { %v1015_v58 = vpop.permute.xlu0 %1014 }
 0x358   :  { %v1016_v56 = vrot.slane %v1015_v58, 6 }
 0x35a   :  { %v1017_v18 = vsel %vm580_vm10, %v1016_v56, %v1015_v58  ;;  %v5232_v56 = vld [vmem:[#allocation2] sm:$0x3f] }
 0x35b   :  { %1020 = vst.msk [vmem:[#allocation2 + $0x6] sm:$0x3f] %vm5138_vm11, %v1017_v18  ;;  %v2326_v18 = vstv %s3826_s25  ;;  %s3832_s25 = sld [smem:[#allocation12 + $0x2b]] }
 0x362   :  { %v5166_v28 = vld [vmem:[#allocation2 + $0x6] sm:$0x3f] }
 0x363   :  { %v1986_v52 = vmul.f32 %v1985_v44, %v5166_v28  ;;  %v1976_v19 = vmul.f32 %v1975_v12, %v5166_v28  ;;  %v2006_v55 = vmul.f32 %v2005_v45, %v5166_v28  ;;  %v1996_v51 = vmul.f32 %v1995_v26, %v5166_v28  ;;  %v5234_v44 = vld [vmem:[#allocation2] sm:$0x3f] }
 0x364   :  { %v2026_v41 = vmul.f32 %v2025_v7, %v5166_v28  ;;  %v2016_v54 = vmul.f32 %v2015_v20, %v5166_v28  ;;  %v2046_v39 = vmul.f32 %v2045_v31, %v5166_v28  ;;  %v2036_v35 = vmul.f32 %v2035_v38, %v5166_v28  ;;  %v5245_v7 = vld [vmem:[#allocation2] sm:$0x3f] }
 0x365   :  { %1988 = vrot.lane.b32.xlu1 %v1986_v52, %s4109_s14  ;;  %1978 = vrot.lane.b32.xlu0 %v1976_v19, %s4107_s10  ;;  %v2760_v12 = vstv %s3863_s26  ;;  %v1887_v45 = vstv %s5218_s27  ;;  %s3869_s26 = sld [smem:[#allocation12 + $0x4f]] }
 0x366   :  { %v3194_v20 = vstv %s5222_s28  ;;  %v1888_v31 = vmul.f32 %v1887_v45, %v5145_v21  ;;  %s3906_s27 = sld [smem:[#allocation12 + $0x73]] }
 0x367   :  { %s3833_s28 = sld [smem:[#allocation12 + $0x2c]] }
 0x369   :  { %2008 = vrot.lane.b32.xlu1 %v2006_v55, %s4108_s13  ;;  %1998 = vrot.lane.b32.xlu0 %v1996_v51, %s4106_s9  ;;  %v2327_v55 = vmul.f32 %v2326_v18, %v5232_v56  ;;  %v2761_v51 = vmul.f32 %v2760_v12, %v5234_v44  ;;  %v3224_v18 = vstv %s5275_s21  ;;  %s5353_s21 = sld [smem:[#allocation12 + $0x54]] }
 0x36d   :  { %2028 = vrot.lane.b32.xlu1 %v2026_v41, %s4110_s0  ;;  %2018 = vrot.lane.b32.xlu0 %v2016_v54, %s4111_s2  ;;  %v2336_v41 = vstv %s5224_s30  ;;  %s3870_s30 = sld [smem:[#allocation12 + $0x50]] }
 0x371   :  { %2048 = vrot.lane.b32.xlu1 %v2046_v39, %s4112_s19  ;;  %2038 = vrot.lane.b32.xlu0 %v2036_v35, %s4113_s20  ;;  %v2770_v35 = vstv %s5228_s7  ;;  %s3907_s7 = sld [smem:[#allocation12 + $0x74]] }
 0x37c   :  { %v1447_v62 = vpop.permute.xlu1 %1446 }
 0x37d   :  { %v1448_v13 = vrot.slane %v1447_v62, 6 }
 0x37f   :  { %v1449_v49 = vsel %vm580_vm10, %v1448_v13, %v1447_v62 }
 0x380   :  { %1452 = vst.msk [vmem:[#allocation2 + $0xc] sm:$0x3f] %vm5138_vm11, %v1449_v49  ;;  %v3195_v49 = vmul.f32 %v3194_v20, %v5245_v7 }
 0x387   :  { %v5187_v48 = vld [vmem:[#allocation2 + $0xc] sm:$0x3f] }
 0x388   :  { %v2071_v53 = vmul.f32 %v2070_v57, %v5187_v48  ;;  %v2061_v3 = vmul.f32 %v2060_v27, %v5187_v48  ;;  %v2091_v40 = vmul.f32 %v2090_v29, %v5187_v48  ;;  %v2081_v43 = vmul.f32 %v2080_v15, %v5187_v48 }
 0x389   :  { %v2111_v61 = vmul.f32 %v2110_v6, %v5187_v48  ;;  %v2101_v60 = vmul.f32 %v2100_v9, %v5187_v48  ;;  %v2131_v34 = vmul.f32 %v2130_v17, %v5187_v48  ;;  %v2121_v32 = vmul.f32 %v2120_v4, %v5187_v48 }
 0x38a   :  { %2073 = vrot.lane.b32.xlu1 %v2071_v53, %s4109_s14  ;;  %2063 = vrot.lane.b32.xlu0 %v2061_v3, %s4107_s10  ;;  %v2337_v57 = vmul.f32 %v2336_v41, %v5232_v56  ;;  %v3204_v53 = vstv %s5236_s8  ;;  %v2771_v15 = vmul.f32 %v2770_v35, %v5234_v44  ;;  %v2810_v35 = vstv %s3868_s4  ;;  %s3835_s8 = sld [smem:[#allocation12 + $0x2e]] }
 0x38b   :  { %s5379_s4 = sld [smem:[#allocation12 + $0x79]] }
 0x38e   :  { %v1879_v63 = vpop.permute.xlu1 %1878  ;;  %2093 = vrot.lane.b32.xlu1 %v2091_v40, %s4108_s13  ;;  %2083 = vrot.lane.b32.xlu0 %v2081_v43, %s4106_s9  ;;  %v2346_v40 = vstv %s5240_s11  ;;  %s3872_s11 = sld [smem:[#allocation12 + $0x52]] }
 0x38f   :  { %v1880_v11 = vrot.slane %v1879_v63, 6 }
 0x391   :  { %v1881_v47 = vsel %vm580_vm10, %v1880_v11, %v1879_v63  ;;  %v3205_v63 = vmul.f32 %v3204_v53, %v5245_v7 }
 0x392   :  { %1884 = vst.msk [vmem:[#allocation2 + $0x12] sm:$0x3f] %vm5138_vm11, %v1881_v47  ;;  %2113 = vrot.lane.b32.xlu1 %v2111_v61, %s4110_s0  ;;  %2103 = vrot.lane.b32.xlu0 %v2101_v60, %s4111_s2  ;;  %v2780_v60 = vstv %s5249_s12  ;;  %s5326_s12 = sld [smem:[#allocation12 + $0x76]] }
 0x396   :  { %2133 = vrot.lane.b32.xlu1 %v2131_v34, %s4112_s19  ;;  %2123 = vrot.lane.b32.xlu0 %v2121_v32, %s4113_s20  ;;  %v2347_v34 = vmul.f32 %v2346_v40, %v5232_v56 }
 0x399   :  { %v5208_v14 = vld [vmem:[#allocation2 + $0x12] sm:$0x3f] }
 0x39a   :  { %v2156_v46 = vmul.f32 %v2155_v10, %v5208_v14  ;;  %v2146_v16 = vmul.f32 %v2145_v0, %v5208_v14  ;;  %v2176_v8 = vmul.f32 %v2175_v25, %v5208_v14  ;;  %v2166_v24 = vmul.f32 %v2165_v22, %v5208_v14 }
 0x39b   :  { %v2196_v36 = vmul.f32 %v2195_v42, %v5208_v14  ;;  %v2186_v2 = vmul.f32 %v2185_v33, %v5208_v14  ;;  %v2216_v1 = vmul.f32 %v2215_v5, %v5208_v14  ;;  %v2206_v58 = vmul.f32 %v2205_v50, %v5208_v14 }
 0x39c   :  { %2158 = vrot.lane.b32.xlu1 %v2156_v46, %s4109_s14  ;;  %2148 = vrot.lane.b32.xlu0 %v2146_v16, %s4107_s10  ;;  %v2781_v46 = vmul.f32 %v2780_v60, %v5234_v44  ;;  %v3214_v25 = vstv %s5258_s15  ;;  %v2356_v22 = vstv %s5261_s16  ;;  %s5328_s15 = sld [smem:[#allocation12 + $0x2f]]  ;;  %v5336_v60 = vld [vmem:[#allocation2 + $0x6] sm:$0x3f] }
 0x39d   :  { %v1971_v33 = vstv %s5268_s17  ;;  %v3215_v5 = vmul.f32 %v3214_v25, %v5245_v7  ;;  %v2357_v50 = vmul.f32 %v2356_v22, %v5232_v56  ;;  %s5334_s16 = sld [smem:[#allocation12 + $0x53]] }
 0x39e   :  { %s5340_s17 = sld [smem:[#allocation12 + $0x77]] }
 0x3a0   :  { %2178 = vrot.lane.b32.xlu1 %v2176_v8, %s4108_s13  ;;  %2168 = vrot.lane.b32.xlu0 %v2166_v24, %s4106_s9 }
 0x3a4   :  { %2198 = vrot.lane.b32.xlu1 %v2196_v36, %s4110_s0  ;;  %2188 = vrot.lane.b32.xlu0 %v2186_v2, %s4111_s2 }
 0x3a8   :  { %2218 = vrot.lane.b32.xlu1 %v2216_v1, %s4112_s19  ;;  %2208 = vrot.lane.b32.xlu0 %v2206_v58, %s4113_s20  ;;  %v1894_v52 = vpop.permute.xlu1 %1893  ;;  %v1914_v19 = vpop.permute.xlu0 %1913  ;;  %v2790_v58 = vstv %s5272_s18  ;;  %s5347_s18 = sld [smem:[#allocation12 + $0x30]] }
 0x3a9   :  { %v1895_v26 = vrot.slane %v1894_v52, 2  ;;  %v1915_v62 = vrot.slane %v1914_v19, 2  ;;  %v2791_v45 = vmul.f32 %v2790_v58, %v5234_v44 }
 0x3ab   :  { %v1896_v54 = vsel %vm120_vm0, %v1894_v52, %v1895_v26  ;;  %v1916_v43 = vsel %vm142_vm2, %v1914_v19, %v1915_v62  ;;  %v1972_v19 = vmul.f32 %v1971_v33, %v5166_v28  ;;  %v3225_v26 = vmul.f32 %v3224_v18, %v5245_v7 }
 0x3ac   :  { %2329 = vrot.lane.b32.xlu1 %v2327_v55, %s4107_s10  ;;  %2763 = vrot.lane.b32.xlu0 %v2761_v51, %s4107_s10  ;;  %v1904_v38 = vpop.permute.xlu1 %1903  ;;  %v1934_v39 = vpop.permute.xlu0 %1933  ;;  %v1898_v27 = vadd.f32 %v1896_v54, %v1888_v31  ;;  %v2366_v55 = vstv %s5283_s22  ;;  %v2800_v51 = vstv %s5287_s23  ;;  %s5358_s22 = sld [smem:[#allocation12 + $0x78]] }
 0x3ad   :  { %v1905_v13 = vrot.slane %v1904_v38, 2  ;;  %v1935_v6 = vrot.slane %v1934_v39, 2  ;;  %v2367_v41 = vmul.f32 %v2366_v55, %v5232_v56  ;;  %v2801_v54 = vmul.f32 %v2800_v51, %v5234_v44  ;;  %s5363_s23 = sld [smem:[#allocation12 + $0x12]] }
 0x3ae   :  { %v3234_v31 = vstv %s3904_s1  ;;  %v2376_v28 = vstv %s3831_s24  ;;  %v3244_v62 = vstv %s3905_s5  ;;  %s5367_s1 = sld [smem:[#allocation12 + $0x31]] }
 0x3af   :  { %v1906_v3 = vsel %vm131_vm1, %v1904_v38, %v1905_v13  ;;  %v1936_v32 = vsel %vm164_vm4, %v1934_v39, %v1935_v6  ;;  %v3235_v38 = vmul.f32 %v3234_v31, %v5245_v7  ;;  %v2377_v39 = vmul.f32 %v2376_v28, %v5232_v56  ;;  %s5375_s24 = sld [smem:[#allocation12 + $0x55]] }
 0x3b0   :  { %3197 = vrot.lane.b32.xlu1 %v3195_v49, %s4107_s10  ;;  %2339 = vrot.lane.b32.xlu0 %v2337_v57, %s4109_s14  ;;  %v1908_v21 = vadd.f32 %v1906_v3, %v1898_v27  ;;  %v1924_v29 = vpop.permute.xlu1 %1923  ;;  %v1954_v61 = vpop.permute.xlu0 %1953  ;;  %v2811_v13 = vmul.f32 %v2810_v35, %v5234_v44  ;;  %v3245_v49 = vmul.f32 %v3244_v62, %v5245_v7  ;;  %v2386_v57 = vstv %s3832_s25  ;;  %s3839_s5 = sld [smem:[#allocation12 + $0x32]] }
 0x3b1   :  { %v1925_v9 = vrot.slane %v1924_v29, 2  ;;  %v1955_v10 = vrot.slane %v1954_v61, 2  ;;  %v2820_v27 = vstv %s3869_s26  ;;  %v2387_v53 = vmul.f32 %v2386_v57, %v5232_v56  ;;  %s3876_s25 = sld [smem:[#allocation12 + $0x56]] }
 0x3b2   :  { %v1918_v11 = vadd.f32 %v1916_v43, %v1908_v21  ;;  %v2821_v3 = vmul.f32 %v2820_v27, %v5234_v44  ;;  %v3254_v21 = vstv %s3906_s27  ;;  %v2830_v43 = vstv %s3870_s30  ;;  %s3913_s26 = sld [smem:[#allocation12 + $0x7a]] }
 0x3b3   :  { %v1926_v47 = vsel %vm153_vm3, %v1924_v29, %v1925_v9  ;;  %v1956_v36 = vsel %vm186_vm6, %v1954_v61, %v1955_v10  ;;  %v2396_v29 = vstv %s3833_s28  ;;  %v3264_v6 = vstv %s3907_s7  ;;  %s3840_s27 = sld [smem:[#allocation12 + $0x33]] }
 0x3b4   :  { %2773 = vrot.lane.b32.xlu1 %v2771_v15, %s4109_s14  ;;  %3207 = vrot.lane.b32.xlu0 %v3205_v63, %s4109_s14  ;;  %v1928_v17 = vadd.f32 %v1926_v47, %v1918_v11  ;;  %v1944_v4 = vpop.permute.xlu1 %1943  ;;  %v3255_v15 = vmul.f32 %v3254_v21, %v5245_v7  ;;  %v2397_v40 = vmul.f32 %v2396_v29, %v5232_v56  ;;  %v2411_v47 = vstv %s3835_s8  ;;  %s3877_s28 = sld [smem:[#allocation12 + $0x57]] }
 0x3b5   :  { %v1945_v0 = vrot.slane %v1944_v4, 2  ;;  %v2831_v9 = vmul.f32 %v2830_v43, %v5234_v44  ;;  %v3265_v63 = vmul.f32 %v3264_v6, %v5245_v7  ;;  %v2431_v35 = vstv %s5347_s18  ;;  %s3914_s30 = sld [smem:[#allocation12 + $0x7b]] }
 0x3b6   :  { %v1938_v16 = vadd.f32 %v1936_v32, %v1928_v17  ;;  %v5338_v17 = vld [vmem:[#allocation2 + $0x6] sm:$0x3f]  ;;  %v2865_v62 = vstv %s5353_s21  ;;  %v2056_v29 = vstv %s5363_s23  ;;  %v2441_v43 = vstv %s5367_s1  ;;  %s3841_s7 = sld [smem:[#allocation12 + $0x34]] }
 0x3b7   :  { %v1946_v8 = vsel %vm175_vm5, %v1944_v4, %v1945_v0  ;;  %v2845_v4 = vstv %s3872_s11  ;;  %v2412_v0 = vmul.f32 %v2411_v47, %v5336_v60  ;;  %v2866_v21 = vmul.f32 %v2865_v62, %v5338_v17  ;;  %s3878_s8 = sld [smem:[#allocation12 + $0x58]] }
 0x3b8   :  { %2349 = vrot.lane.b32.xlu1 %v2347_v34, %s4106_s9  ;;  %2783 = vrot.lane.b32.xlu0 %v2781_v46, %s4106_s9  ;;  %v1948_v24 = vadd.f32 %v1946_v8, %v1938_v16  ;;  %v1964_v42 = vpop.permute.xlu1 %1963  ;;  %v2846_v46 = vmul.f32 %v2845_v4, %v5338_v17  ;;  %v5349_v8 = vld [vmem:[#allocation2 + $0x6] sm:$0x3f]  ;;  %v2875_v47 = vstv %s5375_s24  ;;  %v3309_v4 = vstv %s5379_s4  ;;  %s5410_s11 = sld [smem:[#allocation12 + $0x7c]] }
 0x3b9   :  { %v1965_v2 = vrot.slane %v1964_v42, 2  ;;  %s5431_s18 = sld [smem:[#allocation12 + $0x5b]] }
 0x3ba   :  { %v1958_v1 = vadd.f32 %v1956_v36, %v1948_v24  ;;  %v3279_v24 = vstv %s5326_s12  ;;  %s5412_s12 = sld [smem:[#allocation12 + $0x35]] }
 0x3bb   :  { %v1966_v12 = vsel %vm197_vm7, %v1964_v42, %v1965_v2  ;;  %v2421_v42 = vstv %s5328_s15  ;;  %s5418_s15 = sld [smem:[#allocation12 + $0x59]] }
 0x3bc   :  { %3217 = vrot.lane.b32.xlu1 %v3215_v5, %s4106_s9  ;;  %2359 = vrot.lane.b32.xlu0 %v2357_v50, %s4108_s13  ;;  %v1968_v52 = vadd.f32 %v1966_v12, %v1958_v1  ;;  %v3280_v1 = vmul.f32 %v3279_v24, %v5349_v8  ;;  %v2422_v58 = vmul.f32 %v2421_v42, %v5336_v60  ;;  %s5436_s21 = sld [smem:[#allocation12 + $0x7f]] }
 0x3bd   :  { %s5445_s23 = sld [smem:[#allocation12 + $0x1b]] }
 0x3be   :  { %v1973_v20 = vadd.f32 %v1972_v19, %v1968_v52  ;;  %v2855_v19 = vstv %s5334_s16  ;;  %s5420_s16 = sld [smem:[#allocation12 + $0x7d]] }
 0x3bf   :  { %s5452_s1 = sld [smem:[#allocation12 + $0x5c]] }
 0x3c0   :  { %2793 = vrot.lane.b32.xlu1 %v2791_v45, %s4108_s13  ;;  %3227 = vrot.lane.b32.xlu0 %v3225_v26, %s4108_s13  ;;  %v3289_v45 = vstv %s5340_s17  ;;  %s5426_s17 = sld [smem:[#allocation12 + $0x37]] }
 0x3c1   :  { %v3290_v31 = vmul.f32 %v3289_v45, %v5349_v8  ;;  %s5461_s24 = sld [smem:[#allocation12 + $0x80]] }
 0x3c2   :  { %s5468_s4 = sld [smem:[#allocation12 + $0x39]] }
 0x3c4   :  { %2369 = vrot.lane.b32.xlu1 %v2367_v41, %s4111_s2  ;;  %2803 = vrot.lane.b32.xlu0 %v2801_v54, %s4111_s2  ;;  %v2856_v54 = vmul.f32 %v2855_v19, %v5338_v17 }
 0x3c8   :  { %3237 = vrot.lane.b32.xlu1 %v3235_v38, %s4111_s2  ;;  %2379 = vrot.lane.b32.xlu0 %v2377_v39, %s4110_s0 }
 0x3cc   :  { %2813 = vrot.lane.b32.xlu1 %v2811_v13, %s4110_s0  ;;  %3247 = vrot.lane.b32.xlu0 %v3245_v49, %s4110_s0 }
 0x3d0   :  { %2389 = vrot.lane.b32.xlu1 %v2387_v53, %s4113_s20  ;;  %2823 = vrot.lane.b32.xlu0 %v2821_v3, %s4113_s20  ;;  %v2432_v3 = vmul.f32 %v2431_v35, %v5336_v60 }
 0x3d4   :  { %3257 = vrot.lane.b32.xlu1 %v3255_v15, %s4113_s20  ;;  %2399 = vrot.lane.b32.xlu0 %v2397_v40, %s4112_s19  ;;  %v3299_v40 = vstv %s5358_s22  ;;  %s5440_s22 = sld [smem:[#allocation12 + $0x38]] }
 0x3d7   :  { %v1989_v11 = vpop.permute.xlu1 %1988  ;;  %v1979_v61 = vpop.permute.xlu0 %1978 }
 0x3d8   :  { %2833 = vrot.lane.b32.xlu1 %v2831_v9, %s4112_s19  ;;  %v1990_v34 = vrot.slane %v1989_v11, 2  ;;  %3267 = vrot.lane.b32.xlu0 %v3265_v63, %s4112_s19  ;;  %v1980_v32 = vrot.slane %v1979_v61, 2  ;;  %v2057_v63 = vmul.f32 %v2056_v29, %v5187_v48  ;;  %v2885_v48 = vstv %s3876_s25  ;;  %s3920_s25 = sld [smem:[#allocation12 + $0x81]] }
 0x3da   :  { %v1981_v10 = vsel %vm120_vm0, %v1979_v61, %v1980_v32  ;;  %v1991_v33 = vsel %vm131_vm1, %v1989_v11, %v1990_v34  ;;  %v3300_v11 = vmul.f32 %v3299_v40, %v5349_v8  ;;  %v2442_v61 = vmul.f32 %v2441_v43, %v5336_v60 }
 0x3db   :  { %v1983_v16 = vadd.f32 %v1981_v10, %v1973_v20  ;;  %v2009_v25 = vpop.permute.xlu1 %2008  ;;  %v1999_v22 = vpop.permute.xlu0 %1998  ;;  %v2876_v32 = vmul.f32 %v2875_v47, %v5338_v17  ;;  %v3310_v10 = vmul.f32 %v3309_v4, %v5349_v8  ;;  %v2930_v47 = vstv %s5431_s18  ;;  %s5539_s18 = sld [smem:[#allocation12 + $0x6c]] }
 0x3dc   :  { %2414 = vrot.lane.b32.xlu1 %v2412_v0, %s4107_s10  ;;  %v2010_v36 = vrot.slane %v2009_v25, 2  ;;  %2848 = vrot.lane.b32.xlu0 %v2846_v46, %s4107_s10  ;;  %v2000_v2 = vrot.slane %v1999_v22, 2  ;;  %v2451_v0 = vstv %s3839_s5  ;;  %s5476_s5 = sld [smem:[#allocation12 + $0x5d]] }
 0x3dd   :  { %v1993_v5 = vadd.f32 %v1991_v33, %v1983_v16  ;;  %v2452_v46 = vmul.f32 %v2451_v0, %v5336_v60  ;;  %v2886_v16 = vmul.f32 %v2885_v48, %v5338_v17  ;;  %v2895_v33 = vstv %s3877_s28  ;;  %s3921_s28 = sld [smem:[#allocation12 + $0x82]] }
 0x3de   :  { %v2001_v50 = vsel %vm142_vm2, %v1999_v22, %v2000_v2  ;;  %v2011_v26 = vsel %vm153_vm3, %v2009_v25, %v2010_v36  ;;  %v3319_v25 = vstv %s3913_s26  ;;  %v2461_v22 = vstv %s3840_s27  ;;  %s3847_s26 = sld [smem:[#allocation12 + $0x3a]] }
 0x3df   :  { %v2003_v18 = vadd.f32 %v2001_v50, %v1993_v5  ;;  %v2029_v12 = vpop.permute.xlu1 %2028  ;;  %v2019_v52 = vpop.permute.xlu0 %2018  ;;  %v3320_v24 = vmul.f32 %v3319_v25, %v5349_v8  ;;  %v2462_v42 = vmul.f32 %v2461_v22, %v5336_v60  ;;  %v3329_v36 = vstv %s3914_s30  ;;  %s3884_s27 = sld [smem:[#allocation12 + $0x5e]] }
 0x3e0   :  { %3282 = vrot.lane.b32.xlu1 %v3280_v1, %s4107_s10  ;;  %v2030_v55 = vrot.slane %v2029_v12, 2  ;;  %2424 = vrot.lane.b32.xlu0 %v2422_v58, %s4109_s14  ;;  %v2020_v51 = vrot.slane %v2019_v52, 2  ;;  %v2896_v2 = vmul.f32 %v2895_v33, %v5338_v17  ;;  %v3330_v5 = vmul.f32 %v3329_v36, %v5349_v8  ;;  %s5510_s30 = sld [smem:[#allocation12 + $0x3b]] }
 0x3e1   :  { %v2013_v20 = vadd.f32 %v2011_v26, %v2003_v18  ;;  %v2471_v50 = vstv %s3841_s7  ;;  %v2905_v1 = vstv %s3878_s8  ;;  %v3364_v33 = vstv %s5436_s21  ;;  %s3885_s7 = sld [smem:[#allocation12 + $0x5f]] }
 0x3e2   :  { %v2021_v41 = vsel %vm164_vm4, %v2019_v52, %v2020_v51  ;;  %v2031_v13 = vsel %vm175_vm5, %v2029_v12, %v2030_v55  ;;  %v2472_v19 = vmul.f32 %v2471_v50, %v5336_v60  ;;  %v2906_v45 = vmul.f32 %v2905_v1, %v5338_v17  ;;  %s5520_s8 = sld [smem:[#allocation12 + $0x83]] }
 0x3e3   :  { %v2023_v28 = vadd.f32 %v2021_v41, %v2013_v20  ;;  %v2049_v38 = vpop.permute.xlu1 %2048  ;;  %v2039_v39 = vpop.permute.xlu0 %2038  ;;  %v3339_v55 = vstv %s5410_s11  ;;  %v2481_v51 = vstv %s5412_s12  ;;  %v2506_v36 = vstv %s5440_s22  ;;  %s5522_s11 = sld [smem:[#allocation12 + $0x3c]] }
 0x3e4   :  { %2858 = vrot.lane.b32.xlu1 %v2856_v54, %s4109_s14  ;;  %v2050_v49 = vrot.slane %v2049_v38, 2  ;;  %3292 = vrot.lane.b32.xlu0 %v3290_v31, %s4109_s14  ;;  %v2040_v57 = vrot.slane %v2039_v39, 2  ;;  %v3340_v35 = vmul.f32 %v3339_v55, %v5349_v8  ;;  %v2482_v62 = vmul.f32 %v2481_v51, %v5336_v60  ;;  %s5526_s12 = sld [smem:[#allocation12 + $0x24]] }
 0x3e5   :  { %v2033_v27 = vadd.f32 %v2031_v13, %v2023_v28  ;;  %s5541_s21 = sld [smem:[#allocation12 + $0x3d]] }
 0x3e6   :  { %v2041_v53 = vsel %vm186_vm6, %v2039_v39, %v2040_v57  ;;  %v2051_v6 = vsel %vm197_vm7, %v2049_v38, %v2050_v49  ;;  %v2915_v49 = vstv %s5418_s15  ;;  %v3349_v57 = vstv %s5420_s16  ;;  %s5528_s15 = sld [smem:[#allocation12 + $0x48]] }
 0x3e7   :  { %v2043_v15 = vadd.f32 %v2041_v53, %v2033_v27  ;;  %v2916_v43 = vmul.f32 %v2915_v49, %v5338_v17  ;;  %s5532_s16 = sld [smem:[#allocation12 + $0x60]] }
 0x3e8   :  { %2434 = vrot.lane.b32.xlu1 %v2432_v3, %s4106_s9  ;;  %2868 = vrot.lane.b32.xlu0 %v2866_v21, %s4106_s9  ;;  %s5545_s22 = sld [smem:[#allocation12 + $0x61]] }
 0x3e9   :  { %v2053_v9 = vadd.f32 %v2051_v6, %v2043_v15  ;;  %v3350_v6 = vmul.f32 %v3349_v57, %v5349_v8 }
 0x3eb   :  { %v2058_v34 = vadd.f32 %v2057_v63, %v2053_v9  ;;  %v5455_v63 = vld [vmem:[#allocation2 + $0xc] sm:$0x3f] }
 0x3ec   :  { %3302 = vrot.lane.b32.xlu1 %v3300_v11, %s4106_s9  ;;  %2444 = vrot.lane.b32.xlu0 %v2442_v61, %s4108_s13  ;;  %v2496_v11 = vstv %s5426_s17  ;;  %v5458_v61 = vld [vmem:[#allocation2 + $0xc] sm:$0x3f]  ;;  %s5535_s17 = sld [smem:[#allocation12 + $0x84]] }
 0x3ed   :  { %v2931_v25 = vmul.f32 %v2930_v47, %v5458_v61 }
 0x3f0   :  { %2878 = vrot.lane.b32.xlu1 %v2876_v32, %s4108_s13  ;;  %3312 = vrot.lane.b32.xlu0 %v3310_v10, %s4108_s13 }
 0x3f4   :  { %2454 = vrot.lane.b32.xlu1 %v2452_v46, %s4111_s2  ;;  %2888 = vrot.lane.b32.xlu0 %v2886_v16, %s4111_s2  ;;  %v2497_v16 = vmul.f32 %v2496_v11, %v5455_v63 }
 0x3f8   :  { %3322 = vrot.lane.b32.xlu1 %v3320_v24, %s4111_s2  ;;  %2464 = vrot.lane.b32.xlu0 %v2462_v42, %s4110_s0  ;;  %v2141_v24 = vstv %s5445_s23  ;;  %v5472_v42 = vld [vmem:[#allocation2 + $0xc] sm:$0x3f]  ;;  %s5549_s23 = sld [smem:[#allocation12 + $0x85]] }
 0x3fc   :  { %2898 = vrot.lane.b32.xlu1 %v2896_v2, %s4110_s0  ;;  %v2074_v58 = vpop.permute.xlu1 %2073  ;;  %3332 = vrot.lane.b32.xlu0 %v3330_v5, %s4110_s0  ;;  %v2064_v18 = vpop.permute.xlu0 %2063 }
 0x3fd   :  { %v2075_v12 = vrot.slane %v2074_v58, 2  ;;  %v2065_v52 = vrot.slane %v2064_v18, 2 }
 0x3ff   :  { %v2066_v26 = vsel %vm120_vm0, %v2064_v18, %v2065_v52  ;;  %v2076_v31 = vsel %vm131_vm1, %v2074_v58, %v2075_v12  ;;  %v2142_v58 = vmul.f32 %v2141_v24, %v5208_v14  ;;  %v3365_v12 = vmul.f32 %v3364_v33, %v5472_v42 }
 0x400   :  { %v2068_v20 = vadd.f32 %v2066_v26, %v2058_v34  ;;  %2474 = vrot.lane.b32.xlu1 %v2472_v19, %s4113_s20  ;;  %v2094_v41 = vpop.permute.xlu1 %2093  ;;  %2908 = vrot.lane.b32.xlu0 %v2906_v45, %s4113_s20  ;;  %v2084_v54 = vpop.permute.xlu0 %2083  ;;  %v2507_v52 = vmul.f32 %v2506_v36, %v5455_v63  ;;  %v2940_v19 = vstv %s5452_s1  ;;  %v3374_v45 = vstv %s5461_s24  ;;  %s5553_s1 = sld [smem:[#allocation12 + $0x3e]] }
 0x401   :  { %v2095_v28 = vrot.slane %v2094_v41, 2  ;;  %v2085_v38 = vrot.slane %v2084_v54, 2  ;;  %v2941_v51 = vmul.f32 %v2940_v19, %v5458_v61  ;;  %v2980_v24 = vstv %s5532_s16  ;;  %s5570_s24 = sld [smem:[#allocation12 + $0x62]] }
 0x402   :  { %v2078_v39 = vadd.f32 %v2076_v31, %v2068_v20  ;;  %v3375_v20 = vmul.f32 %v3374_v45, %v5472_v42  ;;  %v3414_v33 = vstv %s5535_s17  ;;  %v2757_v36 = vstv %s5528_s15  ;;  %s5645_s15 = sld [smem:[#allocation12 + $0x51]] }
 0x403   :  { %v2086_v13 = vsel %vm142_vm2, %v2084_v54, %v2085_v38  ;;  %v2096_v21 = vsel %vm153_vm3, %v2094_v41, %v2095_v28  ;;  %v2516_v41 = vstv %s5468_s4  ;;  %v2950_v54 = vstv %s5476_s5  ;;  %s5573_s4 = sld [smem:[#allocation12 + $0x86]] }
 0x404   :  { %v2088_v27 = vadd.f32 %v2086_v13, %v2078_v39  ;;  %3342 = vrot.lane.b32.xlu1 %v3340_v35, %s4113_s20  ;;  %v2114_v53 = vpop.permute.xlu1 %2113  ;;  %2484 = vrot.lane.b32.xlu0 %v2482_v62, %s4112_s19  ;;  %v2104_v3 = vpop.permute.xlu0 %2103  ;;  %v2517_v38 = vmul.f32 %v2516_v41, %v5455_v63  ;;  %v2951_v39 = vmul.f32 %v2950_v54, %v5458_v61  ;;  %v3384_v35 = vstv %s3920_s25  ;;  %s5586_s5 = sld [smem:[#allocation12 + $0x40]] }
 0x405   :  { %v2115_v29 = vrot.slane %v2114_v53, 2  ;;  %v2105_v15 = vrot.slane %v2104_v3, 2  ;;  %v2526_v62 = vstv %s3847_s26  ;;  %v3385_v57 = vmul.f32 %v3384_v35, %v5472_v42  ;;  %s5590_s25 = sld [smem:[#allocation12 + $0x64]] }
 0x406   :  { %v2098_v40 = vadd.f32 %v2096_v21, %v2088_v27  ;;  %v2527_v27 = vmul.f32 %v2526_v62, %v5455_v63  ;;  %v2990_v41 = vstv %s5545_s22  ;;  %s5599_s26 = sld [smem:[#allocation12 + $0x88]] }
 0x407   :  { %v2106_v9 = vsel %vm164_vm4, %v2104_v3, %v2105_v15  ;;  %v2116_v10 = vsel %vm175_vm5, %v2114_v53, %v2115_v29  ;;  %v2960_v53 = vstv %s3884_s27  ;;  %v3394_v3 = vstv %s3921_s28  ;;  %s5603_s27 = sld [smem:[#allocation12 + $0x41]] }
 0x408   :  { %v2108_v4 = vadd.f32 %v2106_v9, %v2098_v40  ;;  %2918 = vrot.lane.b32.xlu1 %v2916_v43, %s4112_s19  ;;  %v2134_v34 = vpop.permute.xlu1 %2133  ;;  %3352 = vrot.lane.b32.xlu0 %v3350_v6, %s4112_s19  ;;  %v2124_v32 = vpop.permute.xlu0 %2123  ;;  %v2961_v15 = vmul.f32 %v2960_v53, %v5458_v61  ;;  %v3395_v40 = vmul.f32 %v3394_v3, %v5472_v42  ;;  %v2536_v43 = vstv %s5510_s30  ;;  %s5609_s28 = sld [smem:[#allocation12 + $0x65]] }
 0x409   :  { %v2135_v0 = vrot.slane %v2134_v34, 2  ;;  %v2125_v48 = vrot.slane %v2124_v32, 2  ;;  %v2970_v6 = vstv %s3885_s7  ;;  %v2537_v47 = vmul.f32 %v2536_v43, %v5455_v63  ;;  %s5613_s30 = sld [smem:[#allocation12 + $0x89]] }
 0x40a   :  { %v2118_v46 = vadd.f32 %v2116_v10, %v2108_v4  ;;  %v2971_v4 = vmul.f32 %v2970_v6, %v5458_v61  ;;  %s5627_s7 = sld [smem:[#allocation12 + $0x42]] }
 0x40b   :  { %v2126_v22 = vsel %vm186_vm6, %v2124_v32, %v2125_v48  ;;  %v2136_v5 = vsel %vm197_vm7, %v2134_v34, %v2135_v0  ;;  %v3404_v34 = vstv %s5520_s8  ;;  %v2546_v32 = vstv %s5522_s11  ;;  %s5633_s8 = sld [smem:[#allocation12 + $0x66]] }
 0x40c   :  { %v2128_v2 = vadd.f32 %v2126_v22, %v2118_v46  ;;  %2499 = vrot.lane.b32.xlu1 %v2497_v16, %s4107_s10  ;;  %2933 = vrot.lane.b32.xlu0 %v2931_v25, %s4107_s10  ;;  %v3405_v46 = vmul.f32 %v3404_v34, %v5472_v42  ;;  %v2547_v16 = vmul.f32 %v2546_v32, %v5455_v63  ;;  %v2323_v25 = vstv %s5526_s12  ;;  %s5637_s11 = sld [smem:[#allocation12 + $0x2d]] }
 0x40d   :  { %s5641_s12 = sld [smem:[#allocation12 + $0x8a]] }
 0x40e   :  { %v2138_v50 = vadd.f32 %v2136_v5, %v2128_v2  ;;  %v5481_v1 = vpop.permute.xlu1 %2158  ;;  %v5484_v18 = vpop.permute.xlu0 %2148  ;;  %v3191_v2 = vstv %s5539_s18  ;;  %s5649_s16 = sld [smem:[#allocation12 + $0x43]] }
 0x40f   :  { %s5653_s17 = sld [smem:[#allocation12 + $0x75]] }
 0x410   :  { %v5490_v26 = vadd.f32 %v2142_v58, %v2138_v50  ;;  %3367 = vrot.lane.b32.xlu1 %v3365_v12, %s4107_s10  ;;  %2509 = vrot.lane.b32.xlu0 %v2507_v52, %s4109_s14  ;;  %v2556_v12 = vstv %s5541_s21  ;;  %v2324_v52 = vmul.f32 %v2323_v25, %v5232_v56  ;;  %v2758_v56 = vmul.f32 %v2757_v36, %v5234_v44  ;;  %s5657_s18 = sld [smem:[#allocation12 + $0x67]] }
 0x411   :  { %v2557_v44 = vmul.f32 %v2556_v12, %v5455_v63  ;;  %v3434_v12 = vstv %s5573_s4  ;;  %s5667_s21 = sld [smem:[#allocation12 + $0x44]] }
 0x412   :  { %v5494_v55 = vpop.permute.xlu1 %2178  ;;  %v5496_v14 = vpop.permute.xlu0 %2168  ;;  %s5683_s22 = sld [smem:[#allocation12 + $0x8c]] }
 0x413   :  { %s5727_s4 = sld [smem:[#allocation12 + $0x6a]] }
 0x414   :  { %2943 = vrot.lane.b32.xlu1 %v2941_v51, %s4109_s14  ;;  %3377 = vrot.lane.b32.xlu0 %v3375_v20, %s4109_s14  ;;  %v2981_v51 = vmul.f32 %v2980_v24, %v5458_v61  ;;  %v3415_v20 = vmul.f32 %v3414_v33, %v5472_v42 }
 0x416   :  { %v5504_v31 = vpop.permute.xlu1 %2198  ;;  %v5506_v28 = vpop.permute.xlu0 %2188 }
 0x418   :  { %2519 = vrot.lane.b32.xlu1 %v2517_v38, %s4106_s9  ;;  %2953 = vrot.lane.b32.xlu0 %v2951_v39, %s4106_s9 }
 0x41a   :  { %v5514_v13 = vpop.permute.xlu1 %2218  ;;  %v5516_v49 = vpop.permute.xlu0 %2208 }
 0x41c   :  { %3387 = vrot.lane.b32.xlu1 %v3385_v57, %s4106_s9  ;;  %2529 = vrot.lane.b32.xlu0 %v2527_v27, %s4108_s13  ;;  %v3424_v57 = vstv %s5549_s23  ;;  %v2566_v27 = vstv %s5553_s1  ;;  %s5694_s23 = sld [smem:[#allocation12 + $0x45]] }
 0x41d   :  { %s5701_s1 = sld [smem:[#allocation12 + $0x69]] }
 0x41e   :  { %v2330_v21 = vpop.permute.xlu1 %2329  ;;  %v2764_v29 = vpop.permute.xlu0 %2763 }
 0x41f   :  { %v2331_v10 = vrot.slane %v2330_v21, 2  ;;  %v2765_v50 = vrot.slane %v2764_v29, 2 }
 0x420   :  { %2963 = vrot.lane.b32.xlu1 %v2961_v15, %s4108_s13  ;;  %3397 = vrot.lane.b32.xlu0 %v3395_v40, %s4108_s13  ;;  %v3192_v40 = vmul.f32 %v3191_v2, %v5245_v7  ;;  %v2567_v2 = vmul.f32 %v2566_v27, %v5455_v63  ;;  %v2581_v27 = vstv %s5586_s5  ;;  %s5732_s5 = sld [smem:[#allocation12 + $0x8e]] }
 0x421   :  { %v2332_v5 = vsel %vm120_vm0, %v2330_v21, %v2331_v10  ;;  %v2766_v53 = vsel %vm120_vm0, %v2764_v29, %v2765_v50 }
 0x422   :  { %v3198_v9 = vpop.permute.xlu1 %3197  ;;  %v2340_v11 = vpop.permute.xlu0 %2339  ;;  %v2334_v62 = vadd.f32 %v2332_v5, %v2324_v52  ;;  %v2768_v32 = vadd.f32 %v2766_v53, %v2758_v56  ;;  %v5618_v53 = vld [vmem:[#allocation2 + $0x12] sm:$0x3f] }
 0x423   :  { %v2341_v22 = vrot.slane %v2340_v11, 2  ;;  %v3199_v58 = vrot.slane %v3198_v9, 2 }
 0x424   :  { %2539 = vrot.lane.b32.xlu1 %v2537_v47, %s4111_s2  ;;  %2973 = vrot.lane.b32.xlu0 %v2971_v4, %s4111_s2  ;;  %v2991_v47 = vmul.f32 %v2990_v41, %v5458_v61 }
 0x425   :  { %v2342_v54 = vsel %vm131_vm1, %v2340_v11, %v2341_v22  ;;  %v3200_v3 = vsel %vm120_vm0, %v3198_v9, %v3199_v58  ;;  %v3000_v58 = vstv %s5570_s24  ;;  %s5716_s24 = sld [smem:[#allocation12 + $0x46]] }
 0x426   :  { %v2774_v0 = vpop.permute.xlu1 %2773  ;;  %v3208_v48 = vpop.permute.xlu0 %3207  ;;  %v2344_v43 = vadd.f32 %v2342_v54, %v2334_v62  ;;  %v3202_v10 = vadd.f32 %v3200_v3, %v3192_v40  ;;  %v3015_v3 = vstv %s5590_s25  ;;  %s5741_s25 = sld [smem:[#allocation12 + $0x47]] }
 0x427   :  { %v2775_v38 = vrot.slane %v2774_v0, 2  ;;  %v3209_v39 = vrot.slane %v3208_v48, 2 }
 0x428   :  { %3407 = vrot.lane.b32.xlu1 %v3405_v46, %s4111_s2  ;;  %2549 = vrot.lane.b32.xlu0 %v2547_v16, %s4110_s0 }
 0x429   :  { %v2776_v4 = vsel %vm131_vm1, %v2774_v0, %v2775_v38  ;;  %v3210_v29 = vsel %vm131_vm1, %v3208_v48, %v3209_v39  ;;  %v3425_v48 = vmul.f32 %v3424_v57, %v5472_v42  ;;  %v3001_v39 = vmul.f32 %v3000_v58, %v5458_v61  ;;  %v5615_v57 = vld [vmem:[#allocation2 + $0x12] sm:$0x3f] }
 0x42a   :  { %v2350_v19 = vpop.permute.xlu1 %2349  ;;  %v2784_v45 = vpop.permute.xlu0 %2783  ;;  %v2778_v25 = vadd.f32 %v2776_v4, %v2768_v32  ;;  %v3212_v22 = vadd.f32 %v3210_v29, %v3202_v10  ;;  %v2591_v32 = vstv %s5603_s27  ;;  %s5807_s27 = sld [smem:[#allocation12 + $0x7e]] }
 0x42b   :  { %v2351_v35 = vrot.slane %v2350_v19, 2  ;;  %v2785_v15 = vrot.slane %v2784_v45, 2 }
 0x42c   :  { %2983 = vrot.lane.b32.xlu1 %v2981_v51, %s4110_s0  ;;  %3417 = vrot.lane.b32.xlu0 %v3415_v20, %s4110_s0 }
 0x42d   :  { %v2352_v21 = vsel %vm142_vm2, %v2350_v19, %v2351_v35  ;;  %v2786_v46 = vsel %vm142_vm2, %v2784_v45, %v2785_v15  ;;  %v3435_v35 = vmul.f32 %v3434_v12, %v5472_v42 }
 0x42e   :  { %v3218_v6 = vpop.permute.xlu1 %3217  ;;  %v2360_v11 = vpop.permute.xlu0 %2359  ;;  %v2354_v7 = vadd.f32 %v2352_v21, %v2344_v43  ;;  %v2788_v52 = vadd.f32 %v2786_v46, %v2778_v25 }
 0x42f   :  { %v3219_v34 = vrot.slane %v3218_v6, 2  ;;  %v2361_v9 = vrot.slane %v2360_v11, 2 }
 0x430   :  { %2559 = vrot.lane.b32.xlu1 %v2557_v44, %s4113_s20  ;;  %2993 = vrot.lane.b32.xlu0 %v2991_v47, %s4113_s20  ;;  %v2582_v44 = vmul.f32 %v2581_v27, %v5615_v57  ;;  %v3016_v47 = vmul.f32 %v3015_v3, %v5618_v53 }
 0x431   :  { %v3220_v16 = vsel %vm142_vm2, %v3218_v6, %v3219_v34  ;;  %v2362_v0 = vsel %vm153_vm3, %v2360_v11, %v2361_v9  ;;  %v5629_v34 = vld [vmem:[#allocation2 + $0x12] sm:$0x3f]  ;;  %v3449_v9 = vstv %s5599_s26  ;;  %s5746_s26 = sld [smem:[#allocation12 + $0x6b]] }
 0x432   :  { %v2364_v24 = vadd.f32 %v2362_v0, %v2354_v7  ;;  %v2794_v33 = vpop.permute.xlu1 %2793  ;;  %v3228_v36 = vpop.permute.xlu0 %3227  ;;  %v3222_v19 = vadd.f32 %v3220_v16, %v3212_v22  ;;  %v3450_v25 = vmul.f32 %v3449_v9, %v5629_v34  ;;  %v2592_v22 = vmul.f32 %v2591_v32, %v5615_v57 }
 0x433   :  { %v2795_v5 = vrot.slane %v2794_v33, 2  ;;  %v3229_v50 = vrot.slane %v3228_v36, 2 }
 0x434   :  { %3427 = vrot.lane.b32.xlu1 %v3425_v48, %s4113_s20  ;;  %2569 = vrot.lane.b32.xlu0 %v2567_v2, %s4112_s19  ;;  %v3459_v2 = vstv %s5613_s30  ;;  %s5840_s30 = sld [smem:[#allocation12 + $0x63]] }
 0x435   :  { %v2796_v45 = vsel %vm153_vm3, %v2794_v33, %v2795_v5  ;;  %v3230_v51 = vsel %vm153_vm3, %v3228_v36, %v3229_v50  ;;  %v3025_v36 = vstv %s5609_s28  ;;  %s5831_s28 = sld [smem:[#allocation12 + $0x3f]] }
 0x436   :  { %v2798_v20 = vadd.f32 %v2796_v45, %v2788_v52  ;;  %v3232_v41 = vadd.f32 %v3230_v51, %v3222_v19  ;;  %v2370_v54 = vpop.permute.xlu1 %2369  ;;  %v2804_v38 = vpop.permute.xlu0 %2803  ;;  %v3026_v45 = vmul.f32 %v3025_v36, %v5618_v53  ;;  %v3460_v51 = vmul.f32 %v3459_v2, %v5629_v34 }
 0x437   :  { %v2371_v62 = vrot.slane %v2370_v54, 2  ;;  %v2805_v56 = vrot.slane %v2804_v38, 2 }
 0x438   :  { %3003 = vrot.lane.b32.xlu1 %v3001_v39, %s4112_s19  ;;  %3437 = vrot.lane.b32.xlu0 %v3435_v35, %s4112_s19 }
 0x439   :  { %v2372_v21 = vsel %vm164_vm4, %v2370_v54, %v2371_v62  ;;  %v2806_v15 = vsel %vm164_vm4, %v2804_v38, %v2805_v56  ;;  %v2601_v54 = vstv %s5627_s7  ;;  %v3035_v38 = vstv %s5633_s8  ;;  %s5843_s7 = sld [smem:[#allocation12 + $0x87]] }
 0x43a   :  { %v2374_v40 = vadd.f32 %v2372_v21, %v2364_v24  ;;  %v2808_v43 = vadd.f32 %v2806_v15, %v2798_v20  ;;  %v3238_v6 = vpop.permute.xlu1 %3237  ;;  %v2380_v11 = vpop.permute.xlu0 %2379  ;;  %v3469_v62 = vstv %s5641_s12  ;;  %v2407_v56 = vstv %s5637_s11  ;;  %s5872_s8 = sld [smem:[#allocation13 + $0x1]] }
 0x43b   :  { %v3239_v4 = vrot.slane %v3238_v6, 2  ;;  %v2381_v29 = vrot.slane %v2380_v11, 2  ;;  %s5877_s11 = sld [smem:[#allocation13 + $0x2]] }
 0x43c   :  { %2584 = vrot.lane.b32.xlu1 %v2582_v44, %s4107_s10  ;;  %3018 = vrot.lane.b32.xlu0 %v3016_v47, %s4107_s10  ;;  %v2611_v47 = vstv %s5649_s16  ;;  %s5882_s12 = sld [smem:[#allocation13 + $0x3]] }
 0x43d   :  { %v3240_v10 = vsel %vm164_vm4, %v3238_v6, %v3239_v4  ;;  %v2382_v7 = vsel %vm175_vm5, %v2380_v11, %v2381_v29  ;;  %v2150_v6 = vrot.slane %v5484_v18, 2  ;;  %v2841_v4 = vstv %s5645_s15 }
 0x43e   :  { %v3242_v46 = vadd.f32 %v3240_v10, %v3232_v41  ;;  %v2384_v16 = vadd.f32 %v2382_v7, %v2374_v40  ;;  %v2814_v0 = vpop.permute.xlu1 %2813  ;;  %v3248_v48 = vpop.permute.xlu0 %3247  ;;  %v2602_v40 = vmul.f32 %v2601_v54, %v5615_v57  ;;  %v3275_v29 = vstv %s5653_s17 }
 0x43f   :  { %v2815_v24 = vrot.slane %v2814_v0, 2  ;;  %v3249_v33 = vrot.slane %v3248_v48, 2  ;;  %v2408_v10 = vmul.f32 %v2407_v56, %v5336_v60  ;;  %v3045_v7 = vstv %s5657_s18 }
 0x440   :  { %3452 = vrot.lane.b32.xlu1 %v3450_v25, %s4107_s10  ;;  %2594 = vrot.lane.b32.xlu0 %v2592_v22, %s4109_s14  ;;  %s5663_s10 = sld [smem:[#allocation12 + $0x8b]]  ;;  %v3470_v25 = vmul.f32 %v3469_v62, %v5629_v34  ;;  %v2612_v22 = vmul.f32 %v2611_v47, %v5615_v57  ;;  %v2170_v54 = vrot.slane %v5496_v14, 2 }
 0x441   :  { %v2816_v5 = vsel %vm175_vm5, %v2814_v0, %v2815_v24  ;;  %v3250_v50 = vsel %vm175_vm5, %v3248_v48, %v3249_v33  ;;  %v2151_v24 = vsel %vm120_vm0, %v5484_v18, %v2150_v6  ;;  %v2160_v18 = vrot.slane %v5481_v1, 2 }
 0x442   :  { %v2818_v58 = vadd.f32 %v2816_v5, %v2808_v43  ;;  %v3252_v12 = vadd.f32 %v3250_v50, %v3242_v46  ;;  %v2390_v52 = vpop.permute.xlu1 %2389  ;;  %v2824_v19 = vpop.permute.xlu0 %2823  ;;  %v3036_v43 = vmul.f32 %v3035_v38, %v5618_v53  ;;  %v2842_v5 = vmul.f32 %v2841_v4, %v5338_v17 }
 0x443   :  { %v2391_v20 = vrot.slane %v2390_v52, 2  ;;  %v2825_v41 = vrot.slane %v2824_v19, 2  ;;  %v3276_v50 = vmul.f32 %v3275_v29, %v5349_v8  ;;  %v2171_v4 = vsel %vm142_vm2, %v5496_v14, %v2170_v54 }
 0x444   :  { %3028 = vrot.lane.b32.xlu1 %v3026_v45, %s4109_s14  ;;  %3462 = vrot.lane.b32.xlu0 %v3460_v51, %s4109_s14  ;;  %s5677_s14 = sld [smem:[#allocation12 + $0x68]]  ;;  %v2153_v45 = vadd.f32 %v2151_v24, %v5490_v26  ;;  %v3489_v26 = vstv %s5683_s22 }
 0x445   :  { %v2392_v39 = vsel %vm186_vm6, %v2390_v52, %v2391_v20  ;;  %v2826_v35 = vsel %vm186_vm6, %v2824_v19, %v2825_v41  ;;  %v3046_v19 = vmul.f32 %v3045_v7, %v5618_v53 }
 0x446   :  { %v2394_v27 = vadd.f32 %v2392_v39, %v2384_v16  ;;  %v2828_v3 = vadd.f32 %v2826_v35, %v2818_v58  ;;  %v3258_v21 = vpop.permute.xlu1 %3257  ;;  %v2400_v15 = vpop.permute.xlu0 %2399  ;;  %v3479_v2 = vstv %s5663_s10  ;;  %v2621_v58 = vstv %s5667_s21 }
 0x447   :  { %v3259_v11 = vrot.slane %v3258_v21, 2  ;;  %v2401_v44 = vrot.slane %v2400_v15, 2  ;;  %v3480_v8 = vmul.f32 %v3479_v2, %v5629_v34 }
 0x448   :  { %2604 = vrot.lane.b32.xlu1 %v2602_v40, %s4106_s9  ;;  %3038 = vrot.lane.b32.xlu0 %v3036_v43, %s4106_s9 }
 0x449   :  { %v3260_v9 = vsel %vm186_vm6, %v3258_v21, %v3259_v11  ;;  %v2402_v32 = vsel %vm197_vm7, %v2400_v15, %v2401_v44  ;;  %v2622_v15 = vmul.f32 %v2621_v58, %v5615_v57 }
 0x44a   :  { %v3262_v46 = vadd.f32 %v3260_v9, %v3252_v12  ;;  %v2404_v16 = vadd.f32 %v2402_v32, %v2394_v27  ;;  %v2834_v0 = vpop.permute.xlu1 %2833  ;;  %v3268_v48 = vpop.permute.xlu0 %3267  ;;  %v3055_v35 = vstv %s5677_s14  ;;  %v2161_v27 = vsel %vm131_vm1, %v5481_v1, %v2160_v18 }
 0x44b   :  { %v2835_v33 = vrot.slane %v2834_v0, 2  ;;  %v3269_v36 = vrot.slane %v3268_v48, 2  ;;  %v2163_v40 = vadd.f32 %v2161_v27, %v2153_v45  ;;  %v3056_v47 = vmul.f32 %v3055_v35, %v5618_v53 }
 0x44c   :  { %3472 = vrot.lane.b32.xlu1 %v3470_v25, %s4106_s9  ;;  %2614 = vrot.lane.b32.xlu0 %v2612_v22, %s4108_s13  ;;  %v2409_v60 = vadd.f32 %v2408_v10, %v2404_v16  ;;  %s5711_s9 = sld [smem:[#allocation12 + $0x8d]]  ;;  %v2631_v1 = vstv %s5694_s23  ;;  %v3065_v32 = vstv %s5701_s1  ;;  %v2180_v10 = vrot.slane %v5494_v55, 2 }
 0x44d   :  { %v2836_v12 = vsel %vm197_vm7, %v2834_v0, %v2835_v33  ;;  %v3270_v52 = vsel %vm197_vm7, %v3268_v48, %v3269_v36  ;;  %v2173_v16 = vadd.f32 %v2171_v4, %v2163_v40  ;;  %v2632_v24 = vmul.f32 %v2631_v1, %v5615_v57 }
 0x44e   :  { %v2838_v51 = vadd.f32 %v2836_v12, %v2828_v3  ;;  %v3272_v20 = vadd.f32 %v3270_v52, %v3262_v46  ;;  %v2415_v17 = vpop.permute.xlu1 %2414  ;;  %v2849_v41 = vpop.permute.xlu0 %2848  ;;  %v3490_v46 = vmul.f32 %v3489_v26, %v5629_v34  ;;  %v2190_v33 = vrot.slane %v5506_v28, 2 }
 0x44f   :  { %v2416_v38 = vrot.slane %v2415_v17, 2  ;;  %v2850_v39 = vrot.slane %v2849_v41, 2  ;;  %v3066_v12 = vmul.f32 %v3065_v32, %v5618_v53  ;;  %v2210_v40 = vrot.slane %v5516_v49, 2 }
 0x450   :  { %v2843_v62 = vadd.f32 %v2842_v5, %v2838_v51  ;;  %3048 = vrot.lane.b32.xlu1 %v3046_v19, %s4108_s13  ;;  %3482 = vrot.lane.b32.xlu0 %v3480_v8, %s4108_s13  ;;  %v3277_v56 = vadd.f32 %v3276_v50, %v3272_v20  ;;  %v2641_v5 = vstv %s5716_s24  ;;  %v2181_v50 = vsel %vm153_vm3, %v5494_v55, %v2180_v10 }
 0x451   :  { %v2417_v3 = vsel %vm120_vm0, %v2415_v17, %v2416_v38  ;;  %v2851_v21 = vsel %vm120_vm0, %v2849_v41, %v2850_v39  ;;  %v2183_v52 = vadd.f32 %v2181_v50, %v2173_v16  ;;  %v2191_v41 = vsel %vm164_vm4, %v5506_v28, %v2190_v33 }
 0x452   :  { %v2419_v43 = vadd.f32 %v2417_v3, %v2409_v60  ;;  %v2853_v6 = vadd.f32 %v2851_v21, %v2843_v62  ;;  %v3283_v11 = vpop.permute.xlu1 %3282  ;;  %v2425_v44 = vpop.permute.xlu0 %2424  ;;  %v3499_v60 = vstv %s5711_s9  ;;  %v3075_v55 = vstv %s5727_s4 }
 0x453   :  { %v3284_v29 = vrot.slane %v3283_v11, 2  ;;  %v2426_v9 = vrot.slane %v2425_v44, 2  ;;  %v3500_v17 = vmul.f32 %v3499_v60, %v5629_v34  ;;  %v3509_v38 = vstv %s5732_s5 }
 0x454   :  { %2624 = vrot.lane.b32.xlu1 %v2622_v15, %s4111_s2  ;;  %3058 = vrot.lane.b32.xlu0 %v3056_v47, %s4111_s2  ;;  %v2200_v39 = vrot.slane %v5504_v31, 2  ;;  %v2642_v28 = vmul.f32 %v2641_v5, %v5615_v57  ;;  %v3076_v15 = vmul.f32 %v3075_v55, %v5618_v53  ;;  %v2211_v16 = vsel %vm186_vm6, %v5516_v49, %v2210_v40 }
 0x455   :  { %v3285_v7 = vsel %vm120_vm0, %v3283_v11, %v3284_v29  ;;  %v2427_v14 = vsel %vm131_vm1, %v2425_v44, %v2426_v9  ;;  %v2651_v11 = vstv %s5741_s25  ;;  %v3085_v44 = vstv %s5746_s26 }
 0x456   :  { %v3287_v0 = vadd.f32 %v3285_v7, %v3277_v56  ;;  %v2429_v48 = vadd.f32 %v2427_v14, %v2419_v43  ;;  %v2859_v25 = vpop.permute.xlu1 %2858  ;;  %v3293_v22 = vpop.permute.xlu0 %3292  ;;  %v2193_v56 = vadd.f32 %v2191_v41, %v2183_v52  ;;  %v2201_v47 = vsel %vm175_vm5, %v5504_v31, %v2200_v39 }
 0x457   :  { %v2860_v36 = vrot.slane %v2859_v25, 2  ;;  %v3294_v2 = vrot.slane %v3293_v22, 2  ;;  %v3510_v9 = vmul.f32 %v3509_v38, %v5629_v34  ;;  %v3086_v33 = vmul.f32 %v3085_v44, %v5618_v53 }
 0x458   :  { %3492 = vrot.lane.b32.xlu1 %v3490_v46, %s4111_s2  ;;  %2634 = vrot.lane.b32.xlu0 %v2632_v24, %s4110_s0  ;;  %s5757_s2 = sld [smem:[#allocation12 + $0x8f]]  ;;  %v2203_v1 = vadd.f32 %v2201_v47, %v2193_v56  ;;  %v2652_v46 = vmul.f32 %v2651_v11, %v5615_v57 }
 0x459   :  { %v2861_v58 = vsel %vm131_vm1, %v2859_v25, %v2860_v36  ;;  %v3295_v18 = vsel %vm131_vm1, %v3293_v22, %v3294_v2  ;;  %v2220_v25 = vrot.slane %v5514_v13, 2 }
 0x45a   :  { %v2863_v19 = vadd.f32 %v2861_v58, %v2853_v6  ;;  %v3297_v45 = vadd.f32 %v3295_v18, %v3287_v0  ;;  %v2435_v51 = vpop.permute.xlu1 %2434  ;;  %v2869_v20 = vpop.permute.xlu0 %2868  ;;  %v2213_v36 = vadd.f32 %v2211_v16, %v2203_v1 }
 0x45b   :  { %v2436_v8 = vrot.slane %v2435_v51, 2  ;;  %v2870_v54 = vrot.slane %v2869_v20, 2 }
 0x45c   :  { %3068 = vrot.lane.b32.xlu1 %v3066_v12, %s4110_s0  ;;  %3502 = vrot.lane.b32.xlu0 %v3500_v17, %s4110_s0  ;;  %s5778_s0 = sld [smem:[#allocation13]]  ;;  %v2221_v12 = vsel %vm197_vm7, %v5514_v13, %v2220_v25 }
 0x45d   :  { %v2437_v35 = vsel %vm142_vm2, %v2435_v51, %v2436_v8  ;;  %v2871_v62 = vsel %vm142_vm2, %v2869_v20, %v2870_v54 }
 0x45e   :  { %v2439_v26 = vadd.f32 %v2437_v35, %v2429_v48  ;;  %v2873_v27 = vadd.f32 %v2871_v62, %v2863_v19  ;;  %v3303_v3 = vpop.permute.xlu1 %3302  ;;  %v2445_v21 = vpop.permute.xlu0 %2444  ;;  %v3519_v48 = vstv %s5757_s2 }
 0x45f   :  { %v3304_v43 = vrot.slane %v3303_v3, 2  ;;  %v2446_v6 = vrot.slane %v2445_v21, 2  ;;  %v3520_v50 = vmul.f32 %v3519_v48, %v5629_v34 }
 0x460   :  { %2644 = vrot.lane.b32.xlu1 %v2642_v28, %s4113_s20  ;;  %3078 = vrot.lane.b32.xlu0 %v3076_v15, %s4113_s20 }
 0x461   :  { %v3305_v4 = vsel %vm142_vm2, %v3303_v3, %v3304_v43  ;;  %v2447_v29 = vsel %vm153_vm3, %v2445_v21, %v2446_v6 }
 0x462   :  { %v3307_v32 = vadd.f32 %v3305_v4, %v3297_v45  ;;  %v2449_v10 = vadd.f32 %v2447_v29, %v2439_v26  ;;  %v2879_v7 = vpop.permute.xlu1 %2878  ;;  %v3313_v14 = vpop.permute.xlu0 %3312  ;;  %v2223_v45 = vadd.f32 %v2221_v12, %v2213_v36  ;;  %v2225_v8 = vstv %s5778_s0 }
 0x463   :  { %v2880_v0 = vrot.slane %v2879_v7, 2  ;;  %v3314_v31 = vrot.slane %v3313_v14, 2 }
 0x464   :  { %3512 = vrot.lane.b32.xlu1 %v3510_v9, %s4113_s20  ;;  %2654 = vrot.lane.b32.xlu0 %v2652_v46, %s4112_s19  ;;  %v5799_v35 = vadd.f32 %v2225_v8, %v2223_v45  ;;  %s5803_s20 = sld [smem:[#allocation12 + $0x5a]] }
 0x465   :  { %v2881_v22 = vsel %vm153_vm3, %v2879_v7, %v2880_v0  ;;  %v3315_v24 = vsel %vm153_vm3, %v3313_v14, %v3314_v31 }
 0x466   :  { %v2883_v2 = vadd.f32 %v2881_v22, %v2873_v27  ;;  %v3317_v60 = vadd.f32 %v3315_v24, %v3307_v32  ;;  %v2455_v49 = vpop.permute.xlu1 %2454  ;;  %v2889_v5 = vpop.permute.xlu0 %2888  ;;  %v2227_v15 = vmul.f32 %v5799_v35, %v4820_v37 }
 0x467   :  { %v2456_v58 = vrot.slane %v2455_v49, 2  ;;  %v2890_v18 = vrot.slane %v2889_v5, 2 }
 0x468   :  { %3088 = vrot.lane.b32.xlu1 %v3086_v33, %s4112_s19  ;;  %3522 = vrot.lane.b32.xlu0 %v3520_v50, %s4112_s19  ;;  %s3843_s19 = sld [smem:[#allocation12 + $0x36]]  ;;  %v2236_v7 = vrot.slane %v2227_v15, %v4801_v59 }
 0x469   :  { %v2457_v52 = vsel %vm164_vm4, %v2455_v49, %v2456_v58  ;;  %v2891_v19 = vsel %vm164_vm4, %v2889_v5, %v2890_v18  ;;  %v3360_v5 = vstv %s5807_s27  ;;  %v2229_v58 = vcombine.high %v2227_v15, %v2227_v15 }
 0x46a   :  { %v2459_v51 = vadd.f32 %v2457_v52, %v2449_v10  ;;  %v2893_v20 = vadd.f32 %v2891_v19, %v2883_v2  ;;  %v3323_v17 = vpop.permute.xlu1 %3322  ;;  %v2465_v41 = vpop.permute.xlu0 %2464  ;;  %v2926_v48 = vstv %s5803_s20  ;;  %v2244_v2 = vcombine.high %v2236_v7, %v2236_v7 }
 0x46b   :  { %v3324_v54 = vrot.slane %v3323_v17, 2  ;;  %v2466_v55 = vrot.slane %v2465_v41, 2  ;;  %v2927_v52 = vmul.f32 %v2926_v48, %v5458_v61 }
 0x46d   :  { %v3325_v38 = vsel %vm164_vm4, %v3323_v17, %v3324_v54  ;;  %v2467_v39 = vsel %vm175_vm5, %v2465_v41, %v2466_v55  ;;  %v3361_v17 = vmul.f32 %v3360_v5, %v5472_v42  ;;  %v2243_v54 = vrot.slane %v2229_v58, %v4801_v59 }
 0x46e   :  { %v3327_v62 = vadd.f32 %v3325_v38, %v3317_v60  ;;  %v2469_v13 = vadd.f32 %v2467_v39, %v2459_v51  ;;  %v2899_v28 = vpop.permute.xlu1 %2898  ;;  %v3333_v56 = vpop.permute.xlu0 %3332  ;;  %v2492_v16 = vstv %s3843_s19  ;;  %v2248_v55 = vsel %vm513_vm8, %v2236_v7, 0.0 }
 0x46f   :  { %v2900_v26 = vrot.slane %v2899_v28, 2  ;;  %v3334_v27 = vrot.slane %v3333_v56, 2  ;;  %v2493_v36 = vmul.f32 %v2492_v16, %v5455_v63  ;;  %v2249_v63 = vsel %vm513_vm8, %v2244_v2, 0.0 }
 0x470   :  { %v2250_v38 = vadd.f32 %v2249_v63, %v2248_v55 }
 0x471   :  { %v2901_v3 = vsel %vm175_vm5, %v2899_v28, %v2900_v26  ;;  %v3335_v21 = vsel %vm175_vm5, %v3333_v56, %v3334_v27 }
 0x472   :  { %v2903_v40 = vadd.f32 %v2901_v3, %v2893_v20  ;;  %v3337_v43 = vadd.f32 %v3335_v21, %v3327_v62  ;;  %v2475_v6 = vpop.permute.xlu1 %2474  ;;  %v2909_v11 = vpop.permute.xlu0 %2908 }
 0x473   :  { %v2476_v44 = vrot.slane %v2475_v6, 2  ;;  %v2910_v47 = vrot.slane %v2909_v11, 2 }
 0x475   :  { %v2477_v4 = vsel %vm186_vm6, %v2475_v6, %v2476_v44  ;;  %v2911_v29 = vsel %vm186_vm6, %v2909_v11, %v2910_v47 }
 0x476   :  { %v2479_v9 = vadd.f32 %v2477_v4, %v2469_v13  ;;  %v2913_v1 = vadd.f32 %v2911_v29, %v2903_v40  ;;  %v3343_v32 = vpop.permute.xlu1 %3342  ;;  %v2485_v10 = vpop.permute.xlu0 %2484  ;;  %v2251_v13 = vsel %vm517_vm9, %v2243_v54, 0.0 }
 0x477   :  { %v3344_v14 = vrot.slane %v3343_v32, 2  ;;  %v2486_v46 = vrot.slane %v2485_v10, 2  ;;  %v2252_v61 = vadd.f32 %v2251_v13, %v2250_v38 }
 0x479   :  { %v3345_v0 = vsel %vm186_vm6, %v3343_v32, %v3344_v14  ;;  %v2487_v31 = vsel %vm197_vm7, %v2485_v10, %v2486_v46 }
 0x47a   :  { %v3347_v25 = vadd.f32 %v3345_v0, %v3337_v43  ;;  %v2489_v22 = vadd.f32 %v2487_v31, %v2479_v9  ;;  %v2919_v24 = vpop.permute.xlu1 %2918  ;;  %v3353_v33 = vpop.permute.xlu0 %3352 }
 0x47b   :  { %v2920_v60 = vrot.slane %v2919_v24, 2  ;;  %v3354_v49 = vrot.slane %v3353_v33, 2 }
 0x47c   :  { %v2494_v50 = vadd.f32 %v2493_v36, %v2489_v22 }
 0x47d   :  { %v2921_v18 = vsel %vm197_vm7, %v2919_v24, %v2920_v60  ;;  %v3355_v12 = vsel %vm197_vm7, %v3353_v33, %v3354_v49 }
 0x47e   :  { %v2923_v19 = vadd.f32 %v2921_v18, %v2913_v1  ;;  %v3357_v45 = vadd.f32 %v3355_v12, %v3347_v25  ;;  %v2500_v51 = vpop.permute.xlu1 %2499  ;;  %v2934_v20 = vpop.permute.xlu0 %2933 }
 0x47f   :  { %v2501_v40 = vrot.slane %v2500_v51, 2  ;;  %v2935_v11 = vrot.slane %v2934_v20, 2 }
 0x480   :  { %v2928_v41 = vadd.f32 %v2927_v52, %v2923_v19  ;;  %v3362_v8 = vadd.f32 %v3361_v17, %v3357_v45 }
 0x481   :  { %v2502_v4 = vsel %vm120_vm0, %v2500_v51, %v2501_v40  ;;  %v2936_v10 = vsel %vm120_vm0, %v2934_v20, %v2935_v11 }
 0x482   :  { %v3368_v39 = vpop.permute.xlu1 %3367  ;;  %v2510_v62 = vpop.permute.xlu0 %2509  ;;  %v2504_v16 = vadd.f32 %v2502_v4, %v2494_v50  ;;  %v2938_v33 = vadd.f32 %v2936_v10, %v2928_v41  ;;  %v2577_v4 = vstv %s5831_s28 }
 0x483   :  { %v2511_v44 = vrot.slane %v2510_v62, 2  ;;  %v3369_v47 = vrot.slane %v3368_v39, 2 }
 0x485   :  { %v2512_v7 = vsel %vm131_vm1, %v2510_v62, %v2511_v44  ;;  %v3370_v0 = vsel %vm120_vm0, %v3368_v39, %v3369_v47 }
 0x486   :  { %v2944_v28 = vpop.permute.xlu1 %2943  ;;  %v3378_v56 = vpop.permute.xlu0 %3377  ;;  %v2514_v36 = vadd.f32 %v2512_v7, %v2504_v16  ;;  %v3372_v12 = vadd.f32 %v3370_v0, %v3362_v8 }
 0x487   :  { %2253 = vadd.xlane.f32.xlu0 %v2252_v61  ;;  %v2945_v29 = vrot.slane %v2944_v28, 2  ;;  %v3379_v14 = vrot.slane %v3378_v56, 2 }
 0x489   :  { %v2946_v48 = vsel %vm131_vm1, %v2944_v28, %v2945_v29  ;;  %v3380_v58 = vsel %vm131_vm1, %v3378_v56, %v3379_v14 }
 0x48a   :  { %v2520_v26 = vpop.permute.xlu1 %2519  ;;  %v2954_v27 = vpop.permute.xlu0 %2953  ;;  %v2948_v52 = vadd.f32 %v2946_v48, %v2938_v33  ;;  %v3382_v41 = vadd.f32 %v3380_v58, %v3372_v12 }
 0x48b   :  { %v2521_v9 = vrot.slane %v2520_v26, 2  ;;  %v2955_v31 = vrot.slane %v2954_v27, 2 }
 0x48d   :  { %v2522_v25 = vsel %vm142_vm2, %v2520_v26, %v2521_v9  ;;  %v2956_v45 = vsel %vm142_vm2, %v2954_v27, %v2955_v31 }
 0x48e   :  { %v3388_v42 = vpop.permute.xlu1 %3387  ;;  %v2530_v3 = vpop.permute.xlu0 %2529  ;;  %v2524_v19 = vadd.f32 %v2522_v25, %v2514_v36  ;;  %v2958_v56 = vadd.f32 %v2956_v45, %v2948_v52 }
 0x48f   :  { %v2531_v46 = vrot.slane %v2530_v3, 2  ;;  %v3389_v22 = vrot.slane %v3388_v42, 2 }
 0x491   :  { %v2532_v50 = vsel %vm153_vm3, %v2530_v3, %v2531_v46  ;;  %v3390_v51 = vsel %vm142_vm2, %v3388_v42, %v3389_v22 }
 0x492   :  { %v2964_v21 = vpop.permute.xlu1 %2963  ;;  %v3398_v15 = vpop.permute.xlu0 %3397  ;;  %v2534_v54 = vadd.f32 %v2532_v50, %v2524_v19  ;;  %v3392_v26 = vadd.f32 %v3390_v51, %v3382_v41 }
 0x493   :  { %v2965_v2 = vrot.slane %v2964_v21, 2  ;;  %v3399_v60 = vrot.slane %v3398_v15, 2 }
 0x495   :  { %v2966_v55 = vsel %vm153_vm3, %v2964_v21, %v2965_v2  ;;  %v3400_v38 = vsel %vm153_vm3, %v3398_v15, %v3399_v60  ;;  %v3011_v2 = vstv %s5840_s30  ;;  %v3445_v60 = vstv %s5843_s7 }
 0x496   :  { %v2540_v43 = vpop.permute.xlu1 %2539  ;;  %v2974_v6 = vpop.permute.xlu0 %2973  ;;  %v2968_v40 = vadd.f32 %v2966_v55, %v2958_v56  ;;  %v3012_v45 = vmul.f32 %v3011_v2, %v5618_v53 }
 0x497   :  { %v2541_v24 = vrot.slane %v2540_v43, 2  ;;  %v2975_v17 = vrot.slane %v2974_v6, 2 }
 0x499   :  { %v2542_v20 = vsel %vm164_vm4, %v2540_v43, %v2541_v24  ;;  %v2976_v42 = vsel %vm164_vm4, %v2974_v6, %v2975_v17  ;;  %v3402_v43 = vadd.f32 %v3400_v38, %v3392_v26  ;;  %v2578_v24 = vmul.f32 %v2577_v4, %v5615_v57 }
 0x49a   :  { %v3408_v1 = vpop.permute.xlu1 %3407  ;;  %v2550_v32 = vpop.permute.xlu0 %2549  ;;  %v2544_v27 = vadd.f32 %v2542_v20, %v2534_v54  ;;  %v2978_v6 = vadd.f32 %v2976_v42, %v2968_v40  ;;  %v3446_v20 = vmul.f32 %v3445_v60, %v5629_v34 }
 0x49b   :  { %v2551_v18 = vrot.slane %v2550_v32, 2  ;;  %v3409_v63 = vrot.slane %v3408_v1, 2 }
 0x49d   :  { %v2552_v8 = vsel %vm175_vm5, %v2550_v32, %v2551_v18  ;;  %v3410_v3 = vsel %vm164_vm4, %v3408_v1, %v3409_v63 }
 0x49e   :  { %v2984_v49 = vpop.permute.xlu1 %2983  ;;  %v3418_v5 = vpop.permute.xlu0 %3417  ;;  %v2554_v11 = vadd.f32 %v2552_v8, %v2544_v27  ;;  %v3412_v7 = vadd.f32 %v3410_v3, %v3402_v43 }
 0x49f   :  { %v2985_v13 = vrot.slane %v2984_v49, 2  ;;  %v3419_v61 = vrot.slane %v3418_v5, 2 }
 0x4a1   :  { %v2986_v29 = vsel %vm175_vm5, %v2984_v49, %v2985_v13  ;;  %v3420_v9 = vsel %vm175_vm5, %v3418_v5, %v3419_v61 }
 0x4a2   :  { %v2560_v39 = vpop.permute.xlu1 %2559  ;;  %v2994_v62 = vpop.permute.xlu0 %2993  ;;  %v2988_v0 = vadd.f32 %v2986_v29, %v2978_v6  ;;  %v3422_v31 = vadd.f32 %v3420_v9, %v3412_v7 }
 0x4a3   :  { %v2561_v28 = vrot.slane %v2560_v39, 2  ;;  %v2995_v15 = vrot.slane %v2994_v62, 2 }
 0x4a5   :  { %v2562_v21 = vsel %vm186_vm6, %v2560_v39, %v2561_v28  ;;  %v2996_v14 = vsel %vm186_vm6, %v2994_v62, %v2995_v15 }
 0x4a6   :  { %v3428_v44 = vpop.permute.xlu1 %3427  ;;  %v2570_v47 = vpop.permute.xlu0 %2569  ;;  %v2564_v1 = vadd.f32 %v2562_v21, %v2554_v11  ;;  %v2998_v49 = vadd.f32 %v2996_v14, %v2988_v0 }
 0x4a7   :  { %v3429_v32 = vrot.slane %v3428_v44, 2  ;;  %v2571_v10 = vrot.slane %v2570_v47, 2 }
 0x4a9   :  { %v3430_v46 = vsel %vm186_vm6, %v3428_v44, %v3429_v32  ;;  %v2572_v16 = vsel %vm197_vm7, %v2570_v47, %v2571_v10 }
 0x4aa   :  { %v2574_v48 = vadd.f32 %v2572_v16, %v2564_v1  ;;  %v3004_v25 = vpop.permute.xlu1 %3003  ;;  %v3438_v22 = vpop.permute.xlu0 %3437  ;;  %v3432_v5 = vadd.f32 %v3430_v46, %v3422_v31 }
 0x4ab   :  { %v3005_v33 = vrot.slane %v3004_v25, 2  ;;  %v3439_v36 = vrot.slane %v3438_v22, 2 }
 0x4ac   :  { %v2579_v58 = vadd.f32 %v2578_v24, %v2574_v48 }
 0x4ad   :  { %v3006_v50 = vsel %vm197_vm7, %v3004_v25, %v3005_v33  ;;  %v3440_v18 = vsel %vm197_vm7, %v3438_v22, %v3439_v36 }
 0x4ae   :  { %v3008_v12 = vadd.f32 %v3006_v50, %v2998_v49  ;;  %v3442_v52 = vadd.f32 %v3440_v18, %v3432_v5  ;;  %v2585_v19 = vpop.permute.xlu1 %2584  ;;  %v3019_v51 = vpop.permute.xlu0 %3018 }
 0x4af   :  { %v2586_v28 = vrot.slane %v2585_v19, 2  ;;  %v3020_v27 = vrot.slane %v3019_v51, 2 }
 0x4b0   :  { %v3013_v57 = vadd.f32 %v3012_v45, %v3008_v12  ;;  %v3447_v17 = vadd.f32 %v3446_v20, %v3442_v52 }
 0x4b1   :  { %v2587_v34 = vsel %vm120_vm0, %v2585_v19, %v2586_v28  ;;  %v3021_v43 = vsel %vm120_vm0, %v3019_v51, %v3020_v27 }
 0x4b2   :  { %v3453_v63 = vpop.permute.xlu1 %3452  ;;  %v2595_v41 = vpop.permute.xlu0 %2594  ;;  %v2589_v4 = vadd.f32 %v2587_v34, %v2579_v58  ;;  %v3023_v1 = vadd.f32 %v3021_v43, %v3013_v57  ;;  %v2661_v43 = vstv %s5872_s8 }
 0x4b3   :  { %v2596_v53 = vrot.slane %v2595_v41, 2  ;;  %v3454_v42 = vrot.slane %v3453_v63, 2 }
 0x4b5   :  { %v2597_v11 = vsel %vm131_vm1, %v2595_v41, %v2596_v53  ;;  %v3455_v29 = vsel %vm120_vm0, %v3453_v63, %v3454_v42  ;;  %vm2317_vm0 = vmor %vm584_vm13, %vm513_vm8 }
 0x4b6   :  { %v3029_v54 = vpop.permute.xlu1 %3028  ;;  %v3463_v55 = vpop.permute.xlu0 %3462  ;;  %v2599_v14 = vadd.f32 %v2597_v11, %v2589_v4  ;;  %v3457_v24 = vadd.f32 %v3455_v29, %v3447_v17 }
 0x4b7   :  { %v3030_v3 = vrot.slane %v3029_v54, 2  ;;  %v3464_v44 = vrot.slane %v3463_v55, 2 }
 0x4b9   :  { %v3031_v32 = vsel %vm131_vm1, %v3029_v54, %v3030_v3  ;;  %v3465_v48 = vsel %vm131_vm1, %v3463_v55, %v3464_v44  ;;  %vm2318_vm1 = vcmask 553988  }
 0x4ba   :  { %v2605_v38 = vpop.permute.xlu1 %2604  ;;  %v3039_v39 = vpop.permute.xlu0 %3038  ;;  %v3033_v33 = vadd.f32 %v3031_v32, %v3023_v1  ;;  %v3467_v50 = vadd.f32 %v3465_v48, %v3457_v24 }
 0x4bb   :  { %v2606_v21 = vrot.slane %v2605_v38, 2  ;;  %v3040_v9 = vrot.slane %v3039_v39, 2 }
 0x4bd   :  { %v2607_v10 = vsel %vm142_vm2, %v2605_v38, %v2606_v21  ;;  %v3041_v2 = vsel %vm142_vm2, %v3039_v39, %v3040_v9 }
 0x4be   :  { %v3473_v62 = vpop.permute.xlu1 %3472  ;;  %v2615_v8 = vpop.permute.xlu0 %2614  ;;  %v2609_v36 = vadd.f32 %v2607_v10, %v2599_v14  ;;  %v3043_v63 = vadd.f32 %v3041_v2, %v3033_v33  ;;  %v3095_v14 = vstv %s5877_s11 }
 0x4bf   :  { %v2616_v47 = vrot.slane %v2615_v8, 2  ;;  %v3474_v6 = vrot.slane %v3473_v62, 2 }
 0x4c1   :  { %v2617_v25 = vsel %vm153_vm3, %v2615_v8, %v2616_v47  ;;  %v3475_v60 = vsel %vm142_vm2, %v3473_v62, %v3474_v6  ;;  %vm5975_vm2 = vmor %vm2318_vm1, %vm2317_vm0 }
 0x4c2   :  { %v3049_v13 = vpop.permute.xlu1 %3048  ;;  %v3483_v61 = vpop.permute.xlu0 %3482  ;;  %v2619_v18 = vadd.f32 %v2617_v25, %v2609_v36  ;;  %v3477_v41 = vadd.f32 %v3475_v60, %v3467_v50 }
 0x4c3   :  { %v3050_v46 = vrot.slane %v3049_v13, 2  ;;  %v3484_v16 = vrot.slane %v3483_v61, 2 }
 0x4c5   :  { %v3051_v12 = vsel %vm153_vm3, %v3049_v13, %v3050_v46  ;;  %v3485_v52 = vsel %vm153_vm3, %v3483_v61, %v3484_v16  ;;  %v3529_v16 = vstv %s5882_s12 }
 0x4c6   :  { %v2625_v56 = vpop.permute.xlu1 %2624  ;;  %v3059_v26 = vpop.permute.xlu0 %3058  ;;  %v3053_v8 = vadd.f32 %v3051_v12, %v3043_v63  ;;  %v3487_v13 = vadd.f32 %v3485_v52, %v3477_v41 }
 0x4c7   :  { %v2626_v7 = vrot.slane %v2625_v56, 2  ;;  %v3060_v5 = vrot.slane %v3059_v26, 2 }
 0x4c9   :  { %v2627_v49 = vsel %vm164_vm4, %v2625_v56, %v2626_v7  ;;  %v3061_v55 = vsel %vm164_vm4, %v3059_v26, %v3060_v5 }
 0x4ca   :  { %v3493_v15 = vpop.permute.xlu1 %3492  ;;  %v2635_v40 = vpop.permute.xlu0 %2634  ;;  %v2629_v54 = vadd.f32 %v2627_v49, %v2619_v18  ;;  %v3063_v26 = vadd.f32 %v3061_v55, %v3053_v8 }
 0x4cb   :  { %v2636_v22 = vrot.slane %v2635_v40, 2  ;;  %v3494_v58 = vrot.slane %v3493_v15, 2 }
 0x4cd   :  { %v2637_v51 = vsel %vm175_vm5, %v2635_v40, %v2636_v22  ;;  %v3495_v38 = vsel %vm164_vm4, %v3493_v15, %v3494_v58 }
 0x4ce   :  { %v3069_v0 = vpop.permute.xlu1 %3068  ;;  %v3503_v31 = vpop.permute.xlu0 %3502  ;;  %v2639_v61 = vadd.f32 %v2637_v51, %v2629_v54  ;;  %v3497_v3 = vadd.f32 %v3495_v38, %v3487_v13 }
 0x4cf   :  { %v3070_v20 = vrot.slane %v3069_v0, 2  ;;  %v3504_v57 = vrot.slane %v3503_v31, 2 }
 0x4d1   :  { %v3071_v27 = vsel %vm175_vm5, %v3069_v0, %v3070_v20  ;;  %v3505_v53 = vsel %vm175_vm5, %v3503_v31, %v3504_v57 }
 0x4d2   :  { %v2645_v19 = vpop.permute.xlu1 %2644  ;;  %v3079_v45 = vpop.permute.xlu0 %3078  ;;  %v3073_v44 = vadd.f32 %v3071_v27, %v3063_v26  ;;  %v3507_v47 = vadd.f32 %v3505_v53, %v3497_v3 }
 0x4d3   :  { %v2646_v17 = vrot.slane %v2645_v19, 2  ;;  %v3080_v62 = vrot.slane %v3079_v45, 2 }
 0x4d5   :  { %v2647_v39 = vsel %vm186_vm6, %v2645_v19, %v2646_v17  ;;  %v3081_v15 = vsel %vm186_vm6, %v3079_v45, %v3080_v62 }
 0x4d6   :  { %v3513_v28 = vpop.permute.xlu1 %3512  ;;  %v2655_v56 = vpop.permute.xlu0 %2654  ;;  %v2649_v21 = vadd.f32 %v2647_v39, %v2639_v61  ;;  %v3083_v6 = vadd.f32 %v3081_v15, %v3073_v44 }
 0x4d7   :  { %v3514_v42 = vrot.slane %v3513_v28, 2  ;;  %v2656_v34 = vrot.slane %v2655_v56, 2 }
 0x4d9   :  { %v3515_v40 = vsel %vm186_vm6, %v3513_v28, %v3514_v42  ;;  %v2657_v11 = vsel %vm197_vm7, %v2655_v56, %v2656_v34 }
 0x4da   :  { %v2659_v4 = vadd.f32 %v2657_v11, %v2649_v21  ;;  %v3089_v29 = vpop.permute.xlu1 %3088  ;;  %v3523_v9 = vpop.permute.xlu0 %3522  ;;  %v3517_v7 = vadd.f32 %v3515_v40, %v3507_v47 }
 0x4db   :  { %v3090_v32 = vrot.slane %v3089_v29, 2  ;;  %v3524_v10 = vrot.slane %v3523_v9, 2 }
 0x4dc   :  { %v5890_v1 = vadd.f32 %v2661_v43, %v2659_v4 }
 0x4dd   :  { %v3091_v46 = vsel %vm197_vm7, %v3089_v29, %v3090_v32  ;;  %v3525_v0 = vsel %vm197_vm7, %v3523_v9, %v3524_v10  ;;  %v2744_v29 = vld [vmem:[#allocation3 + $0x6] sm:$0x3f]  ;;  %v3612_v9 = vld [vmem:[#allocation3 + $0x12] sm:$0x3f] }
 0x4de   :  { %v2663_v31 = vmul.f32 %v5890_v1, %v4820_v37  ;;  %v3093_v48 = vadd.f32 %v3091_v46, %v3083_v6  ;;  %v3527_v25 = vadd.f32 %v3525_v0, %v3517_v7 }
 0x4e0   :  { %v2665_v22 = vcombine.high %v2663_v31, %v2663_v31  ;;  %v2672_v24 = vrot.slane %v2663_v31, %v4801_v59  ;;  %v3096_v33 = vadd.f32 %v3095_v14, %v3093_v48  ;;  %v5899_v36 = vadd.f32 %v3529_v16, %v3527_v25 }
 0x4e2   :  { %v3097_v2 = vmul.f32 %v3096_v33, %v4820_v37  ;;  %v3531_v60 = vmul.f32 %v5899_v36, %v4820_v37  ;;  %v2680_v49 = vcombine.high %v2672_v24, %v2672_v24  ;;  %v2679_v5 = vrot.slane %v2665_v22, %v4801_v59 }
 0x4e3   :  { %v2684_v12 = vsel %vm513_vm8, %v2672_v24, 0.0 }
 0x4e4   :  { %v3099_v58 = vcombine.high %v3097_v2, %v3097_v2  ;;  %v3106_v50 = vrot.slane %v3097_v2, %v4801_v59  ;;  %v3540_v18 = vrot.slane %v3531_v60, %v4801_v59  ;;  %v2685_v52 = vsel %vm513_vm8, %v2680_v49, 0.0 }
 0x4e5   :  { %v3533_v19 = vcombine.high %v3531_v60, %v3531_v60  ;;  %v2686_v45 = vadd.f32 %v2685_v52, %v2684_v12  ;;  %v2687_v57 = vsel %vm517_vm9, %v2679_v5, 0.0 }
 0x4e6   :  { %v3113_v51 = vrot.slane %v3099_v58, %v4801_v59  ;;  %v3114_v20 = vcombine.high %v3106_v50, %v3106_v50  ;;  %v3548_v17 = vcombine.high %v3540_v18, %v3540_v18  ;;  %v3118_v41 = vsel %vm513_vm8, %v3106_v50, 0.0 }
 0x4e7   :  { %v2688_v63 = vadd.f32 %v2687_v57, %v2686_v45  ;;  %v3547_v62 = vrot.slane %v3533_v19, %v4801_v59  ;;  %v3552_v8 = vsel %vm513_vm8, %v3540_v18, 0.0 }
 0x4e8   :  { %v3119_v54 = vsel %vm513_vm8, %v3114_v20, 0.0  ;;  %v3553_v38 = vsel %vm513_vm8, %v3548_v17, 0.0  ;;  %v3121_v39 = vsel %vm517_vm9, %v3113_v51, 0.0 }
 0x4e9   :  { %v3120_v55 = vadd.f32 %v3119_v54, %v3118_v41  ;;  %2689 = vadd.xlane.f32.xlu1 %v2688_v63  ;;  %v3554_v61 = vadd.f32 %v3553_v38, %v3552_v8  ;;  %v3555_v28 = vsel %vm517_vm9, %v3547_v62, 0.0 }
 0x4eb   :  { %v3122_v13 = vadd.f32 %v3121_v39, %v3120_v55  ;;  %v3556_v56 = vadd.f32 %v3555_v28, %v3554_v61 }
 0x4ed   :  { %3123 = vadd.xlane.f32.xlu0 %v3122_v13 }
 0x4f1   :  { %3557 = vadd.xlane.f32.xlu0 %v3556_v56 }
 0x507   :  { %2746 = vrot.lane.b32.xlu0 %v2744_v29, %s4108_s13 }
 0x50b   :  { %3614 = vrot.lane.b32.xlu0 %v3612_v9, %s4108_s13 }
 0x510   :  { %v2254_v27 = vpop.xlane.xlu0 %2253 }
 0x511   :  { %v2255_v53 = vmul.f32 0.00390625, %v2254_v27 }
 0x513   :  { %v2263_v42 = vrot.slane %v2255_v53, %v5082_v23  ;;  %v3178_v53 = vld [vmem:[#allocation3 + $0xc] sm:$0x3f] }
 0x515   :  { %v2265_v34 = vsub.f32 %v5799_v35, %v2263_v42 }
 0x517   :  { %v5921_v26 = vmul.f32 %v2265_v34, %v4820_v37 }
 0x519   :  { %v2267_v3 = vmul.f32 %v5921_v26, %v5921_v26 }
 0x51b   :  { %v2269_v21 = vcombine.high %v2267_v3, %v2267_v3  ;;  %v2276_v15 = vrot.slane %v2267_v3, %v4801_v59 }
 0x51d   :  { %v2283_v40 = vrot.slane %v2269_v21, %v4801_v59  ;;  %v2284_v43 = vcombine.high %v2276_v15, %v2276_v15  ;;  %v2288_v11 = vsel %vm513_vm8, %v2276_v15, 0.0 }
 0x51f   :  { %v2289_v44 = vsel %vm513_vm8, %v2284_v43, 0.0  ;;  %v2291_v4 = vsel %vm517_vm9, %v2283_v40, 0.0 }
 0x520   :  { %v2290_v47 = vadd.f32 %v2289_v44, %v2288_v11 }
 0x522   :  { %v2292_v35 = vadd.f32 %v2291_v4, %v2290_v47 }
 0x524   :  { %2293 = vadd.xlane.f32.xlu1 %v2292_v35 }
 0x572   :  { %v2690_v32 = vpop.xlane.xlu1 %2689 }
 0x573   :  { %v2691_v10 = vmul.f32 0.00390625, %v2690_v32 }
 0x575   :  { %v2699_v6 = vrot.slane %v2691_v10, %v5082_v23 }
 0x576   :  { %v3124_v7 = vpop.xlane.xlu0 %3123 }
 0x577   :  { %v3125_v14 = vmul.f32 0.00390625, %v3124_v7  ;;  %v2701_v46 = vsub.f32 %v5890_v1, %v2699_v6 }
 0x579   :  { %v3133_v16 = vrot.slane %v3125_v14, %v5082_v23  ;;  %v5936_v0 = vmul.f32 %v2701_v46, %v4820_v37 }
 0x57a   :  { %v3558_v31 = vpop.xlane.xlu0 %3557 }
 0x57b   :  { %v3135_v48 = vsub.f32 %v3096_v33, %v3133_v16  ;;  %v3559_v25 = vmul.f32 0.00390625, %v3558_v31  ;;  %v2703_v22 = vmul.f32 %v5936_v0, %v5936_v0 }
 0x57d   :  { %v5941_v24 = vmul.f32 %v3135_v48, %v4820_v37  ;;  %v3567_v2 = vrot.slane %v3559_v25, %v5082_v23  ;;  %v2705_v60 = vcombine.high %v2703_v22, %v2703_v22  ;;  %v2712_v49 = vrot.slane %v2703_v22, %v4801_v59 }
 0x57e   :  { %v2747_v7 = vpop.permute.xlu0 %2746 }
 0x57f   :  { %v3137_v1 = vmul.f32 %v5941_v24, %v5941_v24  ;;  %v3569_v5 = vsub.f32 %v5899_v36, %v3567_v2  ;;  %v2719_v58 = vrot.slane %v2705_v60, %v4801_v59  ;;  %v2720_v33 = vcombine.high %v2712_v49, %v2712_v49 }
 0x580   :  { %v2724_v52 = vsel %vm513_vm8, %v2712_v49, 0.0  ;;  %v2748_v14 = vrot.slane %v2747_v7, 2 }
 0x581   :  { %v5950_v50 = vmul.f32 %v3569_v5, %v4820_v37  ;;  %v3139_v18 = vcombine.high %v3137_v1, %v3137_v1  ;;  %v3146_v12 = vrot.slane %v3137_v1, %v4801_v59  ;;  %v2725_v19 = vsel %vm513_vm8, %v2720_v33, 0.0 }
 0x582   :  { %v2726_v51 = vadd.f32 %v2725_v19, %v2724_v52  ;;  %v2727_v57 = vsel %vm517_vm9, %v2719_v58, 0.0  ;;  %v2749_v48 = vsel %vm153_vm3, %v2747_v7, %v2748_v14  ;;  %v3615_v1 = vpop.permute.xlu0 %3614 }
 0x583   :  { %v3571_v45 = vmul.f32 %v5950_v50, %v5950_v50  ;;  %v3153_v20 = vrot.slane %v3139_v18, %v4801_v59  ;;  %v3154_v36 = vcombine.high %v3146_v12, %v3146_v12  ;;  %v3158_v37 = vsel %vm513_vm8, %v3146_v12, 0.0 }
 0x584   :  { %v2728_v17 = vadd.f32 %v2727_v57, %v2726_v51  ;;  %v3616_v12 = vrot.slane %v3615_v1, 2 }
 0x585   :  { %v3159_v63 = vsel %vm513_vm8, %v3154_v36, 0.0  ;;  %v3573_v41 = vcombine.high %v3571_v45, %v3571_v45  ;;  %v3580_v55 = vrot.slane %v3571_v45, %v4801_v59  ;;  %v3161_v38 = vsel %vm517_vm9, %v3153_v20, 0.0 }
 0x586   :  { %v3160_v54 = vadd.f32 %v3159_v63, %v3158_v37  ;;  %2729 = vadd.xlane.f32.xlu1 %v2728_v17  ;;  %v3617_v51 = vsel %vm153_vm3, %v3615_v1, %v3616_v12 }
 0x587   :  { %v3587_v62 = vrot.slane %v3573_v41, %v4801_v59  ;;  %v3588_v8 = vcombine.high %v3580_v55, %v3580_v55  ;;  %v3592_v13 = vsel %vm513_vm8, %v3580_v55, 0.0  ;;  %v2312_v59 = vrot.slane %v5130_v30, 2 }
 0x588   :  { %v3162_v39 = vadd.f32 %v3161_v38, %v3160_v54 }
 0x589   :  { %v3593_v61 = vsel %vm513_vm8, %v3588_v8, 0.0  ;;  %v3595_v56 = vsel %vm517_vm9, %v3587_v62, 0.0  ;;  %v2313_v43 = vsel %vm153_vm3, %v5130_v30, %v2312_v59 }
 0x58a   :  { %3163 = vadd.xlane.f32.xlu1 %v3162_v39  ;;  %v3594_v28 = vadd.f32 %v3593_v61, %v3592_v13 }
 0x58c   :  { %v3596_v27 = vadd.f32 %v3595_v56, %v3594_v28 }
 0x58e   :  { %3597 = vadd.xlane.f32.xlu1 %v3596_v27 }
 0x59f   :  { %3180 = vrot.lane.b32.xlu1 %v3178_v53, %s4108_s13  ;;  %s4118_s13 = smov [#allocation15]  }
 0x5a0   :  { %s3628_s15 = sshll.u32 %s4118_s13, 4  ;;  %s3629_s15 = int_to_ptr.vmem [resolvable:$true] %s3628_s15 }
 0x5a1   :  { %s4066_s16 = scalar_lea.vmem %s3629_s15, 384  ;;  %p4071_p3 = scmp.lt.s32.totalorder %s3629_s15, %s3629_s15 }
 0x5a2   :  { %p4067_p2 = scmp.ne.s32.totalorder %s3629_s15, %s4066_s16  ;;  %p4072_p4 = scmp.lt.s32.totalorder %s4066_s16, %s4066_s16 }
 0x5a4   :  { %p4073_p5 = por %p4072_p4, %p4071_p3 }
 0x5a6   :  { %p4074_p6 = pnand %p4073_p5, %p4067_p2 }
 0x5ad   :  { %v2294_v42 = vpop.xlane.xlu1 %2293 }
 0x5ae   :  { %v2295_v34 = vmul.f32 0.00390625, %v2294_v42 }
 0x5b0   :  { %v2296_v3 = vadd.f32 1e-05, %v2295_v34 }
 0x5b2   :  { %3965 = vrsqrt.f32 %v2296_v3 }
 0x5bf   :  { %v3966_v21 = vpop.eup %3965 }
 0x5c0   :  { %v2305_v15 = vrot.slane %v3966_v21, %v5082_v23 }
 0x5c2   :  { %v2307_v40 = vmul.f32 %v2305_v15, %v5921_v26 }
 0x5c4   :  { %v2315_v11 = vadd.f32 %v2313_v43, %v2307_v40 }
 0x5c6   :  { %v2316_v47 = vmax.f32 %v2315_v11, 0.0 }
 0x5c8   :  { %2320 = vst.msk [vmem:[#allocation15] sm:$0x3f] %vm5975_vm2, %v2316_v47 }
 0x60f   :  { %v2730_v4 = vpop.xlane.xlu1 %2729 }
 0x610   :  { %v2731_v35 = vmul.f32 0.00390625, %v2730_v4 }
 0x612   :  { %v2732_v29 = vadd.f32 1e-05, %v2731_v35 }
 0x613   :  { %v3164_v9 = vpop.xlane.xlu1 %3163 }
 0x614   :  { %3967 = vrsqrt.f32 %v2732_v29  ;;  %v3165_v32 = vmul.f32 0.00390625, %v3164_v9 }
 0x616   :  { %v3166_v10 = vadd.f32 1e-05, %v3165_v32 }
 0x617   :  { %v3598_v26 = vpop.xlane.xlu1 %3597 }
 0x618   :  { %3969 = vrsqrt.f32 %v3166_v10  ;;  %v3599_v6 = vmul.f32 0.00390625, %v3598_v26 }
 0x61a   :  { %v3600_v30 = vadd.f32 1e-05, %v3599_v6 }
 0x61b   :  { %v3181_v46 = vpop.permute.xlu1 %3180 }
 0x61c   :  { %3971 = vrsqrt.f32 %v3600_v30  ;;  %v3182_v25 = vrot.slane %v3181_v46, 2 }
 0x61e   :  { %v3183_v5 = vsel %vm153_vm3, %v3181_v46, %v3182_v25 }
 0x621   :  { %v3968_v16 = vpop.eup %3967 }
 0x622   :  { %v2741_v31 = vrot.slane %v3968_v16, %v5082_v23 }
 0x624   :  { %v2743_v22 = vmul.f32 %v2741_v31, %v5936_v0 }
 0x625   :  { %v3970_v2 = vpop.eup %3969 }
 0x626   :  { %v2751_v60 = vadd.f32 %v2749_v48, %v2743_v22  ;;  %v3175_v49 = vrot.slane %v3970_v2, %v5082_v23 }
 0x628   :  { %v2752_v58 = vmax.f32 %v2751_v60, 0.0  ;;  %v3177_v33 = vmul.f32 %v3175_v49, %v5941_v24 }
 0x629   :  { %v3972_v18 = vpop.eup %3971 }
 0x62a   :  { %2754 = vst.msk [vmem:[#allocation15 + $0x6] sm:$0x3f] %vm5975_vm2, %v2752_v58  ;;  %v3185_v52 = vadd.f32 %v3183_v5, %v3177_v33  ;;  %v3609_v19 = vrot.slane %v3972_v18, %v5082_v23 }
 0x62c   :  { %v3186_v45 = vmax.f32 %v3185_v52, 0.0  ;;  %v3611_v0 = vmul.f32 %v3609_v19, %v5950_v50 }
 0x62e   :  { %3188 = vst.msk [vmem:[#allocation15 + $0xc] sm:$0x3f] %vm5975_vm2, %v3186_v45  ;;  %v3619_v20 = vadd.f32 %v3617_v51, %v3611_v0 }
 0x630   :  { %v3620_v24 = vmax.f32 %v3619_v20, 0.0 }
 0x632   :  { %3622 = vst.msk [vmem:[#allocation15 + $0x12] sm:$0x3f] %vm5975_vm2, %v3620_v24 }
 0x633   :  { %4077 = shalt.err (!%p4074_p6)
}
 0x634   :  { %3634 = dma.vmem_to_hbm [thread:$0]  %s3629_s15, 384, %s6008_s6, [#allocation5], %s4100_s3, %s4100_s3, %s4101_s29  }
 0x635   :  { %4096 = dma.done.wait [#allocation5], 384  }
 0x636   :  { %4097 = vsyncadd [#allocation5], 4294966912 }
 0x637   :  { %3638 = vsyncpa [#allocation4], 1 }
 0x638   :  { %3639 = vsyncpa [#allocation8], 1 }
 0x639   :  { %3640 = vsyncpa [#allocation5], 1 }
 0x63a   :  { %3641 = vsyncpa [#allocation6], 1 }
 0x63b   :  { %3642 = vsyncpa [#allocation11], 1 }
 0x63c   :  { %3643 = vsyncpa [#allocation14], 1 }

</bundles_post_ra>
